<compile_context>
chip_gen: v6e
topology: v6e:2x2x1
jax: 0.10.0
libtpu: 0.0.40
codegen_flags: <defaults>
</compile_context>

<pallas_src>
import functools

import numpy as np
import jax
import jax.numpy as jnp
from jax import lax
from jax.experimental import pallas as pl
from jax.experimental.pallas import tpu as pltpu

LANE = 128


# ------------------------------ small helpers -------------------------------

def _round_up(x, m):
    return ((x + m - 1) // m) * m


def _round_c(c):
    return max(LANE, _round_up(c, LANE))


def _pad_c(a, cp):
    c = a.shape[-1]
    if c == cp:
        return a
    pad = [(0, 0)] * (a.ndim - 1) + [(0, cp - c)]
    return jnp.pad(a, pad)


def _vmem_capacity():
    try:
        return int(pltpu.get_tpu_info().vmem_capacity_bytes)
    except Exception:                     # conservative (v7x) fallback
        return 64 << 20


def _pick_tile_h(Hp, N, d, need_even, est, budget):
    """Largest divisor of Hp fitting the VMEM budget; prefer >= 4 grid steps
    (megacore sharding / pipelining slack) when possible without th < d."""
    cands = [t for t in range(Hp, 0, -1)
             if Hp % t == 0 and (not need_even or t % 2 == 0)
             and (t == Hp or t >= d)]
    if not cands:
        cands = [Hp]
    fits = [t for t in cands if est(t) <= budget] or [cands[-1]]
    th = fits[0]
    for t in fits:
        if N * (Hp // t) >= 4:
            th = t
            break
    return th


def _prep_weight(w, real_cins, pads, cp_out):
    """(3,3,sum(real_cins),cout) HWIO -> (9*sum(pads), cp_out) bf16.
    K blocks ordered (dy, input, dx) to match the kernel's lhs concat."""
    cout = w.shape[-1]
    blocks = []
    for dy in range(3):
        off = 0
        for r, p in zip(real_cins, pads):
            for dx in range(3):
                blk = w[dy, dx, off:off + r, :]
                blocks.append(jnp.pad(blk, ((0, p - r), (0, cp_out - cout))))
            off += r
    return jnp.concatenate(blocks, axis=0).astype(jnp.bfloat16)


# --------------------------- fused ConvBlock kernel --------------------------

def _conv_kernel(*refs, d, th, W, h_real, Hp, cins, cp_out, pool, write_full,
                 has_res, n_t):
    n_in = len(cins)
    x_hbm = refs[:n_in]
    w_ref = refs[n_in]
    b_ref = refs[n_in + 1]
    pos = n_in + 2
    res_ref = None
    if has_res:
        res_ref = refs[pos]
        pos += 1
    n_out = int(write_full) + int(pool)
    out_refs = refs[pos:pos + n_out]
    xv = refs[pos + n_out:pos + n_out + n_in]
    sem = refs[pos + n_out + n_in]

    n = pl.program_id(0)
    t = pl.program_id(1)

    # --- halo-window DMA: flat HBM activation -> VMEM scratch (th+2d rows) ---
    top_src = jnp.maximum(t * th - d, 0)
    bot_src = jnp.clip((t + 1) * th, 0, max(Hp - d, 0))
    copies = []
    for i in range(n_in):
        cm = pltpu.make_async_copy(x_hbm[i].at[n, pl.ds(t * th, th)],
                                   xv[i].at[pl.ds(d, th)], sem.at[i, 0])
        ct = pltpu.make_async_copy(x_hbm[i].at[n, pl.ds(top_src, d)],
                                   xv[i].at[pl.ds(0, d)], sem.at[i, 1])
        cb = pltpu.make_async_copy(x_hbm[i].at[n, pl.ds(bot_src, d)],
                                   xv[i].at[pl.ds(th + d, d)], sem.at[i, 2])
        cm.start()

        @pl.when(t > 0)
        def _(ct=ct):
            ct.start()

        @pl.when(t < n_t - 1)
        def _(cb=cb):
            cb.start()

        copies.append((cm, ct, cb))

    # halo rows with no source (conv zero padding) are zeroed in VMEM
    for i in range(n_in):
        @pl.when(t == 0)
        def _(i=i):
            xv[i][0:d] = jnp.zeros((d, W, cins[i]), xv[i].dtype)

        @pl.when(t == n_t - 1)
        def _(i=i):
            xv[i][th + d:th + 2 * d] = jnp.zeros((d, W, cins[i]), xv[i].dtype)

    for (cm, ct, cb) in copies:
        cm.wait()

        @pl.when(t > 0)
        def _(ct=ct):
            ct.wait()

        @pl.when(t < n_t - 1)
        def _(cb=cb):
            cb.wait()

    # --- dx-shifted bands, built once per input (W halo folded in as zeros) ---
    bands = []
    for i, ci in enumerate(cins):
        xw = xv[i][...]                                   # (th+2d, W, ci) bf16
        z = jnp.zeros((th + 2 * d, d, ci), xw.dtype)
        left = jnp.concatenate([z, xw[:, :W - d, :]], axis=1)    # x[w-d]
        right = jnp.concatenate([xw[:, d:, :], z], axis=1)       # x[w+d]
        bands.append((left, xw, right))

    # --- one MXU matmul per dy row of taps: K = 3 * sum(Cpad) >= 384 ---
    ksub = 3 * sum(cins)
    acc = None
    for dy in range(3):
        slabs = []
        for i in range(n_in):
            for band in bands[i]:
                slabs.append(band[dy * d:dy * d + th])
        lhs = jnp.concatenate(slabs, axis=-1).reshape(th * W, ksub)
        part = jnp.dot(lhs, w_ref[dy * ksub:(dy + 1) * ksub, :],
                       preferred_element_type=jnp.float32)
        acc = part if acc is None else acc + part

    # --- epilogue: folded-BN bias + ReLU, row masking, residual, pooling ---
    y = jnp.maximum(acc + b_ref[...], 0.0).reshape(th, W, cp_out)
    if Hp > h_real:
        rows = t * th + lax.broadcasted_iota(jnp.int32, (th, 1, 1), 0)
        y = jnp.where(rows < h_real, y, 0.0)      # keep padded rows exactly 0
    if has_res:
        y = y + res_ref[0].astype(jnp.float32)

    oi = 0
    if write_full:
        out_refs[oi][0] = y.astype(out_refs[oi].dtype)
        oi += 1
    if pool:
        yp, Wp = y, W
        if W % 2:
            yp = jnp.concatenate(
                [yp, jnp.zeros((th, 1, cp_out), jnp.float32)], axis=1)
            Wp = W + 1
        yp = yp.reshape(th // 2, 2, Wp // 2, 2, cp_out)
        # ReLU output >= 0, so zero padding is max-neutral (ceil_mode pooling).
        out_refs[oi][0] = jnp.max(jnp.max(yp, axis=3), axis=1).astype(
            out_refs[oi].dtype)


def conv_block(xs, real_cins, w, b, dilation, *, h_real, pool=False,
               write_full=True, residual=None, out_dtype=jnp.bfloat16):
    """Conv3x3(dilation) + folded BN + ReLU (+ fused 2x2 ceil-maxpool,
    + fused residual add).  xs: NHWC bf16 maps with 128-padded channels and
    rows >= h_real zeroed; all xs share (N, Hp, W)."""
    d = dilation
    # pack small concat inputs into one lane-dense segment (halves decoder K)
    if len(xs) > 1 and _round_c(sum(real_cins)) < sum(x.shape[-1] for x in xs):
        packed = jnp.concatenate([x[..., :r] for x, r in zip(xs, real_cins)],
                                 axis=-1)
        xs = [_pad_c(packed, _round_c(sum(real_cins)))]
        real_cins = [sum(real_cins)]

    N, Hp, W = xs[0].shape[:3]
    pads = [int(x.shape[-1]) for x in xs]
    cout = w.shape[-1]
    cp_out = _round_c(cout)
    Wo = (W + 1) // 2
    out_isz = jnp.dtype(out_dtype).itemsize

    cap = _vmem_capacity()
    budget = int(cap * 0.40)                 # generation-aware (v7x: 64 MiB)

    def est(th):
        e = sum(4 * (th + 2 * d) * W * c * 2 for c in pads)   # window + 3 bands
        e += th * W * 3 * sum(pads) * 2                       # per-dy lhs
        e += 2 * th * W * cp_out * 4                          # acc + epilogue
        e += 2 * ((th * W * cp_out if write_full else 0)
                  + ((th // 2) * Wo * cp_out if pool else 0)) * out_isz
        e += 2 * 9 * sum(pads) * cp_out * 2 + cp_out * 4      # weight + bias
        if residual is not None:
            e += 2 * th * W * cp_out * 2
        return e

    th = _pick_tile_h(Hp, N, d, pool, est, budget)
    n_t = Hp // th

    wp = _prep_weight(w, real_cins, pads, cp_out)
    bp = jnp.pad(b, (0, cp_out - cout)).reshape(1, cp_out).astype(jnp.float32)

    inputs = list(xs) + [wp, bp]
    in_specs = [pl.BlockSpec(memory_space=pl.ANY) for _ in xs]
    in_specs += [pl.BlockSpec(wp.shape, lambda n, t: (0, 0)),
                 pl.BlockSpec((1, cp_out), lambda n, t: (0, 0))]
    if residual is not None:
        inputs.append(residual)
        in_specs.append(pl.BlockSpec((1, th, W, residual.shape[-1]),
                                     lambda n, t: (n, t, 0, 0)))

    out_shapes, out_specs = [], []
    if write_full:
        out_shapes.append(jax.ShapeDtypeStruct((N, Hp, W, cp_out), out_dtype))
        out_specs.append(pl.BlockSpec((1, th, W, cp_out),
                                      lambda n, t: (n, t, 0, 0)))
    if pool:
        out_shapes.append(jax.ShapeDtypeStruct((N, Hp // 2, Wo, cp_out),
                                               out_dtype))
        out_specs.append(pl.BlockSpec((1, th // 2, Wo, cp_out),
                                      lambda n, t: (n, t, 0, 0)))

    scratch = [pltpu.VMEM((th + 2 * d, W, c), jnp.bfloat16) for c in pads]
    scratch.append(pltpu.SemaphoreType.DMA((len(pads), 3)))

    vmem_limit = int(min(max(int(est(th) * 1.5) + (8 << 20), 32 << 20),
                         int(cap * 0.9)))

    bytes_acc = (sum(int(np.prod(x.shape)) * 2 for x in xs)
                 + int(np.prod(wp.shape)) * 2 + cp_out * 4
                 + sum(int(np.prod(s.shape)) * jnp.dtype(s.dtype).itemsize
                       for s in out_shapes)
                 + (int(np.prod(residual.shape)) * 2
                    if residual is not None else 0))
    cost = pl.CostEstimate(flops=int(2 * N * Hp * W * 9 * sum(pads) * cp_out),
                           transcendentals=0, bytes_accessed=int(bytes_acc))

    kernel = functools.partial(
        _conv_kernel, d=d, th=th, W=W, h_real=h_real, Hp=Hp, cins=tuple(pads),
        cp_out=cp_out, pool=pool, write_full=write_full,
        has_res=residual is not None, n_t=n_t)

    outs = pl.pallas_call(
        kernel,
        out_shape=tuple(out_shapes),
        grid=(N, n_t),
        in_specs=in_specs,
        out_specs=tuple(out_specs),
        scratch_shapes=scratch,
        compiler_params=pltpu.CompilerParams(
            dimension_semantics=("parallel", "parallel"),
            vmem_limit_bytes=vmem_limit),
        cost_estimate=cost,
    )(*inputs)
    if not isinstance(outs, (tuple, list)):
        outs = (outs,)
    # No [:, :H] trims: padded rows are zeroed in-kernel and consumed as-is.
    return outs[0] if len(outs) == 1 else tuple(outs)


# ------------------------ bilinear upsample (two MXU passes) ------------------

def _interp_matrix(out_size, in_size):
    """PyTorch-exact bilinear (align_corners=False) interpolation weights."""
    scale = in_size / out_size
    i = np.arange(out_size)
    src = np.maximum(scale * (i + 0.5) - 0.5, 0.0)
    i0 = np.minimum(np.floor(src).astype(np.int64), in_size - 1)
    i1 = np.minimum(i0 + 1, in_size - 1)
    l1 = src - i0
    l0 = 1.0 - l1
    M = np.zeros((out_size, in_size), np.float32)
    M[np.arange(out_size), i0] += l0.astype(np.float32)
    M[np.arange(out_size), i1] += l1.astype(np.float32)
    return M


def _rowinterp_kernel(a_ref, x_ref, o_ref, *, w_in):
    a = a_ref[...]                                        # (hp_out, hp_in) f32
    cols = [jnp.dot(a, x_ref[0, :, q, :], preferred_element_type=jnp.float32)
            for q in range(w_in)]                         # MXU, contract H
    o_ref[0] = jnp.stack(cols, axis=1).astype(o_ref.dtype)


def _colinterp_kernel(bw_ref, t_ref, o_ref, *, ti):
    bw = bw_ref[...]                                      # (ow, w_in) f32
    rows = [jnp.dot(bw, t_ref[0, r], preferred_element_type=jnp.float32)
            for r in range(ti)]                           # MXU, contract W
    o_ref[0] = jnp.stack(rows, axis=0).astype(o_ref.dtype)


def bilinear_upsample(x, *, h_in, oh, ow, hp_out):
    """F.interpolate(mode='bilinear', align_corners=False).  x: (N, hp_in,
    w_in, Cpad) bf16 with rows >= h_in zero; returns (N, hp_out, ow, Cpad)
    bf16 with rows >= oh zero.  Both directions run as MXU contractions."""
    N, hp_in, w_in, Cp = x.shape
    if (oh, ow, hp_out) == (h_in, w_in, hp_in):
        return x                                          # identity -> skipped

    A = np.zeros((hp_out, hp_in), np.float32)
    A[:oh, :h_in] = _interp_matrix(oh, h_in)
    A = jnp.asarray(A)
    Bw = jnp.asarray(_interp_matrix(ow, w_in), jnp.float32)

    cap = _vmem_capacity()

    def _lim(per_step):
        return int(min(max(per_step * 3 + (8 << 20), 32 << 20), int(cap * 0.9)))

    # 1) row interpolation (per image), f32 intermediate for accuracy
    t_inter = pl.pallas_call(
        functools.partial(_rowinterp_kernel, w_in=w_in),
        out_shape=jax.ShapeDtypeStruct((N, hp_out, w_in, Cp), jnp.float32),
        grid=(N,),
        in_specs=[pl.BlockSpec((hp_out, hp_in), lambda n: (0, 0)),
                  pl.BlockSpec((1, hp_in, w_in, Cp), lambda n: (n, 0, 0, 0))],
        out_specs=pl.BlockSpec((1, hp_out, w_in, Cp), lambda n: (n, 0, 0, 0)),
        compiler_params=pltpu.CompilerParams(
            dimension_semantics=("parallel",),
            vmem_limit_bytes=_lim((hp_out + hp_in) * w_in * Cp * 4)),
    )(A, x)

    # 2) column interpolation, row-tiled for grid parallelism
    divs = [t for t in range(min(hp_out, 16), 0, -1) if hp_out % t == 0]
    ti = divs[0]
    for t in divs:
        if N * (hp_out // t) >= 4:
            ti = t
            break
    out = pl.pallas_call(
        functools.partial(_colinterp_kernel, ti=ti),
        out_shape=jax.ShapeDtypeStruct((N, hp_out, ow, Cp), jnp.bfloat16),
        grid=(N, hp_out // ti),
        in_specs=[pl.BlockSpec((ow, w_in), lambda n, r: (0, 0)),
                  pl.BlockSpec((1, ti, w_in, Cp), lambda n, r: (n, r, 0, 0))],
        out_specs=pl.BlockSpec((1, ti, ow, Cp), lambda n, r: (n, r, 0, 0)),
        compiler_params=pltpu.CompilerParams(
            dimension_semantics=("parallel", "parallel"),
            vmem_limit_bytes=_lim(ti * (w_in + ow) * Cp * 4)),
    )(Bw, t_inter)
    return out


# --------------------------------- parameters --------------------------------

def init_convblock(key, cin, cout):
    """Deterministic ConvBlock params; BatchNorm (eval) folded into conv."""
    k1, k2, k3, k4, k5, k6 = jax.random.split(key, 6)
    w = 0.1 * jax.random.normal(k1, (3, 3, cin, cout), jnp.float32)   # HWIO
    b = 0.1 * jax.random.normal(k2, (cout,), jnp.float32)
    gamma = 1.0 + 0.1 * jax.random.normal(k3, (cout,), jnp.float32)
    beta = 0.1 * jax.random.normal(k4, (cout,), jnp.float32)
    r_mean = 0.1 * jax.random.normal(k5, (cout,), jnp.float32)
    r_var = 1.0 + 0.1 * jnp.abs(jax.random.normal(k6, (cout,), jnp.float32))
    eps = 1e-5
    scale = gamma / jnp.sqrt(r_var + eps)
    return w * scale, (b - r_mean) * scale + beta


def init_rsu4_params(key, cin, cmid, cout):
    ks = jax.random.split(key, 8)
    return {
        'enconv1': init_convblock(ks[0], cin, cout),
        'enconv2': init_convblock(ks[1], cout, cmid),
        'enconv3': init_convblock(ks[2], cmid, cmid),
        'enconv4': init_convblock(ks[3], cmid, cmid),
        'enconv5': init_convblock(ks[4], cmid, cmid),
        'deconv1': init_convblock(ks[5], 2 * cmid, cmid),
        'deconv2': init_convblock(ks[6], 2 * cmid, cmid),
        'deconv3': init_convblock(ks[7], 2 * cmid, cout),
    }


# -------------------------------- RSU4 forward --------------------------------

def rsu4_forward(x_nchw, params):
    p = params
    x = jnp.transpose(x_nchw, (0, 2, 3, 1)).astype(jnp.float32)   # NCHW -> NHWC
    N, H, W, cin = x.shape
    cout = p['enconv1'][0].shape[-1]
    cmid = p['enconv2'][0].shape[-1]

    # padded-height chain: Hp0 % 4 == 0 so pooled maps tile exactly and no
    # intermediate activation is ever re-staged or trimmed in HBM.
    Hp0 = _round_up(H, 4)
    h1 = (H + 1) // 2
    h2 = (h1 + 1) // 2

    xb = jnp.pad(x, ((0, 0), (0, Hp0 - H), (0, 0),
                     (0, _round_c(cin) - cin))).astype(jnp.bfloat16)

    out1 = conv_block([xb], [cin], *p['enconv1'], 1, h_real=H)
    out2, out2_1 = conv_block([out1], [cout], *p['enconv2'], 1, h_real=H,
                              pool=True)
    out3 = conv_block([out2_1], [cmid], *p['enconv3'], 1, h_real=h1, pool=True,
                      write_full=False)        # only the pooled map is used
    out4 = conv_block([out3], [cmid], *p['enconv4'], 1, h_real=h2)
    out5 = conv_block([out4], [cmid], *p['enconv5'], 2, h_real=h2)
    out6 = conv_block([out5, out4], [cmid, cmid], *p['deconv1'], 1, h_real=h2)
    # Upsample(out6, out3): identical spatial size in this module -> skipped.
    out7 = conv_block([out6, out3], [cmid, cmid], *p['deconv2'], 1, h_real=h2)
    out7u = bilinear_upsample(out7, h_in=h2, oh=H, ow=W, hp_out=Hp0)
    out9 = conv_block([out7u, out2], [cmid, cmid], *p['deconv3'], 1, h_real=H,
                      residual=out1, out_dtype=jnp.float32)   # residual fused
    return jnp.transpose(out9[:, :H, :, :cout], (0, 3, 1, 2))


# --------------------------- pure-JAX reference (check) -----------------------

def _conv_ref(x, w, b, d):
    y = lax.conv_general_dilated(
        x, w, window_strides=(1, 1), padding=((d, d), (d, d)),
        rhs_dilation=(d, d), dimension_numbers=('NHWC', 'HWIO', 'NHWC'))
    return jnp.maximum(y + b, 0.0)


def _maxpool_ref(x):
    N, H, W, C = x.shape
    Ho, Wo = -(-H // 2), -(-W // 2)
    xp = jnp.pad(x, ((0, 0), (0, 2 * Ho - H), (0, 2 * Wo - W), (0, 0)),
                 constant_values=-jnp.inf)
    return lax.reduce_window(xp, -jnp.inf, lax.max, (1, 2, 2, 1), (1, 2, 2, 1),
                             'VALID')


def _upsample_ref(x, oh, ow):
    A = jnp.asarray(_interp_matrix(oh, x.shape[1]))
    Bw = jnp.asarray(_interp_matrix(ow, x.shape[2]))
    return jnp.einsum('ip,jq,npqc->nijc', A, Bw, x)


def rsu4_ref(x_nchw, params):
    p = params
    x = jnp.transpose(x_nchw, (0, 2, 3, 1)).astype(jnp.float32)
    out1 = _conv_ref(x, *p['enconv1'], 1)
    out2 = _conv_ref(out1, *p['enconv2'], 1)
    out2_1 = _maxpool_ref(out2)
    out3 = _conv_ref(out2_1, *p['enconv3'], 1)
    out3 = _maxpool_ref(out3)
    out4 = _conv_ref(out3, *p['enconv4'], 1)
    out5 = _conv_ref(out4, *p['enconv5'], 2)
    out6 = _conv_ref(jnp.concatenate([out5, out4], -1), *p['deconv1'], 1)
    out6 = _upsample_ref(out6, out3.shape[1], out3.shape[2])
    out7 = _conv_ref(jnp.concatenate([out6, out3], -1), *p['deconv2'], 1)
    out7 = _upsample_ref(out7, out2.shape[1], out2.shape[2])
    out9 = _conv_ref(jnp.concatenate([out7, out2], -1), *p['deconv3'], 1)
    return jnp.transpose(out9 + out1, (0, 3, 1, 2))


# ------------------------------------ main ------------------------------------

if __name__ == "__main__":
    key = jax.random.PRNGKey(0)
    kx, kp = jax.random.split(key)

    N, Cin, H, W = 2, 4, 16, 16
    Cmid, Cout = 8, 4

    x = jax.random.normal(kx, (N, Cin, H, W), jnp.float32)
    params = init_rsu4_params(kp, Cin, Cmid, Cout)

    out = jax.block_until_ready(jax.jit(rsu4_forward)(x, params))
    assert out.shape == (N, Cout, H, W), out.shape

    ref = jax.block_until_ready(rsu4_ref(x, params))
    # Tolerance covers bf16 storage of activations/weights (f32 accumulation).
    if not np.allclose(np.asarray(out), np.asarray(ref), rtol=5e-2, atol=5e-2):
        raise AssertionError(
            "mismatch vs reference, max abs diff = %e"
            % float(np.max(np.abs(np.asarray(out) - np.asarray(ref)))))

    print("KERNEL_OK")
</pallas_src>

<mosaic_0001>
module attributes {stable_mosaic.version = 11 : i64} {
  func.func @_conv_kernel(%arg0: i32, %arg1: i32, %arg2: memref<2x16x16x128xbf16, #tpu.memory_space<any>>, %arg3: memref<1152x128xbf16, #tpu.memory_space<vmem>>, %arg4: memref<1x128xf32, #tpu.memory_space<vmem>>, %arg5: memref<1x8x16x128xbf16, #tpu.memory_space<vmem>>, %arg6: memref<10x16x128xbf16, #tpu.memory_space<vmem>>, %arg7: memref<1x3x!tpu.dma_semaphore, #tpu.memory_space<semaphore_mem>>) attributes {dimension_semantics = [#tpu.dimension_semantics<parallel>, #tpu.dimension_semantics<parallel>], iteration_bounds = array<i64: 2, 2>, scalar_prefetch = 0 : i64, scratch_operands = 2 : i64, tpu.core_type = #tpu.core_type<tc>, window_params = [{}, {pipeline_mode = #tpu.pipeline_mode<synchronous>, transform_indices = @transform_1, window_bounds = array<i64: 1152, 128>}, {pipeline_mode = #tpu.pipeline_mode<synchronous>, transform_indices = @transform_2, window_bounds = array<i64: 1, 128>}, {transform_indices = @transform_3, window_bounds = array<i64: 1, 8, 16, 128>}]} {
    %c8_i32 = arith.constant 8 : i32
    %0 = arith.muli %arg1, %c8_i32 : i32
    %c1_i32 = arith.constant 1 : i32
    %1 = arith.subi %0, %c1_i32 : i32
    %c0_i32 = arith.constant 0 : i32
    %2 = arith.maxsi %1, %c0_i32 : i32
    %c1_i32_0 = arith.constant 1 : i32
    %3 = arith.addi %arg1, %c1_i32_0 : i32
    %c8_i32_1 = arith.constant 8 : i32
    %4 = arith.muli %3, %c8_i32_1 : i32
    %c0_i32_2 = arith.constant 0 : i32
    %c15_i32 = arith.constant 15 : i32
    %5 = arith.maxsi %c0_i32_2, %4 : i32
    %6 = arith.minsi %c15_i32, %5 : i32
    %c8_i32_3 = arith.constant 8 : i32
    %7 = arith.muli %arg1, %c8_i32_3 : i32
    %c0_i32_4 = arith.constant 0 : i32
    %c0_i32_5 = arith.constant 0 : i32
    %c0_i32_6 = arith.constant 0 : i32
    %c0_i32_7 = arith.constant 0 : i32
    %8 = tpu.memref_slice %arg2[%arg0, %7, %c0_i32_6, %c0_i32_7] : memref<2x16x16x128xbf16, #tpu.memory_space<any>> -> memref<1x8x16x128xbf16, #tpu.memory_space<any>>
    %9 = tpu.memref_squeeze %8 : memref<1x8x16x128xbf16, #tpu.memory_space<any>> -> memref<8x16x128xbf16, #tpu.memory_space<any>>
    %c1_i32_8 = arith.constant 1 : i32
    %c0_i32_9 = arith.constant 0 : i32
    %c0_i32_10 = arith.constant 0 : i32
    %10 = tpu.memref_slice %arg6[%c1_i32_8, %c0_i32_9, %c0_i32_10] : memref<10x16x128xbf16, #tpu.memory_space<vmem>> -> memref<8x16x128xbf16, #tpu.memory_space<vmem>>
    %11 = tpu.memref_slice %arg7[%c0_i32_4, %c0_i32_5] : memref<1x3x!tpu.dma_semaphore, #tpu.memory_space<semaphore_mem>> -> memref<1x1x!tpu.dma_semaphore, #tpu.memory_space<semaphore_mem>>
    %12 = tpu.memref_squeeze %11 : memref<1x1x!tpu.dma_semaphore, #tpu.memory_space<semaphore_mem>> -> memref<!tpu.dma_semaphore, #tpu.memory_space<semaphore_mem>>
    tpu.enqueue_dma source(%9 : memref<8x16x128xbf16, #tpu.memory_space<any>>) target(%10 : memref<8x16x128xbf16, #tpu.memory_space<vmem>>) target_semaphore(%12 : memref<!tpu.dma_semaphore, #tpu.memory_space<semaphore_mem>>)
    %c0_i32_11 = arith.constant 0 : i32
    %13 = arith.cmpi sgt, %arg1, %c0_i32_11 : i32
    %14 = arith.extui %13 : i1 to i32
    %c0_i32_12 = arith.constant 0 : i32
    %c1_i32_13 = arith.constant 1 : i32
    %c0_i32_14 = arith.constant 0 : i32
    %15 = arith.cmpi ne, %14, %c0_i32_14 : i32
    scf.if %15 {
      %c0_i32_53 = arith.constant 0 : i32
      %c0_i32_54 = arith.constant 0 : i32
      %75 = tpu.memref_slice %arg2[%arg0, %2, %c0_i32_53, %c0_i32_54] : memref<2x16x16x128xbf16, #tpu.memory_space<any>> -> memref<1x1x16x128xbf16, #tpu.memory_space<any>>
      %76 = tpu.memref_squeeze %75 : memref<1x1x16x128xbf16, #tpu.memory_space<any>> -> memref<1x16x128xbf16, #tpu.memory_space<any>>
      %c0_i32_55 = arith.constant 0 : i32
      %c0_i32_56 = arith.constant 0 : i32
      %c0_i32_57 = arith.constant 0 : i32
      %77 = tpu.memref_slice %arg6[%c0_i32_55, %c0_i32_56, %c0_i32_57] : memref<10x16x128xbf16, #tpu.memory_space<vmem>> -> memref<1x16x128xbf16, #tpu.memory_space<vmem>>
      %78 = tpu.memref_slice %arg7[%c0_i32_12, %c1_i32_13] : memref<1x3x!tpu.dma_semaphore, #tpu.memory_space<semaphore_mem>> -> memref<1x1x!tpu.dma_semaphore, #tpu.memory_space<semaphore_mem>>
      %79 = tpu.memref_squeeze %78 : memref<1x1x!tpu.dma_semaphore, #tpu.memory_space<semaphore_mem>> -> memref<!tpu.dma_semaphore, #tpu.memory_space<semaphore_mem>>
      tpu.enqueue_dma source(%76 : memref<1x16x128xbf16, #tpu.memory_space<any>>) target(%77 : memref<1x16x128xbf16, #tpu.memory_space<vmem>>) target_semaphore(%79 : memref<!tpu.dma_semaphore, #tpu.memory_space<semaphore_mem>>)
    } else {
    }
    %c1_i32_15 = arith.constant 1 : i32
    %16 = arith.cmpi slt, %arg1, %c1_i32_15 : i32
    %17 = arith.extui %16 : i1 to i32
    %c0_i32_16 = arith.constant 0 : i32
    %c2_i32 = arith.constant 2 : i32
    %c0_i32_17 = arith.constant 0 : i32
    %18 = arith.cmpi ne, %17, %c0_i32_17 : i32
    scf.if %18 {
      %c0_i32_53 = arith.constant 0 : i32
      %c0_i32_54 = arith.constant 0 : i32
      %75 = tpu.memref_slice %arg2[%arg0, %6, %c0_i32_53, %c0_i32_54] : memref<2x16x16x128xbf16, #tpu.memory_space<any>> -> memref<1x1x16x128xbf16, #tpu.memory_space<any>>
      %76 = tpu.memref_squeeze %75 : memref<1x1x16x128xbf16, #tpu.memory_space<any>> -> memref<1x16x128xbf16, #tpu.memory_space<any>>
      %c9_i32 = arith.constant 9 : i32
      %c0_i32_55 = arith.constant 0 : i32
      %c0_i32_56 = arith.constant 0 : i32
      %77 = tpu.memref_slice %arg6[%c9_i32, %c0_i32_55, %c0_i32_56] : memref<10x16x128xbf16, #tpu.memory_space<vmem>> -> memref<1x16x128xbf16, #tpu.memory_space<vmem>>
      %78 = tpu.memref_slice %arg7[%c0_i32_16, %c2_i32] : memref<1x3x!tpu.dma_semaphore, #tpu.memory_space<semaphore_mem>> -> memref<1x1x!tpu.dma_semaphore, #tpu.memory_space<semaphore_mem>>
      %79 = tpu.memref_squeeze %78 : memref<1x1x!tpu.dma_semaphore, #tpu.memory_space<semaphore_mem>> -> memref<!tpu.dma_semaphore, #tpu.memory_space<semaphore_mem>>
      tpu.enqueue_dma source(%76 : memref<1x16x128xbf16, #tpu.memory_space<any>>) target(%77 : memref<1x16x128xbf16, #tpu.memory_space<vmem>>) target_semaphore(%79 : memref<!tpu.dma_semaphore, #tpu.memory_space<semaphore_mem>>)
    } else {
    }
    %c0_i32_18 = arith.constant 0 : i32
    %19 = arith.cmpi eq, %arg1, %c0_i32_18 : i32
    %20 = arith.extui %19 : i1 to i32
    %c0_i32_19 = arith.constant 0 : i32
    %21 = arith.cmpi ne, %20, %c0_i32_19 : i32
    scf.if %21 {
      %cst_53 = arith.constant 0.000000e+00 : bf16
      %75 = vector.broadcast %cst_53 : bf16 to vector<1x16x128xbf16>
      %c0_54 = arith.constant 0 : index
      %c0_55 = arith.constant 0 : index
      %c0_56 = arith.constant 0 : index
      %76 = vector.load %arg6[%c0_54, %c0_55, %c0_56] : memref<10x16x128xbf16, #tpu.memory_space<vmem>>, vector<1x16x128xbf16>
      tpu.vector_store %arg6[%c0_54, %c0_55, %c0_56], %75 {strides = array<i32>} : memref<10x16x128xbf16, #tpu.memory_space<vmem>>, vector<1x16x128xbf16>,
    } else {
    }
    %c1_i32_20 = arith.constant 1 : i32
    %22 = arith.cmpi eq, %arg1, %c1_i32_20 : i32
    %23 = arith.extui %22 : i1 to i32
    %c0_i32_21 = arith.constant 0 : i32
    %24 = arith.cmpi ne, %23, %c0_i32_21 : i32
    scf.if %24 {
      %cst_53 = arith.constant 0.000000e+00 : bf16
      %75 = vector.broadcast %cst_53 : bf16 to vector<1x16x128xbf16>
      %c9 = arith.constant 9 : index
      %c0_54 = arith.constant 0 : index
      %c0_55 = arith.constant 0 : index
      %76 = vector.load %arg6[%c9, %c0_54, %c0_55] : memref<10x16x128xbf16, #tpu.memory_space<vmem>>, vector<1x16x128xbf16>
      tpu.vector_store %arg6[%c9, %c0_54, %c0_55], %75 {strides = array<i32>} : memref<10x16x128xbf16, #tpu.memory_space<vmem>>, vector<1x16x128xbf16>,
    } else {
    }
    %c0_i32_22 = arith.constant 0 : i32
    %c0_i32_23 = arith.constant 0 : i32
    %c0_i32_24 = arith.constant 0 : i32
    %c0_i32_25 = arith.constant 0 : i32
    %25 = tpu.memref_slice %arg2[%arg0, %7, %c0_i32_24, %c0_i32_25] : memref<2x16x16x128xbf16, #tpu.memory_space<any>> -> memref<1x8x16x128xbf16, #tpu.memory_space<any>>
    %26 = tpu.memref_squeeze %25 : memref<1x8x16x128xbf16, #tpu.memory_space<any>> -> memref<8x16x128xbf16, #tpu.memory_space<any>>
    %c1_i32_26 = arith.constant 1 : i32
    %c0_i32_27 = arith.constant 0 : i32
    %c0_i32_28 = arith.constant 0 : i32
    %27 = tpu.memref_slice %arg6[%c1_i32_26, %c0_i32_27, %c0_i32_28] : memref<10x16x128xbf16, #tpu.memory_space<vmem>> -> memref<8x16x128xbf16, #tpu.memory_space<vmem>>
    %28 = tpu.memref_slice %arg7[%c0_i32_22, %c0_i32_23] : memref<1x3x!tpu.dma_semaphore, #tpu.memory_space<semaphore_mem>> -> memref<1x1x!tpu.dma_semaphore, #tpu.memory_space<semaphore_mem>>
    %29 = tpu.memref_squeeze %28 : memref<1x1x!tpu.dma_semaphore, #tpu.memory_space<semaphore_mem>> -> memref<!tpu.dma_semaphore, #tpu.memory_space<semaphore_mem>>
    tpu.wait_dma2 semaphore(%29 : memref<!tpu.dma_semaphore, #tpu.memory_space<semaphore_mem>>) src(%26 : memref<8x16x128xbf16, #tpu.memory_space<any>>) dst(%27 : memref<8x16x128xbf16, #tpu.memory_space<vmem>>)
    %c0_i32_29 = arith.constant 0 : i32
    %30 = arith.cmpi sgt, %arg1, %c0_i32_29 : i32
    %31 = arith.extui %30 : i1 to i32
    %c0_i32_30 = arith.constant 0 : i32
    %c1_i32_31 = arith.constant 1 : i32
    %c0_i32_32 = arith.constant 0 : i32
    %32 = arith.cmpi ne, %31, %c0_i32_32 : i32
    scf.if %32 {
      %c0_i32_53 = arith.constant 0 : i32
      %c0_i32_54 = arith.constant 0 : i32
      %75 = tpu.memref_slice %arg2[%arg0, %2, %c0_i32_53, %c0_i32_54] : memref<2x16x16x128xbf16, #tpu.memory_space<any>> -> memref<1x1x16x128xbf16, #tpu.memory_space<any>>
      %76 = tpu.memref_squeeze %75 : memref<1x1x16x128xbf16, #tpu.memory_space<any>> -> memref<1x16x128xbf16, #tpu.memory_space<any>>
      %c0_i32_55 = arith.constant 0 : i32
      %c0_i32_56 = arith.constant 0 : i32
      %c0_i32_57 = arith.constant 0 : i32
      %77 = tpu.memref_slice %arg6[%c0_i32_55, %c0_i32_56, %c0_i32_57] : memref<10x16x128xbf16, #tpu.memory_space<vmem>> -> memref<1x16x128xbf16, #tpu.memory_space<vmem>>
      %78 = tpu.memref_slice %arg7[%c0_i32_30, %c1_i32_31] : memref<1x3x!tpu.dma_semaphore, #tpu.memory_space<semaphore_mem>> -> memref<1x1x!tpu.dma_semaphore, #tpu.memory_space<semaphore_mem>>
      %79 = tpu.memref_squeeze %78 : memref<1x1x!tpu.dma_semaphore, #tpu.memory_space<semaphore_mem>> -> memref<!tpu.dma_semaphore, #tpu.memory_space<semaphore_mem>>
      tpu.wait_dma2 semaphore(%79 : memref<!tpu.dma_semaphore, #tpu.memory_space<semaphore_mem>>) src(%76 : memref<1x16x128xbf16, #tpu.memory_space<any>>) dst(%77 : memref<1x16x128xbf16, #tpu.memory_space<vmem>>)
    } else {
    }
    %c1_i32_33 = arith.constant 1 : i32
    %33 = arith.cmpi slt, %arg1, %c1_i32_33 : i32
    %34 = arith.extui %33 : i1 to i32
    %c0_i32_34 = arith.constant 0 : i32
    %c2_i32_35 = arith.constant 2 : i32
    %c0_i32_36 = arith.constant 0 : i32
    %35 = arith.cmpi ne, %34, %c0_i32_36 : i32
    scf.if %35 {
      %c0_i32_53 = arith.constant 0 : i32
      %c0_i32_54 = arith.constant 0 : i32
      %75 = tpu.memref_slice %arg2[%arg0, %6, %c0_i32_53, %c0_i32_54] : memref<2x16x16x128xbf16, #tpu.memory_space<any>> -> memref<1x1x16x128xbf16, #tpu.memory_space<any>>
      %76 = tpu.memref_squeeze %75 : memref<1x1x16x128xbf16, #tpu.memory_space<any>> -> memref<1x16x128xbf16, #tpu.memory_space<any>>
      %c9_i32 = arith.constant 9 : i32
      %c0_i32_55 = arith.constant 0 : i32
      %c0_i32_56 = arith.constant 0 : i32
      %77 = tpu.memref_slice %arg6[%c9_i32, %c0_i32_55, %c0_i32_56] : memref<10x16x128xbf16, #tpu.memory_space<vmem>> -> memref<1x16x128xbf16, #tpu.memory_space<vmem>>
      %78 = tpu.memref_slice %arg7[%c0_i32_34, %c2_i32_35] : memref<1x3x!tpu.dma_semaphore, #tpu.memory_space<semaphore_mem>> -> memref<1x1x!tpu.dma_semaphore, #tpu.memory_space<semaphore_mem>>
      %79 = tpu.memref_squeeze %78 : memref<1x1x!tpu.dma_semaphore, #tpu.memory_space<semaphore_mem>> -> memref<!tpu.dma_semaphore, #tpu.memory_space<semaphore_mem>>
      tpu.wait_dma2 semaphore(%79 : memref<!tpu.dma_semaphore, #tpu.memory_space<semaphore_mem>>) src(%76 : memref<1x16x128xbf16, #tpu.memory_space<any>>) dst(%77 : memref<1x16x128xbf16, #tpu.memory_space<vmem>>)
    } else {
    }
    %c0 = arith.constant 0 : index
    %c0_37 = arith.constant 0 : index
    %c0_38 = arith.constant 0 : index
    %36 = vector.load %arg6[%c0, %c0_37, %c0_38] : memref<10x16x128xbf16, #tpu.memory_space<vmem>>, vector<10x16x128xbf16>
    %cst = arith.constant 0.000000e+00 : bf16
    %37 = vector.broadcast %cst : bf16 to vector<10x1x128xbf16>
    %38 = vector.extract_strided_slice %36 {offsets = [0, 0, 0], sizes = [10, 15, 128], strides = [1, 1, 1]} : vector<10x16x128xbf16> to vector<10x15x128xbf16>
    %39 = tpu.concatenate %37, %38 in 1 : vector<10x1x128xbf16>, vector<10x15x128xbf16> -> vector<10x16x128xbf16>
    %40 = vector.extract_strided_slice %36 {offsets = [0, 1, 0], sizes = [10, 15, 128], strides = [1, 1, 1]} : vector<10x16x128xbf16> to vector<10x15x128xbf16>
    %41 = tpu.concatenate %40, %37 in 1 : vector<10x15x128xbf16>, vector<10x1x128xbf16> -> vector<10x16x128xbf16>
    %42 = vector.extract_strided_slice %39 {offsets = [0, 0, 0], sizes = [8, 16, 128], strides = [1, 1, 1]} : vector<10x16x128xbf16> to vector<8x16x128xbf16>
    %43 = vector.extract_strided_slice %36 {offsets = [0, 0, 0], sizes = [8, 16, 128], strides = [1, 1, 1]} : vector<10x16x128xbf16> to vector<8x16x128xbf16>
    %44 = vector.extract_strided_slice %41 {offsets = [0, 0, 0], sizes = [8, 16, 128], strides = [1, 1, 1]} : vector<10x16x128xbf16> to vector<8x16x128xbf16>
    %45 = tpu.concatenate %42, %43, %44 in 2 : vector<8x16x128xbf16>, vector<8x16x128xbf16>, vector<8x16x128xbf16> -> vector<8x16x384xbf16>
    %46 = vector.shape_cast %45 : vector<8x16x384xbf16> to vector<128x384xbf16>
    %c0_39 = arith.constant 0 : index
    %c0_40 = arith.constant 0 : index
    %47 = vector.load %arg3[%c0_39, %c0_40] : memref<1152x128xbf16, #tpu.memory_space<vmem>>, vector<384x128xbf16>
    %cst_41 = arith.constant dense<0.000000e+00> : vector<128x128xf32>
    %48 = tpu.matmul %46, %47, %cst_41 {dimension_numbers = #tpu.dot_dimension_numbers<[1], [0], [0], [1], [0, 0, 1, 1], [], []>} : vector<128x384xbf16>, vector<384x128xbf16>, vector<128x128xf32> -> vector<128x128xf32>
    %49 = vector.extract_strided_slice %39 {offsets = [1, 0, 0], sizes = [8, 16, 128], strides = [1, 1, 1]} : vector<10x16x128xbf16> to vector<8x16x128xbf16>
    %50 = vector.extract_strided_slice %36 {offsets = [1, 0, 0], sizes = [8, 16, 128], strides = [1, 1, 1]} : vector<10x16x128xbf16> to vector<8x16x128xbf16>
    %51 = vector.extract_strided_slice %41 {offsets = [1, 0, 0], sizes = [8, 16, 128], strides = [1, 1, 1]} : vector<10x16x128xbf16> to vector<8x16x128xbf16>
    %52 = tpu.concatenate %49, %50, %51 in 2 : vector<8x16x128xbf16>, vector<8x16x128xbf16>, vector<8x16x128xbf16> -> vector<8x16x384xbf16>
    %53 = vector.shape_cast %52 : vector<8x16x384xbf16> to vector<128x384xbf16>
    %c384 = arith.constant 384 : index
    %c0_42 = arith.constant 0 : index
    %54 = vector.load %arg3[%c384, %c0_42] : memref<1152x128xbf16, #tpu.memory_space<vmem>>, vector<384x128xbf16>
    %cst_43 = arith.constant dense<0.000000e+00> : vector<128x128xf32>
    %55 = tpu.matmul %53, %54, %cst_43 {dimension_numbers = #tpu.dot_dimension_numbers<[1], [0], [0], [1], [0, 0, 1, 1], [], []>} : vector<128x384xbf16>, vector<384x128xbf16>, vector<128x128xf32> -> vector<128x128xf32>
    %56 = arith.addf %48, %55 : vector<128x128xf32>
    %57 = vector.extract_strided_slice %39 {offsets = [2, 0, 0], sizes = [8, 16, 128], strides = [1, 1, 1]} : vector<10x16x128xbf16> to vector<8x16x128xbf16>
    %58 = vector.extract_strided_slice %36 {offsets = [2, 0, 0], sizes = [8, 16, 128], strides = [1, 1, 1]} : vector<10x16x128xbf16> to vector<8x16x128xbf16>
    %59 = vector.extract_strided_slice %41 {offsets = [2, 0, 0], sizes = [8, 16, 128], strides = [1, 1, 1]} : vector<10x16x128xbf16> to vector<8x16x128xbf16>
    %60 = tpu.concatenate %57, %58, %59 in 2 : vector<8x16x128xbf16>, vector<8x16x128xbf16>, vector<8x16x128xbf16> -> vector<8x16x384xbf16>
    %61 = vector.shape_cast %60 : vector<8x16x384xbf16> to vector<128x384xbf16>
    %c768 = arith.constant 768 : index
    %c0_44 = arith.constant 0 : index
    %62 = vector.load %arg3[%c768, %c0_44] : memref<1152x128xbf16, #tpu.memory_space<vmem>>, vector<384x128xbf16>
    %cst_45 = arith.constant dense<0.000000e+00> : vector<128x128xf32>
    %63 = tpu.matmul %61, %62, %cst_45 {dimension_numbers = #tpu.dot_dimension_numbers<[1], [0], [0], [1], [0, 0, 1, 1], [], []>} : vector<128x384xbf16>, vector<384x128xbf16>, vector<128x128xf32> -> vector<128x128xf32>
    %64 = arith.addf %56, %63 : vector<128x128xf32>
    %c0_46 = arith.constant 0 : index
    %c0_47 = arith.constant 0 : index
    %65 = vector.load %arg4[%c0_46, %c0_47] : memref<1x128xf32, #tpu.memory_space<vmem>>, vector<1x128xf32>
    %66 = vector.broadcast %65 : vector<1x128xf32> to vector<128x128xf32>
    %67 = arith.addf %64, %66 : vector<128x128xf32>
    %cst_48 = arith.constant 0.000000e+00 : f32
    %68 = vector.broadcast %cst_48 : f32 to vector<128x128xf32>
    %69 = arith.maximumf %67, %68 : vector<128x128xf32>
    %70 = vector.shape_cast %69 : vector<128x128xf32> to vector<8x16x128xf32>
    %71 = arith.truncf %70 : vector<8x16x128xf32> to vector<8x16x128xbf16>
    %c0_49 = arith.constant 0 : index
    %c0_50 = arith.constant 0 : index
    %c0_51 = arith.constant 0 : index
    %c0_52 = arith.constant 0 : index
    %72 = vector.load %arg5[%c0_49, %c0_50, %c0_51, %c0_52] : memref<1x8x16x128xbf16, #tpu.memory_space<vmem>>, vector<1x8x16x128xbf16>
    %73 = vector.shape_cast %72 : vector<1x8x16x128xbf16> to vector<8x16x128xbf16>
    %74 = vector.shape_cast %71 : vector<8x16x128xbf16> to vector<1x8x16x128xbf16>
    tpu.vector_store %arg5[%c0_49, %c0_50, %c0_51, %c0_52], %74 {strides = array<i32>} : memref<1x8x16x128xbf16, #tpu.memory_space<vmem>>, vector<1x8x16x128xbf16>,
    return
  }
  func.func @transform_1(%arg0: i32, %arg1: i32) -> (i32, i32) {
    %c0_i32 = arith.constant 0 : i32
    %c0_i32_0 = arith.constant 0 : i32
    %c0_i32_1 = arith.constant 0 : i32
    return %c0_i32, %c0_i32_0 : i32, i32
  }
  func.func @transform_2(%arg0: i32, %arg1: i32) -> (i32, i32) {
    %c0_i32 = arith.constant 0 : i32
    %c0_i32_0 = arith.constant 0 : i32
    %c0_i32_1 = arith.constant 0 : i32
    return %c0_i32, %c0_i32_0 : i32, i32
  }
  func.func @transform_3(%arg0: i32, %arg1: i32) -> (i32, i32, i32, i32) {
    %c0_i32 = arith.constant 0 : i32
    %c0_i32_0 = arith.constant 0 : i32
    %c0_i32_1 = arith.constant 0 : i32
    return %arg0, %arg1, %c0_i32, %c0_i32_0 : i32, i32, i32, i32
  }
}

module attributes {stable_mosaic.version = 11 : i64} {
  func.func @_conv_kernel(%arg0: i32, %arg1: i32, %arg2: memref<2x16x16x128xbf16, #tpu.memory_space<any>>, %arg3: memref<1152x128xbf16, #tpu.memory_space<vmem>>, %arg4: memref<1x128xf32, #tpu.memory_space<vmem>>, %arg5: memref<1x8x16x128xbf16, #tpu.memory_space<vmem>>, %arg6: memref<1x4x8x128xbf16, #tpu.memory_space<vmem>>, %arg7: memref<10x16x128xbf16, #tpu.memory_space<vmem>>, %arg8: memref<1x3x!tpu.dma_semaphore, #tpu.memory_space<semaphore_mem>>) attributes {dimension_semantics = [#tpu.dimension_semantics<parallel>, #tpu.dimension_semantics<parallel>], iteration_bounds = array<i64: 2, 2>, scalar_prefetch = 0 : i64, scratch_operands = 2 : i64, tpu.core_type = #tpu.core_type<tc>, window_params = [{}, {pipeline_mode = #tpu.pipeline_mode<synchronous>, transform_indices = @transform_1, window_bounds = array<i64: 1152, 128>}, {pipeline_mode = #tpu.pipeline_mode<synchronous>, transform_indices = @transform_2, window_bounds = array<i64: 1, 128>}, {transform_indices = @transform_3, window_bounds = array<i64: 1, 8, 16, 128>}, {transform_indices = @transform_4, window_bounds = array<i64: 1, 4, 8, 128>}]} {
    %c8_i32 = arith.constant 8 : i32
    %0 = arith.muli %arg1, %c8_i32 : i32
    %c1_i32 = arith.constant 1 : i32
    %1 = arith.subi %0, %c1_i32 : i32
    %c0_i32 = arith.constant 0 : i32
    %2 = arith.maxsi %1, %c0_i32 : i32
    %c1_i32_0 = arith.constant 1 : i32
    %3 = arith.addi %arg1, %c1_i32_0 : i32
    %c8_i32_1 = arith.constant 8 : i32
    %4 = arith.muli %3, %c8_i32_1 : i32
    %c0_i32_2 = arith.constant 0 : i32
    %c15_i32 = arith.constant 15 : i32
    %5 = arith.maxsi %c0_i32_2, %4 : i32
    %6 = arith.minsi %c15_i32, %5 : i32
    %c8_i32_3 = arith.constant 8 : i32
    %7 = arith.muli %arg1, %c8_i32_3 : i32
    %c0_i32_4 = arith.constant 0 : i32
    %c0_i32_5 = arith.constant 0 : i32
    %c0_i32_6 = arith.constant 0 : i32
    %c0_i32_7 = arith.constant 0 : i32
    %8 = tpu.memref_slice %arg2[%arg0, %7, %c0_i32_6, %c0_i32_7] : memref<2x16x16x128xbf16, #tpu.memory_space<any>> -> memref<1x8x16x128xbf16, #tpu.memory_space<any>>
    %9 = tpu.memref_squeeze %8 : memref<1x8x16x128xbf16, #tpu.memory_space<any>> -> memref<8x16x128xbf16, #tpu.memory_space<any>>
    %c1_i32_8 = arith.constant 1 : i32
    %c0_i32_9 = arith.constant 0 : i32
    %c0_i32_10 = arith.constant 0 : i32
    %10 = tpu.memref_slice %arg7[%c1_i32_8, %c0_i32_9, %c0_i32_10] : memref<10x16x128xbf16, #tpu.memory_space<vmem>> -> memref<8x16x128xbf16, #tpu.memory_space<vmem>>
    %11 = tpu.memref_slice %arg8[%c0_i32_4, %c0_i32_5] : memref<1x3x!tpu.dma_semaphore, #tpu.memory_space<semaphore_mem>> -> memref<1x1x!tpu.dma_semaphore, #tpu.memory_space<semaphore_mem>>
    %12 = tpu.memref_squeeze %11 : memref<1x1x!tpu.dma_semaphore, #tpu.memory_space<semaphore_mem>> -> memref<!tpu.dma_semaphore, #tpu.memory_space<semaphore_mem>>
    tpu.enqueue_dma source(%9 : memref<8x16x128xbf16, #tpu.memory_space<any>>) target(%10 : memref<8x16x128xbf16, #tpu.memory_space<vmem>>) target_semaphore(%12 : memref<!tpu.dma_semaphore, #tpu.memory_space<semaphore_mem>>)
    %c0_i32_11 = arith.constant 0 : i32
    %13 = arith.cmpi sgt, %arg1, %c0_i32_11 : i32
    %14 = arith.extui %13 : i1 to i32
    %c0_i32_12 = arith.constant 0 : i32
    %c1_i32_13 = arith.constant 1 : i32
    %c0_i32_14 = arith.constant 0 : i32
    %15 = arith.cmpi ne, %14, %c0_i32_14 : i32
    scf.if %15 {
      %c0_i32_59 = arith.constant 0 : i32
      %c0_i32_60 = arith.constant 0 : i32
      %82 = tpu.memref_slice %arg2[%arg0, %2, %c0_i32_59, %c0_i32_60] : memref<2x16x16x128xbf16, #tpu.memory_space<any>> -> memref<1x1x16x128xbf16, #tpu.memory_space<any>>
      %83 = tpu.memref_squeeze %82 : memref<1x1x16x128xbf16, #tpu.memory_space<any>> -> memref<1x16x128xbf16, #tpu.memory_space<any>>
      %c0_i32_61 = arith.constant 0 : i32
      %c0_i32_62 = arith.constant 0 : i32
      %c0_i32_63 = arith.constant 0 : i32
      %84 = tpu.memref_slice %arg7[%c0_i32_61, %c0_i32_62, %c0_i32_63] : memref<10x16x128xbf16, #tpu.memory_space<vmem>> -> memref<1x16x128xbf16, #tpu.memory_space<vmem>>
      %85 = tpu.memref_slice %arg8[%c0_i32_12, %c1_i32_13] : memref<1x3x!tpu.dma_semaphore, #tpu.memory_space<semaphore_mem>> -> memref<1x1x!tpu.dma_semaphore, #tpu.memory_space<semaphore_mem>>
      %86 = tpu.memref_squeeze %85 : memref<1x1x!tpu.dma_semaphore, #tpu.memory_space<semaphore_mem>> -> memref<!tpu.dma_semaphore, #tpu.memory_space<semaphore_mem>>
      tpu.enqueue_dma source(%83 : memref<1x16x128xbf16, #tpu.memory_space<any>>) target(%84 : memref<1x16x128xbf16, #tpu.memory_space<vmem>>) target_semaphore(%86 : memref<!tpu.dma_semaphore, #tpu.memory_space<semaphore_mem>>)
    } else {
    }
    %c1_i32_15 = arith.constant 1 : i32
    %16 = arith.cmpi slt, %arg1, %c1_i32_15 : i32
    %17 = arith.extui %16 : i1 to i32
    %c0_i32_16 = arith.constant 0 : i32
    %c2_i32 = arith.constant 2 : i32
    %c0_i32_17 = arith.constant 0 : i32
    %18 = arith.cmpi ne, %17, %c0_i32_17 : i32
    scf.if %18 {
      %c0_i32_59 = arith.constant 0 : i32
      %c0_i32_60 = arith.constant 0 : i32
      %82 = tpu.memref_slice %arg2[%arg0, %6, %c0_i32_59, %c0_i32_60] : memref<2x16x16x128xbf16, #tpu.memory_space<any>> -> memref<1x1x16x128xbf16, #tpu.memory_space<any>>
      %83 = tpu.memref_squeeze %82 : memref<1x1x16x128xbf16, #tpu.memory_space<any>> -> memref<1x16x128xbf16, #tpu.memory_space<any>>
      %c9_i32 = arith.constant 9 : i32
      %c0_i32_61 = arith.constant 0 : i32
      %c0_i32_62 = arith.constant 0 : i32
      %84 = tpu.memref_slice %arg7[%c9_i32, %c0_i32_61, %c0_i32_62] : memref<10x16x128xbf16, #tpu.memory_space<vmem>> -> memref<1x16x128xbf16, #tpu.memory_space<vmem>>
      %85 = tpu.memref_slice %arg8[%c0_i32_16, %c2_i32] : memref<1x3x!tpu.dma_semaphore, #tpu.memory_space<semaphore_mem>> -> memref<1x1x!tpu.dma_semaphore, #tpu.memory_space<semaphore_mem>>
      %86 = tpu.memref_squeeze %85 : memref<1x1x!tpu.dma_semaphore, #tpu.memory_space<semaphore_mem>> -> memref<!tpu.dma_semaphore, #tpu.memory_space<semaphore_mem>>
      tpu.enqueue_dma source(%83 : memref<1x16x128xbf16, #tpu.memory_space<any>>) target(%84 : memref<1x16x128xbf16, #tpu.memory_space<vmem>>) target_semaphore(%86 : memref<!tpu.dma_semaphore, #tpu.memory_space<semaphore_mem>>)
    } else {
    }
    %c0_i32_18 = arith.constant 0 : i32
    %19 = arith.cmpi eq, %arg1, %c0_i32_18 : i32
    %20 = arith.extui %19 : i1 to i32
    %c0_i32_19 = arith.constant 0 : i32
    %21 = arith.cmpi ne, %20, %c0_i32_19 : i32
    scf.if %21 {
      %cst_59 = arith.constant 0.000000e+00 : bf16
      %82 = vector.broadcast %cst_59 : bf16 to vector<1x16x128xbf16>
      %c0_60 = arith.constant 0 : index
      %c0_61 = arith.constant 0 : index
      %c0_62 = arith.constant 0 : index
      %83 = vector.load %arg7[%c0_60, %c0_61, %c0_62] : memref<10x16x128xbf16, #tpu.memory_space<vmem>>, vector<1x16x128xbf16>
      tpu.vector_store %arg7[%c0_60, %c0_61, %c0_62], %82 {strides = array<i32>} : memref<10x16x128xbf16, #tpu.memory_space<vmem>>, vector<1x16x128xbf16>,
    } else {
    }
    %c1_i32_20 = arith.constant 1 : i32
    %22 = arith.cmpi eq, %arg1, %c1_i32_20 : i32
    %23 = arith.extui %22 : i1 to i32
    %c0_i32_21 = arith.constant 0 : i32
    %24 = arith.cmpi ne, %23, %c0_i32_21 : i32
    scf.if %24 {
      %cst_59 = arith.constant 0.000000e+00 : bf16
      %82 = vector.broadcast %cst_59 : bf16 to vector<1x16x128xbf16>
      %c9 = arith.constant 9 : index
      %c0_60 = arith.constant 0 : index
      %c0_61 = arith.constant 0 : index
      %83 = vector.load %arg7[%c9, %c0_60, %c0_61] : memref<10x16x128xbf16, #tpu.memory_space<vmem>>, vector<1x16x128xbf16>
      tpu.vector_store %arg7[%c9, %c0_60, %c0_61], %82 {strides = array<i32>} : memref<10x16x128xbf16, #tpu.memory_space<vmem>>, vector<1x16x128xbf16>,
    } else {
    }
    %c0_i32_22 = arith.constant 0 : i32
    %c0_i32_23 = arith.constant 0 : i32
    %c0_i32_24 = arith.constant 0 : i32
    %c0_i32_25 = arith.constant 0 : i32
    %25 = tpu.memref_slice %arg2[%arg0, %7, %c0_i32_24, %c0_i32_25] : memref<2x16x16x128xbf16, #tpu.memory_space<any>> -> memref<1x8x16x128xbf16, #tpu.memory_space<any>>
    %26 = tpu.memref_squeeze %25 : memref<1x8x16x128xbf16, #tpu.memory_space<any>> -> memref<8x16x128xbf16, #tpu.memory_space<any>>
    %c1_i32_26 = arith.constant 1 : i32
    %c0_i32_27 = arith.constant 0 : i32
    %c0_i32_28 = arith.constant 0 : i32
    %27 = tpu.memref_slice %arg7[%c1_i32_26, %c0_i32_27, %c0_i32_28] : memref<10x16x128xbf16, #tpu.memory_space<vmem>> -> memref<8x16x128xbf16, #tpu.memory_space<vmem>>
    %28 = tpu.memref_slice %arg8[%c0_i32_22, %c0_i32_23] : memref<1x3x!tpu.dma_semaphore, #tpu.memory_space<semaphore_mem>> -> memref<1x1x!tpu.dma_semaphore, #tpu.memory_space<semaphore_mem>>
    %29 = tpu.memref_squeeze %28 : memref<1x1x!tpu.dma_semaphore, #tpu.memory_space<semaphore_mem>> -> memref<!tpu.dma_semaphore, #tpu.memory_space<semaphore_mem>>
    tpu.wait_dma2 semaphore(%29 : memref<!tpu.dma_semaphore, #tpu.memory_space<semaphore_mem>>) src(%26 : memref<8x16x128xbf16, #tpu.memory_space<any>>) dst(%27 : memref<8x16x128xbf16, #tpu.memory_space<vmem>>)
    %c0_i32_29 = arith.constant 0 : i32
    %30 = arith.cmpi sgt, %arg1, %c0_i32_29 : i32
    %31 = arith.extui %30 : i1 to i32
    %c0_i32_30 = arith.constant 0 : i32
    %c1_i32_31 = arith.constant 1 : i32
    %c0_i32_32 = arith.constant 0 : i32
    %32 = arith.cmpi ne, %31, %c0_i32_32 : i32
    scf.if %32 {
      %c0_i32_59 = arith.constant 0 : i32
      %c0_i32_60 = arith.constant 0 : i32
      %82 = tpu.memref_slice %arg2[%arg0, %2, %c0_i32_59, %c0_i32_60] : memref<2x16x16x128xbf16, #tpu.memory_space<any>> -> memref<1x1x16x128xbf16, #tpu.memory_space<any>>
      %83 = tpu.memref_squeeze %82 : memref<1x1x16x128xbf16, #tpu.memory_space<any>> -> memref<1x16x128xbf16, #tpu.memory_space<any>>
      %c0_i32_61 = arith.constant 0 : i32
      %c0_i32_62 = arith.constant 0 : i32
      %c0_i32_63 = arith.constant 0 : i32
      %84 = tpu.memref_slice %arg7[%c0_i32_61, %c0_i32_62, %c0_i32_63] : memref<10x16x128xbf16, #tpu.memory_space<vmem>> -> memref<1x16x128xbf16, #tpu.memory_space<vmem>>
      %85 = tpu.memref_slice %arg8[%c0_i32_30, %c1_i32_31] : memref<1x3x!tpu.dma_semaphore, #tpu.memory_space<semaphore_mem>> -> memref<1x1x!tpu.dma_semaphore, #tpu.memory_space<semaphore_mem>>
      %86 = tpu.memref_squeeze %85 : memref<1x1x!tpu.dma_semaphore, #tpu.memory_space<semaphore_mem>> -> memref<!tpu.dma_semaphore, #tpu.memory_space<semaphore_mem>>
      tpu.wait_dma2 semaphore(%86 : memref<!tpu.dma_semaphore, #tpu.memory_space<semaphore_mem>>) src(%83 : memref<1x16x128xbf16, #tpu.memory_space<any>>) dst(%84 : memref<1x16x128xbf16, #tpu.memory_space<vmem>>)
    } else {
    }
    %c1_i32_33 = arith.constant 1 : i32
    %33 = arith.cmpi slt, %arg1, %c1_i32_33 : i32
    %34 = arith.extui %33 : i1 to i32
    %c0_i32_34 = arith.constant 0 : i32
    %c2_i32_35 = arith.constant 2 : i32
    %c0_i32_36 = arith.constant 0 : i32
    %35 = arith.cmpi ne, %34, %c0_i32_36 : i32
    scf.if %35 {
      %c0_i32_59 = arith.constant 0 : i32
      %c0_i32_60 = arith.constant 0 : i32
      %82 = tpu.memref_slice %arg2[%arg0, %6, %c0_i32_59, %c0_i32_60] : memref<2x16x16x128xbf16, #tpu.memory_space<any>> -> memref<1x1x16x128xbf16, #tpu.memory_space<any>>
      %83 = tpu.memref_squeeze %82 : memref<1x1x16x128xbf16, #tpu.memory_space<any>> -> memref<1x16x128xbf16, #tpu.memory_space<any>>
      %c9_i32 = arith.constant 9 : i32
      %c0_i32_61 = arith.constant 0 : i32
      %c0_i32_62 = arith.constant 0 : i32
      %84 = tpu.memref_slice %arg7[%c9_i32, %c0_i32_61, %c0_i32_62] : memref<10x16x128xbf16, #tpu.memory_space<vmem>> -> memref<1x16x128xbf16, #tpu.memory_space<vmem>>
      %85 = tpu.memref_slice %arg8[%c0_i32_34, %c2_i32_35] : memref<1x3x!tpu.dma_semaphore, #tpu.memory_space<semaphore_mem>> -> memref<1x1x!tpu.dma_semaphore, #tpu.memory_space<semaphore_mem>>
      %86 = tpu.memref_squeeze %85 : memref<1x1x!tpu.dma_semaphore, #tpu.memory_space<semaphore_mem>> -> memref<!tpu.dma_semaphore, #tpu.memory_space<semaphore_mem>>
      tpu.wait_dma2 semaphore(%86 : memref<!tpu.dma_semaphore, #tpu.memory_space<semaphore_mem>>) src(%83 : memref<1x16x128xbf16, #tpu.memory_space<any>>) dst(%84 : memref<1x16x128xbf16, #tpu.memory_space<vmem>>)
    } else {
    }
    %c0 = arith.constant 0 : index
    %c0_37 = arith.constant 0 : index
    %c0_38 = arith.constant 0 : index
    %36 = vector.load %arg7[%c0, %c0_37, %c0_38] : memref<10x16x128xbf16, #tpu.memory_space<vmem>>, vector<10x16x128xbf16>
    %cst = arith.constant 0.000000e+00 : bf16
    %37 = vector.broadcast %cst : bf16 to vector<10x1x128xbf16>
    %38 = vector.extract_strided_slice %36 {offsets = [0, 0, 0], sizes = [10, 15, 128], strides = [1, 1, 1]} : vector<10x16x128xbf16> to vector<10x15x128xbf16>
    %39 = tpu.concatenate %37, %38 in 1 : vector<10x1x128xbf16>, vector<10x15x128xbf16> -> vector<10x16x128xbf16>
    %40 = vector.extract_strided_slice %36 {offsets = [0, 1, 0], sizes = [10, 15, 128], strides = [1, 1, 1]} : vector<10x16x128xbf16> to vector<10x15x128xbf16>
    %41 = tpu.concatenate %40, %37 in 1 : vector<10x15x128xbf16>, vector<10x1x128xbf16> -> vector<10x16x128xbf16>
    %42 = vector.extract_strided_slice %39 {offsets = [0, 0, 0], sizes = [8, 16, 128], strides = [1, 1, 1]} : vector<10x16x128xbf16> to vector<8x16x128xbf16>
    %43 = vector.extract_strided_slice %36 {offsets = [0, 0, 0], sizes = [8, 16, 128], strides = [1, 1, 1]} : vector<10x16x128xbf16> to vector<8x16x128xbf16>
    %44 = vector.extract_strided_slice %41 {offsets = [0, 0, 0], sizes = [8, 16, 128], strides = [1, 1, 1]} : vector<10x16x128xbf16> to vector<8x16x128xbf16>
    %45 = tpu.concatenate %42, %43, %44 in 2 : vector<8x16x128xbf16>, vector<8x16x128xbf16>, vector<8x16x128xbf16> -> vector<8x16x384xbf16>
    %46 = vector.shape_cast %45 : vector<8x16x384xbf16> to vector<128x384xbf16>
    %c0_39 = arith.constant 0 : index
    %c0_40 = arith.constant 0 : index
    %47 = vector.load %arg3[%c0_39, %c0_40] : memref<1152x128xbf16, #tpu.memory_space<vmem>>, vector<384x128xbf16>
    %cst_41 = arith.constant dense<0.000000e+00> : vector<128x128xf32>
    %48 = tpu.matmul %46, %47, %cst_41 {dimension_numbers = #tpu.dot_dimension_numbers<[1], [0], [0], [1], [0, 0, 1, 1], [], []>} : vector<128x384xbf16>, vector<384x128xbf16>, vector<128x128xf32> -> vector<128x128xf32>
    %49 = vector.extract_strided_slice %39 {offsets = [1, 0, 0], sizes = [8, 16, 128], strides = [1, 1, 1]} : vector<10x16x128xbf16> to vector<8x16x128xbf16>
    %50 = vector.extract_strided_slice %36 {offsets = [1, 0, 0], sizes = [8, 16, 128], strides = [1, 1, 1]} : vector<10x16x128xbf16> to vector<8x16x128xbf16>
    %51 = vector.extract_strided_slice %41 {offsets = [1, 0, 0], sizes = [8, 16, 128], strides = [1, 1, 1]} : vector<10x16x128xbf16> to vector<8x16x128xbf16>
    %52 = tpu.concatenate %49, %50, %51 in 2 : vector<8x16x128xbf16>, vector<8x16x128xbf16>, vector<8x16x128xbf16> -> vector<8x16x384xbf16>
    %53 = vector.shape_cast %52 : vector<8x16x384xbf16> to vector<128x384xbf16>
    %c384 = arith.constant 384 : index
    %c0_42 = arith.constant 0 : index
    %54 = vector.load %arg3[%c384, %c0_42] : memref<1152x128xbf16, #tpu.memory_space<vmem>>, vector<384x128xbf16>
    %cst_43 = arith.constant dense<0.000000e+00> : vector<128x128xf32>
    %55 = tpu.matmul %53, %54, %cst_43 {dimension_numbers = #tpu.dot_dimension_numbers<[1], [0], [0], [1], [0, 0, 1, 1], [], []>} : vector<128x384xbf16>, vector<384x128xbf16>, vector<128x128xf32> -> vector<128x128xf32>
    %56 = arith.addf %48, %55 : vector<128x128xf32>
    %57 = vector.extract_strided_slice %39 {offsets = [2, 0, 0], sizes = [8, 16, 128], strides = [1, 1, 1]} : vector<10x16x128xbf16> to vector<8x16x128xbf16>
    %58 = vector.extract_strided_slice %36 {offsets = [2, 0, 0], sizes = [8, 16, 128], strides = [1, 1, 1]} : vector<10x16x128xbf16> to vector<8x16x128xbf16>
    %59 = vector.extract_strided_slice %41 {offsets = [2, 0, 0], sizes = [8, 16, 128], strides = [1, 1, 1]} : vector<10x16x128xbf16> to vector<8x16x128xbf16>
    %60 = tpu.concatenate %57, %58, %59 in 2 : vector<8x16x128xbf16>, vector<8x16x128xbf16>, vector<8x16x128xbf16> -> vector<8x16x384xbf16>
    %61 = vector.shape_cast %60 : vector<8x16x384xbf16> to vector<128x384xbf16>
    %c768 = arith.constant 768 : index
    %c0_44 = arith.constant 0 : index
    %62 = vector.load %arg3[%c768, %c0_44] : memref<1152x128xbf16, #tpu.memory_space<vmem>>, vector<384x128xbf16>
    %cst_45 = arith.constant dense<0.000000e+00> : vector<128x128xf32>
    %63 = tpu.matmul %61, %62, %cst_45 {dimension_numbers = #tpu.dot_dimension_numbers<[1], [0], [0], [1], [0, 0, 1, 1], [], []>} : vector<128x384xbf16>, vector<384x128xbf16>, vector<128x128xf32> -> vector<128x128xf32>
    %64 = arith.addf %56, %63 : vector<128x128xf32>
    %c0_46 = arith.constant 0 : index
    %c0_47 = arith.constant 0 : index
    %65 = vector.load %arg4[%c0_46, %c0_47] : memref<1x128xf32, #tpu.memory_space<vmem>>, vector<1x128xf32>
    %66 = vector.broadcast %65 : vector<1x128xf32> to vector<128x128xf32>
    %67 = arith.addf %64, %66 : vector<128x128xf32>
    %cst_48 = arith.constant 0.000000e+00 : f32
    %68 = vector.broadcast %cst_48 : f32 to vector<128x128xf32>
    %69 = arith.maximumf %67, %68 : vector<128x128xf32>
    %70 = vector.shape_cast %69 : vector<128x128xf32> to vector<8x16x128xf32>
    %71 = arith.truncf %70 : vector<8x16x128xf32> to vector<8x16x128xbf16>
    %c0_49 = arith.constant 0 : index
    %c0_50 = arith.constant 0 : index
    %c0_51 = arith.constant 0 : index
    %c0_52 = arith.constant 0 : index
    %72 = vector.load %arg5[%c0_49, %c0_50, %c0_51, %c0_52] : memref<1x8x16x128xbf16, #tpu.memory_space<vmem>>, vector<1x8x16x128xbf16>
    %73 = vector.shape_cast %72 : vector<1x8x16x128xbf16> to vector<8x16x128xbf16>
    %74 = vector.shape_cast %71 : vector<8x16x128xbf16> to vector<1x8x16x128xbf16>
    tpu.vector_store %arg5[%c0_49, %c0_50, %c0_51, %c0_52], %74 {strides = array<i32>} : memref<1x8x16x128xbf16, #tpu.memory_space<vmem>>, vector<1x8x16x128xbf16>,
    %75 = vector.shape_cast %70 : vector<8x16x128xf32> to vector<4x2x8x2x128xf32>
    %cst_53 = arith.constant dense<0xFF800000> : vector<4x2x8x128xf32>
    %76 = vector.multi_reduction <maximumf>, %75, %cst_53 [3] : vector<4x2x8x2x128xf32> to vector<4x2x8x128xf32>
    %cst_54 = arith.constant dense<0xFF800000> : vector<4x8x128xf32>
    %77 = vector.multi_reduction <maximumf>, %76, %cst_54 [1] : vector<4x2x8x128xf32> to vector<4x8x128xf32>
    %78 = arith.truncf %77 : vector<4x8x128xf32> to vector<4x8x128xbf16>
    %c0_55 = arith.constant 0 : index
    %c0_56 = arith.constant 0 : index
    %c0_57 = arith.constant 0 : index
    %c0_58 = arith.constant 0 : index
    %79 = vector.load %arg6[%c0_55, %c0_56, %c0_57, %c0_58] : memref<1x4x8x128xbf16, #tpu.memory_space<vmem>>, vector<1x4x8x128xbf16>
    %80 = vector.shape_cast %79 : vector<1x4x8x128xbf16> to vector<4x8x128xbf16>
    %81 = vector.shape_cast %78 : vector<4x8x128xbf16> to vector<1x4x8x128xbf16>
    tpu.vector_store %arg6[%c0_55, %c0_56, %c0_57, %c0_58], %81 {strides = array<i32>} : memref<1x4x8x128xbf16, #tpu.memory_space<vmem>>, vector<1x4x8x128xbf16>,
    return
  }
  func.func @transform_1(%arg0: i32, %arg1: i32) -> (i32, i32) {
    %c0_i32 = arith.constant 0 : i32
    %c0_i32_0 = arith.constant 0 : i32
    %c0_i32_1 = arith.constant 0 : i32
    return %c0_i32, %c0_i32_0 : i32, i32
  }
  func.func @transform_2(%arg0: i32, %arg1: i32) -> (i32, i32) {
    %c0_i32 = arith.constant 0 : i32
    %c0_i32_0 = arith.constant 0 : i32
    %c0_i32_1 = arith.constant 0 : i32
    return %c0_i32, %c0_i32_0 : i32, i32
  }
  func.func @transform_3(%arg0: i32, %arg1: i32) -> (i32, i32, i32, i32) {
    %c0_i32 = arith.constant 0 : i32
    %c0_i32_0 = arith.constant 0 : i32
    %c0_i32_1 = arith.constant 0 : i32
    return %arg0, %arg1, %c0_i32, %c0_i32_0 : i32, i32, i32, i32
  }
  func.func @transform_4(%arg0: i32, %arg1: i32) -> (i32, i32, i32, i32) {
    %c0_i32 = arith.constant 0 : i32
    %c0_i32_0 = arith.constant 0 : i32
    %c0_i32_1 = arith.constant 0 : i32
    return %arg0, %arg1, %c0_i32, %c0_i32_0 : i32, i32, i32, i32
  }
}

module attributes {stable_mosaic.version = 11 : i64} {
  func.func @_conv_kernel(%arg0: i32, %arg1: i32, %arg2: memref<2x8x8x128xbf16, #tpu.memory_space<any>>, %arg3: memref<1152x128xbf16, #tpu.memory_space<vmem>>, %arg4: memref<1x128xf32, #tpu.memory_space<vmem>>, %arg5: memref<1x2x4x128xbf16, #tpu.memory_space<vmem>>, %arg6: memref<6x8x128xbf16, #tpu.memory_space<vmem>>, %arg7: memref<1x3x!tpu.dma_semaphore, #tpu.memory_space<semaphore_mem>>) attributes {dimension_semantics = [#tpu.dimension_semantics<parallel>, #tpu.dimension_semantics<parallel>], iteration_bounds = array<i64: 2, 2>, scalar_prefetch = 0 : i64, scratch_operands = 2 : i64, tpu.core_type = #tpu.core_type<tc>, window_params = [{}, {pipeline_mode = #tpu.pipeline_mode<synchronous>, transform_indices = @transform_1, window_bounds = array<i64: 1152, 128>}, {pipeline_mode = #tpu.pipeline_mode<synchronous>, transform_indices = @transform_2, window_bounds = array<i64: 1, 128>}, {transform_indices = @transform_3, window_bounds = array<i64: 1, 2, 4, 128>}]} {
    %c4_i32 = arith.constant 4 : i32
    %0 = arith.muli %arg1, %c4_i32 : i32
    %c1_i32 = arith.constant 1 : i32
    %1 = arith.subi %0, %c1_i32 : i32
    %c0_i32 = arith.constant 0 : i32
    %2 = arith.maxsi %1, %c0_i32 : i32
    %c1_i32_0 = arith.constant 1 : i32
    %3 = arith.addi %arg1, %c1_i32_0 : i32
    %c4_i32_1 = arith.constant 4 : i32
    %4 = arith.muli %3, %c4_i32_1 : i32
    %c0_i32_2 = arith.constant 0 : i32
    %c7_i32 = arith.constant 7 : i32
    %5 = arith.maxsi %c0_i32_2, %4 : i32
    %6 = arith.minsi %c7_i32, %5 : i32
    %c4_i32_3 = arith.constant 4 : i32
    %7 = arith.muli %arg1, %c4_i32_3 : i32
    %c0_i32_4 = arith.constant 0 : i32
    %c0_i32_5 = arith.constant 0 : i32
    %c0_i32_6 = arith.constant 0 : i32
    %c0_i32_7 = arith.constant 0 : i32
    %8 = tpu.memref_slice %arg2[%arg0, %7, %c0_i32_6, %c0_i32_7] : memref<2x8x8x128xbf16, #tpu.memory_space<any>> -> memref<1x4x8x128xbf16, #tpu.memory_space<any>>
    %9 = tpu.memref_squeeze %8 : memref<1x4x8x128xbf16, #tpu.memory_space<any>> -> memref<4x8x128xbf16, #tpu.memory_space<any>>
    %c1_i32_8 = arith.constant 1 : i32
    %c0_i32_9 = arith.constant 0 : i32
    %c0_i32_10 = arith.constant 0 : i32
    %10 = tpu.memref_slice %arg6[%c1_i32_8, %c0_i32_9, %c0_i32_10] : memref<6x8x128xbf16, #tpu.memory_space<vmem>> -> memref<4x8x128xbf16, #tpu.memory_space<vmem>>
    %11 = tpu.memref_slice %arg7[%c0_i32_4, %c0_i32_5] : memref<1x3x!tpu.dma_semaphore, #tpu.memory_space<semaphore_mem>> -> memref<1x1x!tpu.dma_semaphore, #tpu.memory_space<semaphore_mem>>
    %12 = tpu.memref_squeeze %11 : memref<1x1x!tpu.dma_semaphore, #tpu.memory_space<semaphore_mem>> -> memref<!tpu.dma_semaphore, #tpu.memory_space<semaphore_mem>>
    tpu.enqueue_dma source(%9 : memref<4x8x128xbf16, #tpu.memory_space<any>>) target(%10 : memref<4x8x128xbf16, #tpu.memory_space<vmem>>) target_semaphore(%12 : memref<!tpu.dma_semaphore, #tpu.memory_space<semaphore_mem>>)
    %c0_i32_11 = arith.constant 0 : i32
    %13 = arith.cmpi sgt, %arg1, %c0_i32_11 : i32
    %14 = arith.extui %13 : i1 to i32
    %c0_i32_12 = arith.constant 0 : i32
    %c1_i32_13 = arith.constant 1 : i32
    %c0_i32_14 = arith.constant 0 : i32
    %15 = arith.cmpi ne, %14, %c0_i32_14 : i32
    scf.if %15 {
      %c0_i32_55 = arith.constant 0 : i32
      %c0_i32_56 = arith.constant 0 : i32
      %78 = tpu.memref_slice %arg2[%arg0, %2, %c0_i32_55, %c0_i32_56] : memref<2x8x8x128xbf16, #tpu.memory_space<any>> -> memref<1x1x8x128xbf16, #tpu.memory_space<any>>
      %79 = tpu.memref_squeeze %78 : memref<1x1x8x128xbf16, #tpu.memory_space<any>> -> memref<1x8x128xbf16, #tpu.memory_space<any>>
      %c0_i32_57 = arith.constant 0 : i32
      %c0_i32_58 = arith.constant 0 : i32
      %c0_i32_59 = arith.constant 0 : i32
      %80 = tpu.memref_slice %arg6[%c0_i32_57, %c0_i32_58, %c0_i32_59] : memref<6x8x128xbf16, #tpu.memory_space<vmem>> -> memref<1x8x128xbf16, #tpu.memory_space<vmem>>
      %81 = tpu.memref_slice %arg7[%c0_i32_12, %c1_i32_13] : memref<1x3x!tpu.dma_semaphore, #tpu.memory_space<semaphore_mem>> -> memref<1x1x!tpu.dma_semaphore, #tpu.memory_space<semaphore_mem>>
      %82 = tpu.memref_squeeze %81 : memref<1x1x!tpu.dma_semaphore, #tpu.memory_space<semaphore_mem>> -> memref<!tpu.dma_semaphore, #tpu.memory_space<semaphore_mem>>
      tpu.enqueue_dma source(%79 : memref<1x8x128xbf16, #tpu.memory_space<any>>) target(%80 : memref<1x8x128xbf16, #tpu.memory_space<vmem>>) target_semaphore(%82 : memref<!tpu.dma_semaphore, #tpu.memory_space<semaphore_mem>>)
    } else {
    }
    %c1_i32_15 = arith.constant 1 : i32
    %16 = arith.cmpi slt, %arg1, %c1_i32_15 : i32
    %17 = arith.extui %16 : i1 to i32
    %c0_i32_16 = arith.constant 0 : i32
    %c2_i32 = arith.constant 2 : i32
    %c0_i32_17 = arith.constant 0 : i32
    %18 = arith.cmpi ne, %17, %c0_i32_17 : i32
    scf.if %18 {
      %c0_i32_55 = arith.constant 0 : i32
      %c0_i32_56 = arith.constant 0 : i32
      %78 = tpu.memref_slice %arg2[%arg0, %6, %c0_i32_55, %c0_i32_56] : memref<2x8x8x128xbf16, #tpu.memory_space<any>> -> memref<1x1x8x128xbf16, #tpu.memory_space<any>>
      %79 = tpu.memref_squeeze %78 : memref<1x1x8x128xbf16, #tpu.memory_space<any>> -> memref<1x8x128xbf16, #tpu.memory_space<any>>
      %c5_i32 = arith.constant 5 : i32
      %c0_i32_57 = arith.constant 0 : i32
      %c0_i32_58 = arith.constant 0 : i32
      %80 = tpu.memref_slice %arg6[%c5_i32, %c0_i32_57, %c0_i32_58] : memref<6x8x128xbf16, #tpu.memory_space<vmem>> -> memref<1x8x128xbf16, #tpu.memory_space<vmem>>
      %81 = tpu.memref_slice %arg7[%c0_i32_16, %c2_i32] : memref<1x3x!tpu.dma_semaphore, #tpu.memory_space<semaphore_mem>> -> memref<1x1x!tpu.dma_semaphore, #tpu.memory_space<semaphore_mem>>
      %82 = tpu.memref_squeeze %81 : memref<1x1x!tpu.dma_semaphore, #tpu.memory_space<semaphore_mem>> -> memref<!tpu.dma_semaphore, #tpu.memory_space<semaphore_mem>>
      tpu.enqueue_dma source(%79 : memref<1x8x128xbf16, #tpu.memory_space<any>>) target(%80 : memref<1x8x128xbf16, #tpu.memory_space<vmem>>) target_semaphore(%82 : memref<!tpu.dma_semaphore, #tpu.memory_space<semaphore_mem>>)
    } else {
    }
    %c0_i32_18 = arith.constant 0 : i32
    %19 = arith.cmpi eq, %arg1, %c0_i32_18 : i32
    %20 = arith.extui %19 : i1 to i32
    %c0_i32_19 = arith.constant 0 : i32
    %21 = arith.cmpi ne, %20, %c0_i32_19 : i32
    scf.if %21 {
      %cst_55 = arith.constant 0.000000e+00 : bf16
      %78 = vector.broadcast %cst_55 : bf16 to vector<1x8x128xbf16>
      %c0_56 = arith.constant 0 : index
      %c0_57 = arith.constant 0 : index
      %c0_58 = arith.constant 0 : index
      %79 = vector.load %arg6[%c0_56, %c0_57, %c0_58] : memref<6x8x128xbf16, #tpu.memory_space<vmem>>, vector<1x8x128xbf16>
      tpu.vector_store %arg6[%c0_56, %c0_57, %c0_58], %78 {strides = array<i32>} : memref<6x8x128xbf16, #tpu.memory_space<vmem>>, vector<1x8x128xbf16>,
    } else {
    }
    %c1_i32_20 = arith.constant 1 : i32
    %22 = arith.cmpi eq, %arg1, %c1_i32_20 : i32
    %23 = arith.extui %22 : i1 to i32
    %c0_i32_21 = arith.constant 0 : i32
    %24 = arith.cmpi ne, %23, %c0_i32_21 : i32
    scf.if %24 {
      %cst_55 = arith.constant 0.000000e+00 : bf16
      %78 = vector.broadcast %cst_55 : bf16 to vector<1x8x128xbf16>
      %c5 = arith.constant 5 : index
      %c0_56 = arith.constant 0 : index
      %c0_57 = arith.constant 0 : index
      %79 = vector.load %arg6[%c5, %c0_56, %c0_57] : memref<6x8x128xbf16, #tpu.memory_space<vmem>>, vector<1x8x128xbf16>
      tpu.vector_store %arg6[%c5, %c0_56, %c0_57], %78 {strides = array<i32>} : memref<6x8x128xbf16, #tpu.memory_space<vmem>>, vector<1x8x128xbf16>,
    } else {
    }
    %c0_i32_22 = arith.constant 0 : i32
    %c0_i32_23 = arith.constant 0 : i32
    %c0_i32_24 = arith.constant 0 : i32
    %c0_i32_25 = arith.constant 0 : i32
    %25 = tpu.memref_slice %arg2[%arg0, %7, %c0_i32_24, %c0_i32_25] : memref<2x8x8x128xbf16, #tpu.memory_space<any>> -> memref<1x4x8x128xbf16, #tpu.memory_space<any>>
    %26 = tpu.memref_squeeze %25 : memref<1x4x8x128xbf16, #tpu.memory_space<any>> -> memref<4x8x128xbf16, #tpu.memory_space<any>>
    %c1_i32_26 = arith.constant 1 : i32
    %c0_i32_27 = arith.constant 0 : i32
    %c0_i32_28 = arith.constant 0 : i32
    %27 = tpu.memref_slice %arg6[%c1_i32_26, %c0_i32_27, %c0_i32_28] : memref<6x8x128xbf16, #tpu.memory_space<vmem>> -> memref<4x8x128xbf16, #tpu.memory_space<vmem>>
    %28 = tpu.memref_slice %arg7[%c0_i32_22, %c0_i32_23] : memref<1x3x!tpu.dma_semaphore, #tpu.memory_space<semaphore_mem>> -> memref<1x1x!tpu.dma_semaphore, #tpu.memory_space<semaphore_mem>>
    %29 = tpu.memref_squeeze %28 : memref<1x1x!tpu.dma_semaphore, #tpu.memory_space<semaphore_mem>> -> memref<!tpu.dma_semaphore, #tpu.memory_space<semaphore_mem>>
    tpu.wait_dma2 semaphore(%29 : memref<!tpu.dma_semaphore, #tpu.memory_space<semaphore_mem>>) src(%26 : memref<4x8x128xbf16, #tpu.memory_space<any>>) dst(%27 : memref<4x8x128xbf16, #tpu.memory_space<vmem>>)
    %c0_i32_29 = arith.constant 0 : i32
    %30 = arith.cmpi sgt, %arg1, %c0_i32_29 : i32
    %31 = arith.extui %30 : i1 to i32
    %c0_i32_30 = arith.constant 0 : i32
    %c1_i32_31 = arith.constant 1 : i32
    %c0_i32_32 = arith.constant 0 : i32
    %32 = arith.cmpi ne, %31, %c0_i32_32 : i32
    scf.if %32 {
      %c0_i32_55 = arith.constant 0 : i32
      %c0_i32_56 = arith.constant 0 : i32
      %78 = tpu.memref_slice %arg2[%arg0, %2, %c0_i32_55, %c0_i32_56] : memref<2x8x8x128xbf16, #tpu.memory_space<any>> -> memref<1x1x8x128xbf16, #tpu.memory_space<any>>
      %79 = tpu.memref_squeeze %78 : memref<1x1x8x128xbf16, #tpu.memory_space<any>> -> memref<1x8x128xbf16, #tpu.memory_space<any>>
      %c0_i32_57 = arith.constant 0 : i32
      %c0_i32_58 = arith.constant 0 : i32
      %c0_i32_59 = arith.constant 0 : i32
      %80 = tpu.memref_slice %arg6[%c0_i32_57, %c0_i32_58, %c0_i32_59] : memref<6x8x128xbf16, #tpu.memory_space<vmem>> -> memref<1x8x128xbf16, #tpu.memory_space<vmem>>
      %81 = tpu.memref_slice %arg7[%c0_i32_30, %c1_i32_31] : memref<1x3x!tpu.dma_semaphore, #tpu.memory_space<semaphore_mem>> -> memref<1x1x!tpu.dma_semaphore, #tpu.memory_space<semaphore_mem>>
      %82 = tpu.memref_squeeze %81 : memref<1x1x!tpu.dma_semaphore, #tpu.memory_space<semaphore_mem>> -> memref<!tpu.dma_semaphore, #tpu.memory_space<semaphore_mem>>
      tpu.wait_dma2 semaphore(%82 : memref<!tpu.dma_semaphore, #tpu.memory_space<semaphore_mem>>) src(%79 : memref<1x8x128xbf16, #tpu.memory_space<any>>) dst(%80 : memref<1x8x128xbf16, #tpu.memory_space<vmem>>)
    } else {
    }
    %c1_i32_33 = arith.constant 1 : i32
    %33 = arith.cmpi slt, %arg1, %c1_i32_33 : i32
    %34 = arith.extui %33 : i1 to i32
    %c0_i32_34 = arith.constant 0 : i32
    %c2_i32_35 = arith.constant 2 : i32
    %c0_i32_36 = arith.constant 0 : i32
    %35 = arith.cmpi ne, %34, %c0_i32_36 : i32
    scf.if %35 {
      %c0_i32_55 = arith.constant 0 : i32
      %c0_i32_56 = arith.constant 0 : i32
      %78 = tpu.memref_slice %arg2[%arg0, %6, %c0_i32_55, %c0_i32_56] : memref<2x8x8x128xbf16, #tpu.memory_space<any>> -> memref<1x1x8x128xbf16, #tpu.memory_space<any>>
      %79 = tpu.memref_squeeze %78 : memref<1x1x8x128xbf16, #tpu.memory_space<any>> -> memref<1x8x128xbf16, #tpu.memory_space<any>>
      %c5_i32 = arith.constant 5 : i32
      %c0_i32_57 = arith.constant 0 : i32
      %c0_i32_58 = arith.constant 0 : i32
      %80 = tpu.memref_slice %arg6[%c5_i32, %c0_i32_57, %c0_i32_58] : memref<6x8x128xbf16, #tpu.memory_space<vmem>> -> memref<1x8x128xbf16, #tpu.memory_space<vmem>>
      %81 = tpu.memref_slice %arg7[%c0_i32_34, %c2_i32_35] : memref<1x3x!tpu.dma_semaphore, #tpu.memory_space<semaphore_mem>> -> memref<1x1x!tpu.dma_semaphore, #tpu.memory_space<semaphore_mem>>
      %82 = tpu.memref_squeeze %81 : memref<1x1x!tpu.dma_semaphore, #tpu.memory_space<semaphore_mem>> -> memref<!tpu.dma_semaphore, #tpu.memory_space<semaphore_mem>>
      tpu.wait_dma2 semaphore(%82 : memref<!tpu.dma_semaphore, #tpu.memory_space<semaphore_mem>>) src(%79 : memref<1x8x128xbf16, #tpu.memory_space<any>>) dst(%80 : memref<1x8x128xbf16, #tpu.memory_space<vmem>>)
    } else {
    }
    %c0 = arith.constant 0 : index
    %c0_37 = arith.constant 0 : index
    %c0_38 = arith.constant 0 : index
    %36 = vector.load %arg6[%c0, %c0_37, %c0_38] : memref<6x8x128xbf16, #tpu.memory_space<vmem>>, vector<6x8x128xbf16>
    %cst = arith.constant 0.000000e+00 : bf16
    %37 = vector.broadcast %cst : bf16 to vector<6x1x128xbf16>
    %38 = vector.extract_strided_slice %36 {offsets = [0, 0, 0], sizes = [6, 7, 128], strides = [1, 1, 1]} : vector<6x8x128xbf16> to vector<6x7x128xbf16>
    %39 = tpu.concatenate %37, %38 in 1 : vector<6x1x128xbf16>, vector<6x7x128xbf16> -> vector<6x8x128xbf16>
    %40 = vector.extract_strided_slice %36 {offsets = [0, 1, 0], sizes = [6, 7, 128], strides = [1, 1, 1]} : vector<6x8x128xbf16> to vector<6x7x128xbf16>
    %41 = tpu.concatenate %40, %37 in 1 : vector<6x7x128xbf16>, vector<6x1x128xbf16> -> vector<6x8x128xbf16>
    %42 = vector.extract_strided_slice %39 {offsets = [0, 0, 0], sizes = [4, 8, 128], strides = [1, 1, 1]} : vector<6x8x128xbf16> to vector<4x8x128xbf16>
    %43 = vector.extract_strided_slice %36 {offsets = [0, 0, 0], sizes = [4, 8, 128], strides = [1, 1, 1]} : vector<6x8x128xbf16> to vector<4x8x128xbf16>
    %44 = vector.extract_strided_slice %41 {offsets = [0, 0, 0], sizes = [4, 8, 128], strides = [1, 1, 1]} : vector<6x8x128xbf16> to vector<4x8x128xbf16>
    %45 = tpu.concatenate %42, %43, %44 in 2 : vector<4x8x128xbf16>, vector<4x8x128xbf16>, vector<4x8x128xbf16> -> vector<4x8x384xbf16>
    %46 = vector.shape_cast %45 : vector<4x8x384xbf16> to vector<32x384xbf16>
    %c0_39 = arith.constant 0 : index
    %c0_40 = arith.constant 0 : index
    %47 = vector.load %arg3[%c0_39, %c0_40] : memref<1152x128xbf16, #tpu.memory_space<vmem>>, vector<384x128xbf16>
    %cst_41 = arith.constant dense<0.000000e+00> : vector<32x128xf32>
    %48 = tpu.matmul %46, %47, %cst_41 {dimension_numbers = #tpu.dot_dimension_numbers<[1], [0], [0], [1], [0, 0, 1, 1], [], []>} : vector<32x384xbf16>, vector<384x128xbf16>, vector<32x128xf32> -> vector<32x128xf32>
    %49 = vector.extract_strided_slice %39 {offsets = [1, 0, 0], sizes = [4, 8, 128], strides = [1, 1, 1]} : vector<6x8x128xbf16> to vector<4x8x128xbf16>
    %50 = vector.extract_strided_slice %36 {offsets = [1, 0, 0], sizes = [4, 8, 128], strides = [1, 1, 1]} : vector<6x8x128xbf16> to vector<4x8x128xbf16>
    %51 = vector.extract_strided_slice %41 {offsets = [1, 0, 0], sizes = [4, 8, 128], strides = [1, 1, 1]} : vector<6x8x128xbf16> to vector<4x8x128xbf16>
    %52 = tpu.concatenate %49, %50, %51 in 2 : vector<4x8x128xbf16>, vector<4x8x128xbf16>, vector<4x8x128xbf16> -> vector<4x8x384xbf16>
    %53 = vector.shape_cast %52 : vector<4x8x384xbf16> to vector<32x384xbf16>
    %c384 = arith.constant 384 : index
    %c0_42 = arith.constant 0 : index
    %54 = vector.load %arg3[%c384, %c0_42] : memref<1152x128xbf16, #tpu.memory_space<vmem>>, vector<384x128xbf16>
    %cst_43 = arith.constant dense<0.000000e+00> : vector<32x128xf32>
    %55 = tpu.matmul %53, %54, %cst_43 {dimension_numbers = #tpu.dot_dimension_numbers<[1], [0], [0], [1], [0, 0, 1, 1], [], []>} : vector<32x384xbf16>, vector<384x128xbf16>, vector<32x128xf32> -> vector<32x128xf32>
    %56 = arith.addf %48, %55 : vector<32x128xf32>
    %57 = vector.extract_strided_slice %39 {offsets = [2, 0, 0], sizes = [4, 8, 128], strides = [1, 1, 1]} : vector<6x8x128xbf16> to vector<4x8x128xbf16>
    %58 = vector.extract_strided_slice %36 {offsets = [2, 0, 0], sizes = [4, 8, 128], strides = [1, 1, 1]} : vector<6x8x128xbf16> to vector<4x8x128xbf16>
    %59 = vector.extract_strided_slice %41 {offsets = [2, 0, 0], sizes = [4, 8, 128], strides = [1, 1, 1]} : vector<6x8x128xbf16> to vector<4x8x128xbf16>
    %60 = tpu.concatenate %57, %58, %59 in 2 : vector<4x8x128xbf16>, vector<4x8x128xbf16>, vector<4x8x128xbf16> -> vector<4x8x384xbf16>
    %61 = vector.shape_cast %60 : vector<4x8x384xbf16> to vector<32x384xbf16>
    %c768 = arith.constant 768 : index
    %c0_44 = arith.constant 0 : index
    %62 = vector.load %arg3[%c768, %c0_44] : memref<1152x128xbf16, #tpu.memory_space<vmem>>, vector<384x128xbf16>
    %cst_45 = arith.constant dense<0.000000e+00> : vector<32x128xf32>
    %63 = tpu.matmul %61, %62, %cst_45 {dimension_numbers = #tpu.dot_dimension_numbers<[1], [0], [0], [1], [0, 0, 1, 1], [], []>} : vector<32x384xbf16>, vector<384x128xbf16>, vector<32x128xf32> -> vector<32x128xf32>
    %64 = arith.addf %56, %63 : vector<32x128xf32>
    %c0_46 = arith.constant 0 : index
    %c0_47 = arith.constant 0 : index
    %65 = vector.load %arg4[%c0_46, %c0_47] : memref<1x128xf32, #tpu.memory_space<vmem>>, vector<1x128xf32>
    %66 = vector.broadcast %65 : vector<1x128xf32> to vector<32x128xf32>
    %67 = arith.addf %64, %66 : vector<32x128xf32>
    %cst_48 = arith.constant 0.000000e+00 : f32
    %68 = vector.broadcast %cst_48 : f32 to vector<32x128xf32>
    %69 = arith.maximumf %67, %68 : vector<32x128xf32>
    %70 = vector.shape_cast %69 : vector<32x128xf32> to vector<4x8x128xf32>
    %71 = vector.shape_cast %70 : vector<4x8x128xf32> to vector<2x2x4x2x128xf32>
    %cst_49 = arith.constant dense<0xFF800000> : vector<2x2x4x128xf32>
    %72 = vector.multi_reduction <maximumf>, %71, %cst_49 [3] : vector<2x2x4x2x128xf32> to vector<2x2x4x128xf32>
    %cst_50 = arith.constant dense<0xFF800000> : vector<2x4x128xf32>
    %73 = vector.multi_reduction <maximumf>, %72, %cst_50 [1] : vector<2x2x4x128xf32> to vector<2x4x128xf32>
    %74 = arith.truncf %73 : vector<2x4x128xf32> to vector<2x4x128xbf16>
    %c0_51 = arith.constant 0 : index
    %c0_52 = arith.constant 0 : index
    %c0_53 = arith.constant 0 : index
    %c0_54 = arith.constant 0 : index
    %75 = vector.load %arg5[%c0_51, %c0_52, %c0_53, %c0_54] : memref<1x2x4x128xbf16, #tpu.memory_space<vmem>>, vector<1x2x4x128xbf16>
    %76 = vector.shape_cast %75 : vector<1x2x4x128xbf16> to vector<2x4x128xbf16>
    %77 = vector.shape_cast %74 : vector<2x4x128xbf16> to vector<1x2x4x128xbf16>
    tpu.vector_store %arg5[%c0_51, %c0_52, %c0_53, %c0_54], %77 {strides = array<i32>} : memref<1x2x4x128xbf16, #tpu.memory_space<vmem>>, vector<1x2x4x128xbf16>,
    return
  }
  func.func @transform_1(%arg0: i32, %arg1: i32) -> (i32, i32) {
    %c0_i32 = arith.constant 0 : i32
    %c0_i32_0 = arith.constant 0 : i32
    %c0_i32_1 = arith.constant 0 : i32
    return %c0_i32, %c0_i32_0 : i32, i32
  }
  func.func @transform_2(%arg0: i32, %arg1: i32) -> (i32, i32) {
    %c0_i32 = arith.constant 0 : i32
    %c0_i32_0 = arith.constant 0 : i32
    %c0_i32_1 = arith.constant 0 : i32
    return %c0_i32, %c0_i32_0 : i32, i32
  }
  func.func @transform_3(%arg0: i32, %arg1: i32) -> (i32, i32, i32, i32) {
    %c0_i32 = arith.constant 0 : i32
    %c0_i32_0 = arith.constant 0 : i32
    %c0_i32_1 = arith.constant 0 : i32
    return %arg0, %arg1, %c0_i32, %c0_i32_0 : i32, i32, i32, i32
  }
}

module attributes {stable_mosaic.version = 11 : i64} {
  func.func @_conv_kernel(%arg0: i32, %arg1: i32, %arg2: memref<2x4x4x128xbf16, #tpu.memory_space<any>>, %arg3: memref<1152x128xbf16, #tpu.memory_space<vmem>>, %arg4: memref<1x128xf32, #tpu.memory_space<vmem>>, %arg5: memref<1x2x4x128xbf16, #tpu.memory_space<vmem>>, %arg6: memref<4x4x128xbf16, #tpu.memory_space<vmem>>, %arg7: memref<1x3x!tpu.dma_semaphore, #tpu.memory_space<semaphore_mem>>) attributes {dimension_semantics = [#tpu.dimension_semantics<parallel>, #tpu.dimension_semantics<parallel>], iteration_bounds = array<i64: 2, 2>, scalar_prefetch = 0 : i64, scratch_operands = 2 : i64, tpu.core_type = #tpu.core_type<tc>, window_params = [{}, {pipeline_mode = #tpu.pipeline_mode<synchronous>, transform_indices = @transform_1, window_bounds = array<i64: 1152, 128>}, {pipeline_mode = #tpu.pipeline_mode<synchronous>, transform_indices = @transform_2, window_bounds = array<i64: 1, 128>}, {transform_indices = @transform_3, window_bounds = array<i64: 1, 2, 4, 128>}]} {
    %c2_i32 = arith.constant 2 : i32
    %0 = arith.muli %arg1, %c2_i32 : i32
    %c1_i32 = arith.constant 1 : i32
    %1 = arith.subi %0, %c1_i32 : i32
    %c0_i32 = arith.constant 0 : i32
    %2 = arith.maxsi %1, %c0_i32 : i32
    %c1_i32_0 = arith.constant 1 : i32
    %3 = arith.addi %arg1, %c1_i32_0 : i32
    %c2_i32_1 = arith.constant 2 : i32
    %4 = arith.muli %3, %c2_i32_1 : i32
    %c0_i32_2 = arith.constant 0 : i32
    %c3_i32 = arith.constant 3 : i32
    %5 = arith.maxsi %c0_i32_2, %4 : i32
    %6 = arith.minsi %c3_i32, %5 : i32
    %c2_i32_3 = arith.constant 2 : i32
    %7 = arith.muli %arg1, %c2_i32_3 : i32
    %c0_i32_4 = arith.constant 0 : i32
    %c0_i32_5 = arith.constant 0 : i32
    %c0_i32_6 = arith.constant 0 : i32
    %c0_i32_7 = arith.constant 0 : i32
    %8 = tpu.memref_slice %arg2[%arg0, %7, %c0_i32_6, %c0_i32_7] : memref<2x4x4x128xbf16, #tpu.memory_space<any>> -> memref<1x2x4x128xbf16, #tpu.memory_space<any>>
    %9 = tpu.memref_squeeze %8 : memref<1x2x4x128xbf16, #tpu.memory_space<any>> -> memref<2x4x128xbf16, #tpu.memory_space<any>>
    %c1_i32_8 = arith.constant 1 : i32
    %c0_i32_9 = arith.constant 0 : i32
    %c0_i32_10 = arith.constant 0 : i32
    %10 = tpu.memref_slice %arg6[%c1_i32_8, %c0_i32_9, %c0_i32_10] : memref<4x4x128xbf16, #tpu.memory_space<vmem>> -> memref<2x4x128xbf16, #tpu.memory_space<vmem>>
    %11 = tpu.memref_slice %arg7[%c0_i32_4, %c0_i32_5] : memref<1x3x!tpu.dma_semaphore, #tpu.memory_space<semaphore_mem>> -> memref<1x1x!tpu.dma_semaphore, #tpu.memory_space<semaphore_mem>>
    %12 = tpu.memref_squeeze %11 : memref<1x1x!tpu.dma_semaphore, #tpu.memory_space<semaphore_mem>> -> memref<!tpu.dma_semaphore, #tpu.memory_space<semaphore_mem>>
    tpu.enqueue_dma source(%9 : memref<2x4x128xbf16, #tpu.memory_space<any>>) target(%10 : memref<2x4x128xbf16, #tpu.memory_space<vmem>>) target_semaphore(%12 : memref<!tpu.dma_semaphore, #tpu.memory_space<semaphore_mem>>)
    %c0_i32_11 = arith.constant 0 : i32
    %13 = arith.cmpi sgt, %arg1, %c0_i32_11 : i32
    %14 = arith.extui %13 : i1 to i32
    %c0_i32_12 = arith.constant 0 : i32
    %c1_i32_13 = arith.constant 1 : i32
    %c0_i32_14 = arith.constant 0 : i32
    %15 = arith.cmpi ne, %14, %c0_i32_14 : i32
    scf.if %15 {
      %c0_i32_54 = arith.constant 0 : i32
      %c0_i32_55 = arith.constant 0 : i32
      %75 = tpu.memref_slice %arg2[%arg0, %2, %c0_i32_54, %c0_i32_55] : memref<2x4x4x128xbf16, #tpu.memory_space<any>> -> memref<1x1x4x128xbf16, #tpu.memory_space<any>>
      %76 = tpu.memref_squeeze %75 : memref<1x1x4x128xbf16, #tpu.memory_space<any>> -> memref<1x4x128xbf16, #tpu.memory_space<any>>
      %c0_i32_56 = arith.constant 0 : i32
      %c0_i32_57 = arith.constant 0 : i32
      %c0_i32_58 = arith.constant 0 : i32
      %77 = tpu.memref_slice %arg6[%c0_i32_56, %c0_i32_57, %c0_i32_58] : memref<4x4x128xbf16, #tpu.memory_space<vmem>> -> memref<1x4x128xbf16, #tpu.memory_space<vmem>>
      %78 = tpu.memref_slice %arg7[%c0_i32_12, %c1_i32_13] : memref<1x3x!tpu.dma_semaphore, #tpu.memory_space<semaphore_mem>> -> memref<1x1x!tpu.dma_semaphore, #tpu.memory_space<semaphore_mem>>
      %79 = tpu.memref_squeeze %78 : memref<1x1x!tpu.dma_semaphore, #tpu.memory_space<semaphore_mem>> -> memref<!tpu.dma_semaphore, #tpu.memory_space<semaphore_mem>>
      tpu.enqueue_dma source(%76 : memref<1x4x128xbf16, #tpu.memory_space<any>>) target(%77 : memref<1x4x128xbf16, #tpu.memory_space<vmem>>) target_semaphore(%79 : memref<!tpu.dma_semaphore, #tpu.memory_space<semaphore_mem>>)
    } else {
    }
    %c1_i32_15 = arith.constant 1 : i32
    %16 = arith.cmpi slt, %arg1, %c1_i32_15 : i32
    %17 = arith.extui %16 : i1 to i32
    %c0_i32_16 = arith.constant 0 : i32
    %c2_i32_17 = arith.constant 2 : i32
    %c0_i32_18 = arith.constant 0 : i32
    %18 = arith.cmpi ne, %17, %c0_i32_18 : i32
    scf.if %18 {
      %c0_i32_54 = arith.constant 0 : i32
      %c0_i32_55 = arith.constant 0 : i32
      %75 = tpu.memref_slice %arg2[%arg0, %6, %c0_i32_54, %c0_i32_55] : memref<2x4x4x128xbf16, #tpu.memory_space<any>> -> memref<1x1x4x128xbf16, #tpu.memory_space<any>>
      %76 = tpu.memref_squeeze %75 : memref<1x1x4x128xbf16, #tpu.memory_space<any>> -> memref<1x4x128xbf16, #tpu.memory_space<any>>
      %c3_i32_56 = arith.constant 3 : i32
      %c0_i32_57 = arith.constant 0 : i32
      %c0_i32_58 = arith.constant 0 : i32
      %77 = tpu.memref_slice %arg6[%c3_i32_56, %c0_i32_57, %c0_i32_58] : memref<4x4x128xbf16, #tpu.memory_space<vmem>> -> memref<1x4x128xbf16, #tpu.memory_space<vmem>>
      %78 = tpu.memref_slice %arg7[%c0_i32_16, %c2_i32_17] : memref<1x3x!tpu.dma_semaphore, #tpu.memory_space<semaphore_mem>> -> memref<1x1x!tpu.dma_semaphore, #tpu.memory_space<semaphore_mem>>
      %79 = tpu.memref_squeeze %78 : memref<1x1x!tpu.dma_semaphore, #tpu.memory_space<semaphore_mem>> -> memref<!tpu.dma_semaphore, #tpu.memory_space<semaphore_mem>>
      tpu.enqueue_dma source(%76 : memref<1x4x128xbf16, #tpu.memory_space<any>>) target(%77 : memref<1x4x128xbf16, #tpu.memory_space<vmem>>) target_semaphore(%79 : memref<!tpu.dma_semaphore, #tpu.memory_space<semaphore_mem>>)
    } else {
    }
    %c0_i32_19 = arith.constant 0 : i32
    %19 = arith.cmpi eq, %arg1, %c0_i32_19 : i32
    %20 = arith.extui %19 : i1 to i32
    %c0_i32_20 = arith.constant 0 : i32
    %21 = arith.cmpi ne, %20, %c0_i32_20 : i32
    scf.if %21 {
      %cst_54 = arith.constant 0.000000e+00 : bf16
      %75 = vector.broadcast %cst_54 : bf16 to vector<1x4x128xbf16>
      %c0_55 = arith.constant 0 : index
      %c0_56 = arith.constant 0 : index
      %c0_57 = arith.constant 0 : index
      %76 = vector.load %arg6[%c0_55, %c0_56, %c0_57] : memref<4x4x128xbf16, #tpu.memory_space<vmem>>, vector<1x4x128xbf16>
      tpu.vector_store %arg6[%c0_55, %c0_56, %c0_57], %75 {strides = array<i32>} : memref<4x4x128xbf16, #tpu.memory_space<vmem>>, vector<1x4x128xbf16>,
    } else {
    }
    %c1_i32_21 = arith.constant 1 : i32
    %22 = arith.cmpi eq, %arg1, %c1_i32_21 : i32
    %23 = arith.extui %22 : i1 to i32
    %c0_i32_22 = arith.constant 0 : i32
    %24 = arith.cmpi ne, %23, %c0_i32_22 : i32
    scf.if %24 {
      %cst_54 = arith.constant 0.000000e+00 : bf16
      %75 = vector.broadcast %cst_54 : bf16 to vector<1x4x128xbf16>
      %c3 = arith.constant 3 : index
      %c0_55 = arith.constant 0 : index
      %c0_56 = arith.constant 0 : index
      %76 = vector.load %arg6[%c3, %c0_55, %c0_56] : memref<4x4x128xbf16, #tpu.memory_space<vmem>>, vector<1x4x128xbf16>
      tpu.vector_store %arg6[%c3, %c0_55, %c0_56], %75 {strides = array<i32>} : memref<4x4x128xbf16, #tpu.memory_space<vmem>>, vector<1x4x128xbf16>,
    } else {
    }
    %c0_i32_23 = arith.constant 0 : i32
    %c0_i32_24 = arith.constant 0 : i32
    %c0_i32_25 = arith.constant 0 : i32
    %c0_i32_26 = arith.constant 0 : i32
    %25 = tpu.memref_slice %arg2[%arg0, %7, %c0_i32_25, %c0_i32_26] : memref<2x4x4x128xbf16, #tpu.memory_space<any>> -> memref<1x2x4x128xbf16, #tpu.memory_space<any>>
    %26 = tpu.memref_squeeze %25 : memref<1x2x4x128xbf16, #tpu.memory_space<any>> -> memref<2x4x128xbf16, #tpu.memory_space<any>>
    %c1_i32_27 = arith.constant 1 : i32
    %c0_i32_28 = arith.constant 0 : i32
    %c0_i32_29 = arith.constant 0 : i32
    %27 = tpu.memref_slice %arg6[%c1_i32_27, %c0_i32_28, %c0_i32_29] : memref<4x4x128xbf16, #tpu.memory_space<vmem>> -> memref<2x4x128xbf16, #tpu.memory_space<vmem>>
    %28 = tpu.memref_slice %arg7[%c0_i32_23, %c0_i32_24] : memref<1x3x!tpu.dma_semaphore, #tpu.memory_space<semaphore_mem>> -> memref<1x1x!tpu.dma_semaphore, #tpu.memory_space<semaphore_mem>>
    %29 = tpu.memref_squeeze %28 : memref<1x1x!tpu.dma_semaphore, #tpu.memory_space<semaphore_mem>> -> memref<!tpu.dma_semaphore, #tpu.memory_space<semaphore_mem>>
    tpu.wait_dma2 semaphore(%29 : memref<!tpu.dma_semaphore, #tpu.memory_space<semaphore_mem>>) src(%26 : memref<2x4x128xbf16, #tpu.memory_space<any>>) dst(%27 : memref<2x4x128xbf16, #tpu.memory_space<vmem>>)
    %c0_i32_30 = arith.constant 0 : i32
    %30 = arith.cmpi sgt, %arg1, %c0_i32_30 : i32
    %31 = arith.extui %30 : i1 to i32
    %c0_i32_31 = arith.constant 0 : i32
    %c1_i32_32 = arith.constant 1 : i32
    %c0_i32_33 = arith.constant 0 : i32
    %32 = arith.cmpi ne, %31, %c0_i32_33 : i32
    scf.if %32 {
      %c0_i32_54 = arith.constant 0 : i32
      %c0_i32_55 = arith.constant 0 : i32
      %75 = tpu.memref_slice %arg2[%arg0, %2, %c0_i32_54, %c0_i32_55] : memref<2x4x4x128xbf16, #tpu.memory_space<any>> -> memref<1x1x4x128xbf16, #tpu.memory_space<any>>
      %76 = tpu.memref_squeeze %75 : memref<1x1x4x128xbf16, #tpu.memory_space<any>> -> memref<1x4x128xbf16, #tpu.memory_space<any>>
      %c0_i32_56 = arith.constant 0 : i32
      %c0_i32_57 = arith.constant 0 : i32
      %c0_i32_58 = arith.constant 0 : i32
      %77 = tpu.memref_slice %arg6[%c0_i32_56, %c0_i32_57, %c0_i32_58] : memref<4x4x128xbf16, #tpu.memory_space<vmem>> -> memref<1x4x128xbf16, #tpu.memory_space<vmem>>
      %78 = tpu.memref_slice %arg7[%c0_i32_31, %c1_i32_32] : memref<1x3x!tpu.dma_semaphore, #tpu.memory_space<semaphore_mem>> -> memref<1x1x!tpu.dma_semaphore, #tpu.memory_space<semaphore_mem>>
      %79 = tpu.memref_squeeze %78 : memref<1x1x!tpu.dma_semaphore, #tpu.memory_space<semaphore_mem>> -> memref<!tpu.dma_semaphore, #tpu.memory_space<semaphore_mem>>
      tpu.wait_dma2 semaphore(%79 : memref<!tpu.dma_semaphore, #tpu.memory_space<semaphore_mem>>) src(%76 : memref<1x4x128xbf16, #tpu.memory_space<any>>) dst(%77 : memref<1x4x128xbf16, #tpu.memory_space<vmem>>)
    } else {
    }
    %c1_i32_34 = arith.constant 1 : i32
    %33 = arith.cmpi slt, %arg1, %c1_i32_34 : i32
    %34 = arith.extui %33 : i1 to i32
    %c0_i32_35 = arith.constant 0 : i32
    %c2_i32_36 = arith.constant 2 : i32
    %c0_i32_37 = arith.constant 0 : i32
    %35 = arith.cmpi ne, %34, %c0_i32_37 : i32
    scf.if %35 {
      %c0_i32_54 = arith.constant 0 : i32
      %c0_i32_55 = arith.constant 0 : i32
      %75 = tpu.memref_slice %arg2[%arg0, %6, %c0_i32_54, %c0_i32_55] : memref<2x4x4x128xbf16, #tpu.memory_space<any>> -> memref<1x1x4x128xbf16, #tpu.memory_space<any>>
      %76 = tpu.memref_squeeze %75 : memref<1x1x4x128xbf16, #tpu.memory_space<any>> -> memref<1x4x128xbf16, #tpu.memory_space<any>>
      %c3_i32_56 = arith.constant 3 : i32
      %c0_i32_57 = arith.constant 0 : i32
      %c0_i32_58 = arith.constant 0 : i32
      %77 = tpu.memref_slice %arg6[%c3_i32_56, %c0_i32_57, %c0_i32_58] : memref<4x4x128xbf16, #tpu.memory_space<vmem>> -> memref<1x4x128xbf16, #tpu.memory_space<vmem>>
      %78 = tpu.memref_slice %arg7[%c0_i32_35, %c2_i32_36] : memref<1x3x!tpu.dma_semaphore, #tpu.memory_space<semaphore_mem>> -> memref<1x1x!tpu.dma_semaphore, #tpu.memory_space<semaphore_mem>>
      %79 = tpu.memref_squeeze %78 : memref<1x1x!tpu.dma_semaphore, #tpu.memory_space<semaphore_mem>> -> memref<!tpu.dma_semaphore, #tpu.memory_space<semaphore_mem>>
      tpu.wait_dma2 semaphore(%79 : memref<!tpu.dma_semaphore, #tpu.memory_space<semaphore_mem>>) src(%76 : memref<1x4x128xbf16, #tpu.memory_space<any>>) dst(%77 : memref<1x4x128xbf16, #tpu.memory_space<vmem>>)
    } else {
    }
    %c0 = arith.constant 0 : index
    %c0_38 = arith.constant 0 : index
    %c0_39 = arith.constant 0 : index
    %36 = vector.load %arg6[%c0, %c0_38, %c0_39] : memref<4x4x128xbf16, #tpu.memory_space<vmem>>, vector<4x4x128xbf16>
    %cst = arith.constant 0.000000e+00 : bf16
    %37 = vector.broadcast %cst : bf16 to vector<4x1x128xbf16>
    %38 = vector.extract_strided_slice %36 {offsets = [0, 0, 0], sizes = [4, 3, 128], strides = [1, 1, 1]} : vector<4x4x128xbf16> to vector<4x3x128xbf16>
    %39 = tpu.concatenate %37, %38 in 1 : vector<4x1x128xbf16>, vector<4x3x128xbf16> -> vector<4x4x128xbf16>
    %40 = vector.extract_strided_slice %36 {offsets = [0, 1, 0], sizes = [4, 3, 128], strides = [1, 1, 1]} : vector<4x4x128xbf16> to vector<4x3x128xbf16>
    %41 = tpu.concatenate %40, %37 in 1 : vector<4x3x128xbf16>, vector<4x1x128xbf16> -> vector<4x4x128xbf16>
    %42 = vector.extract_strided_slice %39 {offsets = [0, 0, 0], sizes = [2, 4, 128], strides = [1, 1, 1]} : vector<4x4x128xbf16> to vector<2x4x128xbf16>
    %43 = vector.extract_strided_slice %36 {offsets = [0, 0, 0], sizes = [2, 4, 128], strides = [1, 1, 1]} : vector<4x4x128xbf16> to vector<2x4x128xbf16>
    %44 = vector.extract_strided_slice %41 {offsets = [0, 0, 0], sizes = [2, 4, 128], strides = [1, 1, 1]} : vector<4x4x128xbf16> to vector<2x4x128xbf16>
    %45 = tpu.concatenate %42, %43, %44 in 2 : vector<2x4x128xbf16>, vector<2x4x128xbf16>, vector<2x4x128xbf16> -> vector<2x4x384xbf16>
    %46 = vector.shape_cast %45 : vector<2x4x384xbf16> to vector<8x384xbf16>
    %c0_40 = arith.constant 0 : index
    %c0_41 = arith.constant 0 : index
    %47 = vector.load %arg3[%c0_40, %c0_41] : memref<1152x128xbf16, #tpu.memory_space<vmem>>, vector<384x128xbf16>
    %cst_42 = arith.constant dense<0.000000e+00> : vector<8x128xf32>
    %48 = tpu.matmul %46, %47, %cst_42 {dimension_numbers = #tpu.dot_dimension_numbers<[1], [0], [0], [1], [0, 0, 1, 1], [], []>} : vector<8x384xbf16>, vector<384x128xbf16>, vector<8x128xf32> -> vector<8x128xf32>
    %49 = vector.extract_strided_slice %39 {offsets = [1, 0, 0], sizes = [2, 4, 128], strides = [1, 1, 1]} : vector<4x4x128xbf16> to vector<2x4x128xbf16>
    %50 = vector.extract_strided_slice %36 {offsets = [1, 0, 0], sizes = [2, 4, 128], strides = [1, 1, 1]} : vector<4x4x128xbf16> to vector<2x4x128xbf16>
    %51 = vector.extract_strided_slice %41 {offsets = [1, 0, 0], sizes = [2, 4, 128], strides = [1, 1, 1]} : vector<4x4x128xbf16> to vector<2x4x128xbf16>
    %52 = tpu.concatenate %49, %50, %51 in 2 : vector<2x4x128xbf16>, vector<2x4x128xbf16>, vector<2x4x128xbf16> -> vector<2x4x384xbf16>
    %53 = vector.shape_cast %52 : vector<2x4x384xbf16> to vector<8x384xbf16>
    %c384 = arith.constant 384 : index
    %c0_43 = arith.constant 0 : index
    %54 = vector.load %arg3[%c384, %c0_43] : memref<1152x128xbf16, #tpu.memory_space<vmem>>, vector<384x128xbf16>
    %cst_44 = arith.constant dense<0.000000e+00> : vector<8x128xf32>
    %55 = tpu.matmul %53, %54, %cst_44 {dimension_numbers = #tpu.dot_dimension_numbers<[1], [0], [0], [1], [0, 0, 1, 1], [], []>} : vector<8x384xbf16>, vector<384x128xbf16>, vector<8x128xf32> -> vector<8x128xf32>
    %56 = arith.addf %48, %55 : vector<8x128xf32>
    %57 = vector.extract_strided_slice %39 {offsets = [2, 0, 0], sizes = [2, 4, 128], strides = [1, 1, 1]} : vector<4x4x128xbf16> to vector<2x4x128xbf16>
    %58 = vector.extract_strided_slice %36 {offsets = [2, 0, 0], sizes = [2, 4, 128], strides = [1, 1, 1]} : vector<4x4x128xbf16> to vector<2x4x128xbf16>
    %59 = vector.extract_strided_slice %41 {offsets = [2, 0, 0], sizes = [2, 4, 128], strides = [1, 1, 1]} : vector<4x4x128xbf16> to vector<2x4x128xbf16>
    %60 = tpu.concatenate %57, %58, %59 in 2 : vector<2x4x128xbf16>, vector<2x4x128xbf16>, vector<2x4x128xbf16> -> vector<2x4x384xbf16>
    %61 = vector.shape_cast %60 : vector<2x4x384xbf16> to vector<8x384xbf16>
    %c768 = arith.constant 768 : index
    %c0_45 = arith.constant 0 : index
    %62 = vector.load %arg3[%c768, %c0_45] : memref<1152x128xbf16, #tpu.memory_space<vmem>>, vector<384x128xbf16>
    %cst_46 = arith.constant dense<0.000000e+00> : vector<8x128xf32>
    %63 = tpu.matmul %61, %62, %cst_46 {dimension_numbers = #tpu.dot_dimension_numbers<[1], [0], [0], [1], [0, 0, 1, 1], [], []>} : vector<8x384xbf16>, vector<384x128xbf16>, vector<8x128xf32> -> vector<8x128xf32>
    %64 = arith.addf %56, %63 : vector<8x128xf32>
    %c0_47 = arith.constant 0 : index
    %c0_48 = arith.constant 0 : index
    %65 = vector.load %arg4[%c0_47, %c0_48] : memref<1x128xf32, #tpu.memory_space<vmem>>, vector<1x128xf32>
    %66 = vector.broadcast %65 : vector<1x128xf32> to vector<8x128xf32>
    %67 = arith.addf %64, %66 : vector<8x128xf32>
    %cst_49 = arith.constant 0.000000e+00 : f32
    %68 = vector.broadcast %cst_49 : f32 to vector<8x128xf32>
    %69 = arith.maximumf %67, %68 : vector<8x128xf32>
    %70 = vector.shape_cast %69 : vector<8x128xf32> to vector<2x4x128xf32>
    %71 = arith.truncf %70 : vector<2x4x128xf32> to vector<2x4x128xbf16>
    %c0_50 = arith.constant 0 : index
    %c0_51 = arith.constant 0 : index
    %c0_52 = arith.constant 0 : index
    %c0_53 = arith.constant 0 : index
    %72 = vector.load %arg5[%c0_50, %c0_51, %c0_52, %c0_53] : memref<1x2x4x128xbf16, #tpu.memory_space<vmem>>, vector<1x2x4x128xbf16>
    %73 = vector.shape_cast %72 : vector<1x2x4x128xbf16> to vector<2x4x128xbf16>
    %74 = vector.shape_cast %71 : vector<2x4x128xbf16> to vector<1x2x4x128xbf16>
    tpu.vector_store %arg5[%c0_50, %c0_51, %c0_52, %c0_53], %74 {strides = array<i32>} : memref<1x2x4x128xbf16, #tpu.memory_space<vmem>>, vector<1x2x4x128xbf16>,
    return
  }
  func.func @transform_1(%arg0: i32, %arg1: i32) -> (i32, i32) {
    %c0_i32 = arith.constant 0 : i32
    %c0_i32_0 = arith.constant 0 : i32
    %c0_i32_1 = arith.constant 0 : i32
    return %c0_i32, %c0_i32_0 : i32, i32
  }
  func.func @transform_2(%arg0: i32, %arg1: i32) -> (i32, i32) {
    %c0_i32 = arith.constant 0 : i32
    %c0_i32_0 = arith.constant 0 : i32
    %c0_i32_1 = arith.constant 0 : i32
    return %c0_i32, %c0_i32_0 : i32, i32
  }
  func.func @transform_3(%arg0: i32, %arg1: i32) -> (i32, i32, i32, i32) {
    %c0_i32 = arith.constant 0 : i32
    %c0_i32_0 = arith.constant 0 : i32
    %c0_i32_1 = arith.constant 0 : i32
    return %arg0, %arg1, %c0_i32, %c0_i32_0 : i32, i32, i32, i32
  }
}

module attributes {stable_mosaic.version = 11 : i64} {
  func.func @_conv_kernel(%arg0: i32, %arg1: i32, %arg2: memref<2x4x4x128xbf16, #tpu.memory_space<any>>, %arg3: memref<1152x128xbf16, #tpu.memory_space<vmem>>, %arg4: memref<1x128xf32, #tpu.memory_space<vmem>>, %arg5: memref<1x2x4x128xbf16, #tpu.memory_space<vmem>>, %arg6: memref<6x4x128xbf16, #tpu.memory_space<vmem>>, %arg7: memref<1x3x!tpu.dma_semaphore, #tpu.memory_space<semaphore_mem>>) attributes {dimension_semantics = [#tpu.dimension_semantics<parallel>, #tpu.dimension_semantics<parallel>], iteration_bounds = array<i64: 2, 2>, scalar_prefetch = 0 : i64, scratch_operands = 2 : i64, tpu.core_type = #tpu.core_type<tc>, window_params = [{}, {pipeline_mode = #tpu.pipeline_mode<synchronous>, transform_indices = @transform_1, window_bounds = array<i64: 1152, 128>}, {pipeline_mode = #tpu.pipeline_mode<synchronous>, transform_indices = @transform_2, window_bounds = array<i64: 1, 128>}, {transform_indices = @transform_3, window_bounds = array<i64: 1, 2, 4, 128>}]} {
    %c2_i32 = arith.constant 2 : i32
    %0 = arith.muli %arg1, %c2_i32 : i32
    %c2_i32_0 = arith.constant 2 : i32
    %1 = arith.subi %0, %c2_i32_0 : i32
    %c0_i32 = arith.constant 0 : i32
    %2 = arith.maxsi %1, %c0_i32 : i32
    %c1_i32 = arith.constant 1 : i32
    %3 = arith.addi %arg1, %c1_i32 : i32
    %c2_i32_1 = arith.constant 2 : i32
    %4 = arith.muli %3, %c2_i32_1 : i32
    %c0_i32_2 = arith.constant 0 : i32
    %c2_i32_3 = arith.constant 2 : i32
    %5 = arith.maxsi %c0_i32_2, %4 : i32
    %6 = arith.minsi %c2_i32_3, %5 : i32
    %c2_i32_4 = arith.constant 2 : i32
    %7 = arith.muli %arg1, %c2_i32_4 : i32
    %c0_i32_5 = arith.constant 0 : i32
    %c0_i32_6 = arith.constant 0 : i32
    %c0_i32_7 = arith.constant 0 : i32
    %c0_i32_8 = arith.constant 0 : i32
    %8 = tpu.memref_slice %arg2[%arg0, %7, %c0_i32_7, %c0_i32_8] : memref<2x4x4x128xbf16, #tpu.memory_space<any>> -> memref<1x2x4x128xbf16, #tpu.memory_space<any>>
    %9 = tpu.memref_squeeze %8 : memref<1x2x4x128xbf16, #tpu.memory_space<any>> -> memref<2x4x128xbf16, #tpu.memory_space<any>>
    %c2_i32_9 = arith.constant 2 : i32
    %c0_i32_10 = arith.constant 0 : i32
    %c0_i32_11 = arith.constant 0 : i32
    %10 = tpu.memref_slice %arg6[%c2_i32_9, %c0_i32_10, %c0_i32_11] : memref<6x4x128xbf16, #tpu.memory_space<vmem>> -> memref<2x4x128xbf16, #tpu.memory_space<vmem>>
    %11 = tpu.memref_slice %arg7[%c0_i32_5, %c0_i32_6] : memref<1x3x!tpu.dma_semaphore, #tpu.memory_space<semaphore_mem>> -> memref<1x1x!tpu.dma_semaphore, #tpu.memory_space<semaphore_mem>>
    %12 = tpu.memref_squeeze %11 : memref<1x1x!tpu.dma_semaphore, #tpu.memory_space<semaphore_mem>> -> memref<!tpu.dma_semaphore, #tpu.memory_space<semaphore_mem>>
    tpu.enqueue_dma source(%9 : memref<2x4x128xbf16, #tpu.memory_space<any>>) target(%10 : memref<2x4x128xbf16, #tpu.memory_space<vmem>>) target_semaphore(%12 : memref<!tpu.dma_semaphore, #tpu.memory_space<semaphore_mem>>)
    %c0_i32_12 = arith.constant 0 : i32
    %13 = arith.cmpi sgt, %arg1, %c0_i32_12 : i32
    %14 = arith.extui %13 : i1 to i32
    %c0_i32_13 = arith.constant 0 : i32
    %c1_i32_14 = arith.constant 1 : i32
    %c0_i32_15 = arith.constant 0 : i32
    %15 = arith.cmpi ne, %14, %c0_i32_15 : i32
    scf.if %15 {
      %c0_i32_55 = arith.constant 0 : i32
      %c0_i32_56 = arith.constant 0 : i32
      %75 = tpu.memref_slice %arg2[%arg0, %2, %c0_i32_55, %c0_i32_56] : memref<2x4x4x128xbf16, #tpu.memory_space<any>> -> memref<1x2x4x128xbf16, #tpu.memory_space<any>>
      %76 = tpu.memref_squeeze %75 : memref<1x2x4x128xbf16, #tpu.memory_space<any>> -> memref<2x4x128xbf16, #tpu.memory_space<any>>
      %c0_i32_57 = arith.constant 0 : i32
      %c0_i32_58 = arith.constant 0 : i32
      %c0_i32_59 = arith.constant 0 : i32
      %77 = tpu.memref_slice %arg6[%c0_i32_57, %c0_i32_58, %c0_i32_59] : memref<6x4x128xbf16, #tpu.memory_space<vmem>> -> memref<2x4x128xbf16, #tpu.memory_space<vmem>>
      %78 = tpu.memref_slice %arg7[%c0_i32_13, %c1_i32_14] : memref<1x3x!tpu.dma_semaphore, #tpu.memory_space<semaphore_mem>> -> memref<1x1x!tpu.dma_semaphore, #tpu.memory_space<semaphore_mem>>
      %79 = tpu.memref_squeeze %78 : memref<1x1x!tpu.dma_semaphore, #tpu.memory_space<semaphore_mem>> -> memref<!tpu.dma_semaphore, #tpu.memory_space<semaphore_mem>>
      tpu.enqueue_dma source(%76 : memref<2x4x128xbf16, #tpu.memory_space<any>>) target(%77 : memref<2x4x128xbf16, #tpu.memory_space<vmem>>) target_semaphore(%79 : memref<!tpu.dma_semaphore, #tpu.memory_space<semaphore_mem>>)
    } else {
    }
    %c1_i32_16 = arith.constant 1 : i32
    %16 = arith.cmpi slt, %arg1, %c1_i32_16 : i32
    %17 = arith.extui %16 : i1 to i32
    %c0_i32_17 = arith.constant 0 : i32
    %c2_i32_18 = arith.constant 2 : i32
    %c0_i32_19 = arith.constant 0 : i32
    %18 = arith.cmpi ne, %17, %c0_i32_19 : i32
    scf.if %18 {
      %c0_i32_55 = arith.constant 0 : i32
      %c0_i32_56 = arith.constant 0 : i32
      %75 = tpu.memref_slice %arg2[%arg0, %6, %c0_i32_55, %c0_i32_56] : memref<2x4x4x128xbf16, #tpu.memory_space<any>> -> memref<1x2x4x128xbf16, #tpu.memory_space<any>>
      %76 = tpu.memref_squeeze %75 : memref<1x2x4x128xbf16, #tpu.memory_space<any>> -> memref<2x4x128xbf16, #tpu.memory_space<any>>
      %c4_i32 = arith.constant 4 : i32
      %c0_i32_57 = arith.constant 0 : i32
      %c0_i32_58 = arith.constant 0 : i32
      %77 = tpu.memref_slice %arg6[%c4_i32, %c0_i32_57, %c0_i32_58] : memref<6x4x128xbf16, #tpu.memory_space<vmem>> -> memref<2x4x128xbf16, #tpu.memory_space<vmem>>
      %78 = tpu.memref_slice %arg7[%c0_i32_17, %c2_i32_18] : memref<1x3x!tpu.dma_semaphore, #tpu.memory_space<semaphore_mem>> -> memref<1x1x!tpu.dma_semaphore, #tpu.memory_space<semaphore_mem>>
      %79 = tpu.memref_squeeze %78 : memref<1x1x!tpu.dma_semaphore, #tpu.memory_space<semaphore_mem>> -> memref<!tpu.dma_semaphore, #tpu.memory_space<semaphore_mem>>
      tpu.enqueue_dma source(%76 : memref<2x4x128xbf16, #tpu.memory_space<any>>) target(%77 : memref<2x4x128xbf16, #tpu.memory_space<vmem>>) target_semaphore(%79 : memref<!tpu.dma_semaphore, #tpu.memory_space<semaphore_mem>>)
    } else {
    }
    %c0_i32_20 = arith.constant 0 : i32
    %19 = arith.cmpi eq, %arg1, %c0_i32_20 : i32
    %20 = arith.extui %19 : i1 to i32
    %c0_i32_21 = arith.constant 0 : i32
    %21 = arith.cmpi ne, %20, %c0_i32_21 : i32
    scf.if %21 {
      %cst_55 = arith.constant 0.000000e+00 : bf16
      %75 = vector.broadcast %cst_55 : bf16 to vector<2x4x128xbf16>
      %c0_56 = arith.constant 0 : index
      %c0_57 = arith.constant 0 : index
      %c0_58 = arith.constant 0 : index
      %76 = vector.load %arg6[%c0_56, %c0_57, %c0_58] : memref<6x4x128xbf16, #tpu.memory_space<vmem>>, vector<2x4x128xbf16>
      tpu.vector_store %arg6[%c0_56, %c0_57, %c0_58], %75 {strides = array<i32>} : memref<6x4x128xbf16, #tpu.memory_space<vmem>>, vector<2x4x128xbf16>,
    } else {
    }
    %c1_i32_22 = arith.constant 1 : i32
    %22 = arith.cmpi eq, %arg1, %c1_i32_22 : i32
    %23 = arith.extui %22 : i1 to i32
    %c0_i32_23 = arith.constant 0 : i32
    %24 = arith.cmpi ne, %23, %c0_i32_23 : i32
    scf.if %24 {
      %cst_55 = arith.constant 0.000000e+00 : bf16
      %75 = vector.broadcast %cst_55 : bf16 to vector<2x4x128xbf16>
      %c4 = arith.constant 4 : index
      %c0_56 = arith.constant 0 : index
      %c0_57 = arith.constant 0 : index
      %76 = vector.load %arg6[%c4, %c0_56, %c0_57] : memref<6x4x128xbf16, #tpu.memory_space<vmem>>, vector<2x4x128xbf16>
      tpu.vector_store %arg6[%c4, %c0_56, %c0_57], %75 {strides = array<i32>} : memref<6x4x128xbf16, #tpu.memory_space<vmem>>, vector<2x4x128xbf16>,
    } else {
    }
    %c0_i32_24 = arith.constant 0 : i32
    %c0_i32_25 = arith.constant 0 : i32
    %c0_i32_26 = arith.constant 0 : i32
    %c0_i32_27 = arith.constant 0 : i32
    %25 = tpu.memref_slice %arg2[%arg0, %7, %c0_i32_26, %c0_i32_27] : memref<2x4x4x128xbf16, #tpu.memory_space<any>> -> memref<1x2x4x128xbf16, #tpu.memory_space<any>>
    %26 = tpu.memref_squeeze %25 : memref<1x2x4x128xbf16, #tpu.memory_space<any>> -> memref<2x4x128xbf16, #tpu.memory_space<any>>
    %c2_i32_28 = arith.constant 2 : i32
    %c0_i32_29 = arith.constant 0 : i32
    %c0_i32_30 = arith.constant 0 : i32
    %27 = tpu.memref_slice %arg6[%c2_i32_28, %c0_i32_29, %c0_i32_30] : memref<6x4x128xbf16, #tpu.memory_space<vmem>> -> memref<2x4x128xbf16, #tpu.memory_space<vmem>>
    %28 = tpu.memref_slice %arg7[%c0_i32_24, %c0_i32_25] : memref<1x3x!tpu.dma_semaphore, #tpu.memory_space<semaphore_mem>> -> memref<1x1x!tpu.dma_semaphore, #tpu.memory_space<semaphore_mem>>
    %29 = tpu.memref_squeeze %28 : memref<1x1x!tpu.dma_semaphore, #tpu.memory_space<semaphore_mem>> -> memref<!tpu.dma_semaphore, #tpu.memory_space<semaphore_mem>>
    tpu.wait_dma2 semaphore(%29 : memref<!tpu.dma_semaphore, #tpu.memory_space<semaphore_mem>>) src(%26 : memref<2x4x128xbf16, #tpu.memory_space<any>>) dst(%27 : memref<2x4x128xbf16, #tpu.memory_space<vmem>>)
    %c0_i32_31 = arith.constant 0 : i32
    %30 = arith.cmpi sgt, %arg1, %c0_i32_31 : i32
    %31 = arith.extui %30 : i1 to i32
    %c0_i32_32 = arith.constant 0 : i32
    %c1_i32_33 = arith.constant 1 : i32
    %c0_i32_34 = arith.constant 0 : i32
    %32 = arith.cmpi ne, %31, %c0_i32_34 : i32
    scf.if %32 {
      %c0_i32_55 = arith.constant 0 : i32
      %c0_i32_56 = arith.constant 0 : i32
      %75 = tpu.memref_slice %arg2[%arg0, %2, %c0_i32_55, %c0_i32_56] : memref<2x4x4x128xbf16, #tpu.memory_space<any>> -> memref<1x2x4x128xbf16, #tpu.memory_space<any>>
      %76 = tpu.memref_squeeze %75 : memref<1x2x4x128xbf16, #tpu.memory_space<any>> -> memref<2x4x128xbf16, #tpu.memory_space<any>>
      %c0_i32_57 = arith.constant 0 : i32
      %c0_i32_58 = arith.constant 0 : i32
      %c0_i32_59 = arith.constant 0 : i32
      %77 = tpu.memref_slice %arg6[%c0_i32_57, %c0_i32_58, %c0_i32_59] : memref<6x4x128xbf16, #tpu.memory_space<vmem>> -> memref<2x4x128xbf16, #tpu.memory_space<vmem>>
      %78 = tpu.memref_slice %arg7[%c0_i32_32, %c1_i32_33] : memref<1x3x!tpu.dma_semaphore, #tpu.memory_space<semaphore_mem>> -> memref<1x1x!tpu.dma_semaphore, #tpu.memory_space<semaphore_mem>>
      %79 = tpu.memref_squeeze %78 : memref<1x1x!tpu.dma_semaphore, #tpu.memory_space<semaphore_mem>> -> memref<!tpu.dma_semaphore, #tpu.memory_space<semaphore_mem>>
      tpu.wait_dma2 semaphore(%79 : memref<!tpu.dma_semaphore, #tpu.memory_space<semaphore_mem>>) src(%76 : memref<2x4x128xbf16, #tpu.memory_space<any>>) dst(%77 : memref<2x4x128xbf16, #tpu.memory_space<vmem>>)
    } else {
    }
    %c1_i32_35 = arith.constant 1 : i32
    %33 = arith.cmpi slt, %arg1, %c1_i32_35 : i32
    %34 = arith.extui %33 : i1 to i32
    %c0_i32_36 = arith.constant 0 : i32
    %c2_i32_37 = arith.constant 2 : i32
    %c0_i32_38 = arith.constant 0 : i32
    %35 = arith.cmpi ne, %34, %c0_i32_38 : i32
    scf.if %35 {
      %c0_i32_55 = arith.constant 0 : i32
      %c0_i32_56 = arith.constant 0 : i32
      %75 = tpu.memref_slice %arg2[%arg0, %6, %c0_i32_55, %c0_i32_56] : memref<2x4x4x128xbf16, #tpu.memory_space<any>> -> memref<1x2x4x128xbf16, #tpu.memory_space<any>>
      %76 = tpu.memref_squeeze %75 : memref<1x2x4x128xbf16, #tpu.memory_space<any>> -> memref<2x4x128xbf16, #tpu.memory_space<any>>
      %c4_i32 = arith.constant 4 : i32
      %c0_i32_57 = arith.constant 0 : i32
      %c0_i32_58 = arith.constant 0 : i32
      %77 = tpu.memref_slice %arg6[%c4_i32, %c0_i32_57, %c0_i32_58] : memref<6x4x128xbf16, #tpu.memory_space<vmem>> -> memref<2x4x128xbf16, #tpu.memory_space<vmem>>
      %78 = tpu.memref_slice %arg7[%c0_i32_36, %c2_i32_37] : memref<1x3x!tpu.dma_semaphore, #tpu.memory_space<semaphore_mem>> -> memref<1x1x!tpu.dma_semaphore, #tpu.memory_space<semaphore_mem>>
      %79 = tpu.memref_squeeze %78 : memref<1x1x!tpu.dma_semaphore, #tpu.memory_space<semaphore_mem>> -> memref<!tpu.dma_semaphore, #tpu.memory_space<semaphore_mem>>
      tpu.wait_dma2 semaphore(%79 : memref<!tpu.dma_semaphore, #tpu.memory_space<semaphore_mem>>) src(%76 : memref<2x4x128xbf16, #tpu.memory_space<any>>) dst(%77 : memref<2x4x128xbf16, #tpu.memory_space<vmem>>)
    } else {
    }
    %c0 = arith.constant 0 : index
    %c0_39 = arith.constant 0 : index
    %c0_40 = arith.constant 0 : index
    %36 = vector.load %arg6[%c0, %c0_39, %c0_40] : memref<6x4x128xbf16, #tpu.memory_space<vmem>>, vector<6x4x128xbf16>
    %cst = arith.constant 0.000000e+00 : bf16
    %37 = vector.broadcast %cst : bf16 to vector<6x2x128xbf16>
    %38 = vector.extract_strided_slice %36 {offsets = [0, 0, 0], sizes = [6, 2, 128], strides = [1, 1, 1]} : vector<6x4x128xbf16> to vector<6x2x128xbf16>
    %39 = tpu.concatenate %37, %38 in 1 : vector<6x2x128xbf16>, vector<6x2x128xbf16> -> vector<6x4x128xbf16>
    %40 = vector.extract_strided_slice %36 {offsets = [0, 2, 0], sizes = [6, 2, 128], strides = [1, 1, 1]} : vector<6x4x128xbf16> to vector<6x2x128xbf16>
    %41 = tpu.concatenate %40, %37 in 1 : vector<6x2x128xbf16>, vector<6x2x128xbf16> -> vector<6x4x128xbf16>
    %42 = vector.extract_strided_slice %39 {offsets = [0, 0, 0], sizes = [2, 4, 128], strides = [1, 1, 1]} : vector<6x4x128xbf16> to vector<2x4x128xbf16>
    %43 = vector.extract_strided_slice %36 {offsets = [0, 0, 0], sizes = [2, 4, 128], strides = [1, 1, 1]} : vector<6x4x128xbf16> to vector<2x4x128xbf16>
    %44 = vector.extract_strided_slice %41 {offsets = [0, 0, 0], sizes = [2, 4, 128], strides = [1, 1, 1]} : vector<6x4x128xbf16> to vector<2x4x128xbf16>
    %45 = tpu.concatenate %42, %43, %44 in 2 : vector<2x4x128xbf16>, vector<2x4x128xbf16>, vector<2x4x128xbf16> -> vector<2x4x384xbf16>
    %46 = vector.shape_cast %45 : vector<2x4x384xbf16> to vector<8x384xbf16>
    %c0_41 = arith.constant 0 : index
    %c0_42 = arith.constant 0 : index
    %47 = vector.load %arg3[%c0_41, %c0_42] : memref<1152x128xbf16, #tpu.memory_space<vmem>>, vector<384x128xbf16>
    %cst_43 = arith.constant dense<0.000000e+00> : vector<8x128xf32>
    %48 = tpu.matmul %46, %47, %cst_43 {dimension_numbers = #tpu.dot_dimension_numbers<[1], [0], [0], [1], [0, 0, 1, 1], [], []>} : vector<8x384xbf16>, vector<384x128xbf16>, vector<8x128xf32> -> vector<8x128xf32>
    %49 = vector.extract_strided_slice %39 {offsets = [2, 0, 0], sizes = [2, 4, 128], strides = [1, 1, 1]} : vector<6x4x128xbf16> to vector<2x4x128xbf16>
    %50 = vector.extract_strided_slice %36 {offsets = [2, 0, 0], sizes = [2, 4, 128], strides = [1, 1, 1]} : vector<6x4x128xbf16> to vector<2x4x128xbf16>
    %51 = vector.extract_strided_slice %41 {offsets = [2, 0, 0], sizes = [2, 4, 128], strides = [1, 1, 1]} : vector<6x4x128xbf16> to vector<2x4x128xbf16>
    %52 = tpu.concatenate %49, %50, %51 in 2 : vector<2x4x128xbf16>, vector<2x4x128xbf16>, vector<2x4x128xbf16> -> vector<2x4x384xbf16>
    %53 = vector.shape_cast %52 : vector<2x4x384xbf16> to vector<8x384xbf16>
    %c384 = arith.constant 384 : index
    %c0_44 = arith.constant 0 : index
    %54 = vector.load %arg3[%c384, %c0_44] : memref<1152x128xbf16, #tpu.memory_space<vmem>>, vector<384x128xbf16>
    %cst_45 = arith.constant dense<0.000000e+00> : vector<8x128xf32>
    %55 = tpu.matmul %53, %54, %cst_45 {dimension_numbers = #tpu.dot_dimension_numbers<[1], [0], [0], [1], [0, 0, 1, 1], [], []>} : vector<8x384xbf16>, vector<384x128xbf16>, vector<8x128xf32> -> vector<8x128xf32>
    %56 = arith.addf %48, %55 : vector<8x128xf32>
    %57 = vector.extract_strided_slice %39 {offsets = [4, 0, 0], sizes = [2, 4, 128], strides = [1, 1, 1]} : vector<6x4x128xbf16> to vector<2x4x128xbf16>
    %58 = vector.extract_strided_slice %36 {offsets = [4, 0, 0], sizes = [2, 4, 128], strides = [1, 1, 1]} : vector<6x4x128xbf16> to vector<2x4x128xbf16>
    %59 = vector.extract_strided_slice %41 {offsets = [4, 0, 0], sizes = [2, 4, 128], strides = [1, 1, 1]} : vector<6x4x128xbf16> to vector<2x4x128xbf16>
    %60 = tpu.concatenate %57, %58, %59 in 2 : vector<2x4x128xbf16>, vector<2x4x128xbf16>, vector<2x4x128xbf16> -> vector<2x4x384xbf16>
    %61 = vector.shape_cast %60 : vector<2x4x384xbf16> to vector<8x384xbf16>
    %c768 = arith.constant 768 : index
    %c0_46 = arith.constant 0 : index
    %62 = vector.load %arg3[%c768, %c0_46] : memref<1152x128xbf16, #tpu.memory_space<vmem>>, vector<384x128xbf16>
    %cst_47 = arith.constant dense<0.000000e+00> : vector<8x128xf32>
    %63 = tpu.matmul %61, %62, %cst_47 {dimension_numbers = #tpu.dot_dimension_numbers<[1], [0], [0], [1], [0, 0, 1, 1], [], []>} : vector<8x384xbf16>, vector<384x128xbf16>, vector<8x128xf32> -> vector<8x128xf32>
    %64 = arith.addf %56, %63 : vector<8x128xf32>
    %c0_48 = arith.constant 0 : index
    %c0_49 = arith.constant 0 : index
    %65 = vector.load %arg4[%c0_48, %c0_49] : memref<1x128xf32, #tpu.memory_space<vmem>>, vector<1x128xf32>
    %66 = vector.broadcast %65 : vector<1x128xf32> to vector<8x128xf32>
    %67 = arith.addf %64, %66 : vector<8x128xf32>
    %cst_50 = arith.constant 0.000000e+00 : f32
    %68 = vector.broadcast %cst_50 : f32 to vector<8x128xf32>
    %69 = arith.maximumf %67, %68 : vector<8x128xf32>
    %70 = vector.shape_cast %69 : vector<8x128xf32> to vector<2x4x128xf32>
    %71 = arith.truncf %70 : vector<2x4x128xf32> to vector<2x4x128xbf16>
    %c0_51 = arith.constant 0 : index
    %c0_52 = arith.constant 0 : index
    %c0_53 = arith.constant 0 : index
    %c0_54 = arith.constant 0 : index
    %72 = vector.load %arg5[%c0_51, %c0_52, %c0_53, %c0_54] : memref<1x2x4x128xbf16, #tpu.memory_space<vmem>>, vector<1x2x4x128xbf16>
    %73 = vector.shape_cast %72 : vector<1x2x4x128xbf16> to vector<2x4x128xbf16>
    %74 = vector.shape_cast %71 : vector<2x4x128xbf16> to vector<1x2x4x128xbf16>
    tpu.vector_store %arg5[%c0_51, %c0_52, %c0_53, %c0_54], %74 {strides = array<i32>} : memref<1x2x4x128xbf16, #tpu.memory_space<vmem>>, vector<1x2x4x128xbf16>,
    return
  }
  func.func @transform_1(%arg0: i32, %arg1: i32) -> (i32, i32) {
    %c0_i32 = arith.constant 0 : i32
    %c0_i32_0 = arith.constant 0 : i32
    %c0_i32_1 = arith.constant 0 : i32
    return %c0_i32, %c0_i32_0 : i32, i32
  }
  func.func @transform_2(%arg0: i32, %arg1: i32) -> (i32, i32) {
    %c0_i32 = arith.constant 0 : i32
    %c0_i32_0 = arith.constant 0 : i32
    %c0_i32_1 = arith.constant 0 : i32
    return %c0_i32, %c0_i32_0 : i32, i32
  }
  func.func @transform_3(%arg0: i32, %arg1: i32) -> (i32, i32, i32, i32) {
    %c0_i32 = arith.constant 0 : i32
    %c0_i32_0 = arith.constant 0 : i32
    %c0_i32_1 = arith.constant 0 : i32
    return %arg0, %arg1, %c0_i32, %c0_i32_0 : i32, i32, i32, i32
  }
}

module attributes {stable_mosaic.version = 11 : i64} {
  func.func @_colinterp_kernel(%arg0: i32, %arg1: i32, %arg2: memref<16x4xf32, #tpu.memory_space<vmem>>, %arg3: memref<1x8x4x128xf32, #tpu.memory_space<vmem>>, %arg4: memref<1x8x16x128xbf16, #tpu.memory_space<vmem>>) attributes {dimension_semantics = [#tpu.dimension_semantics<parallel>, #tpu.dimension_semantics<parallel>], iteration_bounds = array<i64: 2, 2>, scalar_prefetch = 0 : i64, scratch_operands = 0 : i64, tpu.core_type = #tpu.core_type<tc>, window_params = [{pipeline_mode = #tpu.pipeline_mode<synchronous>, transform_indices = @transform_0, window_bounds = array<i64: 16, 4>}, {transform_indices = @transform_1, window_bounds = array<i64: 1, 8, 4, 128>}, {transform_indices = @transform_2, window_bounds = array<i64: 1, 8, 16, 128>}]} {
    %c0 = arith.constant 0 : index
    %c0_0 = arith.constant 0 : index
    %0 = vector.load %arg2[%c0, %c0_0] : memref<16x4xf32, #tpu.memory_space<vmem>>, vector<16x4xf32>
    %c0_1 = arith.constant 0 : index
    %c0_2 = arith.constant 0 : index
    %c0_3 = arith.constant 0 : index
    %c0_4 = arith.constant 0 : index
    %1 = vector.load %arg3[%c0_1, %c0_2, %c0_3, %c0_4] : memref<1x8x4x128xf32, #tpu.memory_space<vmem>>, vector<1x1x4x128xf32>
    %2 = vector.shape_cast %1 : vector<1x1x4x128xf32> to vector<4x128xf32>
    %cst = arith.constant dense<0.000000e+00> : vector<16x128xf32>
    %3 = tpu.matmul %0, %2, %cst {dimension_numbers = #tpu.dot_dimension_numbers<[1], [0], [0], [1], [0, 0, 1, 1], [], []>} : vector<16x4xf32>, vector<4x128xf32>, vector<16x128xf32> -> vector<16x128xf32>
    %c0_5 = arith.constant 0 : index
    %c1 = arith.constant 1 : index
    %c0_6 = arith.constant 0 : index
    %c0_7 = arith.constant 0 : index
    %4 = vector.load %arg3[%c0_5, %c1, %c0_6, %c0_7] : memref<1x8x4x128xf32, #tpu.memory_space<vmem>>, vector<1x1x4x128xf32>
    %5 = vector.shape_cast %4 : vector<1x1x4x128xf32> to vector<4x128xf32>
    %cst_8 = arith.constant dense<0.000000e+00> : vector<16x128xf32>
    %6 = tpu.matmul %0, %5, %cst_8 {dimension_numbers = #tpu.dot_dimension_numbers<[1], [0], [0], [1], [0, 0, 1, 1], [], []>} : vector<16x4xf32>, vector<4x128xf32>, vector<16x128xf32> -> vector<16x128xf32>
    %c0_9 = arith.constant 0 : index
    %c2 = arith.constant 2 : index
    %c0_10 = arith.constant 0 : index
    %c0_11 = arith.constant 0 : index
    %7 = vector.load %arg3[%c0_9, %c2, %c0_10, %c0_11] : memref<1x8x4x128xf32, #tpu.memory_space<vmem>>, vector<1x1x4x128xf32>
    %8 = vector.shape_cast %7 : vector<1x1x4x128xf32> to vector<4x128xf32>
    %cst_12 = arith.constant dense<0.000000e+00> : vector<16x128xf32>
    %9 = tpu.matmul %0, %8, %cst_12 {dimension_numbers = #tpu.dot_dimension_numbers<[1], [0], [0], [1], [0, 0, 1, 1], [], []>} : vector<16x4xf32>, vector<4x128xf32>, vector<16x128xf32> -> vector<16x128xf32>
    %c0_13 = arith.constant 0 : index
    %c3 = arith.constant 3 : index
    %c0_14 = arith.constant 0 : index
    %c0_15 = arith.constant 0 : index
    %10 = vector.load %arg3[%c0_13, %c3, %c0_14, %c0_15] : memref<1x8x4x128xf32, #tpu.memory_space<vmem>>, vector<1x1x4x128xf32>
    %11 = vector.shape_cast %10 : vector<1x1x4x128xf32> to vector<4x128xf32>
    %cst_16 = arith.constant dense<0.000000e+00> : vector<16x128xf32>
    %12 = tpu.matmul %0, %11, %cst_16 {dimension_numbers = #tpu.dot_dimension_numbers<[1], [0], [0], [1], [0, 0, 1, 1], [], []>} : vector<16x4xf32>, vector<4x128xf32>, vector<16x128xf32> -> vector<16x128xf32>
    %c0_17 = arith.constant 0 : index
    %c4 = arith.constant 4 : index
    %c0_18 = arith.constant 0 : index
    %c0_19 = arith.constant 0 : index
    %13 = vector.load %arg3[%c0_17, %c4, %c0_18, %c0_19] : memref<1x8x4x128xf32, #tpu.memory_space<vmem>>, vector<1x1x4x128xf32>
    %14 = vector.shape_cast %13 : vector<1x1x4x128xf32> to vector<4x128xf32>
    %cst_20 = arith.constant dense<0.000000e+00> : vector<16x128xf32>
    %15 = tpu.matmul %0, %14, %cst_20 {dimension_numbers = #tpu.dot_dimension_numbers<[1], [0], [0], [1], [0, 0, 1, 1], [], []>} : vector<16x4xf32>, vector<4x128xf32>, vector<16x128xf32> -> vector<16x128xf32>
    %c0_21 = arith.constant 0 : index
    %c5 = arith.constant 5 : index
    %c0_22 = arith.constant 0 : index
    %c0_23 = arith.constant 0 : index
    %16 = vector.load %arg3[%c0_21, %c5, %c0_22, %c0_23] : memref<1x8x4x128xf32, #tpu.memory_space<vmem>>, vector<1x1x4x128xf32>
    %17 = vector.shape_cast %16 : vector<1x1x4x128xf32> to vector<4x128xf32>
    %cst_24 = arith.constant dense<0.000000e+00> : vector<16x128xf32>
    %18 = tpu.matmul %0, %17, %cst_24 {dimension_numbers = #tpu.dot_dimension_numbers<[1], [0], [0], [1], [0, 0, 1, 1], [], []>} : vector<16x4xf32>, vector<4x128xf32>, vector<16x128xf32> -> vector<16x128xf32>
    %c0_25 = arith.constant 0 : index
    %c6 = arith.constant 6 : index
    %c0_26 = arith.constant 0 : index
    %c0_27 = arith.constant 0 : index
    %19 = vector.load %arg3[%c0_25, %c6, %c0_26, %c0_27] : memref<1x8x4x128xf32, #tpu.memory_space<vmem>>, vector<1x1x4x128xf32>
    %20 = vector.shape_cast %19 : vector<1x1x4x128xf32> to vector<4x128xf32>
    %cst_28 = arith.constant dense<0.000000e+00> : vector<16x128xf32>
    %21 = tpu.matmul %0, %20, %cst_28 {dimension_numbers = #tpu.dot_dimension_numbers<[1], [0], [0], [1], [0, 0, 1, 1], [], []>} : vector<16x4xf32>, vector<4x128xf32>, vector<16x128xf32> -> vector<16x128xf32>
    %c0_29 = arith.constant 0 : index
    %c7 = arith.constant 7 : index
    %c0_30 = arith.constant 0 : index
    %c0_31 = arith.constant 0 : index
    %22 = vector.load %arg3[%c0_29, %c7, %c0_30, %c0_31] : memref<1x8x4x128xf32, #tpu.memory_space<vmem>>, vector<1x1x4x128xf32>
    %23 = vector.shape_cast %22 : vector<1x1x4x128xf32> to vector<4x128xf32>
    %cst_32 = arith.constant dense<0.000000e+00> : vector<16x128xf32>
    %24 = tpu.matmul %0, %23, %cst_32 {dimension_numbers = #tpu.dot_dimension_numbers<[1], [0], [0], [1], [0, 0, 1, 1], [], []>} : vector<16x4xf32>, vector<4x128xf32>, vector<16x128xf32> -> vector<16x128xf32>
    %25 = vector.shape_cast %3 : vector<16x128xf32> to vector<1x16x128xf32>
    %26 = vector.shape_cast %6 : vector<16x128xf32> to vector<1x16x128xf32>
    %27 = vector.shape_cast %9 : vector<16x128xf32> to vector<1x16x128xf32>
    %28 = vector.shape_cast %12 : vector<16x128xf32> to vector<1x16x128xf32>
    %29 = vector.shape_cast %15 : vector<16x128xf32> to vector<1x16x128xf32>
    %30 = vector.shape_cast %18 : vector<16x128xf32> to vector<1x16x128xf32>
    %31 = vector.shape_cast %21 : vector<16x128xf32> to vector<1x16x128xf32>
    %32 = vector.shape_cast %24 : vector<16x128xf32> to vector<1x16x128xf32>
    %33 = tpu.concatenate %25, %26, %27, %28, %29, %30, %31, %32 in 0 : vector<1x16x128xf32>, vector<1x16x128xf32>, vector<1x16x128xf32>, vector<1x16x128xf32>, vector<1x16x128xf32>, vector<1x16x128xf32>, vector<1x16x128xf32>, vector<1x16x128xf32> -> vector<8x16x128xf32>
    %34 = arith.truncf %33 : vector<8x16x128xf32> to vector<8x16x128xbf16>
    %c0_33 = arith.constant 0 : index
    %c0_34 = arith.constant 0 : index
    %c0_35 = arith.constant 0 : index
    %c0_36 = arith.constant 0 : index
    %35 = vector.load %arg4[%c0_33, %c0_34, %c0_35, %c0_36] : memref<1x8x16x128xbf16, #tpu.memory_space<vmem>>, vector<1x8x16x128xbf16>
    %36 = vector.shape_cast %35 : vector<1x8x16x128xbf16> to vector<8x16x128xbf16>
    %37 = vector.shape_cast %34 : vector<8x16x128xbf16> to vector<1x8x16x128xbf16>
    tpu.vector_store %arg4[%c0_33, %c0_34, %c0_35, %c0_36], %37 {strides = array<i32>} : memref<1x8x16x128xbf16, #tpu.memory_space<vmem>>, vector<1x8x16x128xbf16>,
    return
  }
  func.func @transform_0(%arg0: i32, %arg1: i32) -> (i32, i32) {
    %c0_i32 = arith.constant 0 : i32
    %c0_i32_0 = arith.constant 0 : i32
    %c0_i32_1 = arith.constant 0 : i32
    return %c0_i32, %c0_i32_0 : i32, i32
  }
  func.func @transform_1(%arg0: i32, %arg1: i32) -> (i32, i32, i32, i32) {
    %c0_i32 = arith.constant 0 : i32
    %c0_i32_0 = arith.constant 0 : i32
    %c0_i32_1 = arith.constant 0 : i32
    return %arg0, %arg1, %c0_i32, %c0_i32_0 : i32, i32, i32, i32
  }
  func.func @transform_2(%arg0: i32, %arg1: i32) -> (i32, i32, i32, i32) {
    %c0_i32 = arith.constant 0 : i32
    %c0_i32_0 = arith.constant 0 : i32
    %c0_i32_1 = arith.constant 0 : i32
    return %arg0, %arg1, %c0_i32, %c0_i32_0 : i32, i32, i32, i32
  }
}

module attributes {stable_mosaic.version = 11 : i64} {
  func.func @_rowinterp_kernel(%arg0: i32, %arg1: memref<16x4xf32, #tpu.memory_space<vmem>>, %arg2: memref<1x4x4x128xbf16, #tpu.memory_space<vmem>>, %arg3: memref<1x16x4x128xf32, #tpu.memory_space<vmem>>) attributes {dimension_semantics = [#tpu.dimension_semantics<parallel>], iteration_bounds = array<i64: 2>, scalar_prefetch = 0 : i64, scratch_operands = 0 : i64, tpu.core_type = #tpu.core_type<tc>, window_params = [{pipeline_mode = #tpu.pipeline_mode<synchronous>, transform_indices = @transform_0, window_bounds = array<i64: 16, 4>}, {transform_indices = @transform_1, window_bounds = array<i64: 1, 4, 4, 128>}, {transform_indices = @transform_2, window_bounds = array<i64: 1, 16, 4, 128>}]} {
    %c0 = arith.constant 0 : index
    %c0_0 = arith.constant 0 : index
    %0 = vector.load %arg1[%c0, %c0_0] : memref<16x4xf32, #tpu.memory_space<vmem>>, vector<16x4xf32>
    %c0_1 = arith.constant 0 : index
    %c0_2 = arith.constant 0 : index
    %c0_3 = arith.constant 0 : index
    %c0_4 = arith.constant 0 : index
    %1 = vector.load %arg2[%c0_1, %c0_2, %c0_3, %c0_4] : memref<1x4x4x128xbf16, #tpu.memory_space<vmem>>, vector<1x4x1x128xbf16>
    %2 = vector.shape_cast %1 : vector<1x4x1x128xbf16> to vector<4x128xbf16>
    %cst = arith.constant dense<0.000000e+00> : vector<16x128xf32>
    %3 = tpu.matmul %0, %2, %cst {dimension_numbers = #tpu.dot_dimension_numbers<[1], [0], [0], [1], [0, 0, 1, 1], [], []>} : vector<16x4xf32>, vector<4x128xbf16>, vector<16x128xf32> -> vector<16x128xf32>
    %c0_5 = arith.constant 0 : index
    %c0_6 = arith.constant 0 : index
    %c1 = arith.constant 1 : index
    %c0_7 = arith.constant 0 : index
    %4 = vector.load %arg2[%c0_5, %c0_6, %c1, %c0_7] : memref<1x4x4x128xbf16, #tpu.memory_space<vmem>>, vector<1x4x1x128xbf16>
    %5 = vector.shape_cast %4 : vector<1x4x1x128xbf16> to vector<4x128xbf16>
    %cst_8 = arith.constant dense<0.000000e+00> : vector<16x128xf32>
    %6 = tpu.matmul %0, %5, %cst_8 {dimension_numbers = #tpu.dot_dimension_numbers<[1], [0], [0], [1], [0, 0, 1, 1], [], []>} : vector<16x4xf32>, vector<4x128xbf16>, vector<16x128xf32> -> vector<16x128xf32>
    %c0_9 = arith.constant 0 : index
    %c0_10 = arith.constant 0 : index
    %c2 = arith.constant 2 : index
    %c0_11 = arith.constant 0 : index
    %7 = vector.load %arg2[%c0_9, %c0_10, %c2, %c0_11] : memref<1x4x4x128xbf16, #tpu.memory_space<vmem>>, vector<1x4x1x128xbf16>
    %8 = vector.shape_cast %7 : vector<1x4x1x128xbf16> to vector<4x128xbf16>
    %cst_12 = arith.constant dense<0.000000e+00> : vector<16x128xf32>
    %9 = tpu.matmul %0, %8, %cst_12 {dimension_numbers = #tpu.dot_dimension_numbers<[1], [0], [0], [1], [0, 0, 1, 1], [], []>} : vector<16x4xf32>, vector<4x128xbf16>, vector<16x128xf32> -> vector<16x128xf32>
    %c0_13 = arith.constant 0 : index
    %c0_14 = arith.constant 0 : index
    %c3 = arith.constant 3 : index
    %c0_15 = arith.constant 0 : index
    %10 = vector.load %arg2[%c0_13, %c0_14, %c3, %c0_15] : memref<1x4x4x128xbf16, #tpu.memory_space<vmem>>, vector<1x4x1x128xbf16>
    %11 = vector.shape_cast %10 : vector<1x4x1x128xbf16> to vector<4x128xbf16>
    %cst_16 = arith.constant dense<0.000000e+00> : vector<16x128xf32>
    %12 = tpu.matmul %0, %11, %cst_16 {dimension_numbers = #tpu.dot_dimension_numbers<[1], [0], [0], [1], [0, 0, 1, 1], [], []>} : vector<16x4xf32>, vector<4x128xbf16>, vector<16x128xf32> -> vector<16x128xf32>
    %13 = vector.shape_cast %3 : vector<16x128xf32> to vector<16x1x128xf32>
    %14 = vector.shape_cast %6 : vector<16x128xf32> to vector<16x1x128xf32>
    %15 = vector.shape_cast %9 : vector<16x128xf32> to vector<16x1x128xf32>
    %16 = vector.shape_cast %12 : vector<16x128xf32> to vector<16x1x128xf32>
    %17 = tpu.concatenate %13, %14, %15, %16 in 1 : vector<16x1x128xf32>, vector<16x1x128xf32>, vector<16x1x128xf32>, vector<16x1x128xf32> -> vector<16x4x128xf32>
    %c0_17 = arith.constant 0 : index
    %c0_18 = arith.constant 0 : index
    %c0_19 = arith.constant 0 : index
    %c0_20 = arith.constant 0 : index
    %18 = vector.load %arg3[%c0_17, %c0_18, %c0_19, %c0_20] : memref<1x16x4x128xf32, #tpu.memory_space<vmem>>, vector<1x16x4x128xf32>
    %19 = vector.shape_cast %18 : vector<1x16x4x128xf32> to vector<16x4x128xf32>
    %20 = vector.shape_cast %17 : vector<16x4x128xf32> to vector<1x16x4x128xf32>
    tpu.vector_store %arg3[%c0_17, %c0_18, %c0_19, %c0_20], %20 {strides = array<i32>} : memref<1x16x4x128xf32, #tpu.memory_space<vmem>>, vector<1x16x4x128xf32>,
    return
  }
  func.func @transform_0(%arg0: i32) -> (i32, i32) {
    %c0_i32 = arith.constant 0 : i32
    %c0_i32_0 = arith.constant 0 : i32
    %c0_i32_1 = arith.constant 0 : i32
    return %c0_i32, %c0_i32_0 : i32, i32
  }
  func.func @transform_1(%arg0: i32) -> (i32, i32, i32, i32) {
    %c0_i32 = arith.constant 0 : i32
    %c0_i32_0 = arith.constant 0 : i32
    %c0_i32_1 = arith.constant 0 : i32
    %c0_i32_2 = arith.constant 0 : i32
    return %arg0, %c0_i32, %c0_i32_0, %c0_i32_1 : i32, i32, i32, i32
  }
  func.func @transform_2(%arg0: i32) -> (i32, i32, i32, i32) {
    %c0_i32 = arith.constant 0 : i32
    %c0_i32_0 = arith.constant 0 : i32
    %c0_i32_1 = arith.constant 0 : i32
    %c0_i32_2 = arith.constant 0 : i32
    return %arg0, %c0_i32, %c0_i32_0, %c0_i32_1 : i32, i32, i32, i32
  }
}

module attributes {stable_mosaic.version = 11 : i64} {
  func.func @_conv_kernel(%arg0: i32, %arg1: i32, %arg2: memref<2x16x16x128xbf16, #tpu.memory_space<any>>, %arg3: memref<1152x128xbf16, #tpu.memory_space<vmem>>, %arg4: memref<1x128xf32, #tpu.memory_space<vmem>>, %arg5: memref<1x8x16x128xbf16, #tpu.memory_space<vmem>>, %arg6: memref<1x8x16x128xf32, #tpu.memory_space<vmem>>, %arg7: memref<10x16x128xbf16, #tpu.memory_space<vmem>>, %arg8: memref<1x3x!tpu.dma_semaphore, #tpu.memory_space<semaphore_mem>>) attributes {dimension_semantics = [#tpu.dimension_semantics<parallel>, #tpu.dimension_semantics<parallel>], iteration_bounds = array<i64: 2, 2>, scalar_prefetch = 0 : i64, scratch_operands = 2 : i64, tpu.core_type = #tpu.core_type<tc>, window_params = [{}, {pipeline_mode = #tpu.pipeline_mode<synchronous>, transform_indices = @transform_1, window_bounds = array<i64: 1152, 128>}, {pipeline_mode = #tpu.pipeline_mode<synchronous>, transform_indices = @transform_2, window_bounds = array<i64: 1, 128>}, {transform_indices = @transform_3, window_bounds = array<i64: 1, 8, 16, 128>}, {transform_indices = @transform_4, window_bounds = array<i64: 1, 8, 16, 128>}]} {
    %c8_i32 = arith.constant 8 : i32
    %0 = arith.muli %arg1, %c8_i32 : i32
    %c1_i32 = arith.constant 1 : i32
    %1 = arith.subi %0, %c1_i32 : i32
    %c0_i32 = arith.constant 0 : i32
    %2 = arith.maxsi %1, %c0_i32 : i32
    %c1_i32_0 = arith.constant 1 : i32
    %3 = arith.addi %arg1, %c1_i32_0 : i32
    %c8_i32_1 = arith.constant 8 : i32
    %4 = arith.muli %3, %c8_i32_1 : i32
    %c0_i32_2 = arith.constant 0 : i32
    %c15_i32 = arith.constant 15 : i32
    %5 = arith.maxsi %c0_i32_2, %4 : i32
    %6 = arith.minsi %c15_i32, %5 : i32
    %c8_i32_3 = arith.constant 8 : i32
    %7 = arith.muli %arg1, %c8_i32_3 : i32
    %c0_i32_4 = arith.constant 0 : i32
    %c0_i32_5 = arith.constant 0 : i32
    %c0_i32_6 = arith.constant 0 : i32
    %c0_i32_7 = arith.constant 0 : i32
    %8 = tpu.memref_slice %arg2[%arg0, %7, %c0_i32_6, %c0_i32_7] : memref<2x16x16x128xbf16, #tpu.memory_space<any>> -> memref<1x8x16x128xbf16, #tpu.memory_space<any>>
    %9 = tpu.memref_squeeze %8 : memref<1x8x16x128xbf16, #tpu.memory_space<any>> -> memref<8x16x128xbf16, #tpu.memory_space<any>>
    %c1_i32_8 = arith.constant 1 : i32
    %c0_i32_9 = arith.constant 0 : i32
    %c0_i32_10 = arith.constant 0 : i32
    %10 = tpu.memref_slice %arg7[%c1_i32_8, %c0_i32_9, %c0_i32_10] : memref<10x16x128xbf16, #tpu.memory_space<vmem>> -> memref<8x16x128xbf16, #tpu.memory_space<vmem>>
    %11 = tpu.memref_slice %arg8[%c0_i32_4, %c0_i32_5] : memref<1x3x!tpu.dma_semaphore, #tpu.memory_space<semaphore_mem>> -> memref<1x1x!tpu.dma_semaphore, #tpu.memory_space<semaphore_mem>>
    %12 = tpu.memref_squeeze %11 : memref<1x1x!tpu.dma_semaphore, #tpu.memory_space<semaphore_mem>> -> memref<!tpu.dma_semaphore, #tpu.memory_space<semaphore_mem>>
    tpu.enqueue_dma source(%9 : memref<8x16x128xbf16, #tpu.memory_space<any>>) target(%10 : memref<8x16x128xbf16, #tpu.memory_space<vmem>>) target_semaphore(%12 : memref<!tpu.dma_semaphore, #tpu.memory_space<semaphore_mem>>)
    %c0_i32_11 = arith.constant 0 : i32
    %13 = arith.cmpi sgt, %arg1, %c0_i32_11 : i32
    %14 = arith.extui %13 : i1 to i32
    %c0_i32_12 = arith.constant 0 : i32
    %c1_i32_13 = arith.constant 1 : i32
    %c0_i32_14 = arith.constant 0 : i32
    %15 = arith.cmpi ne, %14, %c0_i32_14 : i32
    scf.if %15 {
      %c0_i32_57 = arith.constant 0 : i32
      %c0_i32_58 = arith.constant 0 : i32
      %78 = tpu.memref_slice %arg2[%arg0, %2, %c0_i32_57, %c0_i32_58] : memref<2x16x16x128xbf16, #tpu.memory_space<any>> -> memref<1x1x16x128xbf16, #tpu.memory_space<any>>
      %79 = tpu.memref_squeeze %78 : memref<1x1x16x128xbf16, #tpu.memory_space<any>> -> memref<1x16x128xbf16, #tpu.memory_space<any>>
      %c0_i32_59 = arith.constant 0 : i32
      %c0_i32_60 = arith.constant 0 : i32
      %c0_i32_61 = arith.constant 0 : i32
      %80 = tpu.memref_slice %arg7[%c0_i32_59, %c0_i32_60, %c0_i32_61] : memref<10x16x128xbf16, #tpu.memory_space<vmem>> -> memref<1x16x128xbf16, #tpu.memory_space<vmem>>
      %81 = tpu.memref_slice %arg8[%c0_i32_12, %c1_i32_13] : memref<1x3x!tpu.dma_semaphore, #tpu.memory_space<semaphore_mem>> -> memref<1x1x!tpu.dma_semaphore, #tpu.memory_space<semaphore_mem>>
      %82 = tpu.memref_squeeze %81 : memref<1x1x!tpu.dma_semaphore, #tpu.memory_space<semaphore_mem>> -> memref<!tpu.dma_semaphore, #tpu.memory_space<semaphore_mem>>
      tpu.enqueue_dma source(%79 : memref<1x16x128xbf16, #tpu.memory_space<any>>) target(%80 : memref<1x16x128xbf16, #tpu.memory_space<vmem>>) target_semaphore(%82 : memref<!tpu.dma_semaphore, #tpu.memory_space<semaphore_mem>>)
    } else {
    }
    %c1_i32_15 = arith.constant 1 : i32
    %16 = arith.cmpi slt, %arg1, %c1_i32_15 : i32
    %17 = arith.extui %16 : i1 to i32
    %c0_i32_16 = arith.constant 0 : i32
    %c2_i32 = arith.constant 2 : i32
    %c0_i32_17 = arith.constant 0 : i32
    %18 = arith.cmpi ne, %17, %c0_i32_17 : i32
    scf.if %18 {
      %c0_i32_57 = arith.constant 0 : i32
      %c0_i32_58 = arith.constant 0 : i32
      %78 = tpu.memref_slice %arg2[%arg0, %6, %c0_i32_57, %c0_i32_58] : memref<2x16x16x128xbf16, #tpu.memory_space<any>> -> memref<1x1x16x128xbf16, #tpu.memory_space<any>>
      %79 = tpu.memref_squeeze %78 : memref<1x1x16x128xbf16, #tpu.memory_space<any>> -> memref<1x16x128xbf16, #tpu.memory_space<any>>
      %c9_i32 = arith.constant 9 : i32
      %c0_i32_59 = arith.constant 0 : i32
      %c0_i32_60 = arith.constant 0 : i32
      %80 = tpu.memref_slice %arg7[%c9_i32, %c0_i32_59, %c0_i32_60] : memref<10x16x128xbf16, #tpu.memory_space<vmem>> -> memref<1x16x128xbf16, #tpu.memory_space<vmem>>
      %81 = tpu.memref_slice %arg8[%c0_i32_16, %c2_i32] : memref<1x3x!tpu.dma_semaphore, #tpu.memory_space<semaphore_mem>> -> memref<1x1x!tpu.dma_semaphore, #tpu.memory_space<semaphore_mem>>
      %82 = tpu.memref_squeeze %81 : memref<1x1x!tpu.dma_semaphore, #tpu.memory_space<semaphore_mem>> -> memref<!tpu.dma_semaphore, #tpu.memory_space<semaphore_mem>>
      tpu.enqueue_dma source(%79 : memref<1x16x128xbf16, #tpu.memory_space<any>>) target(%80 : memref<1x16x128xbf16, #tpu.memory_space<vmem>>) target_semaphore(%82 : memref<!tpu.dma_semaphore, #tpu.memory_space<semaphore_mem>>)
    } else {
    }
    %c0_i32_18 = arith.constant 0 : i32
    %19 = arith.cmpi eq, %arg1, %c0_i32_18 : i32
    %20 = arith.extui %19 : i1 to i32
    %c0_i32_19 = arith.constant 0 : i32
    %21 = arith.cmpi ne, %20, %c0_i32_19 : i32
    scf.if %21 {
      %cst_57 = arith.constant 0.000000e+00 : bf16
      %78 = vector.broadcast %cst_57 : bf16 to vector<1x16x128xbf16>
      %c0_58 = arith.constant 0 : index
      %c0_59 = arith.constant 0 : index
      %c0_60 = arith.constant 0 : index
      %79 = vector.load %arg7[%c0_58, %c0_59, %c0_60] : memref<10x16x128xbf16, #tpu.memory_space<vmem>>, vector<1x16x128xbf16>
      tpu.vector_store %arg7[%c0_58, %c0_59, %c0_60], %78 {strides = array<i32>} : memref<10x16x128xbf16, #tpu.memory_space<vmem>>, vector<1x16x128xbf16>,
    } else {
    }
    %c1_i32_20 = arith.constant 1 : i32
    %22 = arith.cmpi eq, %arg1, %c1_i32_20 : i32
    %23 = arith.extui %22 : i1 to i32
    %c0_i32_21 = arith.constant 0 : i32
    %24 = arith.cmpi ne, %23, %c0_i32_21 : i32
    scf.if %24 {
      %cst_57 = arith.constant 0.000000e+00 : bf16
      %78 = vector.broadcast %cst_57 : bf16 to vector<1x16x128xbf16>
      %c9 = arith.constant 9 : index
      %c0_58 = arith.constant 0 : index
      %c0_59 = arith.constant 0 : index
      %79 = vector.load %arg7[%c9, %c0_58, %c0_59] : memref<10x16x128xbf16, #tpu.memory_space<vmem>>, vector<1x16x128xbf16>
      tpu.vector_store %arg7[%c9, %c0_58, %c0_59], %78 {strides = array<i32>} : memref<10x16x128xbf16, #tpu.memory_space<vmem>>, vector<1x16x128xbf16>,
    } else {
    }
    %c0_i32_22 = arith.constant 0 : i32
    %c0_i32_23 = arith.constant 0 : i32
    %c0_i32_24 = arith.constant 0 : i32
    %c0_i32_25 = arith.constant 0 : i32
    %25 = tpu.memref_slice %arg2[%arg0, %7, %c0_i32_24, %c0_i32_25] : memref<2x16x16x128xbf16, #tpu.memory_space<any>> -> memref<1x8x16x128xbf16, #tpu.memory_space<any>>
    %26 = tpu.memref_squeeze %25 : memref<1x8x16x128xbf16, #tpu.memory_space<any>> -> memref<8x16x128xbf16, #tpu.memory_space<any>>
    %c1_i32_26 = arith.constant 1 : i32
    %c0_i32_27 = arith.constant 0 : i32
    %c0_i32_28 = arith.constant 0 : i32
    %27 = tpu.memref_slice %arg7[%c1_i32_26, %c0_i32_27, %c0_i32_28] : memref<10x16x128xbf16, #tpu.memory_space<vmem>> -> memref<8x16x128xbf16, #tpu.memory_space<vmem>>
    %28 = tpu.memref_slice %arg8[%c0_i32_22, %c0_i32_23] : memref<1x3x!tpu.dma_semaphore, #tpu.memory_space<semaphore_mem>> -> memref<1x1x!tpu.dma_semaphore, #tpu.memory_space<semaphore_mem>>
    %29 = tpu.memref_squeeze %28 : memref<1x1x!tpu.dma_semaphore, #tpu.memory_space<semaphore_mem>> -> memref<!tpu.dma_semaphore, #tpu.memory_space<semaphore_mem>>
    tpu.wait_dma2 semaphore(%29 : memref<!tpu.dma_semaphore, #tpu.memory_space<semaphore_mem>>) src(%26 : memref<8x16x128xbf16, #tpu.memory_space<any>>) dst(%27 : memref<8x16x128xbf16, #tpu.memory_space<vmem>>)
    %c0_i32_29 = arith.constant 0 : i32
    %30 = arith.cmpi sgt, %arg1, %c0_i32_29 : i32
    %31 = arith.extui %30 : i1 to i32
    %c0_i32_30 = arith.constant 0 : i32
    %c1_i32_31 = arith.constant 1 : i32
    %c0_i32_32 = arith.constant 0 : i32
    %32 = arith.cmpi ne, %31, %c0_i32_32 : i32
    scf.if %32 {
      %c0_i32_57 = arith.constant 0 : i32
      %c0_i32_58 = arith.constant 0 : i32
      %78 = tpu.memref_slice %arg2[%arg0, %2, %c0_i32_57, %c0_i32_58] : memref<2x16x16x128xbf16, #tpu.memory_space<any>> -> memref<1x1x16x128xbf16, #tpu.memory_space<any>>
      %79 = tpu.memref_squeeze %78 : memref<1x1x16x128xbf16, #tpu.memory_space<any>> -> memref<1x16x128xbf16, #tpu.memory_space<any>>
      %c0_i32_59 = arith.constant 0 : i32
      %c0_i32_60 = arith.constant 0 : i32
      %c0_i32_61 = arith.constant 0 : i32
      %80 = tpu.memref_slice %arg7[%c0_i32_59, %c0_i32_60, %c0_i32_61] : memref<10x16x128xbf16, #tpu.memory_space<vmem>> -> memref<1x16x128xbf16, #tpu.memory_space<vmem>>
      %81 = tpu.memref_slice %arg8[%c0_i32_30, %c1_i32_31] : memref<1x3x!tpu.dma_semaphore, #tpu.memory_space<semaphore_mem>> -> memref<1x1x!tpu.dma_semaphore, #tpu.memory_space<semaphore_mem>>
      %82 = tpu.memref_squeeze %81 : memref<1x1x!tpu.dma_semaphore, #tpu.memory_space<semaphore_mem>> -> memref<!tpu.dma_semaphore, #tpu.memory_space<semaphore_mem>>
      tpu.wait_dma2 semaphore(%82 : memref<!tpu.dma_semaphore, #tpu.memory_space<semaphore_mem>>) src(%79 : memref<1x16x128xbf16, #tpu.memory_space<any>>) dst(%80 : memref<1x16x128xbf16, #tpu.memory_space<vmem>>)
    } else {
    }
    %c1_i32_33 = arith.constant 1 : i32
    %33 = arith.cmpi slt, %arg1, %c1_i32_33 : i32
    %34 = arith.extui %33 : i1 to i32
    %c0_i32_34 = arith.constant 0 : i32
    %c2_i32_35 = arith.constant 2 : i32
    %c0_i32_36 = arith.constant 0 : i32
    %35 = arith.cmpi ne, %34, %c0_i32_36 : i32
    scf.if %35 {
      %c0_i32_57 = arith.constant 0 : i32
      %c0_i32_58 = arith.constant 0 : i32
      %78 = tpu.memref_slice %arg2[%arg0, %6, %c0_i32_57, %c0_i32_58] : memref<2x16x16x128xbf16, #tpu.memory_space<any>> -> memref<1x1x16x128xbf16, #tpu.memory_space<any>>
      %79 = tpu.memref_squeeze %78 : memref<1x1x16x128xbf16, #tpu.memory_space<any>> -> memref<1x16x128xbf16, #tpu.memory_space<any>>
      %c9_i32 = arith.constant 9 : i32
      %c0_i32_59 = arith.constant 0 : i32
      %c0_i32_60 = arith.constant 0 : i32
      %80 = tpu.memref_slice %arg7[%c9_i32, %c0_i32_59, %c0_i32_60] : memref<10x16x128xbf16, #tpu.memory_space<vmem>> -> memref<1x16x128xbf16, #tpu.memory_space<vmem>>
      %81 = tpu.memref_slice %arg8[%c0_i32_34, %c2_i32_35] : memref<1x3x!tpu.dma_semaphore, #tpu.memory_space<semaphore_mem>> -> memref<1x1x!tpu.dma_semaphore, #tpu.memory_space<semaphore_mem>>
      %82 = tpu.memref_squeeze %81 : memref<1x1x!tpu.dma_semaphore, #tpu.memory_space<semaphore_mem>> -> memref<!tpu.dma_semaphore, #tpu.memory_space<semaphore_mem>>
      tpu.wait_dma2 semaphore(%82 : memref<!tpu.dma_semaphore, #tpu.memory_space<semaphore_mem>>) src(%79 : memref<1x16x128xbf16, #tpu.memory_space<any>>) dst(%80 : memref<1x16x128xbf16, #tpu.memory_space<vmem>>)
    } else {
    }
    %c0 = arith.constant 0 : index
    %c0_37 = arith.constant 0 : index
    %c0_38 = arith.constant 0 : index
    %36 = vector.load %arg7[%c0, %c0_37, %c0_38] : memref<10x16x128xbf16, #tpu.memory_space<vmem>>, vector<10x16x128xbf16>
    %cst = arith.constant 0.000000e+00 : bf16
    %37 = vector.broadcast %cst : bf16 to vector<10x1x128xbf16>
    %38 = vector.extract_strided_slice %36 {offsets = [0, 0, 0], sizes = [10, 15, 128], strides = [1, 1, 1]} : vector<10x16x128xbf16> to vector<10x15x128xbf16>
    %39 = tpu.concatenate %37, %38 in 1 : vector<10x1x128xbf16>, vector<10x15x128xbf16> -> vector<10x16x128xbf16>
    %40 = vector.extract_strided_slice %36 {offsets = [0, 1, 0], sizes = [10, 15, 128], strides = [1, 1, 1]} : vector<10x16x128xbf16> to vector<10x15x128xbf16>
    %41 = tpu.concatenate %40, %37 in 1 : vector<10x15x128xbf16>, vector<10x1x128xbf16> -> vector<10x16x128xbf16>
    %42 = vector.extract_strided_slice %39 {offsets = [0, 0, 0], sizes = [8, 16, 128], strides = [1, 1, 1]} : vector<10x16x128xbf16> to vector<8x16x128xbf16>
    %43 = vector.extract_strided_slice %36 {offsets = [0, 0, 0], sizes = [8, 16, 128], strides = [1, 1, 1]} : vector<10x16x128xbf16> to vector<8x16x128xbf16>
    %44 = vector.extract_strided_slice %41 {offsets = [0, 0, 0], sizes = [8, 16, 128], strides = [1, 1, 1]} : vector<10x16x128xbf16> to vector<8x16x128xbf16>
    %45 = tpu.concatenate %42, %43, %44 in 2 : vector<8x16x128xbf16>, vector<8x16x128xbf16>, vector<8x16x128xbf16> -> vector<8x16x384xbf16>
    %46 = vector.shape_cast %45 : vector<8x16x384xbf16> to vector<128x384xbf16>
    %c0_39 = arith.constant 0 : index
    %c0_40 = arith.constant 0 : index
    %47 = vector.load %arg3[%c0_39, %c0_40] : memref<1152x128xbf16, #tpu.memory_space<vmem>>, vector<384x128xbf16>
    %cst_41 = arith.constant dense<0.000000e+00> : vector<128x128xf32>
    %48 = tpu.matmul %46, %47, %cst_41 {dimension_numbers = #tpu.dot_dimension_numbers<[1], [0], [0], [1], [0, 0, 1, 1], [], []>} : vector<128x384xbf16>, vector<384x128xbf16>, vector<128x128xf32> -> vector<128x128xf32>
    %49 = vector.extract_strided_slice %39 {offsets = [1, 0, 0], sizes = [8, 16, 128], strides = [1, 1, 1]} : vector<10x16x128xbf16> to vector<8x16x128xbf16>
    %50 = vector.extract_strided_slice %36 {offsets = [1, 0, 0], sizes = [8, 16, 128], strides = [1, 1, 1]} : vector<10x16x128xbf16> to vector<8x16x128xbf16>
    %51 = vector.extract_strided_slice %41 {offsets = [1, 0, 0], sizes = [8, 16, 128], strides = [1, 1, 1]} : vector<10x16x128xbf16> to vector<8x16x128xbf16>
    %52 = tpu.concatenate %49, %50, %51 in 2 : vector<8x16x128xbf16>, vector<8x16x128xbf16>, vector<8x16x128xbf16> -> vector<8x16x384xbf16>
    %53 = vector.shape_cast %52 : vector<8x16x384xbf16> to vector<128x384xbf16>
    %c384 = arith.constant 384 : index
    %c0_42 = arith.constant 0 : index
    %54 = vector.load %arg3[%c384, %c0_42] : memref<1152x128xbf16, #tpu.memory_space<vmem>>, vector<384x128xbf16>
    %cst_43 = arith.constant dense<0.000000e+00> : vector<128x128xf32>
    %55 = tpu.matmul %53, %54, %cst_43 {dimension_numbers = #tpu.dot_dimension_numbers<[1], [0], [0], [1], [0, 0, 1, 1], [], []>} : vector<128x384xbf16>, vector<384x128xbf16>, vector<128x128xf32> -> vector<128x128xf32>
    %56 = arith.addf %48, %55 : vector<128x128xf32>
    %57 = vector.extract_strided_slice %39 {offsets = [2, 0, 0], sizes = [8, 16, 128], strides = [1, 1, 1]} : vector<10x16x128xbf16> to vector<8x16x128xbf16>
    %58 = vector.extract_strided_slice %36 {offsets = [2, 0, 0], sizes = [8, 16, 128], strides = [1, 1, 1]} : vector<10x16x128xbf16> to vector<8x16x128xbf16>
    %59 = vector.extract_strided_slice %41 {offsets = [2, 0, 0], sizes = [8, 16, 128], strides = [1, 1, 1]} : vector<10x16x128xbf16> to vector<8x16x128xbf16>
    %60 = tpu.concatenate %57, %58, %59 in 2 : vector<8x16x128xbf16>, vector<8x16x128xbf16>, vector<8x16x128xbf16> -> vector<8x16x384xbf16>
    %61 = vector.shape_cast %60 : vector<8x16x384xbf16> to vector<128x384xbf16>
    %c768 = arith.constant 768 : index
    %c0_44 = arith.constant 0 : index
    %62 = vector.load %arg3[%c768, %c0_44] : memref<1152x128xbf16, #tpu.memory_space<vmem>>, vector<384x128xbf16>
    %cst_45 = arith.constant dense<0.000000e+00> : vector<128x128xf32>
    %63 = tpu.matmul %61, %62, %cst_45 {dimension_numbers = #tpu.dot_dimension_numbers<[1], [0], [0], [1], [0, 0, 1, 1], [], []>} : vector<128x384xbf16>, vector<384x128xbf16>, vector<128x128xf32> -> vector<128x128xf32>
    %64 = arith.addf %56, %63 : vector<128x128xf32>
    %c0_46 = arith.constant 0 : index
    %c0_47 = arith.constant 0 : index
    %65 = vector.load %arg4[%c0_46, %c0_47] : memref<1x128xf32, #tpu.memory_space<vmem>>, vector<1x128xf32>
    %66 = vector.broadcast %65 : vector<1x128xf32> to vector<128x128xf32>
    %67 = arith.addf %64, %66 : vector<128x128xf32>
    %cst_48 = arith.constant 0.000000e+00 : f32
    %68 = vector.broadcast %cst_48 : f32 to vector<128x128xf32>
    %69 = arith.maximumf %67, %68 : vector<128x128xf32>
    %70 = vector.shape_cast %69 : vector<128x128xf32> to vector<8x16x128xf32>
    %c0_49 = arith.constant 0 : index
    %c0_50 = arith.constant 0 : index
    %c0_51 = arith.constant 0 : index
    %c0_52 = arith.constant 0 : index
    %71 = vector.load %arg5[%c0_49, %c0_50, %c0_51, %c0_52] : memref<1x8x16x128xbf16, #tpu.memory_space<vmem>>, vector<1x8x16x128xbf16>
    %72 = vector.shape_cast %71 : vector<1x8x16x128xbf16> to vector<8x16x128xbf16>
    %73 = arith.extf %72 : vector<8x16x128xbf16> to vector<8x16x128xf32>
    %74 = arith.addf %70, %73 : vector<8x16x128xf32>
    %c0_53 = arith.constant 0 : index
    %c0_54 = arith.constant 0 : index
    %c0_55 = arith.constant 0 : index
    %c0_56 = arith.constant 0 : index
    %75 = vector.load %arg6[%c0_53, %c0_54, %c0_55, %c0_56] : memref<1x8x16x128xf32, #tpu.memory_space<vmem>>, vector<1x8x16x128xf32>
    %76 = vector.shape_cast %75 : vector<1x8x16x128xf32> to vector<8x16x128xf32>
    %77 = vector.shape_cast %74 : vector<8x16x128xf32> to vector<1x8x16x128xf32>
    tpu.vector_store %arg6[%c0_53, %c0_54, %c0_55, %c0_56], %77 {strides = array<i32>} : memref<1x8x16x128xf32, #tpu.memory_space<vmem>>, vector<1x8x16x128xf32>,
    return
  }
  func.func @transform_1(%arg0: i32, %arg1: i32) -> (i32, i32) {
    %c0_i32 = arith.constant 0 : i32
    %c0_i32_0 = arith.constant 0 : i32
    %c0_i32_1 = arith.constant 0 : i32
    return %c0_i32, %c0_i32_0 : i32, i32
  }
  func.func @transform_2(%arg0: i32, %arg1: i32) -> (i32, i32) {
    %c0_i32 = arith.constant 0 : i32
    %c0_i32_0 = arith.constant 0 : i32
    %c0_i32_1 = arith.constant 0 : i32
    return %c0_i32, %c0_i32_0 : i32, i32
  }
  func.func @transform_3(%arg0: i32, %arg1: i32) -> (i32, i32, i32, i32) {
    %c0_i32 = arith.constant 0 : i32
    %c0_i32_0 = arith.constant 0 : i32
    %c0_i32_1 = arith.constant 0 : i32
    return %arg0, %arg1, %c0_i32, %c0_i32_0 : i32, i32, i32, i32
  }
  func.func @transform_4(%arg0: i32, %arg1: i32) -> (i32, i32, i32, i32) {
    %c0_i32 = arith.constant 0 : i32
    %c0_i32_0 = arith.constant 0 : i32
    %c0_i32_1 = arith.constant 0 : i32
    return %arg0, %arg1, %c0_i32, %c0_i32_0 : i32, i32, i32, i32
  }
}

</mosaic_0001>

<bundles_post_ra>
// kernel: rsu4_forward.10
= control target key start
LH: loop header
LB: loop body
LE: loop exit
PB: predicated region body
PF: predicated region fallthrough
CT: control target
= control target key end

     0   :  { %s2750_s12 = smov 0   ;;  %s2752_s13 = smov 0   ;;  %s3420_s0 = inlined_call_operand.vmem [shape: bf16[2,16,16,128], index: 0, kind: input, shape index: {}]   ;;  %s3421_s1 = inlined_call_operand.vmem [shape: bf16[1152,128], index: 1, kind: input, shape index: {}]   ;;  %s3422_s2 = inlined_call_operand.vmem [shape: f32[1,128], index: 2, kind: input, shape index: {}]   ;;  %s3423_s3 = inlined_call_operand.vmem [shape: bf16[2,16,16,128], index: 3, kind: output, shape index: {}]  }
   0x1   :  { %s2754_s14 = smov 0   ;;  %s2756_s15 = smov 0  }
   0x2   :  { %s2758_s16 = smov 0  }
   0x3 LB: > { %s22_s17 = sadd.s32 1, %s2718_s14  ;;  %s25_s18 = sadd.s32 1, %s2722_s15  ;;  %s2726_s16 = sphi %s2758_s16, %s13_s16   ;;  %s2722_s15 = sphi %s2756_s15, %s3431_s15   ;;  %s2718_s14 = sphi %s2754_s14, %s3430_s14   ;;  %s2714_s13 = sphi %s2752_s13, %s3429_s13   ;;  %s2710_s12 = sphi %s2750_s12, %s3428_s12  }
   0x4   : > { %p23_p0 = scmp.ge.s32.totalorder %s22_s17, 2  ;;  %p2014_p1 = scmp.ge.s32.totalorder %s2726_s16, 1 }
   0x5   : > { %p117_p2 = scmp.lt.s32.totalorder %s2726_s16, 5 }
   0x6   : > { %s3433_s17 = smov (%p23_p0, %s22_s17), 0  ;;  %s3435_s18 = smov (!%p23_p0, %s25_s18), %s2722_s15 }
   0x7   : > { %p118_p3 = pnand %p2014_p1, %p117_p2  ;;  %p27_p4 = scmp.ge.s32.totalorder %s3435_s18, 2 }
   0x8   : > { %s2015_s19 = sshll.u32 (!%p118_p3), %s2710_s12, 3  ;;  %p140_p5 = scmp.lt.s32.totalorder (!%p118_p3), %s2714_s13, 1 }
   0x9   : > { %s3437_s18 = smov (%p27_p4, %s3435_s18), 0  ;;  %121 = sbr.rel (%p118_p3) target bundleno = 470 (0x1d6), region = 28 }
   0xa   : > { %p142_p6 = scmp.lt.s32.totalorder (!%p118_p3), %s2015_s19, 15  ;;  %s2020_s20 = sadd.s32 (!%p118_p3), 4294967295, %s2015_s19 }
   0xb   : > { %p153_p7 = scmp.gt.s32.totalorder (!%p118_p3), %s2020_s20, 0  ;;  %s2145_s25 = sadd.s32 (!%p118_p3), 8, %s2015_s19 }
   0xc   : > { %p157_p8 = scmp.gt.s32.totalorder (!%p118_p3), %s2145_s25, 0  ;;  %p2022_p9 = scmp.lt.s32.totalorder (!%p118_p3), %s2145_s25, 15 }
   0xd   : > { %s2148_s4 = sshll.u32 (!%p118_p3), %s2710_s12, 4  ;;  %s2794_s5 = sshll.u32 (!%p118_p3), %s2714_s13, 5 }
   0xe   : > { %s141_s21 = scalar_select %p140_p5, %s2714_s13, 1 }
   0xf   : > { %s143_s22 = scalar_select %p142_p6, %s2015_s19, 15 }
  0x10   : > { %s2017_s23 = sshll.u32 %s141_s21, 5  ;;  %s3439_s20 = smov (!%p153_p7, %s2020_s20), 0 }
  0x11   : > { %s2016_s24 = sshll.u32 %s143_s22, 1  ;;  %s3441_s25 = smov (!%p157_p8, %s2145_s25), 0 }
  0x12   : > { %s146_s26 = sadd.s32 %s2017_s23, %s2016_s24  ;;  %s3443_s25 = smov (!%p2022_p9, %s3441_s25), 15 }
  0x13   : > { %s2018_s27 = sshll.u32 %s146_s26, 2  ;;  %s163_s6 = sadd.s32 %s2148_s4, %s2794_s5 }
  0x14   : > { %s2790_s30 = scalar_lea.vmem %s3423_s3, %s2018_s27  ;;  %s2029_s7 = sshll.u32 %s163_s6, 2 }
  0x15   : > { %s165_s10 = scalar_lea.vmem %s3420_s0, %s2029_s7 }
  0x16   : > { %v200_v0 = vld [vmem:[%s165_s10] sm:$0xff]  ;;  %v202_v1 = vld [vmem:[%s165_s10 + $0x8] sm:$0xff]  ;;  %v204_v2 = vld [vmem:[%s165_s10 + $0x10] sm:$0xff] }
  0x17   : > { %201 = vst [vmem:[#allocation2 + $0x8] sm:$0xff] %v200_v0  ;;  %203 = vst [vmem:[#allocation2 + $0x10] sm:$0xff] %v202_v1  ;;  %v206_v3 = vld [vmem:[%s165_s10 + $0x18] sm:$0xff]  ;;  %v208_v4 = vld [vmem:[%s165_s10 + $0x20] sm:$0xff] }
  0x18   : > { %205 = vst [vmem:[#allocation2 + $0x18] sm:$0xff] %v204_v2  ;;  %v210_v5 = vld [vmem:[%s165_s10 + $0x28] sm:$0xff]  ;;  %207 = vst [vmem:[#allocation2 + $0x20] sm:$0xff] %v206_v3  ;;  %v212_v6 = vld [vmem:[%s165_s10 + $0x30] sm:$0xff] }
  0x19   : > { %209 = vst [vmem:[#allocation2 + $0x28] sm:$0xff] %v208_v4  ;;  %211 = vst [vmem:[#allocation2 + $0x30] sm:$0xff] %v210_v5  ;;  %v214_v7 = vld [vmem:[%s165_s10 + $0x38] sm:$0xff] }
  0x1a   : > { %213 = vst [vmem:[#allocation2 + $0x38] sm:$0xff] %v212_v6  ;;  %215 = vst [vmem:[#allocation2 + $0x40] sm:$0xff] %v214_v7 }
  0x1b   : > { %223 = vsyncadd [#allocation3], 1024  ;;  %p2030_p10 = scmp.le.s32.totalorder %s2710_s12, 0 }
  0x1c   : > { %s2031_s11 = sshll.u32 (!%p2030_p10), %s3439_s20, 1 }
  0x1d   : > { %227 = sbr.rel (%p2030_p10) target bundleno = 37 (0x25), region = 66  ;;  %s229_s13 = sadd.s32 (!%p2030_p10), %s2031_s11, %s2794_s5 }
  0x1e   : > { %s2032_s19 = sshll.u32 (!%p2030_p10), %s229_s13, 2 }
  0x1f   : > { %s231_s23 = scalar_lea.vmem (!%p2030_p10), %s3420_s0, %s2032_s19 }
  0x22   : > { %v266_v8 = vld [vmem:[%s231_s23] sm:$0xff] }
  0x23   : > { %267 = vst [vmem:[#allocation2] sm:$0xff] %v266_v8 }
  0x24   : > { %275 = vsyncadd [#allocation3 + $0x1], 128 }
  0x25 PF: > { %p2033_p11 = scmp.ge.s32.totalorder %s2710_s12, 1 }
  0x26   : > { %s2034_s24 = sshll.u32 (!%p2033_p11), %s3443_s25, 1 }
  0x27   : > { %279 = sbr.rel (%p2033_p11) target bundleno = 47 (0x2f), region = 104  ;;  %s281_s26 = sadd.s32 (!%p2033_p11), %s2034_s24, %s2794_s5 }
  0x28   : > { %s2035_s27 = sshll.u32 (!%p2033_p11), %s281_s26, 2 }
  0x29   : > { %s283_s29 = scalar_lea.vmem (!%p2033_p11), %s3420_s0, %s2035_s27 }
  0x2c   : > { %v319_v9 = vld [vmem:[%s283_s29] sm:$0xff] }
  0x2d   : > { %320 = vst [vmem:[#allocation2 + $0x48] sm:$0xff] %v319_v9 }
  0x2e   : > { %328 = vsyncadd [#allocation3 + $0x2], 128 }
  0x2f PF: > { %p2036_p12 = scmp.ne.s32.totalorder %s2710_s12, 0 }
  0x31   : > { %332 = sbr.rel (%p2036_p12) target bundleno = 56 (0x38), region = 142 }
  0x36   : > { %v2728_v10 = vmov 0  }
  0x37   : > { %333 = vst [vmem:[#allocation2] sm:$0xf] %v2728_v10  ;;  %334 = vst [vmem:[#allocation2 + $0x4] sm:$0xf] %v2728_v10 }
  0x38 PF: > { %p2037_p13 = scmp.ne.s32.totalorder %s2710_s12, 1 }
  0x3a   : > { %338 = sbr.rel (%p2037_p13) target bundleno = 65 (0x41), region = 146 }
  0x3f   : > { %v2729_v11 = vmov 0  }
  0x40   : > { %340 = vst [vmem:[#allocation2 + $0x48] sm:$0xf] %v2729_v11  ;;  %341 = vst [vmem:[#allocation2 + $0x4c] sm:$0xf] %v2729_v11 }
  0x41 PF: > { %2698 = dma.done.wait [#allocation3], 1024 }
  0x42   : > { %2699 = vsyncadd [#allocation3], 4294966272  ;;  %p2552_p0 = scmp.gt.s32.totalorder %s2710_s12, 0 }
  0x44   : > { %2701 = dma.done.wait (%p2552_p0), [#allocation3 + $0x1], 128 }
  0x45   : > { %2703 = vsyncadd (%p2552_p0), [#allocation3 + $0x1], 4294967168  ;;  %p2553_p1 = scmp.lt.s32.totalorder %s2710_s12, 1 }
  0x47   : > { %2705 = dma.done.wait (%p2553_p1), [#allocation3 + $0x2], 128 }
  0x48   : > { %2707 = vsyncadd (%p2553_p1), [#allocation3 + $0x2], 4294967168  ;;  %v2596_v12 = vld [vmem:[%s3421_s1 + $0x138] sm:$0xff]   ;;  %v2599_v15 = vld [vmem:[%s3421_s1 + $0x130] sm:$0xff]   ;;  %vm559_vm0 = vsmask.f32 7424 }
  0x49   : > { %v2597_v13 = vld [vmem:[%s3421_s1 + $0x178] sm:$0xff]   ;;  %2212 = vmatprep.subr.bf16.mxu0 %v2596_v12  ;;  %v2600_v16 = vld [vmem:[%s3421_s1 + $0x170] sm:$0xff]   ;;  %v2602_v18 = vld [vmem:[%s3421_s1 + $0x128] sm:$0xff]   ;;  %vm516_vm1 = vsmask.f32 256  ;;  %vm558_vm2 = vcmask 1047552  }
  0x4a   : > { %v2598_v14 = vld [vmem:[%s3421_s1 + $0xf8] sm:$0xff]   ;;  %2452 = vmatprep.subr.bf16.mxu1 %v2597_v13  ;;  %v2601_v17 = vld [vmem:[%s3421_s1 + $0xf0] sm:$0xff]   ;;  %v2603_v19 = vld [vmem:[%s3421_s1 + $0x168] sm:$0xff]   ;;  %vm515_vm3 = vcmask 1040384  }
  0x4b   : > { %2213 = vmatpush3.bf16.msra.mxu0 %v2598_v14  ;;  %2453 = vmatpush3.bf16.msra.mxu1 %v2597_v13  ;;  %v2604_v20 = vld [vmem:[%s3421_s1 + $0xe8] sm:$0xff]   ;;  %v2605_v21 = vld [vmem:[%s3421_s1 + $0x120] sm:$0xff]   ;;  %v2608_v24 = vld [vmem:[%s3421_s1 + $0x118] sm:$0xff]  }
  0x4c   : > { %2214 = vmatprep.subr.bf16.mxu0 %v2599_v15  ;;  %2454 = vmatprep.subr.bf16.mxu1 %v2600_v16  ;;  %v2606_v22 = vld [vmem:[%s3421_s1 + $0x160] sm:$0xff]   ;;  %v2609_v25 = vld [vmem:[%s3421_s1 + $0x158] sm:$0xff]   ;;  %v2611_v27 = vld [vmem:[%s3421_s1 + $0x110] sm:$0xff]  }
  0x4d   : > { %v2607_v23 = vld [vmem:[%s3421_s1 + $0xe0] sm:$0xff]   ;;  %v2610_v26 = vld [vmem:[%s3421_s1 + $0xd8] sm:$0xff]   ;;  %v2612_v28 = vld [vmem:[%s3421_s1 + $0x150] sm:$0xff]  }
  0x4e   : > { %v2613_v29 = vld [vmem:[%s3421_s1 + $0xd0] sm:$0xff]   ;;  %v2614_v30 = vld [vmem:[%s3421_s1 + $0x108] sm:$0xff]   ;;  %v2617_v33 = vld [vmem:[%s3421_s1 + $0x100] sm:$0xff]  }
  0x4f   : > { %2215 = vmatpush3.bf16.msra.mxu0 %v2601_v17  ;;  %2455 = vmatpush3.bf16.msra.mxu1 %v2600_v16  ;;  %v2615_v31 = vld [vmem:[%s3421_s1 + $0x148] sm:$0xff]   ;;  %v2618_v34 = vld [vmem:[%s3421_s1 + $0x140] sm:$0xff]   ;;  %v2888_v36 = vld [vmem:[#allocation2 + $0x10] sm:$0xff]  }
  0x50   : > { %2216 = vmatprep.subr.bf16.mxu0 %v2602_v18  ;;  %2456 = vmatprep.subr.bf16.mxu1 %v2603_v19  ;;  %v2616_v32 = vld [vmem:[%s3421_s1 + $0xc8] sm:$0xff]   ;;  %v2619_v39 = vld [vmem:[%s3421_s1 + $0xc0] sm:$0xff]   ;;  %vm2897_vm4 = vmand %vm558_vm2, %vm559_vm0  ;;  %v450_v41 = vshrl.u32 %v2888_v36, 16  ;;  %v453_v42 = vshll.u32 %v2888_v36, 16 }
  0x51   : > { %v2886_v35 = vld [vmem:[#allocation2 + $0x8] sm:$0xff]   ;;  %vm2904_vm5 = vmand %vm515_vm3, %vm516_vm1  ;;  %v2622_v47 = vld [vmem:[%s3421_s1 + $0x78] sm:$0xff]  }
  0x52   : > { %852 = vmatprep.mubr.bf16.mxu0 %v2886_v35  ;;  %v443_v37 = vshrl.u32 %v2886_v35, 16  ;;  %v446_v38 = vshll.u32 %v2886_v35, 16  ;;  %v532_v46 = vrot.slane %v453_v42, 1  ;;  %v2623_v50 = vld [vmem:[%s3421_s1 + $0xb8] sm:$0xff]   ;;  %v452_v51 = vrot.slane %v450_v41, 7  ;;  %v2927_v57 = vld [vmem:[#allocation2 + $0x20] sm:$0xff]  }
  0x53   : > { %2217 = vmatpush3.bf16.msra.mxu0 %v2604_v20  ;;  %2457 = vmatpush3.bf16.msra.mxu1 %v2603_v19  ;;  %v2624_v53 = vld [vmem:[%s3421_s1 + $0x38] sm:$0xff]   ;;  %v2625_v59 = vld [vmem:[%s3421_s1 + $0x70] sm:$0xff]   ;;  %v464_v0 = vshrl.u32 %v2927_v57, 16  ;;  %v467_v1 = vshll.u32 %v2927_v57, 16  ;;  %v2629_v4 = vld [vmem:[%s3421_s1 + $0x68] sm:$0xff]  }
  0x54   : > { %2218 = vmatprep.subr.bf16.mxu0 %v2605_v21  ;;  %2458 = vmatprep.subr.bf16.mxu1 %v2606_v22  ;;  %v530_v43 = vrot.slane %v446_v38, 1  ;;  %v445_v44 = vrot.slane %v443_v37, 7  ;;  %v533_v52 = vor.u32 %v532_v46, %v450_v41  ;;  %v2925_v56 = vld [vmem:[#allocation2 + $0x18] sm:$0xff]   ;;  %v455_v60 = vor.u32 %v453_v42, %v452_v51  ;;  %v2626_v61 = vld [vmem:[%s3421_s1 + $0x30] sm:$0xff]   ;;  %v2631_v8 = vld [vmem:[%s3421_s1 + $0x28] sm:$0xff]  }
  0x55   : > { %v457_v62 = vshrl.u32 %v2925_v56, 16  ;;  %v460_v63 = vshll.u32 %v2925_v56, 16  ;;  %v2630_v2 = vld [vmem:[%s3421_s1 + $0xb0] sm:$0xff]   ;;  %v536_v6 = vrot.slane %v467_v1, 1  ;;  %v2632_v10 = vld [vmem:[%s3421_s1 + $0x60] sm:$0xff]   ;;  %v2967_v13 = vld [vmem:[#allocation2 + $0x28] sm:$0xff]  }
  0x56   : > { %v531_v48 = vor.u32 %v530_v43, %v443_v37  ;;  %v448_v49 = vor.u32 %v446_v38, %v445_v44  ;;  %v2932_v58 = vsel %vm2897_vm4, %v533_v52, 0  ;;  %v2955_v5 = vsel %vm2904_vm5, 0, %v455_v60  ;;  %v2974_v16 = vld [vmem:[#allocation2 + $0x30] sm:$0xff]   ;;  %v2637_v19 = vld [vmem:[%s3421_s1 + $0xa8] sm:$0xff]   ;;  %v2633_v20 = vld [vmem:[%s3421_s1 + $0x20] sm:$0xff]  }
  0x57   : > { %2219 = vmatpush3.bf16.msra.mxu0 %v2607_v23  ;;  %2459 = vmatpush3.bf16.msra.mxu1 %v2606_v22  ;;  %v534_v3 = vrot.slane %v460_v63, 1  ;;  %v537_v9 = vor.u32 %v536_v6, %v464_v0  ;;  %v459_v11 = vrot.slane %v457_v62, 7  ;;  %v471_v17 = vshrl.u32 %v2967_v13, 16  ;;  %v2639_v37 = vld [vmem:[%s3421_s1 + $0x50] sm:$0xff]   ;;  %v2647_v6 = vld [vmem:[%s3421_s1] sm:$0xff]  }
  0x58   : > { %2220 = vmatprep.subr.bf16.mxu0 %v2608_v24  ;;  %2460 = vmatprep.subr.bf16.mxu1 %v2609_v25  ;;  %v2919_v54 = vsel %vm2897_vm4, %v531_v48, 0  ;;  %v2923_v55 = vsel %vm2904_vm5, 0, %v448_v49  ;;  %v474_v18 = vshll.u32 %v2967_v13, 16  ;;  %v478_v21 = vshrl.u32 %v2974_v16, 16  ;;  %v2636_v24 = vld [vmem:[%s3421_s1 + $0x58] sm:$0xff]   ;;  %v2640_v44 = vld [vmem:[%s3421_s1 + $0x10] sm:$0xff]  }
  0x59   : > { %2468 = vmatprep.mubr.bf16.mxu1 %v2919_v54  ;;  %v535_v7 = vor.u32 %v534_v3, %v457_v62  ;;  %v2972_v14 = vsel %vm2897_vm4, %v537_v9, 0  ;;  %v462_v15 = vor.u32 %v460_v63, %v459_v11  ;;  %v481_v22 = vshll.u32 %v2974_v16, 16  ;;  %v2643_v49 = vld [vmem:[%s3421_s1 + $0x48] sm:$0xff]   ;;  %v2649_v63 = vld [vmem:[%s3421_s1 + $0x98] sm:$0xff]  }
  0x5a   : > { %v538_v23 = vrot.slane %v474_v18, 1  ;;  %v473_v62 = vrot.slane %v471_v17, 7  ;;  %v480_v9 = vrot.slane %v478_v21, 7 }
  0x5b   : > { %2221 = vmatpush3.bf16.msra.mxu0 %v2610_v26  ;;  %2461 = vmatpush3.bf16.msra.mxu1 %v2609_v25  ;;  %v2965_v12 = vsel %vm2897_vm4, %v535_v7, 0  ;;  %v2996_v25 = vsel %vm2904_vm5, 0, %v462_v15  ;;  %v540_v26 = vrot.slane %v481_v22, 1 }
  0x5c   : > { %2222 = vmatprep.subr.bf16.mxu0 %v2611_v27  ;;  %2462 = vmatprep.subr.bf16.mxu1 %v2612_v28  ;;  %v539_v27 = vor.u32 %v538_v23, %v471_v17  ;;  %v476_v7 = vor.u32 %v474_v18, %v473_v62  ;;  %v2651_v17 = vld [vmem:[%s3421_s1 + $0x88] sm:$0xff]   ;;  %v2658_v18 = vld [vmem:[%s3421_s1 + $0x230] sm:$0xff]  }
  0x5d   : > { %v2669_v62 = vld [vmem:[%s3421_s1 + $0x190] sm:$0xff]  }
  0x5e   : > { %v3092_v11 = vsel %vm2904_vm5, 0, %v476_v7 }
  0x5f   : > { %2223 = vmatpush3.bf16.msra.mxu0 %v2613_v29  ;;  %2463 = vmatpush3.bf16.msra.mxu1 %v2612_v28  ;;  %v2638_v28 = vld [vmem:[%s3421_s1 + $0x18] sm:$0xff]   ;;  %v541_v29 = vor.u32 %v540_v26, %v478_v21  ;;  %v2661_v21 = vld [vmem:[%s3421_s1 + $0x228] sm:$0xff]  }
  0x60   : > { %2224 = vmatprep.subr.bf16.mxu0 %v2614_v30  ;;  %2464 = vmatprep.subr.bf16.mxu1 %v2615_v31  ;;  %v3005_v30 = vld [vmem:[#allocation2 + $0x38] sm:$0xff]  }
  0x61   : > { %v485_v38 = vshrl.u32 %v3005_v30, 16 }
  0x63   : > { %2225 = vmatpush3.bf16.msra.mxu0 %v2616_v32  ;;  %2465 = vmatpush3.bf16.msra.mxu1 %v2615_v31  ;;  %v466_v31 = vrot.slane %v464_v0, 7  ;;  %v3009_v32 = vsel %vm2897_vm4, %v539_v27, 0  ;;  %v2646_v0 = vld [vmem:[%s3421_s1 + $0x40] sm:$0xff]   ;;  %v2667_v27 = vld [vmem:[%s3421_s1 + $0x218] sm:$0xff]  }
  0x64   : > { %2226 = vmatprep.subr.bf16.mxu0 %v2617_v33  ;;  %2466 = vmatprep.subr.bf16.mxu1 %v2618_v34  ;;  %v3011_v33 = vld [vmem:[#allocation2 + $0x40] sm:$0xff]  }
  0x65   : > { %v469_v41 = vor.u32 %v467_v1, %v466_v31  ;;  %v492_v42 = vshrl.u32 %v3011_v33, 16  ;;  %v495_v43 = vshll.u32 %v3011_v33, 16  ;;  %v2670_v31 = vld [vmem:[%s3421_s1 + $0x210] sm:$0xff]  }
  0x67   : > { %2227 = vmatpush3.bf16.msra.mxu0 %v2619_v39  ;;  %2467 = vmatpush3.bf16.msra.mxu1 %v2618_v34  ;;  %v3016_v34 = vsel %vm2897_vm4, %v541_v29, 0  ;;  %v488_v39 = vshll.u32 %v3005_v30, 16  ;;  %v544_v48 = vrot.slane %v495_v43, 1  ;;  %v3045_v51 = vsel %vm2904_vm5, 0, %v469_v41 }
  0x68   : > { %2292 = vmatprep.subr.bf16.mxu1 %v2622_v47  ;;  %2484 = vmatprep.subr.bf16.mxu0 %v2623_v50  ;;  %v2644_v47 = vld [vmem:[%s3421_s1 + $0xa0] sm:$0xff]  }
  0x69   : > { %v542_v46 = vrot.slane %v488_v39, 1  ;;  %v545_v52 = vor.u32 %v544_v48, %v492_v42  ;;  %v2659_v48 = vld [vmem:[%s3421_s1 + $0x1e8] sm:$0xff]  }
  0x6a   : > { %853 = vmatmul.mubr.bf16.vlgmr.msra.gmra.mxu0 %v2923_v55  ;;  %2469 = vmatmul.mubr.bf16.vlgmr.msra.gmra.mxu1 %v2932_v58 }
  0x6b   : > { %2293 = vmatpush3.bf16.msra.mxu1 %v2624_v53  ;;  %2485 = vmatpush3.bf16.msra.mxu0 %v2623_v50  ;;  %v543_v50 = vor.u32 %v542_v46, %v485_v38  ;;  %v3058_v60 = vsel %vm2897_vm4, %v545_v52, 0  ;;  %v2656_v46 = vld [vmem:[%s3421_s1 + $0x1f0] sm:$0xff]   ;;  %v2665_v52 = vld [vmem:[%s3421_s1 + $0x1d8] sm:$0xff]  }
  0x6c   : > { %2294 = vmatprep.subr.bf16.mxu1 %v2625_v59  ;;  %860 = vmatprep.mubr.bf16.mxu0 %v2888_v36  ;;  %v3053_v59 = vld [vmem:[#allocation2] sm:$0xff]  }
  0x6d   : > { %2486 = vmatprep.subr.bf16.mxu0 %v2630_v2  ;;  %2472 = vmatprep.mubr.bf16.mxu1 %v2965_v12  ;;  %v3051_v53 = vsel %vm2897_vm4, %v543_v50, 0  ;;  %v436_v1 = vshrl.u32 %v3053_v59, 16  ;;  %v2663_v50 = vld [vmem:[%s3421_s1 + $0x1a0] sm:$0xff]  }
  0x6f   : > { %2295 = vmatpush3.bf16.msra.mxu1 %v2626_v61  ;;  %2487 = vmatpush3.bf16.msra.mxu0 %v2630_v2  ;;  %v2645_v61 = vld [vmem:[%s3421_s1 + $0x8] sm:$0xff]   ;;  %v439_v2 = vshll.u32 %v3053_v59, 16  ;;  %v438_v3 = vrot.slane %v436_v1, 7 }
  0x70   : > { %2296 = vmatprep.subr.bf16.mxu1 %v2629_v4  ;;  %2488 = vmatprep.subr.bf16.mxu0 %v2637_v19  ;;  %v2650_v4 = vld [vmem:[%s3421_s1 + $0x90] sm:$0xff]  }
  0x71   : > { %v528_v29 = vrot.slane %v439_v2, 1 }
  0x72   : > { %861 = vmatmul.mubr.bf16.gmra.mxu0 %v2955_v5  ;;  %2473 = vmatmul.mubr.bf16.gmra.mxu1 %v2972_v14 }
  0x73   : > { %2297 = vmatpush3.bf16.msra.mxu1 %v2631_v8  ;;  %868 = vmatprep.mubr.bf16.mxu0 %v2925_v56  ;;  %v441_v8 = vor.u32 %v439_v2, %v438_v3  ;;  %v2675_v2 = vld [vmem:[%s3421_s1 + $0x180] sm:$0xff]   ;;  %v2677_v3 = vld [vmem:[#allocation2 + $0x48] sm:$0xff]  }
  0x74   : > { %2298 = vmatprep.subr.bf16.mxu1 %v2632_v10  ;;  %2489 = vmatpush3.bf16.msra.mxu0 %v2637_v19  ;;  %v2655_v10 = vld [vmem:[%s3421_s1 + $0x238] sm:$0xff]   ;;  %v2652_v19 = vld [vmem:[%s3421_s1 + $0x80] sm:$0xff]  }
  0x75   : > { %2476 = vmatprep.mubr.bf16.mxu1 %v3009_v32  ;;  %2490 = vmatprep.subr.bf16.mxu0 %v2644_v47  ;;  %v518_v15 = vsel %vm2904_vm5, 0, %v441_v8 }
  0x77   : > { %2299 = vmatpush3.bf16.msra.mxu1 %v2633_v20  ;;  %v483_v20 = vor.u32 %v481_v22, %v480_v9  ;;  %v2664_v22 = vld [vmem:[%s3421_s1 + $0x220] sm:$0xff]  }
  0x78   : > { %2300 = vmatprep.subr.bf16.mxu1 %v2636_v24  ;;  %2491 = vmatpush3.bf16.msra.mxu0 %v2644_v47  ;;  %v487_v24 = vrot.slane %v485_v38, 7  ;;  %v529_v38 = vor.u32 %v528_v29, %v436_v1  ;;  %v2657_v47 = vld [vmem:[%s3421_s1 + $0x1b0] sm:$0xff]   ;;  %v2674_v1 = vld [vmem:[%s3421_s1 + $0x1c0] sm:$0xff]  }
  0x79   : > { %2492 = vmatprep.subr.bf16.mxu0 %v2649_v63  ;;  %v3115_v23 = vsel %vm2904_vm5, 0, %v483_v20 }
  0x7a   : > { %869 = vmatmul.mubr.bf16.gmra.mxu0 %v2996_v25  ;;  %2477 = vmatmul.mubr.bf16.gmra.mxu1 %v3016_v34  ;;  %v490_v26 = vor.u32 %v488_v39, %v487_v24  ;;  %v2673_v39 = vld [vmem:[%s3421_s1 + $0x208] sm:$0xff]  }
  0x7b   : > { %2301 = vmatpush3.bf16.msra.mxu1 %v2638_v28  ;;  %876 = vmatprep.mubr.bf16.mxu0 %v2927_v57 }
  0x7c   : > { %2302 = vmatprep.subr.bf16.mxu1 %v2639_v37  ;;  %2480 = vmatprep.mubr.bf16.mxu1 %v3051_v53  ;;  %v3136_v28 = vsel %vm2904_vm5, 0, %v490_v26 }
  0x7d   : > { %2493 = vmatpush3.bf16.msra.mxu0 %v2649_v63  ;;  %v2671_v63 = vld [vmem:[%s3421_s1 + $0x1c8] sm:$0xff]  }
  0x7e   : > { %2494 = vmatprep.subr.bf16.mxu0 %v2650_v4 }
  0x7f   : > { %2303 = vmatpush3.bf16.msra.mxu1 %v2640_v44  ;;  %v2654_v44 = vld [vmem:[%s3421_s1 + $0x1b8] sm:$0xff]  }
  0x80   : > { %2304 = vmatprep.subr.bf16.mxu1 %v2643_v49  ;;  %v2660_v49 = vld [vmem:[%s3421_s1 + $0x1a8] sm:$0xff]  }
  0x81   : > { %2495 = vmatpush3.bf16.msra.mxu0 %v2650_v4 }
  0x82   : > { %877 = vmatmul.mubr.bf16.gmra.mxu0 %v3045_v51  ;;  %2481 = vmatmul.mubr.bf16.gmra.mxu1 %v3058_v60 }
  0x83   : > { %2305 = vmatpush3.bf16.msra.mxu1 %v2645_v61  ;;  %884 = vmatprep.mubr.bf16.mxu0 %v2967_v13  ;;  %v2668_v61 = vld [vmem:[%s3421_s1 + $0x1d0] sm:$0xff]  }
  0x84   : > { %2306 = vmatprep.subr.bf16.mxu1 %v2646_v0  ;;  %1190 = vmatprep.mubr.bf16.mxu1 %v3053_v59  ;;  %v2666_v59 = vld [vmem:[%s3421_s1 + $0x198] sm:$0xff]   ;;  %v2672_v0 = vld [vmem:[%s3421_s1 + $0x188] sm:$0xff]  }
  0x85   : > { %2496 = vmatprep.subr.bf16.mxu0 %v2651_v17 }
  0x86   : > { %2497 = vmatpush3.bf16.msra.mxu0 %v2651_v17 }
  0x87   : > { %2307 = vmatpush3.bf16.msra.mxu1 %v2647_v6  ;;  %2498 = vmatprep.subr.bf16.mxu0 %v2652_v19 }
  0x88   : > { %2516 = vmatprep.subr.bf16.mxu1 %v2655_v10 }
  0x8a   : > { %885 = vmatmul.mubr.bf16.gmra.mxu0 %v3092_v11  ;;  %1191 = vmatmul.mubr.bf16.vlgmr.msra.gmra.mxu1 %v518_v15 }
  0x8b   : > { %892 = vmatprep.mubr.bf16.mxu0 %v2974_v16  ;;  %1198 = vmatprep.mubr.bf16.mxu1 %v2886_v35  ;;  %v2653_v35 = vld [vmem:[%s3421_s1 + $0x1f8] sm:$0xff]  }
  0x8c   : > { %2517 = vmatpush3.bf16.msra.mxu1 %v2655_v10  ;;  %2499 = vmatpush3.bf16.msra.mxu0 %v2652_v19 }
  0x8d   : > { %2518 = vmatprep.subr.bf16.mxu1 %v2658_v18  ;;  %2372 = vmatprep.subr.bf16.mxu0 %v2653_v35 }
  0x90   : > { %2519 = vmatpush3.bf16.msra.mxu1 %v2658_v18 }
  0x91   : > { %2520 = vmatprep.subr.bf16.mxu1 %v2661_v21 }
  0x92   : > { %893 = vmatmul.mubr.bf16.gmra.mxu0 %v3115_v23  ;;  %1199 = vmatmul.mubr.bf16.gmra.mxu1 %v2923_v55  ;;  %v494_v55 = vrot.slane %v492_v42, 7  ;;  %v561_v42 = vsel %vm2897_vm4, %v529_v38, 0 }
  0x93   : > { %900 = vmatprep.mubr.bf16.mxu0 %v3005_v30  ;;  %1206 = vmatprep.mubr.bf16.mxu1 %v2888_v36 }
  0x94   : > { %2521 = vmatpush3.bf16.msra.mxu1 %v2661_v21  ;;  %v497_v37 = vor.u32 %v495_v43, %v494_v55  ;;  %v2676_v43 = vld [vmem:[%s3421_s1 + $0x200] sm:$0xff]  }
  0x95   : > { %2522 = vmatprep.subr.bf16.mxu1 %v2664_v22 }
  0x96   : > { %v3156_v41 = vsel %vm2904_vm5, 0, %v497_v37 }
  0x98   : > { %2523 = vmatpush3.bf16.msra.mxu1 %v2664_v22 }
  0x99   : > { %2524 = vmatprep.subr.bf16.mxu1 %v2667_v27 }
  0x9a   : > { %901 = vmatmul.mubr.bf16.gmra.mxu0 %v3136_v28  ;;  %1207 = vmatmul.mubr.bf16.gmra.mxu1 %v2955_v5 }
  0x9b   : > { %908 = vmatprep.mubr.bf16.mxu0 %v3011_v33  ;;  %1214 = vmatprep.mubr.bf16.mxu1 %v2925_v56 }
  0x9c   : > { %2525 = vmatpush3.bf16.msra.mxu1 %v2667_v27 }
  0x9d   : > { %2526 = vmatprep.subr.bf16.mxu1 %v2670_v31 }
  0xa0   : > { %2527 = vmatpush3.bf16.msra.mxu1 %v2670_v31 }
  0xa1   : > { %2528 = vmatprep.subr.bf16.mxu1 %v2673_v39 }
  0xa2   : > { %909 = vmatmul.mubr.bf16.gmra.mxu0 %v3156_v41  ;;  %1215 = vmatmul.mubr.bf16.gmra.mxu1 %v2996_v25 }
  0xa3   : > { %1222 = vmatprep.mubr.bf16.mxu1 %v2927_v57  ;;  %2500 = vmatprep.mubr.bf16.mxu0 %v561_v42 }
  0xa4   : > { %2529 = vmatpush3.bf16.msra.mxu1 %v2673_v39 }
  0xa5   : > { %2530 = vmatprep.subr.bf16.mxu1 %v2676_v43 }
  0xa8   : > { %2531 = vmatpush3.bf16.msra.mxu1 %v2676_v43 }
  0xaa   : > { %1223 = vmatmul.mubr.bf16.gmra.mxu1 %v3045_v51  ;;  %2501 = vmatmul.mubr.bf16.vlgmr.msra.gmra.mxu0 %v2919_v54  ;;  %v2662_v54 = vld [vmem:[%s3421_s1 + $0x1e0] sm:$0xff]  }
  0xab   : > { %2373 = vmatpush3.bf16.msra.mxu0 %v2654_v44  ;;  %1230 = vmatprep.mubr.bf16.mxu1 %v2967_v13 }
  0xac   : > { %2374 = vmatprep.subr.bf16.mxu0 %v2656_v46  ;;  %2504 = vmatprep.mubr.bf16.mxu0 %v2932_v58 }
  0xaf   : > { %2375 = vmatpush3.bf16.msra.mxu0 %v2657_v47 }
  0xb0   : > { %2376 = vmatprep.subr.bf16.mxu0 %v2659_v48 }
  0xb2   : > { %1231 = vmatmul.mubr.bf16.gmra.mxu1 %v3092_v11  ;;  %2505 = vmatmul.mubr.bf16.gmra.mxu0 %v2965_v12 }
  0xb3   : > { %2377 = vmatpush3.bf16.msra.mxu0 %v2660_v49  ;;  %1238 = vmatprep.mubr.bf16.mxu1 %v2974_v16 }
  0xb4   : > { %2378 = vmatprep.subr.bf16.mxu0 %v2662_v54  ;;  %2508 = vmatprep.mubr.bf16.mxu0 %v2972_v14 }
  0xb7   : > { %2379 = vmatpush3.bf16.msra.mxu0 %v2663_v50 }
  0xb8   : > { %2380 = vmatprep.subr.bf16.mxu0 %v2665_v52 }
  0xba   : > { %1239 = vmatmul.mubr.bf16.gmra.mxu1 %v3115_v23  ;;  %2509 = vmatmul.mubr.bf16.gmra.mxu0 %v3009_v32 }
  0xbb   : > { %2381 = vmatpush3.bf16.msra.mxu0 %v2666_v59  ;;  %1246 = vmatprep.mubr.bf16.mxu1 %v3005_v30 }
  0xbc   : > { %2382 = vmatprep.subr.bf16.mxu0 %v2668_v61  ;;  %2512 = vmatprep.mubr.bf16.mxu0 %v3016_v34 }
  0xbf   : > { %2383 = vmatpush3.bf16.msra.mxu0 %v2669_v62 }
  0xc0   : > { %2384 = vmatprep.subr.bf16.mxu0 %v2671_v63 }
  0xc2   : > { %1247 = vmatmul.mubr.bf16.gmra.mxu1 %v3136_v28  ;;  %2513 = vmatmul.mubr.bf16.gmra.mxu0 %v3051_v53 }
  0xc3   : > { %2385 = vmatpush3.bf16.msra.mxu0 %v2672_v0  ;;  %1577 = vmatprep.mubr.bf16.mxu0 %v2888_v36  ;;  %v502_v36 = vshll.u32 %v2677_v3, 16 }
  0xc4   : > { %2386 = vmatprep.subr.bf16.mxu0 %v2674_v1  ;;  %2532 = vmatprep.mubr.bf16.mxu1 %v2932_v58  ;;  %v499_v58 = vshrl.u32 %v2677_v3, 16 }
  0xc5   : > { %v546_v4 = vrot.slane %v502_v36, 1 }
  0xc7   : > { %2387 = vmatpush3.bf16.msra.mxu0 %v2675_v2 }
  0xca   : > { %1578 = vmatmul.mubr.bf16.vlgmr.msra.gmra.mxu0 %v2955_v5  ;;  %2533 = vmatmul.mubr.bf16.vlgmr.msra.gmra.mxu1 %v2965_v12 }
  0xcb   : > { %1585 = vmatprep.mubr.bf16.mxu0 %v2925_v56  ;;  %2536 = vmatprep.mubr.bf16.mxu1 %v2972_v14  ;;  %v547_v56 = vor.u32 %v546_v4, %v499_v58 }
  0xcd   : > { %v570_v5 = vsel %vm2897_vm4, %v547_v56, 0 }
  0xd2   : > { %1586 = vmatmul.mubr.bf16.gmra.mxu0 %v2996_v25  ;;  %2537 = vmatmul.mubr.bf16.gmra.mxu1 %v3009_v32 }
  0xd3   : > { %1593 = vmatprep.mubr.bf16.mxu0 %v2927_v57  ;;  %2540 = vmatprep.mubr.bf16.mxu1 %v3016_v34  ;;  %v501_v57 = vrot.slane %v499_v58, 7 }
  0xd5   : > { %v504_v12 = vor.u32 %v502_v36, %v501_v57 }
  0xd7   : > { %v527_v40 = vsel %vm2904_vm5, 0, %v504_v12 }
  0xda   : > { %1594 = vmatmul.mubr.bf16.gmra.mxu0 %v3045_v51  ;;  %2541 = vmatmul.mubr.bf16.gmra.mxu1 %v3051_v53 }
  0xdb   : > { %1601 = vmatprep.mubr.bf16.mxu0 %v2967_v13  ;;  %2544 = vmatprep.mubr.bf16.mxu1 %v3058_v60 }
  0xe2   : > { %1602 = vmatmul.mubr.bf16.gmra.mxu0 %v3092_v11  ;;  %2545 = vmatmul.mubr.bf16.gmra.mxu1 %v570_v5 }
  0xe3   : > { %1609 = vmatprep.mubr.bf16.mxu0 %v2974_v16 }
  0xea   : > { %1610 = vmatmul.mubr.bf16.gmra.mxu0 %v3115_v23 }
  0xeb   : > { %1617 = vmatprep.mubr.bf16.mxu0 %v3005_v30 }
  0xf2   : > { %1618 = vmatmul.mubr.bf16.gmra.mxu0 %v3136_v28 }
  0xf3   : > { %1625 = vmatprep.mubr.bf16.mxu0 %v3011_v33 }
  0xfa   : > { %1626 = vmatmul.mubr.bf16.gmra.mxu0 %v3156_v41 }
  0xfb   : > { %1633 = vmatprep.mubr.bf16.mxu0 %v2677_v3 }
 0x102   : > { %1634 = vmatmul.mubr.bf16.gmra.mxu0 %v527_v40 }
 0x12a   : > { %v2228_v13 = vpop.f32.mrf.mxu0  ;;  %v2470_v14 = vpop.f32.mrf.mxu1 }
 0x12c   : > { %v2229_v16 = vpop.f32.mrf.mxu0  ;;  %v951_v25 = vpop.f32.mrf.mxu1 }
 0x12d   : > { %v2230_v32 = vadd.f32 %v2229_v16, %v2228_v13 }
 0x12e   : > { %v2231_v34 = vpop.f32.mrf.mxu0  ;;  %v2471_v30 = vpop.f32.mrf.mxu1 }
 0x12f   : > { %v952_v51 = vadd.f32 %v2230_v32, %v951_v25 }
 0x130   : > { %v2232_v53 = vpop.f32.mrf.mxu0  ;;  %v954_v60 = vpop.f32.mrf.mxu1 }
 0x131   : > { %v2233_v33 = vadd.f32 %v2232_v53, %v2231_v34 }
 0x132   : > { %v2234_v6 = vpop.f32.mrf.mxu0  ;;  %v2474_v7 = vpop.f32.mrf.mxu1 }
 0x133   : > { %v3250_v8 = vadd.f32 %v2233_v33, %v954_v60 }
 0x134   : > { %v2235_v9 = vpop.f32.mrf.mxu0  ;;  %v967_v10 = vpop.f32.mrf.mxu1 }
 0x135   : > { %v2236_v45 = vadd.f32 %v2235_v9, %v2234_v6 }
 0x136   : > { %v2237_v11 = vpop.f32.mrf.mxu0  ;;  %v2475_v15 = vpop.f32.mrf.mxu1 }
 0x137   : > { %v960_v17 = vadd.f32 %v2470_v14, %v2236_v45 }
 0x138   : > { %v2238_v18 = vpop.f32.mrf.mxu0  ;;  %v970_v19 = vpop.f32.mrf.mxu1 }
 0x139   : > { %v2239_v20 = vadd.f32 %v2238_v18, %v2237_v11 }
 0x13a   : > { %v2240_v21 = vpop.f32.mrf.mxu0  ;;  %v2478_v23 = vpop.f32.mrf.mxu1 }
 0x13b   : > { %v3252_v24 = vadd.f32 %v2471_v30, %v2239_v20 }
 0x13c   : > { %v2241_v35 = vpop.f32.mrf.mxu0  ;;  %v983_v22 = vpop.f32.mrf.mxu1 }
 0x13d   : > { %v2242_v26 = vadd.f32 %v2241_v35, %v2240_v21 }
 0x13e   : > { %v2243_v27 = vpop.f32.mrf.mxu0  ;;  %v2479_v28 = vpop.f32.mrf.mxu1 }
 0x13f   : > { %v968_v55 = vadd.f32 %v2242_v26, %v967_v10 }
 0x140   : > { %v2244_v29 = vpop.f32.mrf.mxu0  ;;  %v986_v31 = vpop.f32.mrf.mxu1 }
 0x141   : > { %v2245_v37 = vadd.f32 %v2244_v29, %v2243_v27 }
 0x142   : > { %v2246_v38 = vpop.f32.mrf.mxu0  ;;  %v2482_v39 = vpop.f32.mrf.mxu1 }
 0x143   : > { %v3254_v41 = vadd.f32 %v2245_v37, %v970_v19 }
 0x144   : > { %v2247_v42 = vpop.f32.mrf.mxu0  ;;  %v999_v43 = vpop.f32.mrf.mxu1 }
 0x145   : > { %v2248_v44 = vadd.f32 %v2247_v42, %v2246_v38 }
 0x146   : > { %v2249_v46 = vpop.f32.mrf.mxu0  ;;  %v3256_v47 = vpop.f32.mrf.mxu1 }
 0x147   : > { %v976_v48 = vadd.f32 %v2474_v7, %v2248_v44 }
 0x148   : > { %v2250_v49 = vpop.f32.mrf.mxu0  ;;  %v1002_v54 = vpop.f32.mrf.mxu1 }
 0x149   : > { %v2251_v50 = vadd.f32 %v2250_v49, %v2249_v46 }
 0x14a   : > { %v2252_v52 = vpop.f32.mrf.mxu0  ;;  %v2308_v59 = vpop.f32.mrf.mxu1 }
 0x14b   : > { %v3258_v61 = vadd.f32 %v2475_v15, %v2251_v50 }
 0x14c   : > { %v2253_v62 = vpop.f32.mrf.mxu0  ;;  %v2309_v63 = vpop.f32.mrf.mxu1 }
 0x14d   : > { %v2254_v0 = vadd.f32 %v2253_v62, %v2252_v52  ;;  %v2310_v1 = vadd.f32 %v2309_v63, %v2308_v59 }
 0x14e   : > { %v2255_v2 = vpop.f32.mrf.mxu0  ;;  %v3260_v3 = vpop.f32.mrf.mxu1 }
 0x14f   : > { %v984_v36 = vadd.f32 %v2254_v0, %v983_v22  ;;  %v3262_v58 = vadd.f32 %v2310_v1, %v952_v51 }
 0x150   : > { %v2256_v4 = vpop.f32.mrf.mxu0  ;;  %v3264_v56 = vpop.f32.mrf.mxu1 }
 0x151   : > { %v2257_v5 = vadd.f32 %v2256_v4, %v2255_v2 }
 0x152   : > { %v2258_v57 = vpop.f32.mrf.mxu0  ;;  %v2314_v12 = vpop.f32.mrf.mxu1 }
 0x153   : > { %v3266_v40 = vadd.f32 %v2257_v5, %v986_v31 }
 0x154   : > { %v2259_v13 = vpop.f32.mrf.mxu0  ;;  %v2315_v14 = vpop.f32.mrf.mxu1 }
 0x155   : > { %v2260_v16 = vadd.f32 %v2259_v13, %v2258_v57  ;;  %v2316_v25 = vadd.f32 %v2315_v14, %v2314_v12 }
 0x156   : > { %v2261_v32 = vpop.f32.mrf.mxu0  ;;  %v3268_v34 = vpop.f32.mrf.mxu1 }
 0x157   : > { %v992_v30 = vadd.f32 %v2478_v23, %v2260_v16  ;;  %v3270_v53 = vadd.f32 %v2316_v25, %v960_v17 }
 0x158   : > { %v2262_v51 = vpop.f32.mrf.mxu0  ;;  %v3272_v60 = vpop.f32.mrf.mxu1 }
 0x159   : > { %v2263_v33 = vadd.f32 %v2262_v51, %v2261_v32 }
 0x15a   : > { %v2264_v6 = vpop.f32.mrf.mxu0  ;;  %v2320_v7 = vpop.f32.mrf.mxu1 }
 0x15b   : > { %v3274_v9 = vadd.f32 %v2479_v28, %v2263_v33 }
 0x15c   : > { %v2265_v10 = vpop.f32.mrf.mxu0  ;;  %v2321_v45 = vpop.f32.mrf.mxu1 }
 0x15d   : > { %v2266_v11 = vadd.f32 %v2265_v10, %v2264_v6  ;;  %v2322_v15 = vadd.f32 %v2321_v45, %v2320_v7 }
 0x15e   : > { %v2267_v18 = vpop.f32.mrf.mxu0  ;;  %v3276_v19 = vpop.f32.mrf.mxu1 }
 0x15f   : > { %v1000_v20 = vadd.f32 %v2266_v11, %v999_v43  ;;  %v3278_v21 = vadd.f32 %v2322_v15, %v968_v55 }
 0x160   : > { %v2268_v17 = vpop.f32.mrf.mxu0  ;;  %v3280_v23 = vpop.f32.mrf.mxu1 }
 0x161   : > { %v2269_v35 = vadd.f32 %v2268_v17, %v2267_v18 }
 0x162   : > { %v2270_v22 = vpop.f32.mrf.mxu0  ;;  %v2326_v26 = vpop.f32.mrf.mxu1 }
 0x163   : > { %v3282_v27 = vadd.f32 %v2269_v35, %v1002_v54 }
 0x164   : > { %v2271_v28 = vpop.f32.mrf.mxu0  ;;  %v2327_v29 = vpop.f32.mrf.mxu1 }
 0x165   : > { %v2272_v31 = vadd.f32 %v2271_v28, %v2270_v22  ;;  %v2328_v37 = vadd.f32 %v2327_v29, %v2326_v26 }
 0x166   : > { %v2273_v38 = vpop.f32.mrf.mxu0  ;;  %v3284_v42 = vpop.f32.mrf.mxu1 }
 0x167   : > { %v1008_v44 = vadd.f32 %v2482_v39, %v2272_v31  ;;  %v3286_v46 = vadd.f32 %v2328_v37, %v976_v48 }
 0x168   : > { %v2274_v55 = vpop.f32.mrf.mxu0  ;;  %v3288_v43 = vpop.f32.mrf.mxu1 }
 0x169   : > { %v2275_v49 = vadd.f32 %v2274_v55, %v2273_v38 }
 0x16a   : > { %v2332_v50 = vpop.f32.mrf.mxu1  ;;  %v3290_v52 = vpop.f32.mrf.mxu0 }
 0x16b   : > { %v1011_v54 = vadd.f32 %v3256_v47, %v2275_v49 }
 0x16c   : > { %v2333_v59 = vpop.f32.mrf.mxu1  ;;  %v1289_v62 = vpop.f32.mrf.mxu0 }
 0x16d   : > { %v2334_v63 = vadd.f32 %v2333_v59, %v2332_v50 }
 0x16e   : > { %v3293_v0 = vpop.f32.mrf.mxu1  ;;  %v3295_v1 = vpop.f32.mrf.mxu0 }
 0x16f   : > { %v3297_v2 = vadd.f32 %v2334_v63, %v984_v36 }
 0x170   : > { %v3299_v39 = vpop.f32.mrf.mxu1  ;;  %v1292_v48 = vpop.f32.mrf.mxu0 }
 0x172   : > { %v2338_v4 = vpop.f32.mrf.mxu1  ;;  %v3301_v5 = vpop.f32.mrf.mxu0 }
 0x174   : > { %v2339_v57 = vpop.f32.mrf.mxu1  ;;  %v3303_v12 = vpop.f32.mrf.mxu0 }
 0x175   : > { %v2340_v13 = vadd.f32 %v2339_v57, %v2338_v4 }
 0x176   : > { %v3305_v47 = vpop.f32.mrf.mxu1  ;;  %v3307_v14 = vpop.f32.mrf.mxu0 }
 0x177   : > { %v1233_v16 = vadd.f32 %v2340_v13, %v992_v30  ;;  %v2313_v13 = vadd.f32 %v3264_v56, %v3260_v3 }
 0x178   : > { %v3309_v25 = vpop.f32.mrf.mxu1  ;;  %v3311_v32 = vpop.f32.mrf.mxu0 }
 0x17a   : > { %v2344_v36 = vpop.f32.mrf.mxu1  ;;  %v2510_v51 = vpop.f32.mrf.mxu0 }
 0x17b   : > { %v3313_v33 = vadd.f32 %v2510_v51, %v1233_v16 }
 0x17c   : > { %v2345_v6 = vpop.f32.mrf.mxu1  ;;  %v3315_v7 = vpop.f32.mrf.mxu0 }
 0x17d   : > { %v2346_v10 = vadd.f32 %v2345_v6, %v2344_v36 }
 0x17e   : > { %v3317_v45 = vpop.f32.mrf.mxu1  ;;  %v3319_v11 = vpop.f32.mrf.mxu0 }
 0x17f   : > { %v3321_v15 = vadd.f32 %v2346_v10, %v1000_v20 }
 0x180   : > { %v3323_v18 = vpop.f32.mrf.mxu1  ;;  %v3325_v30 = vpop.f32.mrf.mxu0 }
 0x182   : > { %v2350_v17 = vpop.f32.mrf.mxu1  ;;  %v2514_v35 = vpop.f32.mrf.mxu0 }
 0x184   : > { %v2351_v22 = vpop.f32.mrf.mxu1  ;;  %v3327_v26 = vpop.f32.mrf.mxu0 }
 0x185   : > { %v2352_v28 = vadd.f32 %v2351_v22, %v2350_v17  ;;  %v1196_v22 = vadd.f32 %v2313_v13, %v3250_v8 }
 0x186   : > { %v2353_v29 = vpop.f32.mrf.mxu1  ;;  %v2515_v31 = vpop.f32.mrf.mxu0 }
 0x187   : > { %v1249_v37 = vadd.f32 %v2352_v28, %v1008_v44  ;;  %v1290_v44 = vadd.f32 %v1289_v62, %v3262_v58  ;;  %v1293_v56 = vadd.f32 %v1292_v48, %v1196_v22 }
 0x188   : > { %v2354_v38 = vpop.f32.mrf.mxu1  ;;  %v3329_v55 = vpop.f32.mrf.mxu0 }
 0x189   : > { %v3331_v49 = vadd.f32 %v2514_v35, %v1249_v37  ;;  %v2355_v20 = vadd.f32 %v2354_v38, %v2353_v29  ;;  %v2319_v37 = vadd.f32 %v3272_v60, %v3268_v34 }
 0x18a   : > { %v2388_v50 = vpop.f32.mrf.mxu0  ;;  %v2534_v59 = vpop.f32.mrf.mxu1 }
 0x18b   : > { %v1252_v63 = vadd.f32 %v2355_v20, %v1011_v54  ;;  %v3342_v54 = vld [vmem:[%s3422_s2] ss:$0 sm:$0xff]  ;;  %v1204_v48 = vadd.f32 %v2319_v37, %v3252_v24 }
 0x18c   : > { %v2389_v4 = vpop.f32.mrf.mxu0  ;;  %v1676_v57 = vpop.f32.mrf.mxu1 }
 0x18d   : > { %v3335_v16 = vadd.f32 %v2515_v31, %v1252_v63  ;;  %v2390_v36 = vadd.f32 %v2389_v4, %v2388_v50  ;;  %v1298_v63 = vadd.f32 %v3290_v52, %v3270_v53  ;;  %v2325_v53 = vadd.f32 %v3280_v23, %v3276_v19 }
 0x18e   : > { %v2391_v51 = vpop.f32.mrf.mxu0  ;;  %v2535_v6 = vpop.f32.mrf.mxu1 }
 0x18f   : > { %v1677_v10 = vadd.f32 %v2390_v36, %v1676_v57 }
 0x190   : > { %v2392_v17 = vpop.f32.mrf.mxu0  ;;  %v1679_v35 = vpop.f32.mrf.mxu1 }
 0x191   : > { %v1739_v28 = vadd.f32 %v1677_v10, %v1290_v44  ;;  %v2393_v29 = vadd.f32 %v2392_v17, %v2391_v51  ;;  %v1301_v17 = vadd.f32 %v3295_v1, %v1204_v48 }
 0x192   : > { %v2394_v3 = vpop.f32.mrf.mxu0  ;;  %v2538_v58 = vpop.f32.mrf.mxu1 }
 0x193   : > { %v1680_v31 = vadd.f32 %v2393_v29, %v1679_v35  ;;  %v1762_v62 = vadd.f32 %v3342_v54, %v1739_v28 }
 0x194   : > { %v2395_v38 = vpop.f32.mrf.mxu0  ;;  %v1692_v36 = vpop.f32.mrf.mxu1 }
 0x195   : > { %v1740_v20 = vadd.f32 %v1680_v31, %v1293_v56  ;;  %v2396_v50 = vadd.f32 %v2395_v38, %v2394_v3  ;;  %v1778_v51 = vmax.f32 %v1762_v62, 0.0  ;;  %v1306_v56 = vadd.f32 %v3303_v12, %v3278_v21 }
 0x196   : > { %v2397_v8 = vpop.f32.mrf.mxu0  ;;  %v2539_v28 = vpop.f32.mrf.mxu1  ;;  %v2331_v21 = vadd.f32 %v3288_v43, %v3284_v42 }
 0x197   : > { %v1763_v4 = vadd.f32 %v3342_v54, %v1740_v20  ;;  %v1685_v57 = vadd.f32 %v2534_v59, %v2396_v50 }
 0x198   : > { %v2398_v13 = vpop.f32.mrf.mxu0  ;;  %v1695_v38 = vpop.f32.mrf.mxu1 }
 0x199   : > { %v1779_v34 = vmax.f32 %v1763_v4, 0.0  ;;  %v1741_v60 = vadd.f32 %v1685_v57, %v1298_v63  ;;  %v2399_v44 = vadd.f32 %v2398_v13, %v2397_v8 }
 0x19a   : > { %v2400_v10 = vpop.f32.mrf.mxu0  ;;  %v2542_v57 = vpop.f32.mrf.mxu1 }
 0x19b   : > { %v2168_v35 = vpack.c.bf16 %v1779_v34, %v1778_v51  ;;  %v1688_v22 = vadd.f32 %v2535_v6, %v2399_v44  ;;  %v1764_v59 = vadd.f32 %v3342_v54, %v1741_v60  ;;  %v1212_v6 = vadd.f32 %v2325_v53, %v3254_v41 }
 0x19c   : > { %v2401_v52 = vpop.f32.mrf.mxu0  ;;  %v1314_v51 = vadd.f32 %v3301_v5, %v3286_v46  ;;  %v1220_v60 = vadd.f32 %v2331_v21, %v3258_v61  ;;  %v2337_v46 = vadd.f32 %v3299_v39, %v3293_v0 }
 0x19d   : > { %2169 = vst [vmem:[%s2790_s30] sm:$0xff] %v2168_v35   ;;  %v1742_v24 = vadd.f32 %v1688_v22, %v1301_v17  ;;  %v2402_v29 = vadd.f32 %v2401_v52, %v2400_v10  ;;  %v1780_v19 = vmax.f32 %v1764_v59, 0.0  ;;  %v1309_v8 = vadd.f32 %v3311_v32, %v1212_v6  ;;  %v1708_v10 = vpop.f32.mrf.mxu1 }
 0x19e   : > { %v2403_v3 = vpop.f32.mrf.mxu0  ;;  %v1317_v53 = vadd.f32 %v3307_v14, %v1220_v60 }
 0x19f   : > { %v1765_v31 = vadd.f32 %v3342_v54, %v1742_v24  ;;  %v1693_v1 = vadd.f32 %v2402_v29, %v1692_v36  ;;  %v2543_v24 = vpop.f32.mrf.mxu1 }
 0x1a0   : > { %v2404_v37 = vpop.f32.mrf.mxu0 }
 0x1a1   : > { %v1781_v23 = vmax.f32 %v1765_v31, 0.0  ;;  %v1743_v62 = vadd.f32 %v1693_v1, %v1306_v56  ;;  %v2405_v20 = vadd.f32 %v2404_v37, %v2403_v3  ;;  %v1322_v56 = vadd.f32 %v3315_v7, %v3297_v2  ;;  %v1711_v6 = vpop.f32.mrf.mxu1 }
 0x1a2   : > { %v2406_v50 = vpop.f32.mrf.mxu0  ;;  %v2343_v2 = vadd.f32 %v3309_v25, %v3305_v47 }
 0x1a3   : > { %v2173_v63 = vpack.c.bf16 %v1781_v23, %v1780_v19  ;;  %v1696_v4 = vadd.f32 %v2405_v20, %v1695_v38  ;;  %v1766_v48 = vadd.f32 %v3342_v54, %v1743_v62 }
 0x1a4   : > { %v2407_v12 = vpop.f32.mrf.mxu0 }
 0x1a5   : > { %2205 = vst [vmem:[%s2790_s30 + $0x8] sm:$0xff] %v2173_v63   ;;  %v1744_v41 = vadd.f32 %v1696_v4, %v1309_v8  ;;  %v2408_v13 = vadd.f32 %v2407_v12, %v2406_v50  ;;  %v1782_v42 = vmax.f32 %v1766_v48, 0.0  ;;  %v2546_v50 = vpop.f32.mrf.mxu1  ;;  %v1236_v48 = vadd.f32 %v2343_v2, %v3274_v9 }
 0x1a6   : > { %v2409_v36 = vpop.f32.mrf.mxu0 }
 0x1a7   : > { %v1767_v34 = vadd.f32 %v3342_v54, %v1744_v41  ;;  %v1701_v32 = vadd.f32 %v2538_v58, %v2408_v13  ;;  %v1724_v41 = vpop.f32.mrf.mxu1 }
 0x1a8   : > { %v2410_v44 = vpop.f32.mrf.mxu0 }
 0x1a9   : > { %v1783_v43 = vmax.f32 %v1767_v34, 0.0  ;;  %v1745_v17 = vadd.f32 %v1701_v32, %v1314_v51  ;;  %v2411_v35 = vadd.f32 %v2410_v44, %v2409_v36  ;;  %v1333_v34 = vadd.f32 %v3319_v11, %v1236_v48 }
 0x1aa   : > { %v2412_v22 = vpop.f32.mrf.mxu0  ;;  %v2349_v44 = vadd.f32 %v3323_v18, %v3317_v45 }
 0x1ab   : > { %v2178_v52 = vpack.c.bf16 %v1783_v43, %v1782_v42  ;;  %v1704_v59 = vadd.f32 %v2539_v28, %v2411_v35  ;;  %v1768_v58 = vadd.f32 %v3342_v54, %v1745_v17  ;;  %v1228_v28 = vadd.f32 %v2337_v46, %v3266_v40  ;;  %v2547_v42 = vpop.f32.mrf.mxu1 }
 0x1ac   : > { %v2413_v5 = vpop.f32.mrf.mxu0 }
 0x1ad   : > { %2206 = vst [vmem:[%s2790_s30 + $0x10] sm:$0xff] %v2178_v52   ;;  %v1746_v61 = vadd.f32 %v1704_v59, %v1317_v53  ;;  %v2414_v29 = vadd.f32 %v2413_v5, %v2412_v22  ;;  %v1784_v0 = vmax.f32 %v1768_v58, 0.0  ;;  %v1325_v23 = vadd.f32 %v3325_v30, %v1228_v28  ;;  %v1727_v52 = vpop.f32.mrf.mxu1 }
 0x1ae   : > { %v2415_v3 = vpop.f32.mrf.mxu0  ;;  %v1244_v22 = vadd.f32 %v2349_v44, %v3282_v27 }
 0x1af   : > { %v1769_v31 = vadd.f32 %v3342_v54, %v1746_v61  ;;  %v1709_v14 = vadd.f32 %v2414_v29, %v1708_v10 }
 0x1b0   : > { %v2416_v1 = vpop.f32.mrf.mxu0 }
 0x1b1   : > { %v1785_v39 = vmax.f32 %v1769_v31, 0.0  ;;  %v1747_v37 = vadd.f32 %v1709_v14, %v1322_v56  ;;  %v2417_v38 = vadd.f32 %v2416_v1, %v2415_v3 }
 0x1b2   : > { %v2418_v19 = vpop.f32.mrf.mxu0 }
 0x1b3   : > { %v2183_v62 = vpack.c.bf16 %v1785_v39, %v1784_v0  ;;  %v1712_v20 = vadd.f32 %v2417_v38, %v1711_v6  ;;  %v1770_v8 = vadd.f32 %v3342_v54, %v1747_v37 }
 0x1b4   : > { %v2419_v7 = vpop.f32.mrf.mxu0 }
 0x1b5   : > { %2207 = vst [vmem:[%s2790_s30 + $0x18] sm:$0xff] %v2183_v62   ;;  %v1748_v40 = vadd.f32 %v1712_v20, %v1325_v23  ;;  %v2420_v63 = vadd.f32 %v2419_v7, %v2418_v19  ;;  %v1786_v13 = vmax.f32 %v1770_v8, 0.0 }
 0x1b6   : > { %v2421_v4 = vpop.f32.mrf.mxu0 }
 0x1b7   : > { %v1771_v21 = vadd.f32 %v3342_v54, %v1748_v40  ;;  %v1717_v12 = vadd.f32 %v2542_v57, %v2420_v63 }
 0x1b8   : > { %v2422_v30 = vpop.f32.mrf.mxu0 }
 0x1b9   : > { %v1787_v36 = vmax.f32 %v1771_v21, 0.0  ;;  %v1749_v47 = vadd.f32 %v1717_v12, %v3313_v33  ;;  %v2423_v25 = vadd.f32 %v2422_v30, %v2421_v4  ;;  %v1338_v33 = vadd.f32 %v3327_v26, %v3321_v15 }
 0x1ba   : > { %v2424_v51 = vpop.f32.mrf.mxu0 }
 0x1bb   : > { %v2188_v32 = vpack.c.bf16 %v1787_v36, %v1786_v13  ;;  %v1720_v60 = vadd.f32 %v2543_v24, %v2423_v25  ;;  %v1772_v9 = vadd.f32 %v3342_v54, %v1749_v47  ;;  %v1341_v24 = vadd.f32 %v3329_v55, %v1244_v22 }
 0x1bc   : > { %v2425_v10 = vpop.f32.mrf.mxu0 }
 0x1bd   : > { %2208 = vst [vmem:[%s2790_s30 + $0x20] sm:$0xff] %v2188_v32   ;;  %v1750_v57 = vadd.f32 %v1720_v60, %v1333_v34  ;;  %v2426_v43 = vadd.f32 %v2425_v10, %v2424_v51  ;;  %v1788_v45 = vmax.f32 %v1772_v9, 0.0 }
 0x1be   : > { %v2427_v17 = vpop.f32.mrf.mxu0 }
 0x1bf   : > { %v1773_v35 = vadd.f32 %v3342_v54, %v1750_v57  ;;  %v1725_v11 = vadd.f32 %v2426_v43, %v1724_v41 }
 0x1c0   : > { %v2428_v53 = vpop.f32.mrf.mxu0 }
 0x1c1   : > { %v1789_v18 = vmax.f32 %v1773_v35, 0.0  ;;  %v1751_v59 = vadd.f32 %v1725_v11, %v1338_v33  ;;  %v2429_v46 = vadd.f32 %v2428_v53, %v2427_v17 }
 0x1c2   : > { %v2430_v5 = vpop.f32.mrf.mxu0 }
 0x1c3   : > { %v2193_v58 = vpack.c.bf16 %v1789_v18, %v1788_v45  ;;  %v1728_v61 = vadd.f32 %v2429_v46, %v1727_v52  ;;  %v1774_v15 = vadd.f32 %v3342_v54, %v1751_v59 }
 0x1c4   : > { %v2431_v29 = vpop.f32.mrf.mxu0 }
 0x1c5   : > { %2209 = vst [vmem:[%s2790_s30 + $0x28] sm:$0xff] %v2193_v58   ;;  %v1752_v26 = vadd.f32 %v1728_v61, %v1341_v24  ;;  %v2432_v3 = vadd.f32 %v2431_v29, %v2430_v5  ;;  %v1790_v28 = vmax.f32 %v1774_v15, 0.0 }
 0x1c6   : > { %v2433_v56 = vpop.f32.mrf.mxu0 }
 0x1c7   : > { %v1775_v27 = vadd.f32 %v3342_v54, %v1752_v26  ;;  %v1733_v31 = vadd.f32 %v2546_v50, %v2432_v3 }
 0x1c8   : > { %v2434_v14 = vpop.f32.mrf.mxu0 }
 0x1c9   : > { %v1791_v1 = vmax.f32 %v1775_v27, 0.0  ;;  %v1753_v6 = vadd.f32 %v1733_v31, %v3331_v49  ;;  %v2435_v55 = vadd.f32 %v2434_v14, %v2433_v56 }
 0x1cb   : > { %v2198_v0 = vpack.c.bf16 %v1791_v1, %v1790_v28  ;;  %v1736_v39 = vadd.f32 %v2547_v42, %v2435_v55  ;;  %v1776_v37 = vadd.f32 %v3342_v54, %v1753_v6 }
 0x1cd   : > { %2210 = vst [vmem:[%s2790_s30 + $0x30] sm:$0xff] %v2198_v0   ;;  %v1754_v38 = vadd.f32 %v1736_v39, %v3335_v16  ;;  %v1792_v23 = vmax.f32 %v1776_v37, 0.0 }
 0x1cf   : > { %v1777_v19 = vadd.f32 %v3342_v54, %v1754_v38 }
 0x1d1   : > { %v1793_v62 = vmax.f32 %v1777_v19, 0.0 }
 0x1d3   : > { %v2203_v20 = vpack.c.bf16 %v1793_v62, %v1792_v23 }
 0x1d5   : > { %2211 = vst [vmem:[%s2790_s30 + $0x38] sm:$0xff] %v2203_v20  }
 0x1d6 PF: > { %s13_s16 = sadd.s32 1, %s2726_s16   ;;  %s3428_s12 = smov %s2718_s14 }
 0x1d7   : > { %p10_p2 = scmp.ge.s32.totalorder %s13_s16, 6   ;;  %s3429_s13 = smov %s2722_s15 }
 0x1d8   : > { %s3430_s14 = smov %s3433_s17  ;;  %s3431_s15 = smov %s3437_s18 }
 0x1d9   :  { %12 = sbr.rel (!%p10_p2) target bundleno = 3 (0x3), region = 217 }
 0x1de   :  { %1906 = vsyncmov [#allocation3] }
 0x1e1   :  { %s1907_s30 = vpop.sfrf %1906 }
 0x1e2   :  { %p2141_p3 = scmp.ne.s32.totalorder %s1907_s30, 0 }
 0x1e4   :  { %1911 = shalt.err (%p2141_p3)  }
 0x1e5   :  { %1913 = vsyncmov [#allocation3 + $0x1] }
 0x1e8   :  { %s1914_s29 = vpop.sfrf %1913 }
 0x1e9   :  { %p2142_p4 = scmp.ne.s32.totalorder %s1914_s29, 0 }
 0x1eb   :  { %1918 = shalt.err (%p2142_p4)  }
 0x1ec   :  { %1920 = vsyncmov [#allocation3 + $0x2] }
 0x1ef   :  { %s1921_s25 = vpop.sfrf %1920 }
 0x1f0   :  { %p2143_p5 = scmp.ne.s32.totalorder %s1921_s25, 0 }
 0x1f2   :  { %1925 = shalt.err (%p2143_p5)  }

// kernel: rsu4_forward.11
= control target key start
LH: loop header
LB: loop body
LE: loop exit
PB: predicated region body
PF: predicated region fallthrough
CT: control target
= control target key end

     0   :  { %s3966_s15 = smov 0   ;;  %s3968_s16 = smov 0   ;;  %s4865_s0 = inlined_call_operand.vmem [shape: bf16[2,16,16,128], index: 0, kind: input, shape index: {}]   ;;  %s4866_s1 = inlined_call_operand.vmem [shape: bf16[1152,128], index: 1, kind: input, shape index: {}]   ;;  %s4867_s2 = inlined_call_operand.vmem [shape: f32[1,128], index: 2, kind: input, shape index: {}]   ;;  %s4868_s3 = inlined_call_operand.vmem [shape: bf16[2,16,16,128], index: 3, kind: output, shape index: {0}]   ;;  %s4869_s4 = inlined_call_operand.vmem [shape: bf16[2,8,8,128], index: 4, kind: output, shape index: {1}]  }
   0x1   :  { %s3970_s17 = smov 0   ;;  %s3972_s18 = smov 0  }
   0x2   :  { %s3974_s19 = smov 0  }
   0x3 LB: > { %s24_s20 = sadd.s32 1, %s3928_s17  ;;  %s27_s21 = sadd.s32 1, %s3932_s18  ;;  %s3936_s19 = sphi %s3974_s19, %s15_s19   ;;  %s3932_s18 = sphi %s3972_s18, %s4877_s18   ;;  %s3928_s17 = sphi %s3970_s17, %s4876_s17   ;;  %s3924_s16 = sphi %s3968_s16, %s4875_s16   ;;  %s3920_s15 = sphi %s3966_s15, %s4874_s15  }
   0x4   : > { %p25_p0 = scmp.ge.s32.totalorder %s24_s20, 2  ;;  %p3155_p1 = scmp.ge.s32.totalorder %s3936_s19, 1 }
   0x5   : > { %p147_p2 = scmp.lt.s32.totalorder %s3936_s19, 5 }
   0x6   : > { %s4879_s20 = smov (%p25_p0, %s24_s20), 0  ;;  %s4881_s21 = smov (!%p25_p0, %s27_s21), %s3932_s18 }
   0x7   : > { %p148_p3 = pnand %p3155_p1, %p147_p2  ;;  %p29_p4 = scmp.ge.s32.totalorder %s4881_s21, 2 }
   0x8   : > { %s3156_s22 = sshll.u32 (!%p148_p3), %s3920_s15, 3  ;;  %p181_p5 = scmp.lt.s32.totalorder (!%p148_p3), %s3924_s16, 1 }
   0x9   : > { %s4883_s21 = smov (%p29_p4, %s4881_s21), 0  ;;  %151 = sbr.rel (%p148_p3) target bundleno = 606 (0x25e), region = 28 }
   0xa   : > { %p183_p6 = scmp.lt.s32.totalorder (!%p148_p3), %s3156_s22, 15  ;;  %s3160_s23 = sshll.u32 (!%p148_p3), %s3920_s15, 2 }
   0xb   : > { %p194_p7 = scmp.lt.s32.totalorder (!%p148_p3), %s3160_s23, 7  ;;  %s3164_s30 = sadd.s32 (!%p148_p3), 4294967295, %s3156_s22 }
   0xc   : > { %p204_p8 = scmp.gt.s32.totalorder (!%p148_p3), %s3164_s30, 0  ;;  %s3321_s9 = sadd.s32 (!%p148_p3), 8, %s3156_s22 }
   0xd   : > { %p208_p9 = scmp.gt.s32.totalorder (!%p148_p3), %s3321_s9, 0  ;;  %p3166_p10 = scmp.lt.s32.totalorder (!%p148_p3), %s3321_s9, 15 }
   0xe   : > { %s182_s24 = scalar_select %p181_p5, %s3924_s16, 1 }
   0xf   : > { %s184_s25 = scalar_select %p183_p6, %s3156_s22, 15 }
  0x10   : > { %s3158_s26 = sshll.u32 %s182_s24, 5  ;;  %s3161_s28 = sshll.u32 %s182_s24, 3 }
  0x11   : > { %s3157_s27 = sshll.u32 %s184_s25, 1  ;;  %s4885_s23 = smov (!%p194_p7, %s3160_s23), 7 }
  0x12   : > { %s187_s29 = sadd.s32 %s3158_s26, %s3157_s27  ;;  %s4887_s30 = smov (!%p204_p8, %s3164_s30), 0 }
  0x13   : > { %s3159_s5 = sshll.u32 %s187_s29, 2  ;;  %s197_s10 = sadd.s32 %s3161_s28, %s4885_s23 }
  0x14   : > { %s4007_s8 = scalar_lea.vmem %s4868_s3, %s3159_s5  ;;  %s3162_s11 = sshll.u32 %s197_s10, 2 }
  0x15   : > { %s4014_s14 = scalar_lea.vmem %s4869_s4, %s3162_s11  ;;  %s3324_s24 = sshll.u32 %s3920_s15, 4 }
  0x16   : > { %s4889_s9 = smov (!%p208_p9, %s3321_s9), 0  ;;  %s4018_s25 = sshll.u32 %s3924_s16, 5 }
  0x17   : > { %s4891_s9 = smov (!%p3166_p10, %s4889_s9), 15  ;;  %s214_s22 = sadd.s32 %s3324_s24, %s4018_s25 }
  0x18   : > { %s3173_s26 = sshll.u32 %s214_s22, 2 }
  0x19   : > { %s216_s23 = scalar_lea.vmem %s4865_s0, %s3173_s26 }
  0x1a   : > { %v251_v0 = vld [vmem:[%s216_s23] sm:$0xff]  ;;  %v253_v1 = vld [vmem:[%s216_s23 + $0x8] sm:$0xff]  ;;  %v255_v2 = vld [vmem:[%s216_s23 + $0x10] sm:$0xff] }
  0x1b   : > { %252 = vst [vmem:[#allocation2 + $0x8] sm:$0xff] %v251_v0  ;;  %254 = vst [vmem:[#allocation2 + $0x10] sm:$0xff] %v253_v1  ;;  %v257_v3 = vld [vmem:[%s216_s23 + $0x18] sm:$0xff]  ;;  %v259_v4 = vld [vmem:[%s216_s23 + $0x20] sm:$0xff] }
  0x1c   : > { %256 = vst [vmem:[#allocation2 + $0x18] sm:$0xff] %v255_v2  ;;  %v261_v5 = vld [vmem:[%s216_s23 + $0x28] sm:$0xff]  ;;  %258 = vst [vmem:[#allocation2 + $0x20] sm:$0xff] %v257_v3  ;;  %v263_v6 = vld [vmem:[%s216_s23 + $0x30] sm:$0xff] }
  0x1d   : > { %260 = vst [vmem:[#allocation2 + $0x28] sm:$0xff] %v259_v4  ;;  %262 = vst [vmem:[#allocation2 + $0x30] sm:$0xff] %v261_v5  ;;  %v265_v7 = vld [vmem:[%s216_s23 + $0x38] sm:$0xff] }
  0x1e   : > { %264 = vst [vmem:[#allocation2 + $0x38] sm:$0xff] %v263_v6  ;;  %266 = vst [vmem:[#allocation2 + $0x40] sm:$0xff] %v265_v7 }
  0x1f   : > { %274 = vsyncadd [#allocation3], 1024  ;;  %p3174_p11 = scmp.le.s32.totalorder %s3920_s15, 0 }
  0x20   : > { %s3175_s16 = sshll.u32 (!%p3174_p11), %s4887_s30, 1 }
  0x21   : > { %278 = sbr.rel (%p3174_p11) target bundleno = 41 (0x29), region = 66  ;;  %s280_s28 = sadd.s32 (!%p3174_p11), %s3175_s16, %s4018_s25 }
  0x22   : > { %s3176_s5 = sshll.u32 (!%p3174_p11), %s280_s28, 2 }
  0x23   : > { %s282_s10 = scalar_lea.vmem (!%p3174_p11), %s4865_s0, %s3176_s5 }
  0x26   : > { %v317_v8 = vld [vmem:[%s282_s10] sm:$0xff] }
  0x27   : > { %318 = vst [vmem:[#allocation2] sm:$0xff] %v317_v8 }
  0x28   : > { %326 = vsyncadd [#allocation3 + $0x1], 128 }
  0x29 PF: > { %p3177_p12 = scmp.ge.s32.totalorder %s3920_s15, 1 }
  0x2a   : > { %s3178_s11 = sshll.u32 (!%p3177_p12), %s4891_s9, 1 }
  0x2b   : > { %330 = sbr.rel (%p3177_p12) target bundleno = 51 (0x33), region = 104  ;;  %s332_s12 = sadd.s32 (!%p3177_p12), %s3178_s11, %s4018_s25 }
  0x2c   : > { %s3179_s13 = sshll.u32 (!%p3177_p12), %s332_s12, 2 }
  0x2d   : > { %s334_s22 = scalar_lea.vmem (!%p3177_p12), %s4865_s0, %s3179_s13 }
  0x30   : > { %v370_v9 = vld [vmem:[%s334_s22] sm:$0xff] }
  0x31   : > { %371 = vst [vmem:[#allocation2 + $0x48] sm:$0xff] %v370_v9 }
  0x32   : > { %379 = vsyncadd [#allocation3 + $0x2], 128 }
  0x33 PF: > { %p3180_p13 = scmp.ne.s32.totalorder %s3920_s15, 0 }
  0x35   : > { %383 = sbr.rel (%p3180_p13) target bundleno = 60 (0x3c), region = 142 }
  0x3a   : > { %v3938_v10 = vmov 0  }
  0x3b   : > { %384 = vst [vmem:[#allocation2] sm:$0xf] %v3938_v10  ;;  %385 = vst [vmem:[#allocation2 + $0x4] sm:$0xf] %v3938_v10 }
  0x3c PF: > { %p3181_p0 = scmp.ne.s32.totalorder %s3920_s15, 1 }
  0x3e   : > { %389 = sbr.rel (%p3181_p0) target bundleno = 69 (0x45), region = 146 }
  0x43   : > { %v3939_v11 = vmov 0  }
  0x44   : > { %391 = vst [vmem:[#allocation2 + $0x48] sm:$0xf] %v3939_v11  ;;  %392 = vst [vmem:[#allocation2 + $0x4c] sm:$0xf] %v3939_v11 }
  0x45 PF: > { %3908 = dma.done.wait [#allocation3], 1024 }
  0x46   : > { %3909 = vsyncadd [#allocation3], 4294966272  ;;  %p3760_p1 = scmp.gt.s32.totalorder %s3920_s15, 0 }
  0x48   : > { %3911 = dma.done.wait (%p3760_p1), [#allocation3 + $0x1], 128 }
  0x49   : > { %3913 = vsyncadd (%p3760_p1), [#allocation3 + $0x1], 4294967168  ;;  %p3761_p2 = scmp.lt.s32.totalorder %s3920_s15, 1 }
  0x4b   : > { %3915 = dma.done.wait (%p3761_p2), [#allocation3 + $0x2], 128 }
  0x4c   : > { %3917 = vsyncadd (%p3761_p2), [#allocation3 + $0x2], 4294967168  ;;  %v3805_v12 = vld [vmem:[%s4866_s1 + $0x138] sm:$0xff]   ;;  %v3808_v15 = vld [vmem:[%s4866_s1 + $0x130] sm:$0xff]   ;;  %vm610_vm0 = vsmask.f32 7424 }
  0x4d   : > { %v3806_v13 = vld [vmem:[%s4866_s1 + $0x178] sm:$0xff]   ;;  %3420 = vmatprep.subr.bf16.mxu0 %v3805_v12  ;;  %v3809_v16 = vld [vmem:[%s4866_s1 + $0x170] sm:$0xff]   ;;  %v3811_v18 = vld [vmem:[%s4866_s1 + $0x128] sm:$0xff]   ;;  %vm567_vm1 = vsmask.f32 256  ;;  %vm609_vm2 = vcmask 1047552  }
  0x4e   : > { %v3807_v14 = vld [vmem:[%s4866_s1 + $0xf8] sm:$0xff]   ;;  %3660 = vmatprep.subr.bf16.mxu1 %v3806_v13  ;;  %v3810_v17 = vld [vmem:[%s4866_s1 + $0xf0] sm:$0xff]   ;;  %v3812_v19 = vld [vmem:[%s4866_s1 + $0x168] sm:$0xff]   ;;  %vm566_vm3 = vcmask 1040384   ;;  %vm2277_vm6 = vcmask 1041408   ;;  %vm2918_vm7 = vcmask 1041409  }
  0x4f   : > { %3421 = vmatpush3.bf16.msra.mxu0 %v3807_v14  ;;  %3661 = vmatpush3.bf16.msra.mxu1 %v3806_v13  ;;  %v3813_v20 = vld [vmem:[%s4866_s1 + $0xe8] sm:$0xff]   ;;  %v3814_v21 = vld [vmem:[%s4866_s1 + $0x120] sm:$0xff]   ;;  %v3817_v24 = vld [vmem:[%s4866_s1 + $0x118] sm:$0xff]   ;;  %vm2920_vm8 = vcmask 1042434   ;;  %vm2922_vm9 = vcmask 1043459   ;;  %vm2924_vm10 = vcmask 1044484  }
  0x50   : > { %3422 = vmatprep.subr.bf16.mxu0 %v3808_v15  ;;  %3662 = vmatprep.subr.bf16.mxu1 %v3809_v16  ;;  %v3815_v22 = vld [vmem:[%s4866_s1 + $0x160] sm:$0xff]   ;;  %v3818_v25 = vld [vmem:[%s4866_s1 + $0x158] sm:$0xff]   ;;  %v3820_v27 = vld [vmem:[%s4866_s1 + $0x110] sm:$0xff]   ;;  %vm2926_vm11 = vcmask 1045509   ;;  %vm2928_vm12 = vcmask 1046534   ;;  %vm2930_vm13 = vcmask 1047559  }
  0x51   : > { %v3816_v23 = vld [vmem:[%s4866_s1 + $0xe0] sm:$0xff]   ;;  %v3819_v26 = vld [vmem:[%s4866_s1 + $0xd8] sm:$0xff]   ;;  %v3821_v28 = vld [vmem:[%s4866_s1 + $0x150] sm:$0xff]  }
  0x52   : > { %v3822_v29 = vld [vmem:[%s4866_s1 + $0xd0] sm:$0xff]   ;;  %v3823_v30 = vld [vmem:[%s4866_s1 + $0x108] sm:$0xff]   ;;  %v3826_v33 = vld [vmem:[%s4866_s1 + $0x100] sm:$0xff]  }
  0x53   : > { %3423 = vmatpush3.bf16.msra.mxu0 %v3810_v17  ;;  %3663 = vmatpush3.bf16.msra.mxu1 %v3809_v16  ;;  %v3824_v31 = vld [vmem:[%s4866_s1 + $0x148] sm:$0xff]   ;;  %v3827_v34 = vld [vmem:[%s4866_s1 + $0x140] sm:$0xff]   ;;  %v4113_v36 = vld [vmem:[#allocation2 + $0x10] sm:$0xff]  }
  0x54   : > { %3424 = vmatprep.subr.bf16.mxu0 %v3811_v18  ;;  %3664 = vmatprep.subr.bf16.mxu1 %v3812_v19  ;;  %v3825_v32 = vld [vmem:[%s4866_s1 + $0xc8] sm:$0xff]   ;;  %v3828_v39 = vld [vmem:[%s4866_s1 + $0xc0] sm:$0xff]   ;;  %vm4122_vm4 = vmand %vm609_vm2, %vm610_vm0  ;;  %v501_v41 = vshrl.u32 %v4113_v36, 16  ;;  %v504_v42 = vshll.u32 %v4113_v36, 16 }
  0x55   : > { %v4111_v35 = vld [vmem:[#allocation2 + $0x8] sm:$0xff]   ;;  %vm4129_vm5 = vmand %vm566_vm3, %vm567_vm1  ;;  %v3831_v47 = vld [vmem:[%s4866_s1 + $0x78] sm:$0xff]  }
  0x56   : > { %903 = vmatprep.mubr.bf16.mxu0 %v4111_v35  ;;  %v494_v37 = vshrl.u32 %v4111_v35, 16  ;;  %v497_v38 = vshll.u32 %v4111_v35, 16  ;;  %v583_v46 = vrot.slane %v504_v42, 1  ;;  %v3832_v50 = vld [vmem:[%s4866_s1 + $0xb8] sm:$0xff]   ;;  %v503_v51 = vrot.slane %v501_v41, 7  ;;  %v4152_v57 = vld [vmem:[#allocation2 + $0x20] sm:$0xff]  }
  0x57   : > { %3425 = vmatpush3.bf16.msra.mxu0 %v3813_v20  ;;  %3665 = vmatpush3.bf16.msra.mxu1 %v3812_v19  ;;  %v3833_v53 = vld [vmem:[%s4866_s1 + $0x38] sm:$0xff]   ;;  %v3834_v59 = vld [vmem:[%s4866_s1 + $0x70] sm:$0xff]   ;;  %v515_v0 = vshrl.u32 %v4152_v57, 16  ;;  %v518_v1 = vshll.u32 %v4152_v57, 16  ;;  %v3838_v4 = vld [vmem:[%s4866_s1 + $0x68] sm:$0xff]  }
  0x58   : > { %3426 = vmatprep.subr.bf16.mxu0 %v3814_v21  ;;  %3666 = vmatprep.subr.bf16.mxu1 %v3815_v22  ;;  %v581_v43 = vrot.slane %v497_v38, 1  ;;  %v496_v44 = vrot.slane %v494_v37, 7  ;;  %v584_v52 = vor.u32 %v583_v46, %v501_v41  ;;  %v4150_v56 = vld [vmem:[#allocation2 + $0x18] sm:$0xff]   ;;  %v506_v60 = vor.u32 %v504_v42, %v503_v51  ;;  %v3835_v61 = vld [vmem:[%s4866_s1 + $0x30] sm:$0xff]   ;;  %v3840_v8 = vld [vmem:[%s4866_s1 + $0x28] sm:$0xff]  }
  0x59   : > { %v508_v62 = vshrl.u32 %v4150_v56, 16  ;;  %v511_v63 = vshll.u32 %v4150_v56, 16  ;;  %v3839_v2 = vld [vmem:[%s4866_s1 + $0xb0] sm:$0xff]   ;;  %v587_v6 = vrot.slane %v518_v1, 1  ;;  %v3841_v10 = vld [vmem:[%s4866_s1 + $0x60] sm:$0xff]   ;;  %v4192_v13 = vld [vmem:[#allocation2 + $0x28] sm:$0xff]  }
  0x5a   : > { %v582_v48 = vor.u32 %v581_v43, %v494_v37  ;;  %v499_v49 = vor.u32 %v497_v38, %v496_v44  ;;  %v4157_v58 = vsel %vm4122_vm4, %v584_v52, 0  ;;  %v4180_v5 = vsel %vm4129_vm5, 0, %v506_v60  ;;  %v4199_v16 = vld [vmem:[#allocation2 + $0x30] sm:$0xff]   ;;  %v3846_v19 = vld [vmem:[%s4866_s1 + $0xa8] sm:$0xff]   ;;  %v3842_v20 = vld [vmem:[%s4866_s1 + $0x20] sm:$0xff]  }
  0x5b   : > { %3427 = vmatpush3.bf16.msra.mxu0 %v3816_v23  ;;  %3667 = vmatpush3.bf16.msra.mxu1 %v3815_v22  ;;  %v585_v3 = vrot.slane %v511_v63, 1  ;;  %v588_v9 = vor.u32 %v587_v6, %v515_v0  ;;  %v510_v11 = vrot.slane %v508_v62, 7  ;;  %v522_v17 = vshrl.u32 %v4192_v13, 16  ;;  %v3848_v37 = vld [vmem:[%s4866_s1 + $0x50] sm:$0xff]   ;;  %v3856_v6 = vld [vmem:[%s4866_s1] sm:$0xff]  }
  0x5c   : > { %3428 = vmatprep.subr.bf16.mxu0 %v3817_v24  ;;  %3668 = vmatprep.subr.bf16.mxu1 %v3818_v25  ;;  %v4144_v54 = vsel %vm4122_vm4, %v582_v48, 0  ;;  %v4148_v55 = vsel %vm4129_vm5, 0, %v499_v49  ;;  %v525_v18 = vshll.u32 %v4192_v13, 16  ;;  %v529_v21 = vshrl.u32 %v4199_v16, 16  ;;  %v3845_v24 = vld [vmem:[%s4866_s1 + $0x58] sm:$0xff]   ;;  %v3849_v44 = vld [vmem:[%s4866_s1 + $0x10] sm:$0xff]  }
  0x5d   : > { %3676 = vmatprep.mubr.bf16.mxu1 %v4144_v54  ;;  %v586_v7 = vor.u32 %v585_v3, %v508_v62  ;;  %v4197_v14 = vsel %vm4122_vm4, %v588_v9, 0  ;;  %v513_v15 = vor.u32 %v511_v63, %v510_v11  ;;  %v532_v22 = vshll.u32 %v4199_v16, 16  ;;  %v3852_v49 = vld [vmem:[%s4866_s1 + $0x48] sm:$0xff]   ;;  %v3858_v63 = vld [vmem:[%s4866_s1 + $0x98] sm:$0xff]  }
  0x5e   : > { %v589_v23 = vrot.slane %v525_v18, 1  ;;  %v524_v62 = vrot.slane %v522_v17, 7  ;;  %v531_v9 = vrot.slane %v529_v21, 7 }
  0x5f   : > { %3429 = vmatpush3.bf16.msra.mxu0 %v3819_v26  ;;  %3669 = vmatpush3.bf16.msra.mxu1 %v3818_v25  ;;  %v4190_v12 = vsel %vm4122_vm4, %v586_v7, 0  ;;  %v4221_v25 = vsel %vm4129_vm5, 0, %v513_v15  ;;  %v591_v26 = vrot.slane %v532_v22, 1 }
  0x60   : > { %3430 = vmatprep.subr.bf16.mxu0 %v3820_v27  ;;  %3670 = vmatprep.subr.bf16.mxu1 %v3821_v28  ;;  %v590_v27 = vor.u32 %v589_v23, %v522_v17  ;;  %v527_v7 = vor.u32 %v525_v18, %v524_v62  ;;  %v3860_v17 = vld [vmem:[%s4866_s1 + $0x88] sm:$0xff]   ;;  %v3867_v18 = vld [vmem:[%s4866_s1 + $0x230] sm:$0xff]  }
  0x61   : > { %v3878_v62 = vld [vmem:[%s4866_s1 + $0x190] sm:$0xff]  }
  0x62   : > { %v4317_v11 = vsel %vm4129_vm5, 0, %v527_v7 }
  0x63   : > { %3431 = vmatpush3.bf16.msra.mxu0 %v3822_v29  ;;  %3671 = vmatpush3.bf16.msra.mxu1 %v3821_v28  ;;  %v3847_v28 = vld [vmem:[%s4866_s1 + $0x18] sm:$0xff]   ;;  %v592_v29 = vor.u32 %v591_v26, %v529_v21  ;;  %v3870_v21 = vld [vmem:[%s4866_s1 + $0x228] sm:$0xff]  }
  0x64   : > { %3432 = vmatprep.subr.bf16.mxu0 %v3823_v30  ;;  %3672 = vmatprep.subr.bf16.mxu1 %v3824_v31  ;;  %v4230_v30 = vld [vmem:[#allocation2 + $0x38] sm:$0xff]  }
  0x65   : > { %v536_v38 = vshrl.u32 %v4230_v30, 16 }
  0x67   : > { %3433 = vmatpush3.bf16.msra.mxu0 %v3825_v32  ;;  %3673 = vmatpush3.bf16.msra.mxu1 %v3824_v31  ;;  %v517_v31 = vrot.slane %v515_v0, 7  ;;  %v4234_v32 = vsel %vm4122_vm4, %v590_v27, 0  ;;  %v3855_v0 = vld [vmem:[%s4866_s1 + $0x40] sm:$0xff]   ;;  %v3876_v27 = vld [vmem:[%s4866_s1 + $0x218] sm:$0xff]  }
  0x68   : > { %3434 = vmatprep.subr.bf16.mxu0 %v3826_v33  ;;  %3674 = vmatprep.subr.bf16.mxu1 %v3827_v34  ;;  %v4236_v33 = vld [vmem:[#allocation2 + $0x40] sm:$0xff]  }
  0x69   : > { %v520_v41 = vor.u32 %v518_v1, %v517_v31  ;;  %v543_v42 = vshrl.u32 %v4236_v33, 16  ;;  %v546_v43 = vshll.u32 %v4236_v33, 16  ;;  %v3879_v31 = vld [vmem:[%s4866_s1 + $0x210] sm:$0xff]  }
  0x6b   : > { %3435 = vmatpush3.bf16.msra.mxu0 %v3828_v39  ;;  %3675 = vmatpush3.bf16.msra.mxu1 %v3827_v34  ;;  %v4241_v34 = vsel %vm4122_vm4, %v592_v29, 0  ;;  %v539_v39 = vshll.u32 %v4230_v30, 16  ;;  %v595_v48 = vrot.slane %v546_v43, 1  ;;  %v4270_v51 = vsel %vm4129_vm5, 0, %v520_v41 }
  0x6c   : > { %3500 = vmatprep.subr.bf16.mxu1 %v3831_v47  ;;  %3692 = vmatprep.subr.bf16.mxu0 %v3832_v50  ;;  %v3853_v47 = vld [vmem:[%s4866_s1 + $0xa0] sm:$0xff]  }
  0x6d   : > { %v593_v46 = vrot.slane %v539_v39, 1  ;;  %v596_v52 = vor.u32 %v595_v48, %v543_v42  ;;  %v3868_v48 = vld [vmem:[%s4866_s1 + $0x1e8] sm:$0xff]  }
  0x6e   : > { %904 = vmatmul.mubr.bf16.vlgmr.msra.gmra.mxu0 %v4148_v55  ;;  %3677 = vmatmul.mubr.bf16.vlgmr.msra.gmra.mxu1 %v4157_v58 }
  0x6f   : > { %3501 = vmatpush3.bf16.msra.mxu1 %v3833_v53  ;;  %3693 = vmatpush3.bf16.msra.mxu0 %v3832_v50  ;;  %v594_v50 = vor.u32 %v593_v46, %v536_v38  ;;  %v4283_v60 = vsel %vm4122_vm4, %v596_v52, 0  ;;  %v3865_v46 = vld [vmem:[%s4866_s1 + $0x1f0] sm:$0xff]   ;;  %v3874_v52 = vld [vmem:[%s4866_s1 + $0x1d8] sm:$0xff]  }
  0x70   : > { %3502 = vmatprep.subr.bf16.mxu1 %v3834_v59  ;;  %911 = vmatprep.mubr.bf16.mxu0 %v4113_v36  ;;  %v4278_v59 = vld [vmem:[#allocation2] sm:$0xff]  }
  0x71   : > { %3694 = vmatprep.subr.bf16.mxu0 %v3839_v2  ;;  %3680 = vmatprep.mubr.bf16.mxu1 %v4190_v12  ;;  %v4276_v53 = vsel %vm4122_vm4, %v594_v50, 0  ;;  %v487_v1 = vshrl.u32 %v4278_v59, 16  ;;  %v3872_v50 = vld [vmem:[%s4866_s1 + $0x1a0] sm:$0xff]  }
  0x73   : > { %3503 = vmatpush3.bf16.msra.mxu1 %v3835_v61  ;;  %3695 = vmatpush3.bf16.msra.mxu0 %v3839_v2  ;;  %v3854_v61 = vld [vmem:[%s4866_s1 + $0x8] sm:$0xff]   ;;  %v490_v2 = vshll.u32 %v4278_v59, 16  ;;  %v489_v3 = vrot.slane %v487_v1, 7 }
  0x74   : > { %3504 = vmatprep.subr.bf16.mxu1 %v3838_v4  ;;  %3696 = vmatprep.subr.bf16.mxu0 %v3846_v19  ;;  %v3859_v4 = vld [vmem:[%s4866_s1 + $0x90] sm:$0xff]  }
  0x75   : > { %v579_v29 = vrot.slane %v490_v2, 1 }
  0x76   : > { %912 = vmatmul.mubr.bf16.gmra.mxu0 %v4180_v5  ;;  %3681 = vmatmul.mubr.bf16.gmra.mxu1 %v4197_v14 }
  0x77   : > { %3505 = vmatpush3.bf16.msra.mxu1 %v3840_v8  ;;  %919 = vmatprep.mubr.bf16.mxu0 %v4150_v56  ;;  %v492_v8 = vor.u32 %v490_v2, %v489_v3  ;;  %v3884_v2 = vld [vmem:[%s4866_s1 + $0x180] sm:$0xff]   ;;  %v3886_v3 = vld [vmem:[#allocation2 + $0x48] sm:$0xff]  }
  0x78   : > { %3506 = vmatprep.subr.bf16.mxu1 %v3841_v10  ;;  %3697 = vmatpush3.bf16.msra.mxu0 %v3846_v19  ;;  %v3864_v10 = vld [vmem:[%s4866_s1 + $0x238] sm:$0xff]   ;;  %v3861_v19 = vld [vmem:[%s4866_s1 + $0x80] sm:$0xff]  }
  0x79   : > { %3684 = vmatprep.mubr.bf16.mxu1 %v4234_v32  ;;  %3698 = vmatprep.subr.bf16.mxu0 %v3853_v47  ;;  %v569_v15 = vsel %vm4129_vm5, 0, %v492_v8 }
  0x7b   : > { %3507 = vmatpush3.bf16.msra.mxu1 %v3842_v20  ;;  %v534_v20 = vor.u32 %v532_v22, %v531_v9  ;;  %v3873_v22 = vld [vmem:[%s4866_s1 + $0x220] sm:$0xff]  }
  0x7c   : > { %3508 = vmatprep.subr.bf16.mxu1 %v3845_v24  ;;  %3699 = vmatpush3.bf16.msra.mxu0 %v3853_v47  ;;  %v538_v24 = vrot.slane %v536_v38, 7  ;;  %v580_v38 = vor.u32 %v579_v29, %v487_v1  ;;  %v3866_v47 = vld [vmem:[%s4866_s1 + $0x1b0] sm:$0xff]   ;;  %v3883_v1 = vld [vmem:[%s4866_s1 + $0x1c0] sm:$0xff]  }
  0x7d   : > { %3700 = vmatprep.subr.bf16.mxu0 %v3858_v63  ;;  %v4340_v23 = vsel %vm4129_vm5, 0, %v534_v20 }
  0x7e   : > { %920 = vmatmul.mubr.bf16.gmra.mxu0 %v4221_v25  ;;  %3685 = vmatmul.mubr.bf16.gmra.mxu1 %v4241_v34  ;;  %v541_v26 = vor.u32 %v539_v39, %v538_v24  ;;  %v3882_v39 = vld [vmem:[%s4866_s1 + $0x208] sm:$0xff]  }
  0x7f   : > { %3509 = vmatpush3.bf16.msra.mxu1 %v3847_v28  ;;  %927 = vmatprep.mubr.bf16.mxu0 %v4152_v57 }
  0x80   : > { %3510 = vmatprep.subr.bf16.mxu1 %v3848_v37  ;;  %3688 = vmatprep.mubr.bf16.mxu1 %v4276_v53  ;;  %v4361_v28 = vsel %vm4129_vm5, 0, %v541_v26 }
  0x81   : > { %3701 = vmatpush3.bf16.msra.mxu0 %v3858_v63  ;;  %v3880_v63 = vld [vmem:[%s4866_s1 + $0x1c8] sm:$0xff]  }
  0x82   : > { %3702 = vmatprep.subr.bf16.mxu0 %v3859_v4 }
  0x83   : > { %3511 = vmatpush3.bf16.msra.mxu1 %v3849_v44  ;;  %v3863_v44 = vld [vmem:[%s4866_s1 + $0x1b8] sm:$0xff]  }
  0x84   : > { %3512 = vmatprep.subr.bf16.mxu1 %v3852_v49  ;;  %v3869_v49 = vld [vmem:[%s4866_s1 + $0x1a8] sm:$0xff]  }
  0x85   : > { %3703 = vmatpush3.bf16.msra.mxu0 %v3859_v4 }
  0x86   : > { %928 = vmatmul.mubr.bf16.gmra.mxu0 %v4270_v51  ;;  %3689 = vmatmul.mubr.bf16.gmra.mxu1 %v4283_v60 }
  0x87   : > { %3513 = vmatpush3.bf16.msra.mxu1 %v3854_v61  ;;  %935 = vmatprep.mubr.bf16.mxu0 %v4192_v13  ;;  %v3877_v61 = vld [vmem:[%s4866_s1 + $0x1d0] sm:$0xff]  }
  0x88   : > { %3514 = vmatprep.subr.bf16.mxu1 %v3855_v0  ;;  %1241 = vmatprep.mubr.bf16.mxu1 %v4278_v59  ;;  %v3875_v59 = vld [vmem:[%s4866_s1 + $0x198] sm:$0xff]   ;;  %v3881_v0 = vld [vmem:[%s4866_s1 + $0x188] sm:$0xff]  }
  0x89   : > { %3704 = vmatprep.subr.bf16.mxu0 %v3860_v17 }
  0x8a   : > { %3705 = vmatpush3.bf16.msra.mxu0 %v3860_v17 }
  0x8b   : > { %3515 = vmatpush3.bf16.msra.mxu1 %v3856_v6  ;;  %3706 = vmatprep.subr.bf16.mxu0 %v3861_v19 }
  0x8c   : > { %3724 = vmatprep.subr.bf16.mxu1 %v3864_v10 }
  0x8e   : > { %936 = vmatmul.mubr.bf16.gmra.mxu0 %v4317_v11  ;;  %1242 = vmatmul.mubr.bf16.vlgmr.msra.gmra.mxu1 %v569_v15 }
  0x8f   : > { %943 = vmatprep.mubr.bf16.mxu0 %v4199_v16  ;;  %1249 = vmatprep.mubr.bf16.mxu1 %v4111_v35  ;;  %v3862_v35 = vld [vmem:[%s4866_s1 + $0x1f8] sm:$0xff]  }
  0x90   : > { %3725 = vmatpush3.bf16.msra.mxu1 %v3864_v10  ;;  %3707 = vmatpush3.bf16.msra.mxu0 %v3861_v19 }
  0x91   : > { %3726 = vmatprep.subr.bf16.mxu1 %v3867_v18  ;;  %3580 = vmatprep.subr.bf16.mxu0 %v3862_v35 }
  0x94   : > { %3727 = vmatpush3.bf16.msra.mxu1 %v3867_v18 }
  0x95   : > { %3728 = vmatprep.subr.bf16.mxu1 %v3870_v21 }
  0x96   : > { %944 = vmatmul.mubr.bf16.gmra.mxu0 %v4340_v23  ;;  %1250 = vmatmul.mubr.bf16.gmra.mxu1 %v4148_v55  ;;  %v545_v55 = vrot.slane %v543_v42, 7  ;;  %v612_v42 = vsel %vm4122_vm4, %v580_v38, 0 }
  0x97   : > { %951 = vmatprep.mubr.bf16.mxu0 %v4230_v30  ;;  %1257 = vmatprep.mubr.bf16.mxu1 %v4113_v36 }
  0x98   : > { %3729 = vmatpush3.bf16.msra.mxu1 %v3870_v21  ;;  %v548_v37 = vor.u32 %v546_v43, %v545_v55  ;;  %v3885_v43 = vld [vmem:[%s4866_s1 + $0x200] sm:$0xff]  }
  0x99   : > { %3730 = vmatprep.subr.bf16.mxu1 %v3873_v22 }
  0x9a   : > { %v4381_v41 = vsel %vm4129_vm5, 0, %v548_v37 }
  0x9c   : > { %3731 = vmatpush3.bf16.msra.mxu1 %v3873_v22 }
  0x9d   : > { %3732 = vmatprep.subr.bf16.mxu1 %v3876_v27 }
  0x9e   : > { %952 = vmatmul.mubr.bf16.gmra.mxu0 %v4361_v28  ;;  %1258 = vmatmul.mubr.bf16.gmra.mxu1 %v4180_v5 }
  0x9f   : > { %959 = vmatprep.mubr.bf16.mxu0 %v4236_v33  ;;  %1265 = vmatprep.mubr.bf16.mxu1 %v4150_v56 }
  0xa0   : > { %3733 = vmatpush3.bf16.msra.mxu1 %v3876_v27 }
  0xa1   : > { %3734 = vmatprep.subr.bf16.mxu1 %v3879_v31 }
  0xa4   : > { %3735 = vmatpush3.bf16.msra.mxu1 %v3879_v31 }
  0xa5   : > { %3736 = vmatprep.subr.bf16.mxu1 %v3882_v39 }
  0xa6   : > { %960 = vmatmul.mubr.bf16.gmra.mxu0 %v4381_v41  ;;  %1266 = vmatmul.mubr.bf16.gmra.mxu1 %v4221_v25 }
  0xa7   : > { %1273 = vmatprep.mubr.bf16.mxu1 %v4152_v57  ;;  %3708 = vmatprep.mubr.bf16.mxu0 %v612_v42 }
  0xa8   : > { %3737 = vmatpush3.bf16.msra.mxu1 %v3882_v39 }
  0xa9   : > { %3738 = vmatprep.subr.bf16.mxu1 %v3885_v43 }
  0xac   : > { %3739 = vmatpush3.bf16.msra.mxu1 %v3885_v43 }
  0xae   : > { %1274 = vmatmul.mubr.bf16.gmra.mxu1 %v4270_v51  ;;  %3709 = vmatmul.mubr.bf16.vlgmr.msra.gmra.mxu0 %v4144_v54  ;;  %v3871_v54 = vld [vmem:[%s4866_s1 + $0x1e0] sm:$0xff]  }
  0xaf   : > { %3581 = vmatpush3.bf16.msra.mxu0 %v3863_v44  ;;  %1281 = vmatprep.mubr.bf16.mxu1 %v4192_v13 }
  0xb0   : > { %3582 = vmatprep.subr.bf16.mxu0 %v3865_v46  ;;  %3712 = vmatprep.mubr.bf16.mxu0 %v4157_v58 }
  0xb3   : > { %3583 = vmatpush3.bf16.msra.mxu0 %v3866_v47 }
  0xb4   : > { %3584 = vmatprep.subr.bf16.mxu0 %v3868_v48 }
  0xb6   : > { %1282 = vmatmul.mubr.bf16.gmra.mxu1 %v4317_v11  ;;  %3713 = vmatmul.mubr.bf16.gmra.mxu0 %v4190_v12 }
  0xb7   : > { %3585 = vmatpush3.bf16.msra.mxu0 %v3869_v49  ;;  %1289 = vmatprep.mubr.bf16.mxu1 %v4199_v16 }
  0xb8   : > { %3586 = vmatprep.subr.bf16.mxu0 %v3871_v54  ;;  %3716 = vmatprep.mubr.bf16.mxu0 %v4197_v14 }
  0xbb   : > { %3587 = vmatpush3.bf16.msra.mxu0 %v3872_v50 }
  0xbc   : > { %3588 = vmatprep.subr.bf16.mxu0 %v3874_v52 }
  0xbe   : > { %1290 = vmatmul.mubr.bf16.gmra.mxu1 %v4340_v23  ;;  %3717 = vmatmul.mubr.bf16.gmra.mxu0 %v4234_v32 }
  0xbf   : > { %3589 = vmatpush3.bf16.msra.mxu0 %v3875_v59  ;;  %1297 = vmatprep.mubr.bf16.mxu1 %v4230_v30 }
  0xc0   : > { %3590 = vmatprep.subr.bf16.mxu0 %v3877_v61  ;;  %3720 = vmatprep.mubr.bf16.mxu0 %v4241_v34 }
  0xc3   : > { %3591 = vmatpush3.bf16.msra.mxu0 %v3878_v62 }
  0xc4   : > { %3592 = vmatprep.subr.bf16.mxu0 %v3880_v63 }
  0xc6   : > { %1298 = vmatmul.mubr.bf16.gmra.mxu1 %v4361_v28  ;;  %3721 = vmatmul.mubr.bf16.gmra.mxu0 %v4276_v53 }
  0xc7   : > { %3593 = vmatpush3.bf16.msra.mxu0 %v3881_v0  ;;  %1628 = vmatprep.mubr.bf16.mxu0 %v4113_v36  ;;  %v553_v36 = vshll.u32 %v3886_v3, 16 }
  0xc8   : > { %3594 = vmatprep.subr.bf16.mxu0 %v3883_v1  ;;  %3740 = vmatprep.mubr.bf16.mxu1 %v4157_v58  ;;  %v550_v58 = vshrl.u32 %v3886_v3, 16 }
  0xc9   : > { %v597_v4 = vrot.slane %v553_v36, 1 }
  0xcb   : > { %3595 = vmatpush3.bf16.msra.mxu0 %v3884_v2 }
  0xce   : > { %1629 = vmatmul.mubr.bf16.vlgmr.msra.gmra.mxu0 %v4180_v5  ;;  %3741 = vmatmul.mubr.bf16.vlgmr.msra.gmra.mxu1 %v4190_v12 }
  0xcf   : > { %1636 = vmatprep.mubr.bf16.mxu0 %v4150_v56  ;;  %3744 = vmatprep.mubr.bf16.mxu1 %v4197_v14  ;;  %v598_v56 = vor.u32 %v597_v4, %v550_v58 }
  0xd1   : > { %v621_v5 = vsel %vm4122_vm4, %v598_v56, 0 }
  0xd6   : > { %1637 = vmatmul.mubr.bf16.gmra.mxu0 %v4221_v25  ;;  %3745 = vmatmul.mubr.bf16.gmra.mxu1 %v4234_v32 }
  0xd7   : > { %1644 = vmatprep.mubr.bf16.mxu0 %v4152_v57  ;;  %3748 = vmatprep.mubr.bf16.mxu1 %v4241_v34  ;;  %v552_v57 = vrot.slane %v550_v58, 7 }
  0xd9   : > { %v555_v12 = vor.u32 %v553_v36, %v552_v57 }
  0xdb   : > { %v578_v40 = vsel %vm4129_vm5, 0, %v555_v12 }
  0xde   : > { %1645 = vmatmul.mubr.bf16.gmra.mxu0 %v4270_v51  ;;  %3749 = vmatmul.mubr.bf16.gmra.mxu1 %v4276_v53 }
  0xdf   : > { %1652 = vmatprep.mubr.bf16.mxu0 %v4192_v13  ;;  %3752 = vmatprep.mubr.bf16.mxu1 %v4283_v60 }
  0xe6   : > { %1653 = vmatmul.mubr.bf16.gmra.mxu0 %v4317_v11  ;;  %3753 = vmatmul.mubr.bf16.gmra.mxu1 %v621_v5 }
  0xe7   : > { %1660 = vmatprep.mubr.bf16.mxu0 %v4199_v16 }
  0xee   : > { %1661 = vmatmul.mubr.bf16.gmra.mxu0 %v4340_v23 }
  0xef   : > { %1668 = vmatprep.mubr.bf16.mxu0 %v4230_v30 }
  0xf6   : > { %1669 = vmatmul.mubr.bf16.gmra.mxu0 %v4361_v28 }
  0xf7   : > { %1676 = vmatprep.mubr.bf16.mxu0 %v4236_v33 }
  0xfe   : > { %1677 = vmatmul.mubr.bf16.gmra.mxu0 %v4381_v41 }
  0xff   : > { %1684 = vmatprep.mubr.bf16.mxu0 %v3886_v3 }
 0x106   : > { %1685 = vmatmul.mubr.bf16.gmra.mxu0 %v578_v40 }
 0x12e   : > { %v3436_v13 = vpop.f32.mrf.mxu0  ;;  %v3678_v14 = vpop.f32.mrf.mxu1 }
 0x130   : > { %v3437_v16 = vpop.f32.mrf.mxu0  ;;  %v1002_v25 = vpop.f32.mrf.mxu1 }
 0x131   : > { %v3438_v32 = vadd.f32 %v3437_v16, %v3436_v13 }
 0x132   : > { %v3439_v34 = vpop.f32.mrf.mxu0  ;;  %v3679_v30 = vpop.f32.mrf.mxu1 }
 0x133   : > { %v1003_v51 = vadd.f32 %v3438_v32, %v1002_v25 }
 0x134   : > { %v3440_v53 = vpop.f32.mrf.mxu0  ;;  %v1005_v60 = vpop.f32.mrf.mxu1 }
 0x135   : > { %v3441_v33 = vadd.f32 %v3440_v53, %v3439_v34 }
 0x136   : > { %v3442_v6 = vpop.f32.mrf.mxu0  ;;  %v3682_v7 = vpop.f32.mrf.mxu1 }
 0x137   : > { %v4475_v8 = vadd.f32 %v3441_v33, %v1005_v60 }
 0x138   : > { %v3443_v9 = vpop.f32.mrf.mxu0  ;;  %v1018_v10 = vpop.f32.mrf.mxu1 }
 0x139   : > { %v3444_v45 = vadd.f32 %v3443_v9, %v3442_v6 }
 0x13a   : > { %v3445_v11 = vpop.f32.mrf.mxu0  ;;  %v3683_v15 = vpop.f32.mrf.mxu1 }
 0x13b   : > { %v1011_v17 = vadd.f32 %v3678_v14, %v3444_v45 }
 0x13c   : > { %v3446_v18 = vpop.f32.mrf.mxu0  ;;  %v1021_v19 = vpop.f32.mrf.mxu1 }
 0x13d   : > { %v3447_v20 = vadd.f32 %v3446_v18, %v3445_v11 }
 0x13e   : > { %v3448_v21 = vpop.f32.mrf.mxu0  ;;  %v3686_v23 = vpop.f32.mrf.mxu1 }
 0x13f   : > { %v1014_v24 = vadd.f32 %v3679_v30, %v3447_v20 }
 0x140   : > { %v3449_v35 = vpop.f32.mrf.mxu0  ;;  %v1034_v22 = vpop.f32.mrf.mxu1 }
 0x141   : > { %v3450_v26 = vadd.f32 %v3449_v35, %v3448_v21 }
 0x142   : > { %v3451_v27 = vpop.f32.mrf.mxu0  ;;  %v3687_v28 = vpop.f32.mrf.mxu1 }
 0x143   : > { %v1019_v55 = vadd.f32 %v3450_v26, %v1018_v10 }
 0x144   : > { %v3452_v29 = vpop.f32.mrf.mxu0  ;;  %v1037_v31 = vpop.f32.mrf.mxu1 }
 0x145   : > { %v3453_v37 = vadd.f32 %v3452_v29, %v3451_v27 }
 0x146   : > { %v3454_v38 = vpop.f32.mrf.mxu0  ;;  %v4477_v39 = vpop.f32.mrf.mxu1 }
 0x147   : > { %v1022_v41 = vadd.f32 %v3453_v37, %v1021_v19 }
 0x148   : > { %v3455_v42 = vpop.f32.mrf.mxu0  ;;  %v1050_v43 = vpop.f32.mrf.mxu1 }
 0x149   : > { %v3456_v44 = vadd.f32 %v3455_v42, %v3454_v38 }
 0x14a   : > { %v3457_v46 = vpop.f32.mrf.mxu0  ;;  %v4479_v47 = vpop.f32.mrf.mxu1 }
 0x14b   : > { %v1027_v48 = vadd.f32 %v3682_v7, %v3456_v44 }
 0x14c   : > { %v3458_v49 = vpop.f32.mrf.mxu0  ;;  %v1053_v54 = vpop.f32.mrf.mxu1 }
 0x14d   : > { %v3459_v50 = vadd.f32 %v3458_v49, %v3457_v46 }
 0x14e   : > { %v3460_v52 = vpop.f32.mrf.mxu0  ;;  %v3516_v59 = vpop.f32.mrf.mxu1 }
 0x14f   : > { %v1030_v61 = vadd.f32 %v3683_v15, %v3459_v50 }
 0x150   : > { %v3461_v62 = vpop.f32.mrf.mxu0  ;;  %v3517_v63 = vpop.f32.mrf.mxu1 }
 0x151   : > { %v3462_v0 = vadd.f32 %v3461_v62, %v3460_v52  ;;  %v3518_v1 = vadd.f32 %v3517_v63, %v3516_v59 }
 0x152   : > { %v3463_v2 = vpop.f32.mrf.mxu0  ;;  %v4481_v3 = vpop.f32.mrf.mxu1 }
 0x153   : > { %v1035_v36 = vadd.f32 %v3462_v0, %v1034_v22  ;;  %v4483_v58 = vadd.f32 %v3518_v1, %v1003_v51 }
 0x154   : > { %v3464_v4 = vpop.f32.mrf.mxu0  ;;  %v4485_v56 = vpop.f32.mrf.mxu1 }
 0x155   : > { %v3465_v5 = vadd.f32 %v3464_v4, %v3463_v2 }
 0x156   : > { %v3466_v57 = vpop.f32.mrf.mxu0  ;;  %v3522_v12 = vpop.f32.mrf.mxu1 }
 0x157   : > { %v1038_v40 = vadd.f32 %v3465_v5, %v1037_v31 }
 0x158   : > { %v3467_v13 = vpop.f32.mrf.mxu0  ;;  %v3523_v14 = vpop.f32.mrf.mxu1 }
 0x159   : > { %v3468_v16 = vadd.f32 %v3467_v13, %v3466_v57  ;;  %v3524_v25 = vadd.f32 %v3523_v14, %v3522_v12 }
 0x15a   : > { %v3469_v32 = vpop.f32.mrf.mxu0  ;;  %v3525_v34 = vpop.f32.mrf.mxu1 }
 0x15b   : > { %v1043_v30 = vadd.f32 %v3686_v23, %v3468_v16  ;;  %v4487_v53 = vadd.f32 %v3524_v25, %v1011_v17 }
 0x15c   : > { %v3470_v60 = vpop.f32.mrf.mxu0  ;;  %v3526_v33 = vpop.f32.mrf.mxu1 }
 0x15d   : > { %v3471_v51 = vadd.f32 %v3470_v60, %v3469_v32  ;;  %v3527_v6 = vadd.f32 %v3526_v33, %v3525_v34 }
 0x15e   : > { %v3472_v7 = vpop.f32.mrf.mxu0  ;;  %v3528_v9 = vpop.f32.mrf.mxu1 }
 0x15f   : > { %v1046_v10 = vadd.f32 %v3687_v28, %v3471_v51  ;;  %v4489_v45 = vadd.f32 %v3527_v6, %v1014_v24 }
 0x160   : > { %v3473_v11 = vpop.f32.mrf.mxu0  ;;  %v3529_v15 = vpop.f32.mrf.mxu1 }
 0x161   : > { %v3474_v18 = vadd.f32 %v3473_v11, %v3472_v7  ;;  %v3530_v19 = vadd.f32 %v3529_v15, %v3528_v9 }
 0x162   : > { %v3475_v20 = vpop.f32.mrf.mxu0  ;;  %v3531_v21 = vpop.f32.mrf.mxu1 }
 0x163   : > { %v1051_v35 = vadd.f32 %v3474_v18, %v1050_v43  ;;  %v1260_v22 = vadd.f32 %v3530_v19, %v1019_v55 }
 0x164   : > { %v3476_v23 = vpop.f32.mrf.mxu0  ;;  %v3532_v17 = vpop.f32.mrf.mxu1 }
 0x165   : > { %v3477_v26 = vadd.f32 %v3476_v23, %v3475_v20  ;;  %v3533_v27 = vadd.f32 %v3532_v17, %v3531_v21 }
 0x166   : > { %v3478_v29 = vpop.f32.mrf.mxu0  ;;  %v3534_v31 = vpop.f32.mrf.mxu1 }
 0x167   : > { %v1054_v37 = vadd.f32 %v3477_v26, %v1053_v54  ;;  %v1263_v38 = vadd.f32 %v3533_v27, %v1022_v41 }
 0x168   : > { %v3479_v42 = vpop.f32.mrf.mxu0  ;;  %v3535_v28 = vpop.f32.mrf.mxu1 }
 0x169   : > { %v3480_v24 = vadd.f32 %v3479_v42, %v3478_v29  ;;  %v3536_v44 = vadd.f32 %v3535_v28, %v3534_v31 }
 0x16a   : > { %v3481_v46 = vpop.f32.mrf.mxu0  ;;  %v3537_v49 = vpop.f32.mrf.mxu1 }
 0x16b   : > { %v1059_v50 = vadd.f32 %v4477_v39, %v3480_v24  ;;  %v1268_v52 = vadd.f32 %v3536_v44, %v1027_v48 }
 0x16c   : > { %v3482_v59 = vpop.f32.mrf.mxu0  ;;  %v3538_v43 = vpop.f32.mrf.mxu1 }
 0x16d   : > { %v3483_v55 = vadd.f32 %v3482_v59, %v3481_v46  ;;  %v3539_v62 = vadd.f32 %v3538_v43, %v3537_v49 }
 0x16e   : > { %v3540_v63 = vpop.f32.mrf.mxu1  ;;  %v4492_v0 = vpop.f32.mrf.mxu0 }
 0x16f   : > { %v1062_v1 = vadd.f32 %v4479_v47, %v3483_v55  ;;  %v1271_v54 = vadd.f32 %v3539_v62, %v1030_v61 }
 0x170   : > { %v3541_v41 = vpop.f32.mrf.mxu1  ;;  %v4495_v2 = vpop.f32.mrf.mxu0 }
 0x171   : > { %v3542_v4 = vadd.f32 %v3541_v41, %v3540_v63 }
 0x172   : > { %v3543_v5 = vpop.f32.mrf.mxu1  ;;  %v4497_v57 = vpop.f32.mrf.mxu0 }
 0x173   : > { %v1276_v12 = vadd.f32 %v3542_v4, %v1035_v36 }
 0x174   : > { %v3544_v39 = vpop.f32.mrf.mxu1  ;;  %v4499_v48 = vpop.f32.mrf.mxu0 }
 0x175   : > { %v3545_v13 = vadd.f32 %v3544_v39, %v3543_v5 }
 0x176   : > { %v3546_v14 = vpop.f32.mrf.mxu1  ;;  %v3714_v16 = vpop.f32.mrf.mxu0 }
 0x177   : > { %v4501_v25 = vadd.f32 %v3714_v16, %v1268_v52  ;;  %v1279_v32 = vadd.f32 %v3545_v13, %v1038_v40  ;;  %v3940_v13 = vmov 1983009808  }
 0x178   : > { %v3547_v34 = vpop.f32.mrf.mxu1  ;;  %v1356_v47 = vpop.f32.mrf.mxu0 }
 0x179   : > { %v3548_v61 = vadd.f32 %v3547_v34, %v3546_v14  ;;  %v4503_v60 = vadd.f32 %v1356_v47, %v1260_v22  ;;  %v1945_v14 = vlaneseq  ;;  %v3521_v34 = vadd.f32 %v4485_v56, %v4481_v3 }
 0x17a   : > { %v3549_v33 = vpop.f32.mrf.mxu1  ;;  %v3715_v51 = vpop.f32.mrf.mxu0 }
 0x17b   : > { %v4505_v6 = vadd.f32 %v3715_v51, %v1271_v54  ;;  %v1284_v7 = vadd.f32 %v3548_v61, %v1043_v30  ;;  %v1341_v51 = vadd.f32 %v4495_v2, %v4483_v58  ;;  %v1247_v3 = vadd.f32 %v3521_v34, %v4475_v8 }
 0x17c   : > { %v3550_v36 = vpop.f32.mrf.mxu1  ;;  %v1359_v9 = vpop.f32.mrf.mxu0 }
 0x17d   : > { %v3551_v11 = vadd.f32 %v3550_v36, %v3549_v33  ;;  %v4507_v15 = vadd.f32 %v1359_v9, %v1263_v38  ;;  %v1946_v9 = vshrl.u32 %v1945_v14, 7 }
 0x17e   : > { %v3552_v18 = vpop.f32.mrf.mxu1  ;;  %v3718_v19 = vpop.f32.mrf.mxu0 }
 0x17f   : > { %v4509_v20 = vadd.f32 %v3718_v19, %v1284_v7  ;;  %v1287_v40 = vadd.f32 %v3551_v11, %v1046_v10 }
 0x180   : > { %v3553_v21 = vpop.f32.mrf.mxu1  ;;  %v1372_v23 = vpop.f32.mrf.mxu0 }
 0x181   : > { %v3554_v17 = vadd.f32 %v3553_v21, %v3552_v18  ;;  %v4511_v22 = vadd.f32 %v1372_v23, %v1276_v12  ;;  %v1344_v21 = vadd.f32 %v4499_v48, %v1247_v3  ;;  %v1349_v48 = vadd.f32 %v4492_v0, %v4487_v53 }
 0x182   : > { %v3555_v26 = vpop.f32.mrf.mxu1  ;;  %v3719_v27 = vpop.f32.mrf.mxu0 }
 0x183   : > { %v4513_v29 = vadd.f32 %v3719_v27, %v1287_v40  ;;  %v1292_v30 = vadd.f32 %v3554_v17, %v1051_v35 }
 0x184   : > { %v3556_v31 = vpop.f32.mrf.mxu1  ;;  %v1375_v42 = vpop.f32.mrf.mxu0 }
 0x185   : > { %v3557_v28 = vadd.f32 %v3556_v31, %v3555_v26  ;;  %v4515_v38 = vadd.f32 %v1375_v42, %v1279_v32 }
 0x186   : > { %v3558_v24 = vpop.f32.mrf.mxu1  ;;  %v3722_v44 = vpop.f32.mrf.mxu0 }
 0x187   : > { %v1295_v46 = vadd.f32 %v3557_v28, %v1054_v37  ;;  %v1943_v37 = vunpack.c.l.s4 %v3940_v13 }
 0x188   : > { %v3559_v49 = vpop.f32.mrf.mxu1  ;;  %v1388_v10 = vpop.f32.mrf.mxu0 }
 0x189   : > { %v3560_v52 = vadd.f32 %v3559_v49, %v3558_v24  ;;  %v4517_v59 = vadd.f32 %v1388_v10, %v1292_v30  ;;  %v1944_v36 = vunpack.c.0.s8 %v1943_v37 }
 0x18a   : > { %v3561_v43 = vpop.f32.mrf.mxu1  ;;  %v3723_v55 = vpop.f32.mrf.mxu0 }
 0x18b   : > { %v1300_v62 = vadd.f32 %v3560_v52, %v1059_v50  ;;  %v4537_v58 = vsub.s32 %v1944_v36, %v1946_v9 }
 0x18c   : > { %v3562_v63 = vpop.f32.mrf.mxu1  ;;  %v1391_v54 = vpop.f32.mrf.mxu0 }
 0x18d   : > { %v4519_v41 = vadd.f32 %v3722_v44, %v1300_v62  ;;  %v3563_v35 = vadd.f32 %v3562_v63, %v3561_v43  ;;  %v4521_v4 = vadd.f32 %v1391_v54, %v1295_v46  ;;  %v4547_v43 = vadd.f32 %v4497_v57, %v4489_v45 }
 0x18e   : > { %v3596_v5 = vpop.f32.mrf.mxu0  ;;  %v3742_v12 = vpop.f32.mrf.mxu1 }
 0x18f   : > { %v1303_v39 = vadd.f32 %v3563_v35, %v1062_v1  ;;  %v4532_v1 = vld [vmem:[%s4867_s2] ss:$0 sm:$0xff] }
 0x190   : > { %v3597_v16 = vpop.f32.mrf.mxu0  ;;  %v1727_v32 = vpop.f32.mrf.mxu1 }
 0x191   : > { %v4525_v47 = vadd.f32 %v3723_v55, %v1303_v39  ;;  %v3598_v50 = vadd.f32 %v3597_v16, %v3596_v5 }
 0x192   : > { %v3599_v61 = vpop.f32.mrf.mxu0  ;;  %v3743_v33 = vpop.f32.mrf.mxu1 }
 0x193   : > { %v1728_v7 = vadd.f32 %v3598_v50, %v1727_v32 }
 0x194   : > { %v3600_v11 = vpop.f32.mrf.mxu0  ;;  %v1730_v18 = vpop.f32.mrf.mxu1 }
 0x195   : > { %v1790_v56 = vadd.f32 %v1728_v7, %v1341_v51  ;;  %v3601_v19 = vadd.f32 %v3600_v11, %v3599_v61 }
 0x196   : > { %v3602_v40 = vpop.f32.mrf.mxu0 }
 0x197   : > { %v1813_v23 = vadd.f32 %v4532_v1, %v1790_v56  ;;  %v1731_v2 = vadd.f32 %v3601_v19, %v1730_v18 }
 0x198   : > { %v3603_v17 = vpop.f32.mrf.mxu0 }
 0x199   : > { %v1829_v26 = vmax.f32 %v1813_v23, 0.0  ;;  %v1791_v27 = vadd.f32 %v1731_v2, %v1344_v21  ;;  %v3604_v30 = vadd.f32 %v3603_v17, %v3602_v40 }
 0x19a   : > { %v3605_v31 = vpop.f32.mrf.mxu0 }
 0x19b   : > { %v1941_v42 = vcombine.high %v1829_v26, %v1829_v26  ;;  %v1948_v28 = vrot.slane %v1829_v26, %v4537_v58  ;;  %v1814_v8 = vadd.f32 %v4532_v1, %v1791_v27  ;;  %v1736_v24 = vadd.f32 %v3742_v12, %v3604_v30  ;;  %v4565_v30 = vpop.f32.mrf.mxu1 }
 0x19c   : > { %v3606_v44 = vpop.f32.mrf.mxu0 }
 0x19d   : > { %v1955_v46 = vrot.slane %v1941_v42, %v4537_v58  ;;  %v1956_v49 = vcombine.high %v1948_v28, %v1948_v28  ;;  %v2278_v10 = vsel %vm2277_vm6, %v1948_v28, -inf  ;;  %v1830_v52 = vmax.f32 %v1814_v8, 0.0 }
 0x19e   : > { %v2279_v55 = vrot.slane %v2278_v10, 4  ;;  %v1792_v62 = vadd.f32 %v1736_v24, %v1349_v48  ;;  %v3607_v63 = vadd.f32 %v3606_v44, %v3605_v31  ;;  %v4549_v54 = vpop.f32.mrf.mxu0 }
 0x19f   : > { %v1957_v35 = vcombine.high %v1955_v46, %v1955_v46  ;;  %v2285_v53 = vsel %vm2277_vm6, %v1956_v49, -inf  ;;  %v2292_v0 = vsel %vm2277_vm6, %v1955_v46, -inf  ;;  %v3376_v5 = vpack.c.bf16 %v1830_v52, %v1829_v26 }
 0x1a0   : > { %v2280_v12 = vmax.f32 %v2278_v10, %v2279_v55  ;;  %v2286_v39 = vrot.slane %v2285_v53, 4  ;;  %v2293_v13 = vrot.slane %v2292_v0, 4  ;;  %v1958_v37 = vcombine.high %v1830_v52, %v1830_v52  ;;  %v4557_v51 = vpop.f32.mrf.mxu0 }
 0x1a1   : > { %v2299_v14 = vsel %vm2277_vm6, %v1957_v35, -inf  ;;  %3377 = vst [vmem:[%s4007_s8] sm:$0xff] %v3376_v5   ;;  %v1965_v45 = vrot.slane %v1830_v52, %v4537_v58  ;;  %v1815_v57 = vadd.f32 %v4532_v1, %v1792_v62  ;;  %v1739_v16 = vadd.f32 %v3743_v33, %v3607_v63  ;;  %v1743_v5 = vpop.f32.mrf.mxu1 }
 0x1a2   : > { %v2281_v32 = vrot.slane %v2280_v12, 2  ;;  %v2287_v34 = vmax.f32 %v2285_v53, %v2286_v39  ;;  %v2294_v50 = vmax.f32 %v2292_v0, %v2293_v13  ;;  %v2300_v61 = vrot.slane %v2299_v14, 4  ;;  %v3611_v31 = vpop.f32.mrf.mxu0 }
 0x1a3   : > { %v1972_v7 = vrot.slane %v1958_v37, %v4537_v58  ;;  %v1973_v36 = vcombine.high %v1965_v45, %v1965_v45  ;;  %v2306_v9 = vsel %vm2277_vm6, %v1965_v45, -inf  ;;  %v4561_v11 = vmax.f32 %v1815_v57, 0.0 }
 0x1a4   : > { %v2282_v18 = vmax.f32 %v2280_v12, %v2281_v32  ;;  %v2288_v3 = vrot.slane %v2287_v34, 2  ;;  %v2295_v56 = vrot.slane %v2294_v50, 2  ;;  %v2301_v19 = vmax.f32 %v2299_v14, %v2300_v61  ;;  %v3612_v12 = vpop.f32.mrf.mxu0 }
 0x1a5   : > { %v1974_v40 = vcombine.high %v1972_v7, %v1972_v7  ;;  %v2307_v21 = vrot.slane %v2306_v9, 4  ;;  %v2313_v33 = vsel %vm2277_vm6, %v1973_v36, -inf  ;;  %v2320_v23 = vsel %vm2277_vm6, %v1972_v7, -inf }
 0x1a6   : > { %v2283_v2 = vrot.slane %v2282_v18, 1  ;;  %v2289_v17 = vmax.f32 %v2287_v34, %v2288_v3  ;;  %v2296_v26 = vmax.f32 %v2294_v50, %v2295_v56  ;;  %v2302_v27 = vrot.slane %v2301_v19, 2 }
 0x1a7   : > { %v2308_v42 = vmax.f32 %v2306_v9, %v2307_v21  ;;  %v2314_v28 = vrot.slane %v2313_v33, 4  ;;  %v2321_v8 = vrot.slane %v2320_v23, 4  ;;  %v2327_v24 = vsel %vm2277_vm6, %v1974_v40, -inf  ;;  %v3614_v40 = vpop.f32.mrf.mxu0 }
 0x1a8   : > { %v4568_v48 = vmax.f32 %v2282_v18, %v2283_v2  ;;  %v2290_v44 = vrot.slane %v2289_v17, 1  ;;  %v2297_v46 = vrot.slane %v2296_v26, 1  ;;  %v2303_v49 = vmax.f32 %v2301_v19, %v2302_v27  ;;  %v4584_v19 = vpop.f32.mrf.mxu1 }
 0x1a9   : > { %v2309_v10 = vrot.slane %v2308_v42, 2  ;;  %v2315_v52 = vmax.f32 %v2313_v33, %v2314_v28  ;;  %v2322_v55 = vmax.f32 %v2320_v23, %v2321_v8  ;;  %v2328_v62 = vrot.slane %v2327_v24, 4 }
 0x1aa   : > { %v4570_v63 = vmax.f32 %v2289_v17, %v2290_v44  ;;  %v4572_v35 = vmax.f32 %v2296_v26, %v2297_v46  ;;  %v2304_v53 = vrot.slane %v2303_v49, 1  ;;  %v1975_v0 = vcombine.high %v4561_v11, %v4561_v11 }
 0x1ab   : > { %v2310_v39 = vmax.f32 %v2308_v42, %v2309_v10  ;;  %v2316_v13 = vrot.slane %v2315_v52, 2  ;;  %v2323_v37 = vrot.slane %v2322_v55, 2  ;;  %v2329_v14 = vmax.f32 %v2327_v24, %v2328_v62  ;;  %v1746_v10 = vpop.f32.mrf.mxu1 }
 0x1ac   : > { %v4576_v45 = vmax.f32 %v2303_v49, %v2304_v53  ;;  %v1982_v57 = vrot.slane %v4561_v11, %v4537_v58  ;;  %v1989_v32 = vrot.slane %v1975_v0, %v4537_v58  ;;  %v1793_v34 = vadd.f32 %v1739_v16, %v4547_v43 }
 0x1ad   : > { %v2311_v50 = vrot.slane %v2310_v39, 1  ;;  %v2317_v61 = vmax.f32 %v2315_v52, %v2316_v13  ;;  %v2324_v7 = vmax.f32 %v2322_v55, %v2323_v37  ;;  %v2330_v36 = vrot.slane %v2329_v14, 2  ;;  %v3615_v52 = vpop.f32.mrf.mxu0 }
 0x1ae   : > { %v1990_v9 = vcombine.high %v1982_v57, %v1982_v57  ;;  %v1991_v18 = vcombine.high %v1989_v32, %v1989_v32  ;;  %v2334_v3 = vsel %vm2277_vm6, %v1982_v57, -inf  ;;  %v2348_v56 = vsel %vm2277_vm6, %v1989_v32, -inf }
 0x1af   : > { %v4586_v21 = vmax.f32 %v2310_v39, %v2311_v50  ;;  %v2318_v33 = vrot.slane %v2317_v61, 1  ;;  %v2325_v23 = vrot.slane %v2324_v7, 1  ;;  %v2331_v2 = vmax.f32 %v2329_v14, %v2330_v36 }
 0x1b0   : > { %v2335_v17 = vrot.slane %v2334_v3, 4  ;;  %v2341_v43 = vsel %vm2277_vm6, %v1990_v9, -inf  ;;  %v2349_v16 = vrot.slane %v2348_v56, 4  ;;  %v2355_v26 = vsel %vm2277_vm6, %v1991_v18, -inf }
 0x1b1   : > { %v4590_v27 = vmax.f32 %v2317_v61, %v2318_v33  ;;  %v4592_v42 = vmax.f32 %v2324_v7, %v2325_v23  ;;  %v2332_v28 = vrot.slane %v2331_v2, 1  ;;  %v2342_v8 = vrot.slane %v2341_v43, 4 }
 0x1b2   : > { %v2336_v24 = vmax.f32 %v2334_v3, %v2335_v17  ;;  %v2350_v44 = vmax.f32 %v2348_v56, %v2349_v16  ;;  %v2356_v46 = vrot.slane %v2355_v26, 4  ;;  %v1816_v49 = vadd.f32 %v4532_v1, %v1793_v34 }
 0x1b3   : > { %v4595_v55 = vmax.f32 %v2331_v2, %v2332_v28  ;;  %v2343_v62 = vmax.f32 %v2341_v43, %v2342_v8  ;;  %v3610_v53 = vadd.f32 %v4557_v51, %v4549_v54  ;;  %v3613_v0 = vadd.f32 %v3612_v12, %v3611_v31 }
 0x1b4   : > { %v2337_v39 = vrot.slane %v2336_v24, 2  ;;  %v2351_v13 = vrot.slane %v2350_v44, 2  ;;  %v2357_v37 = vmax.f32 %v2355_v26, %v2356_v46  ;;  %v1832_v14 = vmax.f32 %v1816_v49, 0.0 }
 0x1b5   : > { %v2344_v57 = vrot.slane %v2343_v62, 2  ;;  %v1744_v32 = vadd.f32 %v3610_v53, %v1743_v5  ;;  %v1747_v50 = vadd.f32 %v3613_v0, %v1746_v10  ;;  %v4599_v61 = vadd.f32 %v3615_v52, %v3614_v40 }
 0x1b6   : > { %v2338_v34 = vmax.f32 %v2336_v24, %v2337_v39  ;;  %v2352_v7 = vmax.f32 %v2350_v44, %v2351_v13  ;;  %v2358_v36 = vrot.slane %v2357_v37, 2  ;;  %v3381_v9 = vpack.c.bf16 %v1832_v14, %v4561_v11 }
 0x1b7   : > { %v2345_v18 = vmax.f32 %v2343_v62, %v2344_v57  ;;  %v1992_v3 = vcombine.high %v1832_v14, %v1832_v14  ;;  %v1999_v54 = vrot.slane %v1832_v14, %v4537_v58  ;;  %v1794_v51 = vadd.f32 %v1744_v32, %v4503_v60 }
 0x1b8   : > { %v2339_v31 = vrot.slane %v2338_v34, 1  ;;  %v2353_v12 = vrot.slane %v2352_v7, 1  ;;  %v2359_v56 = vmax.f32 %v2357_v37, %v2358_v36  ;;  %3413 = vst [vmem:[%s4007_s8 + $0x8] sm:$0xff] %v3381_v9   ;;  %v1795_v5 = vadd.f32 %v1747_v50, %v4507_v15 }
 0x1b9   : > { %v2346_v40 = vrot.slane %v2345_v18, 1  ;;  %v2006_v33 = vrot.slane %v1992_v3, %v4537_v58  ;;  %v2007_v23 = vcombine.high %v1999_v54, %v1999_v54  ;;  %v2362_v11 = vsel %vm2277_vm6, %v1999_v54, -inf }
 0x1ba   : > { %v2340_v2 = vmax.f32 %v2338_v34, %v2339_v31  ;;  %v2354_v17 = vmax.f32 %v2352_v7, %v2353_v12  ;;  %v2360_v43 = vrot.slane %v2359_v56, 1  ;;  %v2363_v16 = vrot.slane %v2362_v11, 4 }
 0x1bb   : > { %v2347_v60 = vmax.f32 %v2345_v18, %v2346_v40  ;;  %v2008_v26 = vcombine.high %v2006_v33, %v2006_v33  ;;  %v2369_v28 = vsel %vm2277_vm6, %v2007_v23, -inf  ;;  %v2376_v8 = vsel %vm2277_vm6, %v2006_v33, -inf  ;;  %v4618_v33 = vpop.f32.mrf.mxu0 }
 0x1bc   : > { %v2361_v24 = vmax.f32 %v2359_v56, %v2360_v43  ;;  %v2726_v15 = vmax.f32 %v4568_v48, %v2340_v2  ;;  %v2728_v44 = vmax.f32 %v4572_v35, %v2354_v17  ;;  %v2364_v46 = vmax.f32 %v2362_v11, %v2363_v16 }
 0x1bd   : > { %v2727_v49 = vmax.f32 %v4570_v63, %v2347_v60  ;;  %v2370_v10 = vrot.slane %v2369_v28, 4  ;;  %v2377_v52 = vrot.slane %v2376_v8, 4  ;;  %v2383_v62 = vsel %vm2277_vm6, %v2008_v26, -inf }
 0x1be   : > { %v2729_v53 = vmax.f32 %v4576_v45, %v2361_v24  ;;  %v3341_v0 = vpack.c.bf16 %v2726_v15, %v2726_v15  ;;  %v3343_v39 = vpack.c.bf16 %v2728_v44, %v2728_v44  ;;  %v2365_v13 = vrot.slane %v2364_v46, 2 }
 0x1bf   : > { %v3342_v37 = vpack.c.bf16 %v2727_v49, %v2727_v49  ;;  %v2371_v14 = vmax.f32 %v2369_v28, %v2370_v10  ;;  %v2378_v57 = vmax.f32 %v2376_v8, %v2377_v52  ;;  %v2384_v32 = vrot.slane %v2383_v62, 4  ;;  %v4624_v49 = vpop.f32.mrf.mxu0 }
 0x1c0   : > { %v3344_v50 = vpack.c.bf16 %v2729_v53, %v2729_v53  ;;  %v2886_v48 = vunpack.c.l.b16 %v3341_v0  ;;  %v2888_v34 = vunpack.c.l.b16 %v3343_v39  ;;  %v2366_v35 = vmax.f32 %v2364_v46, %v2365_v13 }
 0x1c1   : > { %v2887_v7 = vunpack.c.l.b16 %v3342_v37  ;;  %v2372_v36 = vrot.slane %v2371_v14, 2  ;;  %v2379_v63 = vrot.slane %v2378_v57, 2  ;;  %v2385_v9 = vmax.f32 %v2383_v62, %v2384_v32 }
 0x1c2   : > { %v2889_v18 = vunpack.c.l.b16 %v3344_v50  ;;  %v2367_v3 = vrot.slane %v2366_v35, 1  ;;  %v1817_v45 = vadd.f32 %v4532_v1, %v1794_v51  ;;  %v1818_v54 = vadd.f32 %v4532_v1, %v1795_v5 }
 0x1c3   : > { %v2919_v31 = vsel %vm2918_vm7, %v2887_v7, %v2886_v48  ;;  %v2373_v12 = vmax.f32 %v2371_v14, %v2372_v36  ;;  %v2380_v56 = vmax.f32 %v2378_v57, %v2379_v63  ;;  %v2386_v40 = vrot.slane %v2385_v9, 2  ;;  %v3620_v7 = vpop.f32.mrf.mxu0 }
 0x1c4   : > { %v2921_v23 = vsel %vm2920_vm8, %v2888_v34, %v2919_v31  ;;  %v2368_v11 = vmax.f32 %v2366_v35, %v2367_v3  ;;  %v1833_v2 = vmax.f32 %v1817_v45, 0.0  ;;  %v1834_v17 = vmax.f32 %v1818_v54, 0.0  ;;  %v4636_v54 = vpop.f32.mrf.mxu1 }
 0x1c5   : > { %v2374_v43 = vrot.slane %v2373_v12, 1  ;;  %v2381_v16 = vrot.slane %v2380_v56, 1  ;;  %v2387_v60 = vmax.f32 %v2385_v9, %v2386_v40  ;;  %v2923_v51 = vsel %vm2922_vm9, %v2889_v18, %v2921_v23 }
 0x1c6   : > { %v2730_v5 = vmax.f32 %v4586_v21, %v2368_v11  ;;  %v2009_v26 = vcombine.high %v1833_v2, %v1833_v2  ;;  %v2016_v28 = vrot.slane %v1833_v2, %v4537_v58  ;;  %v3386_v8 = vpack.c.bf16 %v1834_v17, %v1833_v2 }
 0x1c7   : > { %v2375_v24 = vmax.f32 %v2373_v12, %v2374_v43  ;;  %v2382_v15 = vmax.f32 %v2380_v56, %v2381_v16  ;;  %v2388_v44 = vrot.slane %v2387_v60, 1  ;;  %v2026_v46 = vcombine.high %v1834_v17, %v1834_v17  ;;  %v3621_v43 = vpop.f32.mrf.mxu0 }
 0x1c8   : > { %v3345_v10 = vpack.c.bf16 %v2730_v5, %v2730_v5  ;;  %v2023_v52 = vrot.slane %v2009_v26, %v4537_v58  ;;  %v2024_v62 = vcombine.high %v2016_v28, %v2016_v28  ;;  %v2390_v53 = vsel %vm2277_vm6, %v2016_v28, -inf  ;;  %3414 = vst [vmem:[%s4007_s8 + $0x10] sm:$0xff] %v3386_v8  }
 0x1c9   : > { %v2389_v0 = vmax.f32 %v2387_v60, %v2388_v44  ;;  %v2731_v21 = vmax.f32 %v4590_v27, %v2375_v24  ;;  %v2732_v39 = vmax.f32 %v4592_v42, %v2382_v15  ;;  %v2391_v13 = vrot.slane %v2390_v53, 4  ;;  %v1759_v15 = vpop.f32.mrf.mxu1 }
 0x1ca   : > { %v2890_v37 = vunpack.c.l.b16 %v3345_v10  ;;  %v2025_v14 = vcombine.high %v2023_v52, %v2023_v52  ;;  %v2397_v57 = vsel %vm2277_vm6, %v2024_v62, -inf  ;;  %v2404_v32 = vsel %vm2277_vm6, %v2023_v52, -inf }
 0x1cb   : > { %v2733_v50 = vmax.f32 %v4595_v55, %v2389_v0  ;;  %v3346_v48 = vpack.c.bf16 %v2731_v21, %v2731_v21  ;;  %v3347_v34 = vpack.c.bf16 %v2732_v39, %v2732_v39  ;;  %v2392_v35 = vmax.f32 %v2390_v53, %v2391_v13  ;;  %v3623_v21 = vpop.f32.mrf.mxu0 }
 0x1cc   : > { %v2925_v36 = vsel %vm2924_vm10, %v2890_v37, %v2923_v51  ;;  %v2398_v63 = vrot.slane %v2397_v57, 4  ;;  %v2405_v9 = vrot.slane %v2404_v32, 4  ;;  %v2411_v27 = vsel %vm2277_vm6, %v2025_v14, -inf }
 0x1cd   : > { %v3348_v42 = vpack.c.bf16 %v2733_v50, %v2733_v50  ;;  %v2891_v18 = vunpack.c.l.b16 %v3346_v48  ;;  %v2892_v3 = vunpack.c.l.b16 %v3347_v34  ;;  %v2393_v45 = vrot.slane %v2392_v35, 2  ;;  %v4652_v34 = vpop.f32.mrf.mxu1 }
 0x1ce   : > { %v2399_v31 = vmax.f32 %v2397_v57, %v2398_v63  ;;  %v2406_v12 = vmax.f32 %v2404_v32, %v2405_v9  ;;  %v2412_v56 = vrot.slane %v2411_v27, 4  ;;  %v2033_v55 = vrot.slane %v1834_v17, %v4537_v58 }
 0x1cf   : > { %v2893_v40 = vunpack.c.l.b16 %v3348_v42  ;;  %v2927_v23 = vsel %vm2926_vm11, %v2891_v18, %v2925_v36  ;;  %v2394_v11 = vmax.f32 %v2392_v35, %v2393_v45  ;;  %v2040_v2 = vrot.slane %v2026_v46, %v4537_v58  ;;  %v3624_v45 = vpop.f32.mrf.mxu0 }
 0x1d0   : > { %v2929_v16 = vsel %vm2928_vm12, %v2892_v3, %v2927_v23  ;;  %v2400_v60 = vrot.slane %v2399_v31, 2  ;;  %v2407_v51 = vrot.slane %v2406_v12, 2  ;;  %v2413_v5 = vmax.f32 %v2411_v27, %v2412_v56 }
 0x1d1   : > { %v2931_v26 = vsel %vm2930_vm13, %v2893_v40, %v2929_v16  ;;  %v2395_v28 = vrot.slane %v2394_v11, 1  ;;  %v2041_v8 = vcombine.high %v2033_v55, %v2033_v55  ;;  %v2042_v24 = vcombine.high %v2040_v2, %v2040_v2 }
 0x1d2   : > { %v2953_v17 = vpack.c.b16 %v2931_v26, %v2931_v26  ;;  %v2401_v44 = vmax.f32 %v2399_v31, %v2400_v60  ;;  %v2408_v10 = vmax.f32 %v2406_v12, %v2407_v51  ;;  %v2414_v52 = vrot.slane %v2413_v5, 2 }
 0x1d3   : > { %v4643_v62 = vmax.f32 %v2394_v11, %v2395_v28  ;;  %v2418_v46 = vsel %vm2277_vm6, %v2033_v55, -inf  ;;  %v2425_v53 = vsel %vm2277_vm6, %v2041_v8, -inf  ;;  %v2432_v0 = vsel %vm2277_vm6, %v2040_v2, -inf  ;;  %v1762_v11 = vpop.f32.mrf.mxu1 }
 0x1d4   : > { %2961 = vst [vmem:[%s4014_s14] sm:$0xf] %v2953_v17  ;;  %v2402_v39 = vrot.slane %v2401_v44, 1  ;;  %v2409_v13 = vrot.slane %v2408_v10, 1  ;;  %v2415_v37 = vmax.f32 %v2413_v5, %v2414_v52  ;;  %v2419_v14 = vrot.slane %v2418_v46, 4 }
 0x1d5   : > { %v2426_v57 = vrot.slane %v2425_v53, 4  ;;  %v2433_v32 = vrot.slane %v2432_v0, 4  ;;  %v2439_v50 = vsel %vm2277_vm6, %v2042_v24, -inf  ;;  %v1752_v48 = vadd.f32 %v4565_v30, %v4599_v61 }
 0x1d6   : > { %v4654_v35 = vmax.f32 %v2401_v44, %v2402_v39  ;;  %v4656_v36 = vmax.f32 %v2408_v10, %v2409_v13  ;;  %v2416_v63 = vrot.slane %v2415_v37, 1  ;;  %v2420_v9 = vmax.f32 %v2418_v46, %v2419_v14 }
 0x1d7   : > { %v2427_v27 = vmax.f32 %v2425_v53, %v2426_v57  ;;  %v2434_v42 = vmax.f32 %v2432_v0, %v2433_v32  ;;  %v2440_v18 = vrot.slane %v2439_v50, 4  ;;  %v1796_v3 = vadd.f32 %v1752_v48, %v4501_v25 }
 0x1d8   : > { %v4659_v31 = vmax.f32 %v2415_v37, %v2416_v63  ;;  %v2421_v12 = vrot.slane %v2420_v9, 2  ;;  %v3619_v30 = vadd.f32 %v4624_v49, %v4618_v33  ;;  %v3622_v61 = vadd.f32 %v3621_v43, %v3620_v7 }
 0x1d9   : > { %v2428_v56 = vrot.slane %v2427_v27, 2  ;;  %v2435_v55 = vrot.slane %v2434_v42, 2  ;;  %v2441_v40 = vmax.f32 %v2439_v50, %v2440_v18  ;;  %v1819_v23 = vadd.f32 %v4532_v1, %v1796_v3 }
 0x1da   : > { %v2422_v2 = vmax.f32 %v2420_v9, %v2421_v12  ;;  %v1755_v16 = vadd.f32 %v4584_v19, %v3619_v30  ;;  %v1760_v60 = vadd.f32 %v3622_v61, %v1759_v15  ;;  %v3625_v51 = vadd.f32 %v3624_v45, %v3623_v21 }
 0x1db   : > { %v2429_v25 = vmax.f32 %v2427_v27, %v2428_v56  ;;  %v2436_v5 = vmax.f32 %v2434_v42, %v2435_v55  ;;  %v2442_v26 = vrot.slane %v2441_v40, 2  ;;  %v1835_v28 = vmax.f32 %v1819_v23, 0.0 }
 0x1dc   : > { %v2423_v8 = vrot.slane %v2422_v2, 1  ;;  %v1797_v24 = vadd.f32 %v1755_v16, %v4505_v6  ;;  %v1798_v33 = vadd.f32 %v1760_v60, %v4511_v22  ;;  %v4667_v49 = vadd.f32 %v3625_v51, %v1762_v11 }
 0x1dd   : > { %v2430_v7 = vrot.slane %v2429_v25, 1  ;;  %v2437_v43 = vrot.slane %v2436_v5, 1  ;;  %v2443_v17 = vmax.f32 %v2441_v40, %v2442_v26  ;;  %v2043_v44 = vcombine.high %v1835_v28, %v1835_v28 }
 0x1de   : > { %v4669_v10 = vmax.f32 %v2422_v2, %v2423_v8  ;;  %v2050_v19 = vrot.slane %v1835_v28, %v4537_v58  ;;  %v1820_v15 = vadd.f32 %v4532_v1, %v1797_v24  ;;  %v1821_v52 = vadd.f32 %v4532_v1, %v1798_v33 }
 0x1df   : > { %v4674_v46 = vmax.f32 %v2429_v25, %v2430_v7  ;;  %v4676_v53 = vmax.f32 %v2436_v5, %v2437_v43  ;;  %v2444_v6 = vrot.slane %v2443_v17, 1  ;;  %v2057_v22 = vrot.slane %v2043_v44, %v4537_v58 }
 0x1e0   : > { %v2058_v0 = vcombine.high %v2050_v19, %v2050_v19  ;;  %v2446_v21 = vsel %vm2277_vm6, %v2050_v19, -inf  ;;  %v1836_v39 = vmax.f32 %v1820_v15, 0.0  ;;  %v4680_v13 = vmax.f32 %v1821_v52, 0.0  ;;  %v4696_v19 = vpop.f32.mrf.mxu0 }
 0x1e1   : > { %v4682_v37 = vmax.f32 %v2443_v17, %v2444_v6  ;;  %v2059_v14 = vcombine.high %v2057_v22, %v2057_v22  ;;  %v2447_v57 = vrot.slane %v2446_v21, 4  ;;  %v2460_v32 = vsel %vm2277_vm6, %v2057_v22, -inf }
 0x1e2   : > { %v2453_v50 = vsel %vm2277_vm6, %v2058_v0, -inf  ;;  %v2461_v48 = vrot.slane %v2460_v32, 4  ;;  %v3391_v63 = vpack.c.bf16 %v1836_v39, %v1835_v28  ;;  %v2060_v9 = vcombine.high %v1836_v39, %v1836_v39 }
 0x1e3   : > { %v2448_v27 = vmax.f32 %v2446_v21, %v2447_v57  ;;  %v2454_v42 = vrot.slane %v2453_v50, 4  ;;  %v2467_v18 = vsel %vm2277_vm6, %v2059_v14, -inf  ;;  %v2067_v3 = vrot.slane %v1836_v39, %v4537_v58 }
 0x1e4   : > { %v2462_v45 = vmax.f32 %v2460_v32, %v2461_v48  ;;  %v2468_v12 = vrot.slane %v2467_v18, 4  ;;  %3415 = vst [vmem:[%s4007_s8 + $0x18] sm:$0xff] %v3391_v63   ;;  %v2074_v30 = vrot.slane %v2060_v9, %v4537_v58  ;;  %v2077_v61 = vcombine.high %v4680_v13, %v4680_v13 }
 0x1e5   : > { %v2449_v56 = vrot.slane %v2448_v27, 2  ;;  %v2455_v55 = vmax.f32 %v2453_v50, %v2454_v42  ;;  %v2075_v40 = vcombine.high %v2067_v3, %v2067_v3  ;;  %v2474_v23 = vsel %vm2277_vm6, %v2067_v3, -inf }
 0x1e6   : > { %v2463_v11 = vrot.slane %v2462_v45, 2  ;;  %v2469_v2 = vmax.f32 %v2467_v18, %v2468_v12  ;;  %v2076_v16 = vcombine.high %v2074_v30, %v2074_v30  ;;  %v2475_v60 = vrot.slane %v2474_v23, 4  ;;  %v4699_v18 = vpop.f32.mrf.mxu0 }
 0x1e7   : > { %v2450_v51 = vmax.f32 %v2448_v27, %v2449_v56  ;;  %v2456_v25 = vrot.slane %v2455_v55, 2  ;;  %v2481_v5 = vsel %vm2277_vm6, %v2075_v40, -inf  ;;  %v2488_v26 = vsel %vm2277_vm6, %v2074_v30, -inf }
 0x1e8   : > { %v2464_v28 = vmax.f32 %v2462_v45, %v2463_v11  ;;  %v2470_v8 = vrot.slane %v2469_v2, 2  ;;  %v2476_v24 = vmax.f32 %v2474_v23, %v2475_v60  ;;  %v2482_v33 = vrot.slane %v2481_v5, 4 }
 0x1e9   : > { %v2451_v7 = vrot.slane %v2450_v51, 1  ;;  %v2457_v43 = vmax.f32 %v2455_v55, %v2456_v25  ;;  %v2489_v17 = vrot.slane %v2488_v26, 4  ;;  %v2495_v44 = vsel %vm2277_vm6, %v2076_v16, -inf }
 0x1ea   : > { %v2465_v15 = vrot.slane %v2464_v28, 1  ;;  %v2471_v52 = vmax.f32 %v2469_v2, %v2470_v8  ;;  %v2477_v6 = vrot.slane %v2476_v24, 2  ;;  %v2483_v22 = vmax.f32 %v2481_v5, %v2482_v33 }
 0x1eb   : > { %v2452_v0 = vmax.f32 %v2450_v51, %v2451_v7  ;;  %v2458_v21 = vrot.slane %v2457_v43, 1  ;;  %v2490_v39 = vmax.f32 %v2488_v26, %v2489_v17  ;;  %v2496_v14 = vrot.slane %v2495_v44, 4  ;;  %v3629_v26 = vpop.f32.mrf.mxu0 }
 0x1ec   : > { %v2466_v57 = vmax.f32 %v2464_v28, %v2465_v15  ;;  %v2472_v32 = vrot.slane %v2471_v52, 1  ;;  %v2478_v50 = vmax.f32 %v2476_v24, %v2477_v6  ;;  %v2484_v48 = vrot.slane %v2483_v22, 2 }
 0x1ed   : > { %v2459_v63 = vmax.f32 %v2457_v43, %v2458_v21  ;;  %v2734_v9 = vmax.f32 %v4643_v62, %v2452_v0  ;;  %v2491_v27 = vrot.slane %v2490_v39, 2  ;;  %v2497_v42 = vmax.f32 %v2495_v44, %v2496_v14  ;;  %v3630_v0 = vpop.f32.mrf.mxu0 }
 0x1ee   : > { %v2473_v3 = vmax.f32 %v2471_v52, %v2472_v32  ;;  %v2736_v45 = vmax.f32 %v4656_v36, %v2466_v57  ;;  %v2479_v12 = vrot.slane %v2478_v50, 1  ;;  %v2485_v30 = vmax.f32 %v2483_v22, %v2484_v48 }
 0x1ef   : > { %v2735_v56 = vmax.f32 %v4654_v35, %v2459_v63  ;;  %v3349_v55 = vpack.c.bf16 %v2734_v9, %v2734_v9  ;;  %v2492_v40 = vmax.f32 %v2490_v39, %v2491_v27  ;;  %v2498_v23 = vrot.slane %v2497_v42, 2 }
 0x1f0   : > { %v2737_v11 = vmax.f32 %v4659_v31, %v2473_v3  ;;  %v3351_v2 = vpack.c.bf16 %v2736_v45, %v2736_v45  ;;  %v2480_v16 = vmax.f32 %v2478_v50, %v2479_v12  ;;  %v2486_v60 = vrot.slane %v2485_v30, 1  ;;  %v3632_v12 = vpop.f32.mrf.mxu0 }
 0x1f1   : > { %v3350_v62 = vpack.c.bf16 %v2735_v56, %v2735_v56  ;;  %v2894_v51 = vunpack.c.l.b16 %v3349_v55  ;;  %v2493_v25 = vrot.slane %v2492_v40, 1  ;;  %v2499_v5 = vmax.f32 %v2497_v42, %v2498_v23 }
 0x1f2   : > { %v3352_v28 = vpack.c.bf16 %v2737_v11, %v2737_v11  ;;  %v2896_v8 = vunpack.c.l.b16 %v3351_v2  ;;  %v2487_v36 = vmax.f32 %v2485_v30, %v2486_v60  ;;  %v2738_v24 = vmax.f32 %v4669_v10, %v2480_v16 }
 0x1f3   : > { %v2895_v33 = vunpack.c.l.b16 %v3350_v62  ;;  %v2494_v35 = vmax.f32 %v2492_v40, %v2493_v25  ;;  %v2500_v7 = vrot.slane %v2499_v5, 1  ;;  %v2084_v43 = vrot.slane %v4680_v13, %v4537_v58 }
 0x1f4   : > { %v2897_v31 = vunpack.c.l.b16 %v3352_v28  ;;  %v2739_v17 = vmax.f32 %v4674_v46, %v2487_v36  ;;  %v3353_v44 = vpack.c.bf16 %v2738_v24, %v2738_v24  ;;  %v2091_v15 = vrot.slane %v2077_v61, %v4537_v58  ;;  %v3633_v36 = vpop.f32.mrf.mxu0  ;;  %v4729_v24 = vpop.f32.mrf.mxu1 }
 0x1f5   : > { %v2932_v52 = vsel %vm2918_vm7, %v2895_v33, %v2894_v51  ;;  %v2501_v6 = vmax.f32 %v2499_v5, %v2500_v7  ;;  %v2740_v10 = vmax.f32 %v4676_v53, %v2494_v35  ;;  %v2092_v22 = vcombine.high %v2084_v43, %v2084_v43 }
 0x1f6   : > { %v2933_v21 = vsel %vm2920_vm8, %v2896_v8, %v2932_v52  ;;  %v3354_v39 = vpack.c.bf16 %v2739_v17, %v2739_v17  ;;  %v2898_v14 = vunpack.c.l.b16 %v3353_v44  ;;  %v2093_v57 = vcombine.high %v2091_v15, %v2091_v15 }
 0x1f7   : > { %v2741_v46 = vmax.f32 %v4682_v37, %v2501_v6  ;;  %v3355_v32 = vpack.c.bf16 %v2740_v10, %v2740_v10  ;;  %v2934_v50 = vsel %vm2922_vm9, %v2897_v31, %v2933_v21  ;;  %v2502_v48 = vsel %vm2277_vm6, %v2084_v43, -inf }
 0x1f8   : > { %v2899_v61 = vunpack.c.l.b16 %v3354_v39  ;;  %v2935_v63 = vsel %vm2924_vm10, %v2898_v14, %v2934_v50  ;;  %v2503_v9 = vrot.slane %v2502_v48, 4  ;;  %v2509_v53 = vsel %vm2277_vm6, %v2092_v22, -inf  ;;  %v1775_v22 = vpop.f32.mrf.mxu1 }
 0x1f9   : > { %v3356_v27 = vpack.c.bf16 %v2741_v46, %v2741_v46  ;;  %v2900_v42 = vunpack.c.l.b16 %v3355_v32  ;;  %v2510_v3 = vrot.slane %v2509_v53, 4  ;;  %v2516_v45 = vsel %vm2277_vm6, %v2091_v15, -inf }
 0x1fa   : > { %v2936_v30 = vsel %vm2926_vm11, %v2899_v61, %v2935_v63  ;;  %v2504_v37 = vmax.f32 %v2502_v48, %v2503_v9  ;;  %v2517_v56 = vrot.slane %v2516_v45, 4  ;;  %v2523_v55 = vsel %vm2277_vm6, %v2093_v57, -inf }
 0x1fb   : > { %v2901_v40 = vunpack.c.l.b16 %v3356_v27  ;;  %v2937_v23 = vsel %vm2928_vm12, %v2900_v42, %v2936_v30  ;;  %v2511_v11 = vmax.f32 %v2509_v53, %v2510_v3  ;;  %v2524_v2 = vrot.slane %v2523_v55, 4 }
 0x1fc   : > { %v2505_v16 = vrot.slane %v2504_v37, 2  ;;  %v2518_v60 = vmax.f32 %v2516_v45, %v2517_v56  ;;  %v1799_v62 = vadd.f32 %v4667_v49, %v4515_v38  ;;  %v3628_v51 = vadd.f32 %v4699_v18, %v4696_v19 }
 0x1fd   : > { %v2938_v25 = vsel %vm2930_vm13, %v2901_v40, %v2937_v23  ;;  %v2512_v5 = vrot.slane %v2511_v11, 2  ;;  %v2525_v28 = vmax.f32 %v2523_v55, %v2524_v2  ;;  %v3631_v8 = vadd.f32 %v3630_v0, %v3629_v26 }
 0x1fe   : > { %v2954_v33 = vpack.c.b16 %v2938_v25, %v2938_v25  ;;  %v2506_v35 = vmax.f32 %v2504_v37, %v2505_v16  ;;  %v2519_v7 = vrot.slane %v2518_v60, 2  ;;  %v1822_v43 = vadd.f32 %v4532_v1, %v1799_v62 }
 0x1ff   : > { %v2513_v31 = vmax.f32 %v2511_v11, %v2512_v5  ;;  %v2526_v17 = vrot.slane %v2525_v28, 2  ;;  %v1768_v38 = vadd.f32 %v4636_v54, %v3628_v51  ;;  %v1771_v49 = vadd.f32 %v4652_v34, %v3631_v8 }
 0x200   : > { %2962 = vst [vmem:[%s4014_s14 + $0x4] sm:$0xf] %v2954_v33  ;;  %v2507_v19 = vrot.slane %v2506_v35, 1  ;;  %v2520_v18 = vmax.f32 %v2518_v60, %v2519_v7  ;;  %v1838_v44 = vmax.f32 %v1822_v43, 0.0  ;;  %v3634_v26 = vadd.f32 %v3633_v36, %v3632_v12 }
 0x201   : > { %v2514_v15 = vrot.slane %v2513_v31, 1  ;;  %v2527_v52 = vmax.f32 %v2525_v28, %v2526_v17  ;;  %v1800_v6 = vadd.f32 %v1768_v38, %v4509_v20  ;;  %v1801_v10 = vadd.f32 %v1771_v49, %v4513_v29 }
 0x202   : > { %v4737_v0 = vmax.f32 %v2506_v35, %v2507_v19  ;;  %v2521_v21 = vrot.slane %v2520_v18, 1  ;;  %v3396_v54 = vpack.c.bf16 %v1838_v44, %v4680_v13  ;;  %v2094_v39 = vcombine.high %v1838_v44, %v1838_v44 }
 0x203   : > { %v4740_v34 = vmax.f32 %v2513_v31, %v2514_v15  ;;  %v2528_v14 = vrot.slane %v2527_v52, 1  ;;  %v2101_v57 = vrot.slane %v1838_v44, %v4537_v58  ;;  %v1823_v46 = vadd.f32 %v4532_v1, %v1800_v6 }
 0x204   : > { %v4744_v32 = vmax.f32 %v2520_v18, %v2521_v21  ;;  %3416 = vst [vmem:[%s4007_s8 + $0x20] sm:$0xff] %v3396_v54   ;;  %v2108_v20 = vrot.slane %v2094_v39, %v4537_v58  ;;  %v1824_v29 = vadd.f32 %v4532_v1, %v1801_v10  ;;  %v4749_v50 = vadd.f32 %v3634_v26, %v1775_v22 }
 0x205   : > { %v4751_v48 = vmax.f32 %v2527_v52, %v2528_v14  ;;  %v2109_v13 = vcombine.high %v2101_v57, %v2101_v57  ;;  %v2530_v61 = vsel %vm2277_vm6, %v2101_v57, -inf  ;;  %v1839_v63 = vmax.f32 %v1823_v46, 0.0 }
 0x206   : > { %v2110_v9 = vcombine.high %v2108_v20, %v2108_v20  ;;  %v2531_v53 = vrot.slane %v2530_v61, 4  ;;  %v2544_v27 = vsel %vm2277_vm6, %v2108_v20, -inf  ;;  %v1840_v42 = vmax.f32 %v1824_v29, 0.0 }
 0x207   : > { %v2537_v3 = vsel %vm2277_vm6, %v2109_v13, -inf  ;;  %v2545_v45 = vrot.slane %v2544_v27, 4  ;;  %v2111_v12 = vcombine.high %v1839_v63, %v1839_v63  ;;  %v2118_v1 = vrot.slane %v1839_v63, %v4537_v58 }
 0x208   : > { %v2532_v30 = vmax.f32 %v2530_v61, %v2531_v53  ;;  %v2538_v37 = vrot.slane %v2537_v3, 4  ;;  %v2551_v56 = vsel %vm2277_vm6, %v2110_v9, -inf  ;;  %v3401_v55 = vpack.c.bf16 %v1840_v42, %v1839_v63 }
 0x209   : > { %v2546_v40 = vmax.f32 %v2544_v27, %v2545_v45  ;;  %v2552_v23 = vrot.slane %v2551_v56, 4  ;;  %v2125_v11 = vrot.slane %v2111_v12, %v4537_v58  ;;  %v2126_v2 = vcombine.high %v2118_v1, %v2118_v1 }
 0x20a   : > { %v2533_v16 = vrot.slane %v2532_v30, 2  ;;  %v2539_v60 = vmax.f32 %v2537_v3, %v2538_v37  ;;  %v2558_v62 = vsel %vm2277_vm6, %v2118_v1, -inf  ;;  %3417 = vst [vmem:[%s4007_s8 + $0x28] sm:$0xff] %v3401_v55   ;;  %v2128_v51 = vcombine.high %v1840_v42, %v1840_v42  ;;  %v3635_v3 = vpop.f32.mrf.mxu0 }
 0x20b   : > { %v2547_v25 = vrot.slane %v2546_v40, 2  ;;  %v2553_v5 = vmax.f32 %v2551_v56, %v2552_v23  ;;  %v2127_v28 = vcombine.high %v2125_v11, %v2125_v11  ;;  %v2559_v8 = vrot.slane %v2558_v62, 4 }
 0x20c   : > { %v2534_v36 = vmax.f32 %v2532_v30, %v2533_v16  ;;  %v2540_v33 = vrot.slane %v2539_v60, 2  ;;  %v2565_v35 = vsel %vm2277_vm6, %v2126_v2, -inf  ;;  %v2572_v7 = vsel %vm2277_vm6, %v2125_v11, -inf }
 0x20d   : > { %v2548_v43 = vmax.f32 %v2546_v40, %v2547_v25  ;;  %v2554_v31 = vrot.slane %v2553_v5, 2  ;;  %v2560_v17 = vmax.f32 %v2558_v62, %v2559_v8  ;;  %v2566_v38 = vrot.slane %v2565_v35, 4  ;;  %v3636_v25 = vpop.f32.mrf.mxu0 }
 0x20e   : > { %v2535_v49 = vrot.slane %v2534_v36, 1  ;;  %v2541_v19 = vmax.f32 %v2539_v60, %v2540_v33  ;;  %v2573_v18 = vrot.slane %v2572_v7, 4  ;;  %v2579_v44 = vsel %vm2277_vm6, %v2127_v28, -inf }
 0x20f   : > { %v2549_v26 = vrot.slane %v2548_v43, 1  ;;  %v2555_v15 = vmax.f32 %v2553_v5, %v2554_v31  ;;  %v2561_v52 = vrot.slane %v2560_v17, 2  ;;  %v2567_v6 = vmax.f32 %v2565_v35, %v2566_v38 }
 0x210   : > { %v4764_v10 = vmax.f32 %v2534_v36, %v2535_v49  ;;  %v2542_v22 = vrot.slane %v2541_v19, 1  ;;  %v2574_v21 = vmax.f32 %v2572_v7, %v2573_v18  ;;  %v2580_v54 = vrot.slane %v2579_v44, 4 }
 0x211   : > { %v4766_v39 = vmax.f32 %v2548_v43, %v2549_v26  ;;  %v2556_v14 = vrot.slane %v2555_v15, 1  ;;  %v2562_v57 = vmax.f32 %v2560_v17, %v2561_v52  ;;  %v2568_v46 = vrot.slane %v2567_v6, 2  ;;  %v3638_v26 = vpop.f32.mrf.mxu0 }
 0x212   : > { %v4768_v20 = vmax.f32 %v2541_v19, %v2542_v22  ;;  %v2575_v29 = vrot.slane %v2574_v21, 2  ;;  %v2581_v13 = vmax.f32 %v2579_v44, %v2580_v54  ;;  %v2135_v61 = vrot.slane %v1840_v42, %v4537_v58 }
 0x213   : > { %v4771_v63 = vmax.f32 %v2555_v15, %v2556_v14  ;;  %v2563_v9 = vrot.slane %v2562_v57, 1  ;;  %v2569_v53 = vmax.f32 %v2567_v6, %v2568_v46  ;;  %v2142_v27 = vrot.slane %v2128_v51, %v4537_v58 }
 0x214   : > { %v2576_v45 = vmax.f32 %v2574_v21, %v2575_v29  ;;  %v2582_v12 = vrot.slane %v2581_v13, 2  ;;  %v2143_v1 = vcombine.high %v2135_v61, %v2135_v61  ;;  %v2586_v30 = vsel %vm2277_vm6, %v2135_v61, -inf }
 0x215   : > { %v2564_v37 = vmax.f32 %v2562_v57, %v2563_v9  ;;  %v2570_v56 = vrot.slane %v2569_v53, 1  ;;  %v2144_v55 = vcombine.high %v2142_v27, %v2142_v27  ;;  %v2587_v40 = vrot.slane %v2586_v30, 4  ;;  %v4784_v57 = vpop.f32.mrf.mxu1 }
 0x216   : > { %v2577_v23 = vrot.slane %v2576_v45, 1  ;;  %v2583_v11 = vmax.f32 %v2581_v13, %v2582_v12  ;;  %v2593_v42 = vsel %vm2277_vm6, %v2143_v1, -inf  ;;  %v2600_v2 = vsel %vm2277_vm6, %v2142_v27, -inf }
 0x217   : > { %v2571_v16 = vmax.f32 %v2569_v53, %v2570_v56  ;;  %v2742_v60 = vmax.f32 %v4737_v0, %v2564_v37  ;;  %v2588_v62 = vmax.f32 %v2586_v30, %v2587_v40  ;;  %v2594_v51 = vrot.slane %v2593_v42, 4  ;;  %v1778_v40 = vpop.f32.mrf.mxu1 }
 0x218   : > { %v2578_v5 = vmax.f32 %v2576_v45, %v2577_v23  ;;  %v2584_v28 = vrot.slane %v2583_v11, 1  ;;  %v2601_v8 = vrot.slane %v2600_v2, 4  ;;  %v2607_v36 = vsel %vm2277_vm6, %v2144_v55, -inf  ;;  %v3639_v45 = vpop.f32.mrf.mxu0 }
 0x219   : > { %v2743_v33 = vmax.f32 %v4740_v34, %v2571_v16  ;;  %v3357_v35 = vpack.c.bf16 %v2742_v60, %v2742_v60  ;;  %v2589_v7 = vrot.slane %v2588_v62, 2  ;;  %v2595_v43 = vmax.f32 %v2593_v42, %v2594_v51 }
 0x21a   : > { %v2585_v31 = vmax.f32 %v2583_v11, %v2584_v28  ;;  %v2744_v17 = vmax.f32 %v4744_v32, %v2578_v5  ;;  %v2602_v38 = vmax.f32 %v2600_v2, %v2601_v8  ;;  %v2608_v49 = vrot.slane %v2607_v36, 4 }
 0x21b   : > { %v3358_v19 = vpack.c.bf16 %v2743_v33, %v2743_v33  ;;  %v2902_v0 = vunpack.c.l.b16 %v3357_v35  ;;  %v2590_v18 = vmax.f32 %v2588_v62, %v2589_v7  ;;  %v2596_v44 = vrot.slane %v2595_v43, 2 }
 0x21c   : > { %v2745_v15 = vmax.f32 %v4751_v48, %v2585_v31  ;;  %v3359_v52 = vpack.c.bf16 %v2744_v17, %v2744_v17  ;;  %v2603_v6 = vrot.slane %v2602_v38, 2  ;;  %v2609_v22 = vmax.f32 %v2607_v36, %v2608_v49  ;;  %v4790_v48 = vld [vmem:[%s4867_s2] ss:$0 sm:$0xff] }
 0x21d   : > { %v2903_v21 = vunpack.c.l.b16 %v3358_v19  ;;  %v2591_v34 = vrot.slane %v2590_v18, 1  ;;  %v2597_v54 = vmax.f32 %v2595_v43, %v2596_v44  ;;  %v1802_v14 = vadd.f32 %v4749_v50, %v4517_v59 }
 0x21e   : > { %v3360_v32 = vpack.c.bf16 %v2745_v15, %v2745_v15  ;;  %v2904_v46 = vunpack.c.l.b16 %v3359_v52  ;;  %v2604_v29 = vmax.f32 %v2602_v38, %v2603_v6  ;;  %v2610_v13 = vrot.slane %v2609_v22, 2 }
 0x21f   : > { %v2939_v61 = vsel %vm2918_vm7, %v2903_v21, %v2902_v0  ;;  %v2592_v9 = vmax.f32 %v2590_v18, %v2591_v34  ;;  %v2598_v53 = vrot.slane %v2597_v54, 1  ;;  %v1825_v27 = vadd.f32 %v4790_v48, %v1802_v14 }
 0x220   : > { %v2905_v12 = vunpack.c.l.b16 %v3360_v32  ;;  %v2940_v59 = vsel %vm2920_vm8, %v2904_v46, %v2939_v61  ;;  %v2605_v50 = vrot.slane %v2604_v29, 1  ;;  %v2611_v1 = vmax.f32 %v2609_v22, %v2610_v13 }
 0x221   : > { %v2599_v30 = vmax.f32 %v2597_v54, %v2598_v53  ;;  %v2746_v37 = vmax.f32 %v4764_v10, %v2592_v9  ;;  %v1841_v56 = vmax.f32 %v1825_v27, 0.0  ;;  %v3637_v55 = vadd.f32 %v3636_v25, %v3635_v3  ;;  %v3641_v54 = vpop.f32.mrf.mxu0 }
 0x222   : > { %v2606_v23 = vmax.f32 %v2604_v29, %v2605_v50  ;;  %v2612_v11 = vrot.slane %v2611_v1, 1  ;;  %v2941_v42 = vsel %vm2922_vm9, %v2905_v12, %v2940_v59  ;;  %v3640_v2 = vadd.f32 %v3639_v45, %v3638_v26 }
 0x223   : > { %v2747_v16 = vmax.f32 %v4768_v20, %v2599_v30  ;;  %v3361_v60 = vpack.c.bf16 %v2746_v37, %v2746_v37  ;;  %v2145_v62 = vcombine.high %v1841_v56, %v1841_v56  ;;  %v2152_v51 = vrot.slane %v1841_v56, %v4537_v58  ;;  %v3642_v59 = vpop.f32.mrf.mxu0 }
 0x224   : > { %v2613_v5 = vmax.f32 %v2611_v1, %v2612_v11  ;;  %v2748_v28 = vmax.f32 %v4766_v39, %v2606_v23  ;;  %v1779_v8 = vadd.f32 %v3637_v55, %v1778_v40  ;;  %v1784_v10 = vadd.f32 %v4729_v24, %v3640_v2 }
 0x225   : > { %v3362_v36 = vpack.c.bf16 %v2747_v16, %v2747_v16  ;;  %v2906_v3 = vunpack.c.l.b16 %v3361_v60  ;;  %v2159_v25 = vrot.slane %v2145_v62, %v4537_v58  ;;  %v2160_v33 = vcombine.high %v2152_v51, %v2152_v51 }
 0x226   : > { %v2749_v35 = vmax.f32 %v4771_v63, %v2613_v5  ;;  %v3363_v7 = vpack.c.bf16 %v2748_v28, %v2748_v28  ;;  %v2614_v20 = vsel %vm2277_vm6, %v2152_v51, -inf  ;;  %v1803_v43 = vadd.f32 %v1779_v8, %v4521_v4 }
 0x227   : > { %v2907_v31 = vunpack.c.l.b16 %v3362_v36  ;;  %v2942_v17 = vsel %vm2924_vm10, %v2906_v3, %v2941_v42  ;;  %v2161_v38 = vcombine.high %v2159_v25, %v2159_v25  ;;  %v2615_v39 = vrot.slane %v2614_v20, 4 }
 0x228   : > { %v3364_v49 = vpack.c.bf16 %v2749_v35, %v2749_v35  ;;  %v2908_v19 = vunpack.c.l.b16 %v3363_v7  ;;  %v2621_v24 = vsel %vm2277_vm6, %v2160_v33, -inf  ;;  %v2628_v0 = vsel %vm2277_vm6, %v2159_v25, -inf }
 0x229   : > { %v2943_v18 = vsel %vm2926_vm11, %v2907_v31, %v2942_v17  ;;  %v2616_v44 = vmax.f32 %v2614_v20, %v2615_v39  ;;  %v2622_v63 = vrot.slane %v2621_v24, 4  ;;  %v2629_v26 = vrot.slane %v2628_v0, 4 }
 0x22a   : > { %v2909_v15 = vunpack.c.l.b16 %v3364_v49  ;;  %v2944_v4 = vsel %vm2928_vm12, %v2908_v19, %v2943_v18  ;;  %v2635_v52 = vsel %vm2277_vm6, %v2161_v38, -inf  ;;  %v1826_v6 = vadd.f32 %v4790_v48, %v1803_v43 }
 0x22b   : > { %v2617_v22 = vrot.slane %v2616_v44, 2  ;;  %v2623_v21 = vmax.f32 %v2621_v24, %v2622_v63  ;;  %v2636_v34 = vrot.slane %v2635_v52, 4  ;;  %v2630_v32 = vmax.f32 %v2628_v0, %v2629_v26 }
 0x22c   : > { %v2945_v14 = vsel %vm2930_vm13, %v2909_v15, %v2944_v4  ;;  %v1842_v46 = vmax.f32 %v1826_v6, 0.0  ;;  %v1804_v29 = vadd.f32 %v1784_v10, %v4519_v41  ;;  %v3643_v40 = vadd.f32 %v3642_v59, %v3641_v54 }
 0x22d   : > { %v2955_v13 = vpack.c.b16 %v2945_v14, %v2945_v14  ;;  %v2618_v27 = vmax.f32 %v2616_v44, %v2617_v22  ;;  %v2624_v45 = vrot.slane %v2623_v21, 2  ;;  %v2637_v12 = vmax.f32 %v2635_v52, %v2636_v34 }
 0x22e   : > { %v3406_v61 = vpack.c.bf16 %v1842_v46, %v1841_v56  ;;  %v2162_v9 = vcombine.high %v1842_v46, %v1842_v46  ;;  %v2169_v53 = vrot.slane %v1842_v46, %v4537_v58  ;;  %v2631_v50 = vrot.slane %v2630_v32, 2 }
 0x22f   : > { %2963 = vst [vmem:[%s4014_s14 + $0x8] sm:$0xf] %v2955_v13  ;;  %v1827_v37 = vadd.f32 %v4790_v48, %v1804_v29  ;;  %v2619_v56 = vrot.slane %v2618_v27, 1  ;;  %v2625_v23 = vmax.f32 %v2623_v21, %v2624_v45  ;;  %v2638_v11 = vrot.slane %v2637_v12, 2 }
 0x230   : > { %3418 = vst [vmem:[%s4007_s8 + $0x30] sm:$0xff] %v3406_v61   ;;  %v2177_v1 = vcombine.high %v2169_v53, %v2169_v53  ;;  %v2642_v30 = vsel %vm2277_vm6, %v2169_v53, -inf  ;;  %v2176_v55 = vrot.slane %v2162_v9, %v4537_v58  ;;  %v2632_v42 = vmax.f32 %v2630_v32, %v2631_v50 }
 0x231   : > { %v2643_v41 = vrot.slane %v2642_v30, 4  ;;  %v1843_v16 = vmax.f32 %v1827_v37, 0.0  ;;  %v1787_v8 = vadd.f32 %v4784_v57, %v3643_v40  ;;  %v2620_v10 = vmax.f32 %v2618_v27, %v2619_v56 }
 0x232   : > { %v2649_v2 = vsel %vm2277_vm6, %v2177_v1, -inf  ;;  %v2178_v60 = vcombine.high %v2176_v55, %v2176_v55  ;;  %v2656_v51 = vsel %vm2277_vm6, %v2176_v55, -inf  ;;  %v2626_v36 = vrot.slane %v2625_v23, 1 }
 0x233   : > { %v2644_v62 = vmax.f32 %v2642_v30, %v2643_v41  ;;  %v2179_v5 = vcombine.high %v1843_v16, %v1843_v16  ;;  %v2186_v28 = vrot.slane %v1843_v16, %v4537_v58  ;;  %v2639_v3 = vmax.f32 %v2637_v12, %v2638_v11 }
 0x234   : > { %v2650_v25 = vrot.slane %v2649_v2, 4  ;;  %v2633_v33 = vrot.slane %v2632_v42, 1  ;;  %v2657_v31 = vrot.slane %v2656_v51, 4  ;;  %v2663_v17 = vsel %vm2277_vm6, %v2178_v60, -inf }
 0x235   : > { %v2193_v35 = vrot.slane %v2179_v5, %v4537_v58  ;;  %v2194_v7 = vcombine.high %v2186_v28, %v2186_v28  ;;  %v2670_v20 = vsel %vm2277_vm6, %v2186_v28, -inf  ;;  %v2645_v43 = vrot.slane %v2644_v62, 2 }
 0x236   : > { %v2671_v38 = vrot.slane %v2670_v20, 4  ;;  %v1805_v19 = vadd.f32 %v1787_v8, %v4525_v47  ;;  %v2627_v24 = vmax.f32 %v2625_v23, %v2626_v36  ;;  %v2640_v0 = vrot.slane %v2639_v3, 1 }
 0x237   : > { %v2195_v39 = vcombine.high %v2193_v35, %v2193_v35  ;;  %v2677_v49 = vsel %vm2277_vm6, %v2194_v7, -inf  ;;  %v2684_v57 = vsel %vm2277_vm6, %v2193_v35, -inf  ;;  %v2651_v18 = vmax.f32 %v2649_v2, %v2650_v25 }
 0x238   : > { %v2672_v44 = vmax.f32 %v2670_v20, %v2671_v38  ;;  %v2664_v63 = vrot.slane %v2663_v17, 4  ;;  %v2678_v26 = vrot.slane %v2677_v49, 4  ;;  %v2685_v15 = vrot.slane %v2684_v57, 4 }
 0x239   : > { %v2691_v4 = vsel %vm2277_vm6, %v2195_v39, -inf  ;;  %v4830_v52 = vmax.f32 %v2644_v62, %v2645_v43  ;;  %v2658_v6 = vmax.f32 %v2656_v51, %v2657_v31  ;;  %v2634_v34 = vmax.f32 %v2632_v42, %v2633_v33 }
 0x23a   : > { %v2673_v22 = vrot.slane %v2672_v44, 2  ;;  %v2692_v21 = vrot.slane %v2691_v4, 4  ;;  %v2679_v54 = vmax.f32 %v2677_v49, %v2678_v26  ;;  %v2686_v14 = vmax.f32 %v2684_v57, %v2685_v15 }
 0x23b   : > { %v1828_v32 = vadd.f32 %v4790_v48, %v1805_v19  ;;  %v2641_v47 = vmax.f32 %v2639_v3, %v2640_v0  ;;  %v2652_v46 = vrot.slane %v2651_v18, 2  ;;  %v2665_v61 = vmax.f32 %v2663_v17, %v2664_v63 }
 0x23c   : > { %v2674_v29 = vmax.f32 %v2672_v44, %v2673_v22  ;;  %v2693_v13 = vmax.f32 %v2691_v4, %v2692_v21  ;;  %v2680_v9 = vrot.slane %v2679_v54, 2  ;;  %v2687_v53 = vrot.slane %v2686_v14, 2 }
 0x23d   : > { %v1844_v27 = vmax.f32 %v1828_v32, 0.0  ;;  %v2647_v45 = vrot.slane %v4830_v52, 1  ;;  %v2659_v12 = vrot.slane %v2658_v6, 2  ;;  %v2653_v41 = vmax.f32 %v2651_v18, %v2652_v46 }
 0x23e   : > { %v2675_v59 = vrot.slane %v2674_v29, 1  ;;  %v2694_v50 = vrot.slane %v2693_v13, 2  ;;  %v2681_v1 = vmax.f32 %v2679_v54, %v2680_v9  ;;  %v2688_v30 = vmax.f32 %v2686_v14, %v2687_v53 }
 0x23f   : > { %v3411_v37 = vpack.c.bf16 %v1844_v27, %v1843_v16  ;;  %v2196_v55 = vcombine.high %v1844_v27, %v1844_v27  ;;  %v2203_v56 = vrot.slane %v1844_v27, %v4537_v58  ;;  %v2666_v23 = vrot.slane %v2665_v61, 2 }
 0x240   : > { %v2676_v48 = vmax.f32 %v2674_v29, %v2675_v59  ;;  %v2695_v40 = vmax.f32 %v2693_v13, %v2694_v50  ;;  %v2682_v11 = vrot.slane %v2681_v1, 1  ;;  %v2689_v42 = vrot.slane %v2688_v30, 1 }
 0x241   : > { %3419 = vst [vmem:[%s4007_s8 + $0x38] sm:$0xff] %v3411_v37   ;;  %v2210_v2 = vrot.slane %v2196_v55, %v4537_v58  ;;  %v2211_v51 = vcombine.high %v2203_v56, %v2203_v56  ;;  %v2698_v5 = vsel %vm2277_vm6, %v2203_v56, -inf  ;;  %v2660_v58 = vmax.f32 %v2658_v6, %v2659_v12 }
 0x242   : > { %v2696_v60 = vrot.slane %v2695_v40, 1  ;;  %v2750_v62 = vmax.f32 %v2620_v10, %v2676_v48  ;;  %v2683_v28 = vmax.f32 %v2681_v1, %v2682_v11  ;;  %v2690_v8 = vmax.f32 %v2688_v30, %v2689_v42 }
 0x243   : > { %v2212_v16 = vcombine.high %v2210_v2, %v2210_v2  ;;  %v2699_v36 = vrot.slane %v2698_v5, 4  ;;  %v2705_v33 = vsel %vm2277_vm6, %v2211_v51, -inf  ;;  %v2712_v35 = vsel %vm2277_vm6, %v2210_v2, -inf }
 0x244   : > { %v2697_v3 = vmax.f32 %v2695_v40, %v2696_v60  ;;  %v3365_v25 = vpack.c.bf16 %v2750_v62, %v2750_v62  ;;  %v2751_v7 = vmax.f32 %v2627_v24, %v2683_v28  ;;  %v2752_v20 = vmax.f32 %v2634_v34, %v2690_v8 }
 0x245   : > { %v2700_v43 = vmax.f32 %v2698_v5, %v2699_v36  ;;  %v2706_v31 = vrot.slane %v2705_v33, 4  ;;  %v2713_v10 = vrot.slane %v2712_v35, 4  ;;  %v2719_v38 = vsel %vm2277_vm6, %v2212_v16, -inf }
 0x246   : > { %v2753_v17 = vmax.f32 %v2641_v47, %v2697_v3  ;;  %v3366_v39 = vpack.c.bf16 %v2751_v7, %v2751_v7  ;;  %v3367_v49 = vpack.c.bf16 %v2752_v20, %v2752_v20  ;;  %v2910_v18 = vunpack.c.l.b16 %v3365_v25 }
 0x247   : > { %v2701_v57 = vrot.slane %v2700_v43, 2  ;;  %v2707_v19 = vmax.f32 %v2705_v33, %v2706_v31  ;;  %v2714_v44 = vmax.f32 %v2712_v35, %v2713_v10  ;;  %v2720_v63 = vrot.slane %v2719_v38, 4 }
 0x248   : > { %v3368_v0 = vpack.c.bf16 %v2753_v17, %v2753_v17  ;;  %v2911_v26 = vunpack.c.l.b16 %v3366_v39  ;;  %v2912_v15 = vunpack.c.l.b16 %v3367_v49  ;;  %v2667_v22 = vmax.f32 %v2665_v61, %v2666_v23 }
 0x249   : > { %v2702_v4 = vmax.f32 %v2700_v43, %v2701_v57  ;;  %v2708_v24 = vrot.slane %v2707_v19, 2  ;;  %v2715_v34 = vrot.slane %v2714_v44, 2  ;;  %v2721_v6 = vmax.f32 %v2719_v38, %v2720_v63 }
 0x24a   : > { %v2913_v21 = vunpack.c.l.b16 %v3368_v0  ;;  %v2654_v54 = vrot.slane %v2653_v41, 1  ;;  %v2946_v14 = vsel %vm2918_vm7, %v2911_v26, %v2910_v18  ;;  %v2661_v46 = vrot.slane %v2660_v58, 1 }
 0x24b   : > { %v2703_v32 = vrot.slane %v2702_v4, 1  ;;  %v2709_v47 = vmax.f32 %v2707_v19, %v2708_v24  ;;  %v2947_v29 = vsel %vm2920_vm8, %v2912_v15, %v2946_v14  ;;  %v2716_v13 = vmax.f32 %v2714_v44, %v2715_v34 }
 0x24c   : > { %v2722_v9 = vrot.slane %v2721_v6, 2  ;;  %v2648_v53 = vmax.f32 %v4830_v52, %v2647_v45  ;;  %v2948_v59 = vsel %vm2922_vm9, %v2913_v21, %v2947_v29  ;;  %v2668_v61 = vrot.slane %v2667_v22, 1 }
 0x24d   : > { %v2704_v27 = vmax.f32 %v2702_v4, %v2703_v32  ;;  %v2710_v12 = vrot.slane %v2709_v47, 1  ;;  %v2717_v50 = vrot.slane %v2716_v13, 1  ;;  %v2655_v30 = vmax.f32 %v2653_v41, %v2654_v54 }
 0x24e   : > { %v2723_v1 = vmax.f32 %v2721_v6, %v2722_v9  ;;  %v2662_v48 = vmax.f32 %v2660_v58, %v2661_v46  ;;  %v2669_v42 = vmax.f32 %v2667_v22, %v2668_v61 }
 0x24f   : > { %v2711_v37 = vmax.f32 %v2709_v47, %v2710_v12  ;;  %v2754_v55 = vmax.f32 %v2648_v53, %v2704_v27  ;;  %v2718_v40 = vmax.f32 %v2716_v13, %v2717_v50 }
 0x250   : > { %v2724_v56 = vrot.slane %v2723_v1, 1 }
 0x251   : > { %v2755_v23 = vmax.f32 %v2655_v30, %v2711_v37  ;;  %v3369_v11 = vpack.c.bf16 %v2754_v55, %v2754_v55  ;;  %v2756_v60 = vmax.f32 %v2662_v48, %v2718_v40 }
 0x252   : > { %v2725_v2 = vmax.f32 %v2723_v1, %v2724_v56 }
 0x253   : > { %v3370_v52 = vpack.c.bf16 %v2755_v23, %v2755_v23  ;;  %v2914_v45 = vunpack.c.l.b16 %v3369_v11  ;;  %v3371_v51 = vpack.c.bf16 %v2756_v60, %v2756_v60 }
 0x254   : > { %v2757_v62 = vmax.f32 %v2669_v42, %v2725_v2 }
 0x255   : > { %v2915_v5 = vunpack.c.l.b16 %v3370_v52  ;;  %v2949_v28 = vsel %vm2924_vm10, %v2914_v45, %v2948_v59  ;;  %v2916_v41 = vunpack.c.l.b16 %v3371_v51 }
 0x256   : > { %v3372_v8 = vpack.c.bf16 %v2757_v62, %v2757_v62 }
 0x257   : > { %v2950_v16 = vsel %vm2926_vm11, %v2915_v5, %v2949_v28 }
 0x258   : > { %v2917_v36 = vunpack.c.l.b16 %v3372_v8  ;;  %v2951_v3 = vsel %vm2928_vm12, %v2916_v41, %v2950_v16 }
 0x25a   : > { %v2952_v25 = vsel %vm2930_vm13, %v2917_v36, %v2951_v3 }
 0x25b   : > { %v2956_v33 = vpack.c.b16 %v2952_v25, %v2952_v25 }
 0x25d   : > { %2964 = vst [vmem:[%s4014_s14 + $0xc] sm:$0xf] %v2956_v33 }
 0x25e PF: > { %s15_s19 = sadd.s32 1, %s3936_s19   ;;  %s4874_s15 = smov %s3928_s17 }
 0x25f   : > { %p12_p3 = scmp.ge.s32.totalorder %s15_s19, 6   ;;  %s4875_s16 = smov %s3932_s18 }
 0x260   : > { %s4876_s17 = smov %s4879_s20  ;;  %s4877_s18 = smov %s4883_s21 }
 0x261   :  { %14 = sbr.rel (!%p12_p3) target bundleno = 3 (0x3), region = 229 }
 0x266   :  { %3022 = vsyncmov [#allocation3] }
 0x269   :  { %s3023_s8 = vpop.sfrf %3022 }
 0x26a   :  { %p3317_p4 = scmp.ne.s32.totalorder %s3023_s8, 0 }
 0x26c   :  { %3027 = shalt.err (%p3317_p4)  }
 0x26d   :  { %3029 = vsyncmov [#allocation3 + $0x1] }
 0x270   :  { %s3030_s14 = vpop.sfrf %3029 }
 0x271   :  { %p3318_p5 = scmp.ne.s32.totalorder %s3030_s14, 0 }
 0x273   :  { %3034 = shalt.err (%p3318_p5)  }
 0x274   :  { %3036 = vsyncmov [#allocation3 + $0x2] }
 0x277   :  { %s3037_s13 = vpop.sfrf %3036 }
 0x278   :  { %p3319_p6 = scmp.ne.s32.totalorder %s3037_s13, 0 }
 0x27a   :  { %3041 = shalt.err (%p3319_p6)  }

// kernel: rsu4_forward.13
= control target key start
LH: loop header
LB: loop body
LE: loop exit
PB: predicated region body
PF: predicated region fallthrough
CT: control target
= control target key end

     0   :  { %s2013_s12 = smov 0   ;;  %s2015_s13 = smov 0   ;;  %s2401_s0 = inlined_call_operand.vmem [shape: bf16[2,4,4,128], index: 0, kind: input, shape index: {}]   ;;  %s2402_s1 = inlined_call_operand.vmem [shape: bf16[1152,128], index: 1, kind: input, shape index: {}]   ;;  %s2403_s2 = inlined_call_operand.vmem [shape: f32[1,128], index: 2, kind: input, shape index: {}]   ;;  %s2404_s3 = inlined_call_operand.vmem [shape: bf16[2,4,4,128], index: 3, kind: output, shape index: {}]  }
   0x1   :  { %s2017_s14 = smov 0   ;;  %s2019_s15 = smov 0  }
   0x2   :  { %s2021_s16 = smov 0  }
   0x3 LB: > { %s22_s17 = sadd.s32 1, %s1978_s14  ;;  %s25_s18 = sadd.s32 1, %s1982_s15  ;;  %s1986_s16 = sphi %s2021_s16, %s13_s16   ;;  %s1982_s15 = sphi %s2019_s15, %s2412_s15   ;;  %s1978_s14 = sphi %s2017_s14, %s2411_s14   ;;  %s1974_s13 = sphi %s2015_s13, %s2410_s13   ;;  %s1970_s12 = sphi %s2013_s12, %s2409_s12  }
   0x4   : > { %p23_p0 = scmp.ge.s32.totalorder %s22_s17, 2  ;;  %p1552_p1 = scmp.ge.s32.totalorder %s1986_s16, 1 }
   0x5   : > { %p117_p2 = scmp.lt.s32.totalorder %s1986_s16, 5 }
   0x6   : > { %s2414_s17 = smov (%p23_p0, %s22_s17), 0  ;;  %s2416_s18 = smov (!%p23_p0, %s25_s18), %s1982_s15 }
   0x7   : > { %p118_p3 = pnand %p1552_p1, %p117_p2  ;;  %p27_p4 = scmp.ge.s32.totalorder %s2416_s18, 2 }
   0x8   : > { %s1553_s19 = sshll.u32 (!%p118_p3), %s1970_s12, 1  ;;  %p139_p5 = scmp.lt.s32.totalorder (!%p118_p3), %s1974_s13, 1 }
   0x9   : > { %s2418_s18 = smov (%p27_p4, %s2416_s18), 0  ;;  %121 = sbr.rel (%p118_p3) target bundleno = 378 (0x17a), region = 28 }
   0xa   : > { %p141_p6 = scmp.lt.s32.totalorder (!%p118_p3), %s1553_s19, 3  ;;  %s1557_s20 = sadd.s32 (!%p118_p3), 4294967295, %s1553_s19 }
   0xb   : > { %p151_p7 = scmp.gt.s32.totalorder (!%p118_p3), %s1557_s20, 0  ;;  %s1659_s25 = sadd.s32 (!%p118_p3), 2, %s1553_s19 }
   0xc   : > { %p155_p8 = scmp.gt.s32.totalorder (!%p118_p3), %s1659_s25, 0  ;;  %p1559_p9 = scmp.lt.s32.totalorder (!%p118_p3), %s1659_s25, 3 }
   0xd   : > { %s1564_s30 = sshll.u32 (!%p118_p3), %s1974_s13, 2 }
   0xe   : > { %s140_s21 = scalar_select %p139_p5, %s1974_s13, 1 }
   0xf   : > { %s142_s22 = scalar_select %p141_p6, %s1553_s19, 3 }
  0x10   : > { %s1554_s23 = sshll.u32 %s140_s21, 2  ;;  %s2420_s20 = smov (!%p151_p7, %s1557_s20), 0 }
  0x11   : > { %s144_s24 = sadd.s32 %s1554_s23, %s142_s22  ;;  %s2422_s25 = smov (!%p155_p8, %s1659_s25), 0 }
  0x12   : > { %s1555_s26 = sshll.u32 %s144_s24, 1  ;;  %s2424_s25 = smov (!%p1559_p9, %s2422_s25), 3 }
  0x13   : > { %s2053_s29 = scalar_lea.vmem %s2404_s3, %s1555_s26  ;;  %s160_s4 = sadd.s32 %s1564_s30, %s1553_s19 }
  0x14   : > { %s1565_s5 = sshll.u32 %s160_s4, 1 }
  0x15   : > { %s162_s8 = scalar_lea.vmem %s2401_s0, %s1565_s5 }
  0x16   : > { %v182_v0 = vld [vmem:[%s162_s8] sm:$0xf] }
  0x17   : > { %183 = vst [vmem:[#allocation2 + $0x2] sm:$0xf] %v182_v0 }
  0x18   : > { %209 = vsyncadd [#allocation3], 64  ;;  %p1566_p10 = scmp.le.s32.totalorder %s1970_s12, 0 }
  0x19   : > { %s214_s9 = sadd.s32 (!%p1566_p10), %s1564_s30, %s2420_s20 }
  0x1a   : > { %213 = sbr.rel (%p1566_p10) target bundleno = 34 (0x22), region = 62  ;;  %s1567_s10 = sshll.u32 (!%p1566_p10), %s214_s9, 1 }
  0x1b   : > { %s216_s22 = scalar_lea.vmem (!%p1566_p10), %s2401_s0, %s1567_s10 }
  0x1f   : > { %v236_v1 = vld [vmem:[%s216_s22] sm:$0x3] }
  0x20   : > { %237 = vst [vmem:[#allocation2] sm:$0x3] %v236_v1 }
  0x21   : > { %263 = vsyncadd [#allocation3 + $0x1], 32 }
  0x22 PF: > { %p1568_p11 = scmp.ge.s32.totalorder %s1970_s12, 1 }
  0x23   : > { %s268_s13 = sadd.s32 (!%p1568_p11), %s2424_s25, %s1564_s30 }
  0x24   : > { %267 = sbr.rel (%p1568_p11) target bundleno = 44 (0x2c), region = 96  ;;  %s1569_s19 = sshll.u32 (!%p1568_p11), %s268_s13, 1 }
  0x25   : > { %s270_s26 = scalar_lea.vmem (!%p1568_p11), %s2401_s0, %s1569_s19 }
  0x29   : > { %v291_v2 = vld [vmem:[%s270_s26] sm:$0x3] }
  0x2a   : > { %292 = vst [vmem:[#allocation2 + $0x6] sm:$0x3] %v291_v2 }
  0x2b   : > { %318 = vsyncadd [#allocation3 + $0x2], 32 }
  0x2c PF: > { %p1570_p12 = scmp.ne.s32.totalorder %s1970_s12, 0 }
  0x2e   : > { %322 = sbr.rel (%p1570_p12) target bundleno = 53 (0x35), region = 130 }
  0x33   : > { %v1988_v3 = vmov 0  }
  0x34   : > { %323 = vst [vmem:[#allocation2] sm:$0x3] %v1988_v3 }
  0x35 PF: > { %p1571_p13 = scmp.ne.s32.totalorder %s1970_s12, 1 }
  0x37   : > { %327 = sbr.rel (%p1571_p13) target bundleno = 62 (0x3e), region = 134 }
  0x3c   : > { %v1989_v4 = vmov 0  }
  0x3d   : > { %329 = vst [vmem:[#allocation2 + $0x6] sm:$0x3] %v1989_v4 }
  0x3e PF: > { %1958 = dma.done.wait [#allocation3], 64 }
  0x3f   : > { %1959 = vsyncadd [#allocation3], 4294967232  ;;  %p1819_p0 = scmp.gt.s32.totalorder %s1970_s12, 0 }
  0x41   : > { %1961 = dma.done.wait (%p1819_p0), [#allocation3 + $0x1], 32 }
  0x42   : > { %1963 = vsyncadd (%p1819_p0), [#allocation3 + $0x1], 4294967264  ;;  %p1820_p1 = scmp.lt.s32.totalorder %s1970_s12, 1 }
  0x44   : > { %1965 = dma.done.wait (%p1820_p1), [#allocation3 + $0x2], 32 }
  0x45   : > { %1967 = vsyncadd (%p1820_p1), [#allocation3 + $0x2], 4294967264  ;;  %v1990_v5 = vmov 0.0   ;;  %vm1991_vm0 = vmmov 0   ;;  %v1866_v6 = vld [vmem:[%s2402_s1 + $0x138] sm:$0xff]   ;;  %v1869_v9 = vld [vmem:[%s2402_s1 + $0x130] sm:$0xff]   ;;  %v364_v21 = vlaneseq }
  0x46   : > { %1755 = vmatprep.subr.bf16.mxu1 %v1990_v5  ;;  %1771 = vmatprep.mubr.msk.bf16.mxu1 %vm1991_vm0, %v1990_v5  ;;  %v1867_v7 = vld [vmem:[%s2402_s1 + $0x178] sm:$0xff]   ;;  %v1870_v10 = vld [vmem:[%s2402_s1 + $0x170] sm:$0xff]   ;;  %v1872_v12 = vld [vmem:[%s2402_s1 + $0x128] sm:$0xff]   ;;  %v1992_v19 = vmov 1983009808   ;;  %vm421_vm3 = vcmask 1040384  }
  0x47   : > { %1662 = vmatprep.subr.bf16.mxu0 %v1866_v6  ;;  %v1868_v8 = vld [vmem:[%s2402_s1 + $0xf8] sm:$0xff]   ;;  %1756 = vmatpush3.bf16.msra.mxu1 %v1867_v7  ;;  %v1871_v11 = vld [vmem:[%s2402_s1 + $0xf0] sm:$0xff]   ;;  %v1873_v13 = vld [vmem:[%s2402_s1 + $0x168] sm:$0xff]   ;;  %v362_v20 = vunpack.c.l.s4 %v1992_v19  ;;  %vm422_vm1 = vsmask.f32 256  ;;  %v365_v26 = vshrl.u32 %v364_v21, 7 }
  0x48   : > { %1663 = vmatpush3.bf16.msra.mxu0 %v1868_v8  ;;  %1757 = vmatprep.subr.bf16.mxu1 %v1990_v5  ;;  %v1874_v14 = vld [vmem:[%s2402_s1 + $0xe8] sm:$0xff]   ;;  %v1875_v15 = vld [vmem:[%s2402_s1 + $0x120] sm:$0xff]   ;;  %v1878_v18 = vld [vmem:[%s2402_s1 + $0x118] sm:$0xff]   ;;  %vm441_vm2 = vsmask.f32 1280  ;;  %vm440_vm4 = vcmask 1041408  }
  0x49   : > { %1664 = vmatprep.subr.bf16.mxu0 %v1869_v9  ;;  %v1876_v16 = vld [vmem:[%s2402_s1 + $0x160] sm:$0xff]   ;;  %v1879_v22 = vld [vmem:[%s2402_s1 + $0x158] sm:$0xff]   ;;  %v1881_v24 = vld [vmem:[%s2402_s1 + $0x110] sm:$0xff]   ;;  %v363_v25 = vunpack.c.0.s8 %v362_v20 }
  0x4a   : > { %v1877_v17 = vld [vmem:[%s2402_s1 + $0xe0] sm:$0xff]   ;;  %v1880_v23 = vld [vmem:[%s2402_s1 + $0xd8] sm:$0xff]   ;;  %v1882_v27 = vld [vmem:[%s2402_s1 + $0x150] sm:$0xff]  }
  0x4b   : > { %1758 = vmatpush3.bf16.msra.mxu1 %v1870_v10  ;;  %v1883_v28 = vld [vmem:[%s2402_s1 + $0xd0] sm:$0xff]   ;;  %v1884_v29 = vld [vmem:[%s2402_s1 + $0x108] sm:$0xff]   ;;  %v2136_v30 = vsub.s32 %v363_v25, %v365_v26  ;;  %v354_v33 = vld [vmem:[#allocation2 + $0x2] sm:$0x3] }
  0x4c   : > { %1665 = vmatpush3.bf16.msra.mxu0 %v1871_v11  ;;  %1759 = vmatprep.subr.bf16.mxu1 %v1990_v5  ;;  %v1885_v31 = vld [vmem:[%s2402_s1 + $0x148] sm:$0xff]   ;;  %v355_v34 = vld [vmem:[#allocation2 + $0x4] sm:$0x3]  ;;  %vm2155_vm5 = vmand %vm421_vm3, %vm422_vm1 }
  0x4d   : > { %1666 = vmatprep.subr.bf16.mxu0 %v1872_v12  ;;  %v1886_v32 = vld [vmem:[%s2402_s1 + $0xc8] sm:$0xff]   ;;  %v1887_v35 = vld [vmem:[%s2402_s1 + $0x100] sm:$0xff]   ;;  %v374_v36 = vrot.slane %v354_v33, %v2136_v30  ;;  %v381_v37 = vrot.slane %v355_v34, %v2136_v30  ;;  %vm2165_vm6 = vmand %vm440_vm4, %vm441_vm2 }
  0x4e   : > { %v1888_v38 = vld [vmem:[%s2402_s1 + $0x140] sm:$0xff]   ;;  %v1890_v50 = vld [vmem:[%s2402_s1 + $0x78] sm:$0xff]   ;;  %v1894_v7 = vld [vmem:[%s2402_s1 + $0xb0] sm:$0xff]  }
  0x4f   : > { %1760 = vmatpush3.bf16.msra.mxu1 %v1873_v13  ;;  %v397_v39 = vshrl.u32 %v374_v36, 16  ;;  %v400_v40 = vshll.u32 %v374_v36, 16  ;;  %v404_v41 = vshrl.u32 %v381_v37, 16  ;;  %v407_v42 = vshll.u32 %v381_v37, 16  ;;  %v1889_v44 = vld [vmem:[%s2402_s1 + $0xc0] sm:$0xff]   ;;  %v1891_v2 = vld [vmem:[%s2402_s1 + $0xb8] sm:$0xff]  }
  0x50   : > { %1667 = vmatpush3.bf16.msra.mxu0 %v1874_v14  ;;  %1761 = vmatprep.subr.bf16.mxu1 %v1990_v5  ;;  %v1892_v9 = vld [vmem:[%s2402_s1 + $0x38] sm:$0xff]   ;;  %v1893_v10 = vld [vmem:[%s2402_s1 + $0x70] sm:$0xff]   ;;  %v1897_v11 = vld [vmem:[%s2402_s1 + $0xa8] sm:$0xff]  }
  0x51   : > { %1668 = vmatprep.subr.bf16.mxu0 %v1875_v15  ;;  %v399_v45 = vrot.slane %v397_v39, 7  ;;  %v406_v46 = vrot.slane %v404_v41, 7  ;;  %v430_v47 = vrot.slane %v400_v40, 1  ;;  %v432_v48 = vrot.slane %v407_v42, 1  ;;  %v1895_v12 = vld [vmem:[%s2402_s1 + $0x30] sm:$0xff]   ;;  %v1896_v13 = vld [vmem:[%s2402_s1 + $0x68] sm:$0xff]  }
  0x52   : > { %v1900_v14 = vld [vmem:[%s2402_s1 + $0xa0] sm:$0xff]   ;;  %v1898_v15 = vld [vmem:[%s2402_s1 + $0x28] sm:$0xff]   ;;  %v1903_v20 = vld [vmem:[%s2402_s1 + $0x98] sm:$0xff]  }
  0x53   : > { %1762 = vmatpush3.bf16.msra.mxu1 %v1876_v16  ;;  %v402_v51 = vor.u32 %v400_v40, %v399_v45  ;;  %v409_v52 = vor.u32 %v407_v42, %v406_v46  ;;  %v431_v53 = vor.u32 %v430_v47, %v397_v39  ;;  %v433_v54 = vor.u32 %v432_v48, %v404_v41  ;;  %v353_v16 = vld [vmem:[#allocation2] sm:$0x3]  ;;  %v1906_v26 = vld [vmem:[%s2402_s1 + $0x90] sm:$0xff]   ;;  %v1909_v36 = vld [vmem:[%s2402_s1 + $0x88] sm:$0xff]  }
  0x54   : > { %1669 = vmatpush3.bf16.msra.mxu0 %v1877_v17  ;;  %1763 = vmatprep.subr.bf16.mxu1 %v1990_v5  ;;  %v1899_v17 = vld [vmem:[%s2402_s1 + $0x60] sm:$0xff]   ;;  %v1907_v37 = vld [vmem:[%s2402_s1 + $0x10] sm:$0xff]   ;;  %v1908_v39 = vld [vmem:[%s2402_s1 + $0x48] sm:$0xff]  }
  0x55   : > { %1670 = vmatprep.subr.bf16.mxu0 %v1878_v18  ;;  %v425_v55 = vsel %vm2155_vm5, 0, %v402_v51  ;;  %v426_v56 = vsel %vm2155_vm5, 0, %v409_v52  ;;  %v444_v57 = vsel %vm2165_vm6, %v431_v53, 0  ;;  %v445_v58 = vsel %vm2165_vm6, %v433_v54, 0  ;;  %v1901_v19 = vld [vmem:[%s2402_s1 + $0x20] sm:$0xff]   ;;  %v1914_v52 = vld [vmem:[%s2402_s1 + $0x1f8] sm:$0xff]  }
  0x56   : > { %v467_v59 = vcombine.low %v425_v55, %v354_v33  ;;  %v533_v60 = vcombine.low %v426_v56, %v355_v34  ;;  %v2182_v61 = vrot.slane %v444_v57, %v2136_v30  ;;  %v2185_v62 = vrot.slane %v445_v58, %v2136_v30  ;;  %v1912_v42 = vld [vmem:[%s2402_s1 + $0x80] sm:$0xff]   ;;  %v1918_v53 = vld [vmem:[%s2402_s1 + $0x230] sm:$0xff]   ;;  %v1916_v54 = vld [vmem:[%s2402_s1 + $0x1b8] sm:$0xff]  }
  0x57   : > { %1764 = vmatpush3.bf16.msra.mxu1 %v1879_v22  ;;  %v367_v18 = vrot.slane %v353_v16, %v2136_v30  ;;  %v1911_v46 = vld [vmem:[%s2402_s1 + $0x40] sm:$0xff]   ;;  %v1917_v56 = vld [vmem:[%s2402_s1 + $0x1f0] sm:$0xff]   ;;  %v1921_v58 = vld [vmem:[%s2402_s1 + $0x228] sm:$0xff]  }
  0x58   : > { %1671 = vmatpush3.bf16.msra.mxu0 %v1880_v23  ;;  %1765 = vmatprep.subr.bf16.mxu1 %v1990_v5  ;;  %v2188_v63 = vrot.slane %v467_v59, %v2136_v30  ;;  %v2191_v0 = vrot.slane %v533_v60, %v2136_v30  ;;  %v1575_v1 = vcombine.low %v2182_v61, %v2185_v62  ;;  %v1902_v23 = vld [vmem:[%s2402_s1 + $0x58] sm:$0xff]   ;;  %v1913_v51 = vld [vmem:[%s2402_s1] sm:$0xff]  }
  0x59   : > { %1672 = vmatprep.subr.bf16.mxu0 %v1881_v24  ;;  %v390_v21 = vshrl.u32 %v367_v18, 16  ;;  %v393_v22 = vshll.u32 %v367_v18, 16  ;;  %v356_v55 = vld [vmem:[#allocation2 + $0x6] sm:$0x3]  ;;  %v1928_v18 = vld [vmem:[%s2402_s1 + $0x198] sm:$0xff]  }
  0x5a   : > { %v1574_v3 = vcombine.low %v2188_v63, %v2191_v0  ;;  %v612_v4 = vrot.slane %v1575_v1, %v2136_v30  ;;  %v388_v57 = vrot.slane %v356_v55, %v2136_v30 }
  0x5b   : > { %1766 = vmatpush3.bf16.msra.mxu1 %v1882_v27  ;;  %v392_v24 = vrot.slane %v390_v21, 7  ;;  %v428_v25 = vrot.slane %v393_v22, 1 }
  0x5c   : > { %1673 = vmatpush3.bf16.msra.mxu0 %v1883_v28  ;;  %1767 = vmatprep.subr.bf16.mxu1 %v1990_v5  ;;  %v605_v6 = vrot.slane %v1574_v3, %v2136_v30  ;;  %v411_v59 = vshrl.u32 %v388_v57, 16  ;;  %v414_v60 = vshll.u32 %v388_v57, 16  ;;  %v1924_v3 = vld [vmem:[%s2402_s1 + $0x220] sm:$0xff]  }
  0x5d   : > { %1674 = vmatprep.subr.bf16.mxu0 %v1884_v29  ;;  %v395_v27 = vor.u32 %v393_v22, %v392_v24  ;;  %v429_v28 = vor.u32 %v428_v25, %v390_v21  ;;  %v1904_v29 = vld [vmem:[%s2402_s1 + $0x18] sm:$0xff]   ;;  %v1931_v21 = vld [vmem:[%s2402_s1 + $0x190] sm:$0xff]   ;;  %v1932_v22 = vld [vmem:[%s2402_s1 + $0x1c8] sm:$0xff]  }
  0x5e   : > { %v613_v8 = vcombine.high %v605_v6, %v605_v6  ;;  %v413_v1 = vrot.slane %v411_v59, 7  ;;  %v1934_v24 = vld [vmem:[%s2402_s1 + $0x188] sm:$0xff]   ;;  %v1935_v25 = vld [vmem:[%s2402_s1 + $0x1c0] sm:$0xff]  }
  0x5f   : > { %1768 = vmatpush3.bf16.msra.mxu1 %v1885_v31  ;;  %v1905_v31 = vld [vmem:[%s2402_s1 + $0x50] sm:$0xff]   ;;  %v443_v33 = vsel %vm2165_vm6, %v429_v28, 0 }
  0x60   : > { %1675 = vmatpush3.bf16.msra.mxu0 %v1886_v32  ;;  %1769 = vmatprep.subr.bf16.mxu1 %v1990_v5  ;;  %v424_v32 = vsel %vm2155_vm5, 0, %v395_v27  ;;  %v1937_v27 = vld [vmem:[%s2402_s1 + $0x180] sm:$0xff]  }
  0x61   : > { %1676 = vmatprep.subr.bf16.mxu0 %v1887_v35  ;;  %793 = vmatprep.mubr.bf16.mxu0 %v613_v8  ;;  %v451_v34 = vcombine.low %v424_v32, %v353_v16  ;;  %v465_v35 = vrot.slane %v443_v33, %v2136_v30  ;;  %v1923_v8 = vld [vmem:[%s2402_s1 + $0x1e0] sm:$0xff]  }
  0x63   : > { %1770 = vmatpush3.bf16.msra.mxu1 %v1888_v38  ;;  %v458_v38 = vrot.slane %v451_v34, %v2136_v30  ;;  %v1601_v41 = vcombine.low %v465_v35, %v2182_v61  ;;  %v1919_v61 = vld [vmem:[%s2402_s1 + $0x1b0] sm:$0xff]  }
  0x64   : > { %1677 = vmatpush3.bf16.msra.mxu0 %v1889_v44  ;;  %1775 = vmatprep.subr.bf16.mxu1 %v1990_v5  ;;  %v1910_v44 = vld [vmem:[%s2402_s1 + $0x8] sm:$0xff]  }
  0x65   : > { %1693 = vmatprep.subr.bf16.mxu0 %v1890_v50  ;;  %v1600_v40 = vcombine.low %v458_v38, %v2188_v63  ;;  %v856_v48 = vrot.slane %v1601_v41, %v2136_v30  ;;  %v1915_v50 = vld [vmem:[%s2402_s1 + $0x238] sm:$0xff]   ;;  %v1920_v63 = vld [vmem:[%s2402_s1 + $0x1e8] sm:$0xff]  }
  0x66   : > { %1772 = vmatmul.mubr.bf16.vlgmr.msra.gmra.mxu1 %v612_v4  ;;  %v416_v4 = vor.u32 %v414_v60, %v413_v1 }
  0x67   : > { %1776 = vmatpush3.bf16.msra.mxu1 %v1891_v2  ;;  %1791 = vmatprep.mubr.msk.bf16.mxu1 %vm1991_vm0, %v1990_v5  ;;  %v849_v45 = vrot.slane %v1600_v40, %v2136_v30  ;;  %v434_v2 = vrot.slane %v414_v60, 1 }
  0x68   : > { %1777 = vmatprep.subr.bf16.mxu1 %v1990_v5  ;;  %794 = vmatmul.mubr.bf16.vlgmr.msra.gmra.mxu0 %v605_v6 }
  0x69   : > { %1694 = vmatpush3.bf16.msra.mxu0 %v1892_v9  ;;  %v857_v47 = vcombine.high %v849_v45, %v849_v45  ;;  %v435_v6 = vor.u32 %v434_v2, %v411_v59  ;;  %v427_v9 = vsel %vm2155_vm5, 0, %v416_v4  ;;  %v1652_v59 = vld [vmem:[%s2403_s2] ss:$0 sm:$0xff] }
  0x6a   : > { %1695 = vmatprep.subr.bf16.mxu0 %v1893_v10 }
  0x6b   : > { %1778 = vmatpush3.bf16.msra.mxu1 %v1894_v7  ;;  %1037 = vmatprep.mubr.bf16.mxu0 %v857_v47  ;;  %v1922_v7 = vld [vmem:[%s2402_s1 + $0x1a8] sm:$0xff]   ;;  %v446_v10 = vsel %vm2165_vm6, %v435_v6, 0 }
  0x6c   : > { %1779 = vmatprep.subr.bf16.mxu1 %v1990_v5 }
  0x6d   : > { %1696 = vmatpush3.bf16.msra.mxu0 %v1895_v12  ;;  %v1101_v12 = vrot.slane %v446_v10, %v2136_v30 }
  0x6e   : > { %1697 = vmatprep.subr.bf16.mxu0 %v1896_v13  ;;  %v1927_v13 = vld [vmem:[%s2402_s1 + $0x218] sm:$0xff]  }
  0x6f   : > { %1780 = vmatpush3.bf16.msra.mxu1 %v1897_v11  ;;  %v1087_v11 = vcombine.low %v427_v9, %v356_v55  ;;  %v1627_v49 = vcombine.low %v2185_v62, %v1101_v12 }
  0x70   : > { %1781 = vmatprep.subr.bf16.mxu1 %v1990_v5 }
  0x71   : > { %1698 = vmatpush3.bf16.msra.mxu0 %v1898_v15  ;;  %v1094_v43 = vrot.slane %v1087_v11, %v2136_v30  ;;  %v1926_v15 = vld [vmem:[%s2402_s1 + $0x1d8] sm:$0xff]  }
  0x72   : > { %1699 = vmatprep.subr.bf16.mxu0 %v1899_v17  ;;  %v1930_v17 = vld [vmem:[%s2402_s1 + $0x210] sm:$0xff]  }
  0x73   : > { %1782 = vmatpush3.bf16.msra.mxu1 %v1900_v14  ;;  %v1925_v14 = vld [vmem:[%s2402_s1 + $0x1a0] sm:$0xff]   ;;  %v1626_v16 = vcombine.low %v2191_v0, %v1094_v43 }
  0x74   : > { %1783 = vmatprep.subr.bf16.mxu1 %v1990_v5 }
  0x75   : > { %1700 = vmatpush3.bf16.msra.mxu0 %v1901_v19  ;;  %v1159_v62 = vrot.slane %v1626_v16, %v2136_v30  ;;  %v1929_v19 = vld [vmem:[%s2402_s1 + $0x1d0] sm:$0xff]  }
  0x76   : > { %1701 = vmatprep.subr.bf16.mxu0 %v1902_v23  ;;  %v1936_v23 = vld [vmem:[%s2402_s1 + $0x200] sm:$0xff]  }
  0x77   : > { %1784 = vmatpush3.bf16.msra.mxu1 %v1903_v20  ;;  %v1167_v0 = vcombine.high %v1159_v62, %v1159_v62  ;;  %v1933_v20 = vld [vmem:[%s2402_s1 + $0x208] sm:$0xff]  }
  0x78   : > { %1785 = vmatprep.subr.bf16.mxu1 %v1990_v5 }
  0x79   : > { %1702 = vmatpush3.bf16.msra.mxu0 %v1904_v29 }
  0x7a   : > { %1703 = vmatprep.subr.bf16.mxu0 %v1905_v31 }
  0x7b   : > { %1786 = vmatpush3.bf16.msra.mxu1 %v1906_v26  ;;  %v1166_v26 = vrot.slane %v1627_v49, %v2136_v30 }
  0x7c   : > { %1787 = vmatprep.subr.bf16.mxu1 %v1990_v5 }
  0x7d   : > { %1704 = vmatpush3.bf16.msra.mxu0 %v1907_v37 }
  0x7e   : > { %1705 = vmatprep.subr.bf16.mxu0 %v1908_v39 }
  0x7f   : > { %1788 = vmatpush3.bf16.msra.mxu1 %v1909_v36 }
  0x80   : > { %1789 = vmatprep.subr.bf16.mxu1 %v1990_v5 }
  0x81   : > { %1706 = vmatpush3.bf16.msra.mxu0 %v1910_v44 }
  0x82   : > { %1707 = vmatprep.subr.bf16.mxu0 %v1911_v46 }
  0x83   : > { %1790 = vmatpush3.bf16.msra.mxu1 %v1912_v42 }
  0x84   : > { %1795 = vmatprep.subr.bf16.mxu1 %v1990_v5 }
  0x85   : > { %1708 = vmatpush3.bf16.msra.mxu0 %v1913_v51 }
  0x86   : > { %1792 = vmatmul.mubr.bf16.vlgmr.msra.gmra.mxu1 %v856_v48  ;;  %1724 = vmatprep.subr.bf16.mxu0 %v1914_v52 }
  0x87   : > { %1796 = vmatpush3.bf16.msra.mxu1 %v1915_v50  ;;  %1811 = vmatprep.mubr.msk.bf16.mxu1 %vm1991_vm0, %v1990_v5 }
  0x88   : > { %1797 = vmatprep.subr.bf16.mxu1 %v1990_v5  ;;  %1038 = vmatmul.mubr.bf16.vlgmr.msra.gmra.mxu0 %v849_v45 }
  0x89   : > { %1725 = vmatpush3.bf16.msra.mxu0 %v1916_v54  ;;  %1347 = vmatprep.mubr.bf16.mxu0 %v1167_v0 }
  0x8a   : > { %1726 = vmatprep.subr.bf16.mxu0 %v1917_v56 }
  0x8b   : > { %1798 = vmatpush3.bf16.msra.mxu1 %v1918_v53 }
  0x8c   : > { %1799 = vmatprep.subr.bf16.mxu1 %v1990_v5 }
  0x8d   : > { %1727 = vmatpush3.bf16.msra.mxu0 %v1919_v61 }
  0x8e   : > { %1728 = vmatprep.subr.bf16.mxu0 %v1920_v63 }
  0x8f   : > { %1800 = vmatpush3.bf16.msra.mxu1 %v1921_v58 }
  0x90   : > { %1801 = vmatprep.subr.bf16.mxu1 %v1990_v5 }
  0x91   : > { %1729 = vmatpush3.bf16.msra.mxu0 %v1922_v7 }
  0x92   : > { %1730 = vmatprep.subr.bf16.mxu0 %v1923_v8 }
  0x93   : > { %1802 = vmatpush3.bf16.msra.mxu1 %v1924_v3 }
  0x94   : > { %1803 = vmatprep.subr.bf16.mxu1 %v1990_v5 }
  0x95   : > { %1731 = vmatpush3.bf16.msra.mxu0 %v1925_v14 }
  0x96   : > { %1732 = vmatprep.subr.bf16.mxu0 %v1926_v15 }
  0x97   : > { %1804 = vmatpush3.bf16.msra.mxu1 %v1927_v13 }
  0x98   : > { %1805 = vmatprep.subr.bf16.mxu1 %v1990_v5 }
  0x99   : > { %1733 = vmatpush3.bf16.msra.mxu0 %v1928_v18 }
  0x9a   : > { %1734 = vmatprep.subr.bf16.mxu0 %v1929_v19 }
  0x9b   : > { %1806 = vmatpush3.bf16.msra.mxu1 %v1930_v17 }
  0x9c   : > { %1807 = vmatprep.subr.bf16.mxu1 %v1990_v5 }
  0x9d   : > { %1735 = vmatpush3.bf16.msra.mxu0 %v1931_v21 }
  0x9e   : > { %1736 = vmatprep.subr.bf16.mxu0 %v1932_v22 }
  0x9f   : > { %1808 = vmatpush3.bf16.msra.mxu1 %v1933_v20 }
  0xa0   : > { %1809 = vmatprep.subr.bf16.mxu1 %v1990_v5 }
  0xa1   : > { %1737 = vmatpush3.bf16.msra.mxu0 %v1934_v24 }
  0xa2   : > { %1738 = vmatprep.subr.bf16.mxu0 %v1935_v25 }
  0xa3   : > { %1810 = vmatpush3.bf16.msra.mxu1 %v1936_v23 }
  0xa5   : > { %1739 = vmatpush3.bf16.msra.mxu0 %v1937_v27 }
  0xa6   : > { %1812 = vmatmul.mubr.bf16.vlgmr.msra.gmra.mxu1 %v1166_v26 }
  0xa8   : > { %1348 = vmatmul.mubr.bf16.vlgmr.msra.gmra.mxu0 %v1159_v62 }
 0x126   : > { %v835_v28 = vpop.f32.mrf.mxu1 }
 0x128   : > { %v1773_v29 = vpop.f32.mrf.mxu1  ;;  %v1678_v31 = vpop.f32.mrf.mxu0 }
 0x12a   : > { %v838_v5 = vpop.f32.mrf.mxu1  ;;  %v1679_v33 = vpop.f32.mrf.mxu0 }
 0x12b   : > { %v1680_v44 = vadd.f32 %v1679_v33, %v1678_v31 }
 0x12c   : > { %v1774_v32 = vpop.f32.mrf.mxu1  ;;  %v1681_v34 = vpop.f32.mrf.mxu0 }
 0x12d   : > { %v836_v48 = vadd.f32 %v1680_v44, %v835_v28 }
 0x12e   : > { %v1682_v35 = vpop.f32.mrf.mxu0 }
 0x146   : > { %v1079_v36 = vpop.f32.mrf.mxu1 }
 0x148   : > { %v1793_v30 = vpop.f32.mrf.mxu1  ;;  %v1709_v38 = vpop.f32.mrf.mxu0 }
 0x14a   : > { %v1082_v37 = vpop.f32.mrf.mxu1  ;;  %v1710_v40 = vpop.f32.mrf.mxu0 }
 0x14b   : > { %v1711_v46 = vadd.f32 %v1710_v40, %v1709_v38 }
 0x14c   : > { %v1794_v39 = vpop.f32.mrf.mxu1  ;;  %v1712_v41 = vpop.f32.mrf.mxu0 }
 0x14d   : > { %v1040_v52 = vadd.f32 %v1711_v46, %v836_v48 }
 0x14e   : > { %v1713_v42 = vpop.f32.mrf.mxu0 }
 0x14f   : > { %v1080_v57 = vadd.f32 %v1079_v36, %v1040_v52 }
 0x166   : > { %v1389_v45 = vpop.f32.mrf.mxu1 }
 0x168   : > { %v1813_v47 = vpop.f32.mrf.mxu1  ;;  %v1740_v51 = vpop.f32.mrf.mxu0 }
 0x16a   : > { %v1392_v50 = vpop.f32.mrf.mxu1  ;;  %v1741_v54 = vpop.f32.mrf.mxu0 }
 0x16b   : > { %v1742_v55 = vadd.f32 %v1741_v54, %v1740_v51 }
 0x16c   : > { %v1814_v53 = vpop.f32.mrf.mxu1  ;;  %v1743_v56 = vpop.f32.mrf.mxu0 }
 0x16d   : > { %v1390_v58 = vadd.f32 %v1742_v55, %v1389_v45 }
 0x16e   : > { %v1744_v60 = vpop.f32.mrf.mxu0 }
 0x16f   : > { %v1395_v61 = vadd.f32 %v1390_v58, %v1080_v57 }
 0x171   : > { %v1403_v63 = vadd.f32 %v1652_v59, %v1395_v61 }
 0x173   : > { %v1404_v1 = vmax.f32 %v1403_v63, 0.0 }
 0x175   : > { %v1406_v2 = vcombine.high %v1404_v1, %v1404_v1  ;;  %v1408_v3 = vpack.c.bf16 %v1404_v1, %v1404_v1 }
 0x177   : > { %v1409_v4 = vpack.c.bf16 %v1406_v2, %v1406_v2  ;;  %1410 = vst [vmem:[%s2053_s29] sm:$0x3] %v1408_v3 }
 0x179   : > { %1411 = vst [vmem:[%s2053_s29 + $0x2] sm:$0x3] %v1409_v4 }
 0x17a PF: > { %s13_s16 = sadd.s32 1, %s1986_s16   ;;  %s2409_s12 = smov %s1978_s14 }
 0x17b   : > { %p10_p2 = scmp.ge.s32.totalorder %s13_s16, 6   ;;  %s2410_s13 = smov %s1982_s15 }
 0x17c   : > { %s2411_s14 = smov %s2414_s17  ;;  %s2412_s15 = smov %s2418_s18 }
 0x17d   :  { %12 = sbr.rel (!%p10_p2) target bundleno = 3 (0x3), region = 211 }
 0x182   :  { %1442 = vsyncmov [#allocation3] }
 0x185   :  { %s1443_s29 = vpop.sfrf %1442 }
 0x186   :  { %p1655_p3 = scmp.ne.s32.totalorder %s1443_s29, 0 }
 0x188   :  { %1447 = shalt.err (%p1655_p3)  }
 0x189   :  { %1449 = vsyncmov [#allocation3 + $0x1] }
 0x18c   :  { %s1450_s26 = vpop.sfrf %1449 }
 0x18d   :  { %p1656_p4 = scmp.ne.s32.totalorder %s1450_s26, 0 }
 0x18f   :  { %1454 = shalt.err (%p1656_p4)  }
 0x190   :  { %1456 = vsyncmov [#allocation3 + $0x2] }
 0x193   :  { %s1457_s20 = vpop.sfrf %1456 }
 0x194   :  { %p1657_p5 = scmp.ne.s32.totalorder %s1457_s20, 0 }
 0x196   :  { %1461 = shalt.err (%p1657_p5)  }

// kernel: rsu4_forward.12
= control target key start
LH: loop header
LB: loop body
LE: loop exit
PB: predicated region body
PF: predicated region fallthrough
CT: control target
= control target key end

     0   :  { %s2426_s12 = smov 0   ;;  %s2428_s13 = smov 0   ;;  %s2904_s0 = inlined_call_operand.vmem [shape: bf16[2,8,8,128], index: 0, kind: input, shape index: {}]   ;;  %s2905_s1 = inlined_call_operand.vmem [shape: bf16[1152,128], index: 1, kind: input, shape index: {}]   ;;  %s2906_s2 = inlined_call_operand.vmem [shape: f32[1,128], index: 2, kind: input, shape index: {}]   ;;  %s2907_s3 = inlined_call_operand.vmem [shape: bf16[2,4,4,128], index: 3, kind: output, shape index: {}]  }
   0x1   :  { %s2430_s14 = smov 0   ;;  %s2432_s15 = smov 0  }
   0x2   :  { %s2434_s16 = smov 0  }
   0x3 LB: > { %s22_s17 = sadd.s32 1, %s2393_s14  ;;  %s25_s18 = sadd.s32 1, %s2397_s15  ;;  %s2401_s16 = sphi %s2434_s16, %s13_s16   ;;  %s2397_s15 = sphi %s2432_s15, %s2915_s15   ;;  %s2393_s14 = sphi %s2430_s14, %s2914_s14   ;;  %s2389_s13 = sphi %s2428_s13, %s2913_s13   ;;  %s2385_s12 = sphi %s2426_s12, %s2912_s12  }
   0x4   : > { %p23_p0 = scmp.ge.s32.totalorder %s22_s17, 2  ;;  %p1920_p1 = scmp.ge.s32.totalorder %s2401_s16, 1 }
   0x5   : > { %p117_p2 = scmp.lt.s32.totalorder %s2401_s16, 5 }
   0x6   : > { %s2917_s17 = smov (%p23_p0, %s22_s17), 0  ;;  %s2919_s18 = smov (!%p23_p0, %s25_s18), %s2397_s15 }
   0x7   : > { %p118_p3 = pnand %p1920_p1, %p117_p2  ;;  %p27_p4 = scmp.ge.s32.totalorder %s2919_s18, 2 }
   0x8   : > { %s1921_s19 = sshll.u32 (!%p118_p3), %s2385_s12, 1  ;;  %p139_p5 = scmp.lt.s32.totalorder (!%p118_p3), %s2389_s13, 1 }
   0x9   : > { %s2921_s18 = smov (%p27_p4, %s2919_s18), 0  ;;  %121 = sbr.rel (%p118_p3) target bundleno = 435 (0x1b3), region = 28 }
   0xa   : > { %p141_p6 = scmp.lt.s32.totalorder (!%p118_p3), %s1921_s19, 3  ;;  %s1924_s20 = sshll.u32 (!%p118_p3), %s2385_s12, 2 }
   0xb   : > { %s1925_s23 = sadd.s32 (!%p118_p3), 4294967295, %s1924_s20  ;;  %s2044_s26 = sadd.s32 (!%p118_p3), 4, %s1924_s20 }
   0xc   : > { %p151_p7 = scmp.gt.s32.totalorder (!%p118_p3), %s1925_s23, 0  ;;  %p155_p8 = scmp.gt.s32.totalorder (!%p118_p3), %s2044_s26, 0 }
   0xd   : > { %p1927_p9 = scmp.lt.s32.totalorder (!%p118_p3), %s2044_s26, 7  ;;  %s1932_s4 = sshll.u32 (!%p118_p3), %s2389_s13, 3 }
   0xe   : > { %s140_s21 = scalar_select %p139_p5, %s2389_s13, 1 }
   0xf   : > { %s2923_s19 = smov (!%p141_p6, %s1921_s19), 3  ;;  %s2925_s23 = smov (!%p151_p7, %s1925_s23), 0 }
  0x10   : > { %s1922_s22 = sshll.u32 %s140_s21, 2  ;;  %s160_s5 = sadd.s32 %s1932_s4, %s1924_s20 }
  0x11   : > { %s144_s24 = sadd.s32 %s1922_s22, %s2923_s19  ;;  %s1933_s6 = sshll.u32 %s160_s5, 2 }
  0x12   : > { %s1923_s25 = sshll.u32 %s144_s24, 1  ;;  %s162_s9 = scalar_lea.vmem %s2904_s0, %s1933_s6 }
  0x13   : > { %s2467_s29 = scalar_lea.vmem %s2907_s3, %s1923_s25  ;;  %v197_v0 = vld [vmem:[%s162_s9] sm:$0xff]  ;;  %v199_v1 = vld [vmem:[%s162_s9 + $0x8] sm:$0xff] }
  0x14   : > { %s156_s30 = scalar_select %p155_p8, %s2044_s26, 0  ;;  %198 = vst [vmem:[#allocation2 + $0x4] sm:$0xff] %v197_v0  ;;  %200 = vst [vmem:[#allocation2 + $0xc] sm:$0xff] %v199_v1 }
  0x16   : > { %s2927_s30 = smov (!%p1927_p9, %s156_s30), 7 }
  0x17   : > { %208 = vsyncadd [#allocation3], 256  ;;  %p1934_p10 = scmp.le.s32.totalorder %s2385_s12, 0 }
  0x18   : > { %s213_s10 = sadd.s32 (!%p1934_p10), %s1932_s4, %s2925_s23 }
  0x19   : > { %212 = sbr.rel (%p1934_p10) target bundleno = 33 (0x21), region = 66  ;;  %s1935_s11 = sshll.u32 (!%p1934_p10), %s213_s10, 2 }
  0x1a   : > { %s215_s13 = scalar_lea.vmem (!%p1934_p10), %s2904_s0, %s1935_s11 }
  0x1e   : > { %v235_v2 = vld [vmem:[%s215_s13] sm:$0xf] }
  0x1f   : > { %236 = vst [vmem:[#allocation2] sm:$0xf] %v235_v2 }
  0x20   : > { %262 = vsyncadd [#allocation3 + $0x1], 64 }
  0x21 PF: > { %p1936_p11 = scmp.ge.s32.totalorder %s2385_s12, 1 }
  0x22   : > { %s267_s20 = sadd.s32 (!%p1936_p11), %s2927_s30, %s1932_s4 }
  0x23   : > { %266 = sbr.rel (%p1936_p11) target bundleno = 43 (0x2b), region = 100  ;;  %s1937_s22 = sshll.u32 (!%p1936_p11), %s267_s20, 2 }
  0x24   : > { %s269_s26 = scalar_lea.vmem (!%p1936_p11), %s2904_s0, %s1937_s22 }
  0x28   : > { %v290_v3 = vld [vmem:[%s269_s26] sm:$0xf] }
  0x29   : > { %291 = vst [vmem:[#allocation2 + $0x14] sm:$0xf] %v290_v3 }
  0x2a   : > { %317 = vsyncadd [#allocation3 + $0x2], 64 }
  0x2b PF: > { %p1938_p12 = scmp.ne.s32.totalorder %s2385_s12, 0 }
  0x2d   : > { %321 = sbr.rel (%p1938_p12) target bundleno = 52 (0x34), region = 134 }
  0x32   : > { %v2403_v4 = vmov 0  }
  0x33   : > { %322 = vst [vmem:[#allocation2] sm:$0xf] %v2403_v4 }
  0x34 PF: > { %p1939_p13 = scmp.ne.s32.totalorder %s2385_s12, 1 }
  0x36   : > { %326 = sbr.rel (%p1939_p13) target bundleno = 61 (0x3d), region = 138 }
  0x3b   : > { %v2404_v5 = vmov 0  }
  0x3c   : > { %328 = vst [vmem:[#allocation2 + $0x14] sm:$0xf] %v2404_v5 }
  0x3d PF: > { %2373 = dma.done.wait [#allocation3], 256 }
  0x3e   : > { %2374 = vsyncadd [#allocation3], 4294967040  ;;  %p2225_p0 = scmp.gt.s32.totalorder %s2385_s12, 0 }
  0x40   : > { %2376 = dma.done.wait (%p2225_p0), [#allocation3 + $0x1], 64 }
  0x41   : > { %2378 = vsyncadd (%p2225_p0), [#allocation3 + $0x1], 4294967232  ;;  %p2226_p1 = scmp.lt.s32.totalorder %s2385_s12, 1 }
  0x43   : > { %2380 = dma.done.wait (%p2226_p1), [#allocation3 + $0x2], 64 }
  0x44   : > { %2382 = vsyncadd (%p2226_p1), [#allocation3 + $0x2], 4294967232  ;;  %v2270_v6 = vld [vmem:[%s2905_s1 + $0x138] sm:$0xff]   ;;  %v2273_v9 = vld [vmem:[%s2905_s1 + $0x130] sm:$0xff]   ;;  %vm425_vm0 = vsmask.f32 256 }
  0x45   : > { %v2271_v7 = vld [vmem:[%s2905_s1 + $0xf8] sm:$0xff]   ;;  %2047 = vmatprep.subr.bf16.mxu0 %v2270_v6  ;;  %v2274_v10 = vld [vmem:[%s2905_s1 + $0xf0] sm:$0xff]   ;;  %v2276_v12 = vld [vmem:[%s2905_s1 + $0x128] sm:$0xff]   ;;  %vm452_vm1 = vsmask.f32 3328  ;;  %vm424_vm2 = vcmask 1040384  }
  0x46   : > { %v2272_v8 = vld [vmem:[%s2905_s1 + $0x178] sm:$0xff]   ;;  %2048 = vmatpush3.bf16.msra.mxu0 %v2271_v7  ;;  %v2275_v11 = vld [vmem:[%s2905_s1 + $0x170] sm:$0xff]   ;;  %v2277_v13 = vld [vmem:[%s2905_s1 + $0xe8] sm:$0xff]   ;;  %vm451_vm3 = vcmask 1043456   ;;  %vm1491_vm6 = vcmask 1041408   ;;  %vm1749_vm7 = vcmask 1041409  }
  0x47   : > { %2161 = vmatprep.subr.bf16.mxu1 %v2272_v8  ;;  %2049 = vmatprep.subr.bf16.mxu0 %v2273_v9  ;;  %v2278_v14 = vld [vmem:[%s2905_s1 + $0x168] sm:$0xff]   ;;  %v2279_v15 = vld [vmem:[%s2905_s1 + $0x120] sm:$0xff]   ;;  %v2282_v18 = vld [vmem:[%s2905_s1 + $0x118] sm:$0xff]   ;;  %vm1752_vm8 = vcmask 1042434   ;;  %vm1755_vm9 = vcmask 1043459  }
  0x48   : > { %2162 = vmatpush3.bf16.msra.mxu1 %v2272_v8  ;;  %v2280_v16 = vld [vmem:[%s2905_s1 + $0xe0] sm:$0xff]   ;;  %v2284_v19 = vld [vmem:[%s2905_s1 + $0x158] sm:$0xff]   ;;  %v2285_v21 = vld [vmem:[%s2905_s1 + $0x110] sm:$0xff]  }
  0x49   : > { %2163 = vmatprep.subr.bf16.mxu1 %v2275_v11  ;;  %v2281_v17 = vld [vmem:[%s2905_s1 + $0x160] sm:$0xff]   ;;  %v2283_v20 = vld [vmem:[%s2905_s1 + $0xd8] sm:$0xff]   ;;  %v2287_v22 = vld [vmem:[%s2905_s1 + $0x150] sm:$0xff]  }
  0x4a   : > { %2050 = vmatpush3.bf16.msra.mxu0 %v2274_v10  ;;  %v2286_v23 = vld [vmem:[%s2905_s1 + $0xd0] sm:$0xff]   ;;  %v2288_v24 = vld [vmem:[%s2905_s1 + $0x108] sm:$0xff]   ;;  %v2291_v27 = vld [vmem:[%s2905_s1 + $0x100] sm:$0xff]  }
  0x4b   : > { %2051 = vmatprep.subr.bf16.mxu0 %v2276_v12  ;;  %v2289_v25 = vld [vmem:[%s2905_s1 + $0xc8] sm:$0xff]   ;;  %v2551_v28 = vld [vmem:[#allocation2 + $0x4] sm:$0xf]  ;;  %v2564_v34 = vld [vmem:[#allocation2] sm:$0xf] }
  0x4c   : > { %2164 = vmatpush3.bf16.msra.mxu1 %v2275_v11  ;;  %v2290_v26 = vld [vmem:[%s2905_s1 + $0x148] sm:$0xff]   ;;  %v2293_v30 = vld [vmem:[%s2905_s1 + $0x140] sm:$0xff]   ;;  %v1943_v31 = vcombine.low %v2551_v28, %v2551_v28  ;;  %v2570_v36 = vcombine.low %v2564_v34, %v2564_v34  ;;  %v2297_v42 = vld [vmem:[%s2905_s1 + $0x78] sm:$0xff]  }
  0x4d   : > { %2165 = vmatprep.subr.bf16.mxu1 %v2278_v14  ;;  %v2553_v29 = vld [vmem:[#allocation2 + $0x8] sm:$0xf]  ;;  %v2566_v35 = vld [vmem:[#allocation2 + $0xc] sm:$0xf]  ;;  %v2292_v37 = vld [vmem:[%s2905_s1 + $0xc0] sm:$0xff]  }
  0x4e   : > { %2052 = vmatpush3.bf16.msra.mxu0 %v2277_v13  ;;  %v1944_v32 = vcombine.low %v2553_v29, %v2553_v29  ;;  %v1949_v33 = vcombine.low %v2551_v28, %v2553_v29  ;;  %v384_v38 = vshrl.u32 %v1943_v31, 16  ;;  %v387_v39 = vshll.u32 %v1943_v31, 16  ;;  %v2581_v45 = vld [vmem:[#allocation2 + $0x10] sm:$0xf]  ;;  %vm2585_vm4 = vmand %vm424_vm2, %vm425_vm0  ;;  %v2303_v54 = vld [vmem:[%s2905_s1 + $0xb8] sm:$0xff]  }
  0x4f   : > { %2053 = vmatprep.subr.bf16.mxu0 %v2279_v15  ;;  %v1945_v43 = vcombine.low %v2566_v35, %v2566_v35  ;;  %v380_v44 = vshll.u32 %v2570_v36, 16  ;;  %vm2591_vm5 = vmand %vm451_vm3, %vm452_vm1  ;;  %v2300_v59 = vld [vmem:[%s2905_s1 + $0x38] sm:$0xff]   ;;  %v2601_v60 = vld [vmem:[#allocation2 + $0x14] sm:$0xf]  ;;  %v1946_v63 = vcombine.low %v2581_v45, %v2581_v45  ;;  %v377_v5 = vshrl.u32 %v2570_v36, 16 }
  0x50   : > { %2166 = vmatpush3.bf16.msra.mxu1 %v2278_v14  ;;  %v391_v40 = vshrl.u32 %v1944_v32, 16  ;;  %v394_v41 = vshll.u32 %v1944_v32, 16  ;;  %764 = vmatprep.mubr.bf16.mxu0 %v1949_v33  ;;  %v386_v46 = vrot.slane %v384_v38, 7  ;;  %v435_v49 = vrot.slane %v387_v39, 1  ;;  %v2304_v7 = vld [vmem:[%s2905_s1 + $0x70] sm:$0xff]   ;;  %v2324_v36 = vld [vmem:[%s2905_s1] sm:$0xff]  }
  0x51   : > { %2167 = vmatprep.subr.bf16.mxu1 %v2281_v17  ;;  %v398_v51 = vshrl.u32 %v1945_v43, 16  ;;  %v401_v52 = vshll.u32 %v1945_v43, 16  ;;  %v433_v61 = vrot.slane %v380_v44, 1  ;;  %v1947_v9 = vcombine.low %v2601_v60, %v2601_v60  ;;  %v2306_v32 = vld [vmem:[%s2905_s1 + $0xb0] sm:$0xff]  }
  0x52   : > { %2054 = vmatpush3.bf16.msra.mxu0 %v2280_v16  ;;  %v393_v47 = vrot.slane %v391_v40, 7  ;;  %v437_v50 = vrot.slane %v394_v41, 1  ;;  %v389_v55 = vor.u32 %v387_v39, %v386_v46  ;;  %v436_v57 = vor.u32 %v435_v49, %v384_v38  ;;  %v2309_v38 = vld [vmem:[%s2905_s1 + $0x28] sm:$0xff]   ;;  %v2312_v49 = vld [vmem:[%s2905_s1 + $0x20] sm:$0xff]   ;;  %v2330_v48 = vld [vmem:[%s2905_s1 + $0x1f0] sm:$0xff]  }
  0x53   : > { %2055 = vmatprep.subr.bf16.mxu0 %v2282_v18  ;;  %v439_v62 = vrot.slane %v401_v52, 1  ;;  %v405_v10 = vshrl.u32 %v1946_v63, 16  ;;  %v408_v11 = vshll.u32 %v1946_v63, 16  ;;  %v434_v12 = vor.u32 %v433_v61, %v377_v5  ;;  %v2305_v18 = vld [vmem:[%s2905_s1 + $0x30] sm:$0xff]   ;;  %v2321_v63 = vld [vmem:[%s2905_s1 + $0x8] sm:$0xff]  }
  0x54   : > { %2168 = vmatpush3.bf16.msra.mxu1 %v2281_v17  ;;  %v396_v56 = vor.u32 %v394_v41, %v393_v47  ;;  %v438_v58 = vor.u32 %v437_v50, %v391_v40  ;;  %v2609_v0 = vsel %vm2585_vm4, 0, %v389_v55  ;;  %v455_v2 = vsel %vm2591_vm5, %v436_v57, 0  ;;  %v2311_v41 = vld [vmem:[%s2905_s1 + $0x60] sm:$0xff]   ;;  %v2310_v47 = vld [vmem:[%s2905_s1 + $0xa8] sm:$0xff]   ;;  %v2319_v61 = vld [vmem:[%s2905_s1 + $0x90] sm:$0xff]  }
  0x55   : > { %2169 = vmatprep.subr.bf16.mxu1 %v2284_v19  ;;  %v440_v8 = vor.u32 %v439_v62, %v398_v51  ;;  %v1952_v13 = vcombine.low %v2566_v35, %v2581_v45  ;;  %v400_v14 = vrot.slane %v398_v51, 7  ;;  %v412_v15 = vshrl.u32 %v1947_v9, 16  ;;  %v2313_v51 = vld [vmem:[%s2905_s1 + $0xa0] sm:$0xff]  }
  0x56   : > { %2056 = vmatpush3.bf16.msra.mxu0 %v2283_v20  ;;  %v2613_v1 = vsel %vm2585_vm4, 0, %v396_v56  ;;  %v2619_v3 = vsel %vm2591_vm5, %v438_v58, 0  ;;  %v415_v16 = vshll.u32 %v1947_v9, 16  ;;  %v441_v17 = vrot.slane %v408_v11, 1  ;;  %v2316_v56 = vld [vmem:[%s2905_s1 + $0x98] sm:$0xff]   ;;  %v2318_v58 = vld [vmem:[%s2905_s1 + $0x10] sm:$0xff]  }
  0x57   : > { %2057 = vmatprep.subr.bf16.mxu0 %v2285_v21  ;;  %v1948_v4 = vcombine.low %v2609_v0, %v2613_v1  ;;  %v1950_v6 = vcombine.low %v455_v2, %v2619_v3  ;;  %v407_v20 = vrot.slane %v405_v10, 7  ;;  %v2308_v21 = vld [vmem:[%s2905_s1 + $0x68] sm:$0xff]   ;;  %v414_v50 = vrot.slane %v412_v15, 7 }
  0x58   : > { %2170 = vmatpush3.bf16.msra.mxu1 %v2284_v19  ;;  %v403_v19 = vor.u32 %v401_v52, %v400_v14  ;;  %v2315_v52 = vld [vmem:[%s2905_s1 + $0x18] sm:$0xff]   ;;  %v379_v57 = vrot.slane %v377_v5, 7  ;;  %v1982_v9 = vcombine.low %v2553_v29, %v2566_v35  ;;  %v2332_v35 = vld [vmem:[%s2905_s1 + $0x230] sm:$0xff]   ;;  %v2337_v14 = vld [vmem:[%s2905_s1 + $0x1e0] sm:$0xff]  }
  0x59   : > { %2171 = vmatprep.subr.bf16.mxu1 %v2287_v22  ;;  %2177 = vmatprep.mubr.bf16.mxu1 %v1950_v6  ;;  %v2327_v5 = vld [vmem:[%s2905_s1 + $0x1f8] sm:$0xff]   ;;  %v2325_v6 = vld [vmem:[%s2905_s1 + $0x80] sm:$0xff]  }
  0x5a   : > { %2058 = vmatpush3.bf16.msra.mxu0 %v2286_v23  ;;  %v442_v23 = vor.u32 %v441_v17, %v405_v10  ;;  %v382_v62 = vor.u32 %v380_v44, %v379_v57  ;;  %v2331_v10 = vld [vmem:[%s2905_s1 + $0x1b0] sm:$0xff]   ;;  %v2341_v17 = vld [vmem:[%s2905_s1 + $0x198] sm:$0xff]  }
  0x5b   : > { %2059 = vmatprep.subr.bf16.mxu0 %v2288_v24  ;;  %v443_v24 = vrot.slane %v415_v16, 1 }
  0x5c   : > { %2172 = vmatpush3.bf16.msra.mxu1 %v2287_v22  ;;  %v2642_v22 = vsel %vm2591_vm5, %v440_v8, 0  ;;  %v458_v31 = vsel %vm2591_vm5, %v442_v23, 0  ;;  %v427_v44 = vsel %vm2585_vm4, 0, %v382_v62  ;;  %v2328_v8 = vld [vmem:[%s2905_s1 + $0x1b8] sm:$0xff]   ;;  %v2347_v23 = vld [vmem:[%s2905_s1 + $0x188] sm:$0xff]  }
  0x5d   : > { %2173 = vmatprep.subr.bf16.mxu1 %v2290_v26  ;;  %v1953_v33 = vcombine.low %v2642_v22, %v458_v31  ;;  %v1983_v29 = vcombine.low %v2619_v3, %v2642_v22  ;;  %v2338_v3 = vld [vmem:[%s2905_s1 + $0x1a0] sm:$0xff]   ;;  %v2345_v22 = vld [vmem:[%s2905_s1 + $0x210] sm:$0xff]  }
  0x5e   : > { %2060 = vmatpush3.bf16.msra.mxu0 %v2289_v25  ;;  %v454_v25 = vsel %vm2591_vm5, %v434_v12, 0 }
  0x5f   : > { %2061 = vmatprep.subr.bf16.mxu0 %v2291_v27  ;;  %v2648_v27 = vsel %vm2585_vm4, 0, %v403_v19  ;;  %v1980_v43 = vcombine.low %v454_v25, %v455_v2  ;;  %v2323_v2 = vld [vmem:[%s2905_s1 + $0x40] sm:$0xff]   ;;  %v2342_v19 = vld [vmem:[%s2905_s1 + $0x218] sm:$0xff]   ;;  %v2348_v25 = vld [vmem:[%s2905_s1 + $0x208] sm:$0xff]  }
  0x60   : > { %2174 = vmatpush3.bf16.msra.mxu1 %v2290_v26  ;;  %v410_v26 = vor.u32 %v408_v11, %v407_v20  ;;  %v2334_v11 = vld [vmem:[%s2905_s1 + $0x1e8] sm:$0xff]   ;;  %v1981_v12 = vcombine.low %v2613_v1, %v2648_v27  ;;  %v2344_v20 = vld [vmem:[%s2905_s1 + $0x190] sm:$0xff]  }
  0x61   : > { %2175 = vmatprep.subr.bf16.mxu1 %v2293_v30  ;;  %v2336_v1 = vld [vmem:[%s2905_s1 + $0x228] sm:$0xff]  }
  0x62   : > { %2062 = vmatpush3.bf16.msra.mxu0 %v2292_v37  ;;  %v431_v37 = vsel %vm2585_vm4, 0, %v410_v26  ;;  %v2350_v26 = vld [vmem:[%s2905_s1 + $0x180] sm:$0xff]  }
  0x63   : > { %2085 = vmatprep.subr.bf16.mxu0 %v2297_v42  ;;  %v1951_v40 = vcombine.low %v2648_v27, %v431_v37  ;;  %v1979_v42 = vcombine.low %v2564_v34, %v2551_v28  ;;  %v2314_v28 = vld [vmem:[%s2905_s1 + $0x58] sm:$0xff]   ;;  %v417_v34 = vor.u32 %v415_v16, %v414_v50  ;;  %v2339_v16 = vld [vmem:[%s2905_s1 + $0x220] sm:$0xff]  }
  0x64   : > { %2176 = vmatpush3.bf16.msra.mxu1 %v2293_v30  ;;  %v444_v30 = vor.u32 %v443_v24, %v412_v15  ;;  %v2340_v15 = vld [vmem:[%s2905_s1 + $0x1d8] sm:$0xff]   ;;  %v2349_v24 = vld [vmem:[%s2905_s1 + $0x1c0] sm:$0xff]  }
  0x65   : > { %2181 = vmatprep.subr.bf16.mxu1 %v2303_v54  ;;  %765 = vmatmul.mubr.bf16.vlgmr.msra.gmra.mxu0 %v1948_v4  ;;  %v432_v53 = vsel %vm2585_vm4, 0, %v417_v34  ;;  %v2322_v4 = vld [vmem:[%s2905_s1 + $0x88] sm:$0xff]   ;;  %v2351_v27 = vld [vmem:[%s2905_s1 + $0x200] sm:$0xff]  }
  0x66   : > { %2086 = vmatpush3.bf16.msra.mxu0 %v2300_v59  ;;  %772 = vmatprep.mubr.bf16.mxu0 %v1952_v13  ;;  %v459_v39 = vsel %vm2591_vm5, %v444_v30, 0  ;;  %v2691_v55 = vcombine.low %v431_v37, %v432_v53  ;;  %v2320_v59 = vld [vmem:[%s2905_s1 + $0x48] sm:$0xff]   ;;  %v2009_v30 = vcombine.low %v2581_v45, %v2601_v60 }
  0x67   : > { %2087 = vmatprep.subr.bf16.mxu0 %v2304_v7  ;;  %2178 = vmatmul.mubr.bf16.vlgmr.msra.gmra.mxu1 %v1953_v33  ;;  %v2669_v46 = vcombine.low %v458_v31, %v459_v39  ;;  %v1978_v7 = vcombine.low %v427_v44, %v2609_v0  ;;  %v2329_v0 = vld [vmem:[%s2905_s1 + $0x238] sm:$0xff]   ;;  %v2335_v13 = vld [vmem:[%s2905_s1 + $0x1a8] sm:$0xff]  }
  0x68   : > { %2182 = vmatpush3.bf16.msra.mxu1 %v2303_v54  ;;  %2197 = vmatprep.mubr.bf16.mxu1 %v1980_v43  ;;  %v2317_v54 = vld [vmem:[%s2905_s1 + $0x50] sm:$0xff]  }
  0x69   : > { %2183 = vmatprep.subr.bf16.mxu1 %v2306_v32 }
  0x6a   : > { %2088 = vmatpush3.bf16.msra.mxu0 %v2305_v18  ;;  %v2343_v18 = vld [vmem:[%s2905_s1 + $0x1d0] sm:$0xff]  }
  0x6b   : > { %2089 = vmatprep.subr.bf16.mxu0 %v2308_v21  ;;  %v2346_v21 = vld [vmem:[%s2905_s1 + $0x1c8] sm:$0xff]  }
  0x6c   : > { %2184 = vmatpush3.bf16.msra.mxu1 %v2306_v32 }
  0x6d   : > { %773 = vmatmul.mubr.bf16.gmra.mxu0 %v1951_v40  ;;  %2185 = vmatprep.subr.bf16.mxu1 %v2310_v47 }
  0x6e   : > { %2090 = vmatpush3.bf16.msra.mxu0 %v2309_v38  ;;  %1018 = vmatprep.mubr.bf16.mxu0 %v1979_v42 }
  0x6f   : > { %2091 = vmatprep.subr.bf16.mxu0 %v2311_v41 }
  0x70   : > { %2186 = vmatpush3.bf16.msra.mxu1 %v2310_v47 }
  0x71   : > { %2187 = vmatprep.subr.bf16.mxu1 %v2313_v51 }
  0x72   : > { %2092 = vmatpush3.bf16.msra.mxu0 %v2312_v49 }
  0x73   : > { %2093 = vmatprep.subr.bf16.mxu0 %v2314_v28 }
  0x74   : > { %2188 = vmatpush3.bf16.msra.mxu1 %v2313_v51 }
  0x75   : > { %2189 = vmatprep.subr.bf16.mxu1 %v2316_v56 }
  0x76   : > { %2094 = vmatpush3.bf16.msra.mxu0 %v2315_v52 }
  0x77   : > { %2095 = vmatprep.subr.bf16.mxu0 %v2317_v54 }
  0x78   : > { %2190 = vmatpush3.bf16.msra.mxu1 %v2316_v56 }
  0x79   : > { %2191 = vmatprep.subr.bf16.mxu1 %v2319_v61 }
  0x7a   : > { %2096 = vmatpush3.bf16.msra.mxu0 %v2318_v58 }
  0x7b   : > { %2097 = vmatprep.subr.bf16.mxu0 %v2320_v59 }
  0x7c   : > { %2192 = vmatpush3.bf16.msra.mxu1 %v2319_v61 }
  0x7d   : > { %2193 = vmatprep.subr.bf16.mxu1 %v2322_v4 }
  0x7e   : > { %2098 = vmatpush3.bf16.msra.mxu0 %v2321_v63 }
  0x7f   : > { %2099 = vmatprep.subr.bf16.mxu0 %v2323_v2 }
  0x80   : > { %2194 = vmatpush3.bf16.msra.mxu1 %v2322_v4 }
  0x81   : > { %2195 = vmatprep.subr.bf16.mxu1 %v2325_v6 }
  0x82   : > { %2100 = vmatpush3.bf16.msra.mxu0 %v2324_v36  ;;  %v2405_v36 = vmov 1983009808  }
  0x83   : > { %2123 = vmatprep.subr.bf16.mxu0 %v2327_v5  ;;  %v1409_v44 = vunpack.c.l.s4 %v2405_v36  ;;  %v1411_v5 = vlaneseq }
  0x84   : > { %2196 = vmatpush3.bf16.msra.mxu1 %v2325_v6 }
  0x85   : > { %1019 = vmatmul.mubr.bf16.vlgmr.msra.gmra.mxu0 %v1978_v7  ;;  %2201 = vmatprep.subr.bf16.mxu1 %v2329_v0 }
  0x86   : > { %2124 = vmatpush3.bf16.msra.mxu0 %v2328_v8  ;;  %1026 = vmatprep.mubr.bf16.mxu0 %v1982_v9 }
  0x87   : > { %2125 = vmatprep.subr.bf16.mxu0 %v2330_v48  ;;  %2198 = vmatmul.mubr.bf16.vlgmr.msra.gmra.mxu1 %v1983_v29 }
  0x88   : > { %2202 = vmatpush3.bf16.msra.mxu1 %v2329_v0  ;;  %2217 = vmatprep.mubr.bf16.mxu1 %v1983_v29 }
  0x89   : > { %2203 = vmatprep.subr.bf16.mxu1 %v2332_v35 }
  0x8a   : > { %2126 = vmatpush3.bf16.msra.mxu0 %v2331_v10 }
  0x8b   : > { %2127 = vmatprep.subr.bf16.mxu0 %v2334_v11 }
  0x8c   : > { %2204 = vmatpush3.bf16.msra.mxu1 %v2332_v35 }
  0x8d   : > { %1027 = vmatmul.mubr.bf16.gmra.mxu0 %v1981_v12  ;;  %2205 = vmatprep.subr.bf16.mxu1 %v2336_v1 }
  0x8e   : > { %2128 = vmatpush3.bf16.msra.mxu0 %v2335_v13  ;;  %1318 = vmatprep.mubr.bf16.mxu0 %v1982_v9  ;;  %v1412_v13 = vshrl.u32 %v1411_v5, 7 }
  0x8f   : > { %2129 = vmatprep.subr.bf16.mxu0 %v2337_v14 }
  0x90   : > { %2206 = vmatpush3.bf16.msra.mxu1 %v2336_v1 }
  0x91   : > { %2207 = vmatprep.subr.bf16.mxu1 %v2339_v16 }
  0x92   : > { %2130 = vmatpush3.bf16.msra.mxu0 %v2338_v3 }
  0x93   : > { %2131 = vmatprep.subr.bf16.mxu0 %v2340_v15 }
  0x94   : > { %2208 = vmatpush3.bf16.msra.mxu1 %v2339_v16 }
  0x95   : > { %2209 = vmatprep.subr.bf16.mxu1 %v2342_v19 }
  0x96   : > { %2132 = vmatpush3.bf16.msra.mxu0 %v2341_v17 }
  0x97   : > { %2133 = vmatprep.subr.bf16.mxu0 %v2343_v18  ;;  %v2824_v18 = vld [vmem:[%s2906_s2] ss:$0 sm:$0xff] }
  0x98   : > { %2210 = vmatpush3.bf16.msra.mxu1 %v2342_v19 }
  0x99   : > { %2211 = vmatprep.subr.bf16.mxu1 %v2345_v22 }
  0x9a   : > { %2134 = vmatpush3.bf16.msra.mxu0 %v2344_v20 }
  0x9b   : > { %2135 = vmatprep.subr.bf16.mxu0 %v2346_v21 }
  0x9c   : > { %2212 = vmatpush3.bf16.msra.mxu1 %v2345_v22 }
  0x9d   : > { %2213 = vmatprep.subr.bf16.mxu1 %v2348_v25 }
  0x9e   : > { %2136 = vmatpush3.bf16.msra.mxu0 %v2347_v23 }
  0x9f   : > { %2137 = vmatprep.subr.bf16.mxu0 %v2349_v24 }
  0xa0   : > { %2214 = vmatpush3.bf16.msra.mxu1 %v2348_v25 }
  0xa1   : > { %2215 = vmatprep.subr.bf16.mxu1 %v2351_v27 }
  0xa2   : > { %2138 = vmatpush3.bf16.msra.mxu0 %v2350_v26 }
  0xa4   : > { %2216 = vmatpush3.bf16.msra.mxu1 %v2351_v27 }
  0xa5   : > { %1319 = vmatmul.mubr.bf16.vlgmr.msra.gmra.mxu0 %v1981_v12  ;;  %v1410_v12 = vunpack.c.0.s8 %v1409_v44 }
  0xa6   : > { %1326 = vmatprep.mubr.bf16.mxu0 %v2009_v30 }
  0xa7   : > { %2218 = vmatmul.mubr.bf16.vlgmr.msra.gmra.mxu1 %v2669_v46  ;;  %v2829_v26 = vsub.s32 %v1410_v12, %v1412_v13 }
  0xad   : > { %1327 = vmatmul.mubr.bf16.gmra.mxu0 %v2691_v55 }
 0x125   : > { %v2063_v31 = vpop.f32.mrf.mxu0 }
 0x127   : > { %v2064_v32 = vpop.f32.mrf.mxu0  ;;  %v2179_v43 = vpop.f32.mrf.mxu1 }
 0x128   : > { %v2065_v55 = vadd.f32 %v2064_v32, %v2063_v31 }
 0x129   : > { %v2066_v33 = vpop.f32.mrf.mxu0  ;;  %v815_v49 = vpop.f32.mrf.mxu1 }
 0x12a   : > { %v816_v61 = vadd.f32 %v2065_v55, %v815_v49 }
 0x12b   : > { %v2067_v37 = vpop.f32.mrf.mxu0  ;;  %v2813_v46 = vpop.f32.mrf.mxu1 }
 0x12c   : > { %v2068_v62 = vadd.f32 %v2067_v37, %v2066_v33 }
 0x12d   : > { %v2069_v38 = vpop.f32.mrf.mxu0  ;;  %v818_v34 = vpop.f32.mrf.mxu1 }
 0x12e   : > { %v819_v10 = vadd.f32 %v2068_v62, %v818_v34 }
 0x12f   : > { %v2070_v39 = vpop.f32.mrf.mxu0 }
 0x130   : > { %v2071_v2 = vadd.f32 %v2070_v39, %v2069_v38 }
 0x131   : > { %v2809_v40 = vpop.f32.mrf.mxu0 }
 0x132   : > { %v824_v29 = vadd.f32 %v2179_v43, %v2071_v2 }
 0x133   : > { %v2811_v41 = vpop.f32.mrf.mxu0 }
 0x145   : > { %v2101_v45 = vpop.f32.mrf.mxu0 }
 0x147   : > { %v2102_v60 = vpop.f32.mrf.mxu0  ;;  %v2199_v51 = vpop.f32.mrf.mxu1 }
 0x148   : > { %v2103_v58 = vadd.f32 %v2102_v60, %v2101_v45  ;;  %v2074_v45 = vadd.f32 %v2811_v41, %v2809_v40 }
 0x149   : > { %v2104_v42 = vpop.f32.mrf.mxu0  ;;  %v1069_v53 = vpop.f32.mrf.mxu1 }
 0x14a   : > { %v1021_v7 = vadd.f32 %v2103_v58, %v816_v61  ;;  %v827_v41 = vadd.f32 %v2813_v46, %v2074_v45 }
 0x14b   : > { %v2105_v47 = vpop.f32.mrf.mxu0  ;;  %v2819_v57 = vpop.f32.mrf.mxu1 }
 0x14c   : > { %v2106_v6 = vadd.f32 %v2105_v47, %v2104_v42  ;;  %v1070_v14 = vadd.f32 %v1069_v53, %v1021_v7 }
 0x14d   : > { %v2107_v50 = vpop.f32.mrf.mxu0  ;;  %v1072_v4 = vpop.f32.mrf.mxu1 }
 0x14e   : > { %v1024_v1 = vadd.f32 %v2106_v6, %v819_v10 }
 0x14f   : > { %v2108_v28 = vpop.f32.mrf.mxu0 }
 0x150   : > { %v2109_v9 = vadd.f32 %v2108_v28, %v2107_v50  ;;  %v1073_v24 = vadd.f32 %v1072_v4, %v1024_v1 }
 0x151   : > { %v2815_v52 = vpop.f32.mrf.mxu0 }
 0x152   : > { %v1029_v17 = vadd.f32 %v2109_v9, %v824_v29 }
 0x153   : > { %v2817_v54 = vpop.f32.mrf.mxu0 }
 0x154   : > { %v1078_v30 = vadd.f32 %v2199_v51, %v1029_v17 }
 0x165   : > { %v2139_v56 = vpop.f32.mrf.mxu0 }
 0x167   : > { %v2140_v59 = vpop.f32.mrf.mxu0  ;;  %v2219_v0 = vpop.f32.mrf.mxu1 }
 0x168   : > { %v2141_v8 = vadd.f32 %v2140_v59, %v2139_v56  ;;  %v2112_v59 = vadd.f32 %v2817_v54, %v2815_v52 }
 0x169   : > { %v2142_v63 = vpop.f32.mrf.mxu0  ;;  %v1369_v35 = vpop.f32.mrf.mxu1 }
 0x16a   : > { %v1370_v3 = vadd.f32 %v2141_v8, %v1369_v35  ;;  %v1032_v29 = vadd.f32 %v2112_v59, %v827_v41 }
 0x16b   : > { %v2143_v48 = vpop.f32.mrf.mxu0  ;;  %v2826_v19 = vpop.f32.mrf.mxu1 }
 0x16c   : > { %v2144_v15 = vadd.f32 %v2143_v48, %v2142_v63  ;;  %v1384_v21 = vadd.f32 %v1370_v3, %v1070_v14 }
 0x16d   : > { %v2145_v11 = vpop.f32.mrf.mxu0  ;;  %v1372_v22 = vpop.f32.mrf.mxu1 }
 0x16e   : > { %v1395_v25 = vadd.f32 %v2824_v18, %v1384_v21  ;;  %v1373_v27 = vadd.f32 %v2144_v15, %v1372_v22 }
 0x16f   : > { %v2146_v16 = vpop.f32.mrf.mxu0 }
 0x170   : > { %v2147_v20 = vadd.f32 %v2146_v16, %v2145_v11  ;;  %v1399_v31 = vmax.f32 %v1395_v25, 0.0  ;;  %v1385_v32 = vadd.f32 %v1373_v27, %v1073_v24 }
 0x171   : > { %v2148_v8 = vpop.f32.mrf.mxu0 }
 0x172   : > { %v1378_v23 = vadd.f32 %v2219_v0, %v2147_v20  ;;  %v1407_v37 = vcombine.high %v1399_v31, %v1399_v31  ;;  %v1414_v38 = vrot.slane %v1399_v31, %v2829_v26  ;;  %v1396_v39 = vadd.f32 %v2824_v18, %v1385_v32 }
 0x173   : > { %v2149_v16 = vpop.f32.mrf.mxu0 }
 0x174   : > { %v1386_v33 = vadd.f32 %v1378_v23, %v1078_v30  ;;  %v1421_v60 = vrot.slane %v1407_v37, %v2829_v26  ;;  %v1422_v42 = vcombine.high %v1414_v38, %v1414_v38  ;;  %v1492_v43 = vsel %vm1491_vm6, %v1414_v38, -inf }
 0x175   : > { %v1400_v47 = vmax.f32 %v1396_v39, 0.0  ;;  %v1493_v49 = vrot.slane %v1492_v43, 4  ;;  %v1081_v30 = vadd.f32 %v2819_v57, %v1032_v29 }
 0x176   : > { %v1397_v50 = vadd.f32 %v2824_v18, %v1386_v33  ;;  %v1423_v28 = vcombine.high %v1421_v60, %v1421_v60  ;;  %v1499_v34 = vsel %vm1491_vm6, %v1422_v42, -inf  ;;  %v1506_v51 = vsel %vm1491_vm6, %v1421_v60, -inf }
 0x177   : > { %v1424_v53 = vcombine.high %v1400_v47, %v1400_v47  ;;  %v1494_v55 = vmax.f32 %v1492_v43, %v1493_v49  ;;  %v1500_v56 = vrot.slane %v1499_v34, 4  ;;  %v1507_v58 = vrot.slane %v1506_v51, 4 }
 0x178   : > { %v1431_v40 = vrot.slane %v1400_v47, %v2829_v26  ;;  %v1513_v61 = vsel %vm1491_vm6, %v1423_v28, -inf  ;;  %v1401_v0 = vmax.f32 %v1397_v50, 0.0  ;;  %v2150_v33 = vadd.f32 %v2149_v16, %v2148_v8 }
 0x179   : > { %v1438_v62 = vrot.slane %v1424_v53, %v2829_v26  ;;  %v1495_v63 = vrot.slane %v1494_v55, 2  ;;  %v1501_v2 = vmax.f32 %v1499_v34, %v1500_v56  ;;  %v1508_v4 = vmax.f32 %v1506_v51, %v1507_v58 }
 0x17a   : > { %v1514_v36 = vrot.slane %v1513_v61, 4  ;;  %v1439_v44 = vcombine.high %v1431_v40, %v1431_v40  ;;  %v1520_v6 = vsel %vm1491_vm6, %v1431_v40, -inf  ;;  %v1441_v21 = vcombine.high %v1401_v0, %v1401_v0 }
 0x17b   : > { %v1440_v5 = vcombine.high %v1438_v62, %v1438_v62  ;;  %v1534_v7 = vsel %vm1491_vm6, %v1438_v62, -inf  ;;  %v1502_v48 = vrot.slane %v1501_v2, 2  ;;  %v1509_v46 = vrot.slane %v1508_v4, 2 }
 0x17c   : > { %v1515_v9 = vmax.f32 %v1513_v61, %v1514_v36  ;;  %v1521_v52 = vrot.slane %v1520_v6, 4  ;;  %v1527_v54 = vsel %vm1491_vm6, %v1439_v44, -inf  ;;  %v1535_v10 = vrot.slane %v1534_v7, 4 }
 0x17d   : > { %v1541_v11 = vsel %vm1491_vm6, %v1440_v5, -inf  ;;  %v1496_v35 = vmax.f32 %v1494_v55, %v1495_v63  ;;  %v1510_v12 = vmax.f32 %v1508_v4, %v1509_v46  ;;  %v1528_v1 = vrot.slane %v1527_v54, 4 }
 0x17e   : > { %v1516_v13 = vrot.slane %v1515_v9, 2  ;;  %v1522_v14 = vmax.f32 %v1520_v6, %v1521_v52  ;;  %v1536_v3 = vmax.f32 %v1534_v7, %v1535_v10  ;;  %v1542_v15 = vrot.slane %v1541_v11, 4 }
 0x17f   : > { %v1503_v17 = vmax.f32 %v1501_v2, %v1502_v48  ;;  %v1448_v22 = vrot.slane %v1401_v0, %v2829_v26  ;;  %v1529_v24 = vmax.f32 %v1527_v54, %v1528_v1  ;;  %v1497_v31 = vrot.slane %v1496_v35, 1 }
 0x180   : > { %v1517_v20 = vmax.f32 %v1515_v9, %v1516_v13  ;;  %v1523_v23 = vrot.slane %v1522_v14, 2  ;;  %v1537_v25 = vrot.slane %v1536_v3, 2  ;;  %v1543_v27 = vmax.f32 %v1541_v11, %v1542_v15 }
 0x181   : > { %v1511_v32 = vrot.slane %v1510_v12, 1  ;;  %v1530_v38 = vrot.slane %v1529_v24, 2  ;;  %v1504_v60 = vrot.slane %v1503_v17, 1  ;;  %v1455_v43 = vrot.slane %v1441_v21, %v2829_v26 }
 0x182   : > { %v1524_v37 = vmax.f32 %v1522_v14, %v1523_v23  ;;  %v1538_v39 = vmax.f32 %v1536_v3, %v1537_v25  ;;  %v1544_v45 = vrot.slane %v1543_v27, 2  ;;  %v1518_v42 = vrot.slane %v1517_v20, 1 }
 0x183   : > { %v1456_v47 = vcombine.high %v1448_v22, %v1448_v22  ;;  %v1531_v50 = vmax.f32 %v1529_v24, %v1530_v38  ;;  %v1498_v51 = vmax.f32 %v1496_v35, %v1497_v31  ;;  %v1512_v53 = vmax.f32 %v1510_v12, %v1511_v32 }
 0x184   : > { %v1525_v49 = vrot.slane %v1524_v37, 1  ;;  %v1539_v28 = vrot.slane %v1538_v39, 1  ;;  %v1545_v34 = vmax.f32 %v1543_v27, %v1544_v45  ;;  %v1548_v57 = vsel %vm1491_vm6, %v1448_v22, -inf }
 0x185   : > { %v1381_v55 = vadd.f32 %v2826_v19, %v2150_v33  ;;  %v1532_v58 = vrot.slane %v1531_v50, 1  ;;  %v1505_v59 = vmax.f32 %v1503_v17, %v1504_v60  ;;  %v1519_v61 = vmax.f32 %v1517_v20, %v1518_v42 }
 0x186   : > { %v1526_v56 = vmax.f32 %v1524_v37, %v1525_v49  ;;  %v1540_v40 = vmax.f32 %v1538_v39, %v1539_v28  ;;  %v1546_v41 = vrot.slane %v1545_v34, 1  ;;  %v1457_v62 = vcombine.high %v1455_v43, %v1455_v43 }
 0x187   : > { %v1555_v63 = vsel %vm1491_vm6, %v1456_v47, -inf  ;;  %v1533_v2 = vmax.f32 %v1531_v50, %v1532_v58  ;;  %v1549_v5 = vrot.slane %v1548_v57, 4  ;;  %v1562_v6 = vsel %vm1491_vm6, %v1455_v43, -inf }
 0x188   : > { %v1547_v4 = vmax.f32 %v1545_v34, %v1546_v41  ;;  %v1604_v36 = vmax.f32 %v1498_v51, %v1526_v56  ;;  %v1606_v44 = vmax.f32 %v1512_v53, %v1540_v40  ;;  %v1387_v7 = vadd.f32 %v1381_v55, %v1081_v30 }
 0x189   : > { %v1605_v8 = vmax.f32 %v1505_v59, %v1533_v2  ;;  %v1556_v9 = vrot.slane %v1555_v63, 4  ;;  %v1569_v0 = vsel %vm1491_vm6, %v1457_v62, -inf  ;;  %v1550_v29 = vmax.f32 %v1548_v57, %v1549_v5 }
 0x18a   : > { %v1607_v48 = vmax.f32 %v1519_v61, %v1547_v4  ;;  %v1612_v19 = vpack.c.bf16 %v1604_v36, %v1604_v36  ;;  %v1614_v46 = vpack.c.bf16 %v1606_v44, %v1606_v44  ;;  %v1563_v35 = vrot.slane %v1562_v6, 4 }
 0x18b   : > { %v1613_v52 = vpack.c.bf16 %v1605_v8, %v1605_v8  ;;  %v1398_v12 = vadd.f32 %v2824_v18, %v1387_v7  ;;  %v1570_v3 = vrot.slane %v1569_v0, 4  ;;  %v1557_v15 = vmax.f32 %v1555_v63, %v1556_v9 }
 0x18c   : > { %v1615_v54 = vpack.c.bf16 %v1607_v48, %v1607_v48  ;;  %v1634_v10 = vrot.slane %v1612_v19, %v2829_v26  ;;  %v1648_v11 = vrot.slane %v1614_v46, %v2829_v26  ;;  %v1564_v22 = vmax.f32 %v1562_v6, %v1563_v35 }
 0x18d   : > { %v1641_v13 = vrot.slane %v1613_v52, %v2829_v26  ;;  %v1402_v23 = vmax.f32 %v1398_v12, 0.0  ;;  %v1551_v25 = vrot.slane %v1550_v29, 2  ;;  %v1571_v27 = vmax.f32 %v1569_v0, %v1570_v3 }
 0x18e   : > { %v1655_v14 = vrot.slane %v1615_v54, %v2829_v26  ;;  %v1704_v1 = vrot.slane %v1648_v11, %v2829_v26  ;;  %v1690_v16 = vrot.slane %v1634_v10, %v2829_v26  ;;  %v1558_v39 = vrot.slane %v1557_v15, 2 }
 0x18f   : > { %v1697_v17 = vrot.slane %v1641_v13, %v2829_v26  ;;  %v1458_v31 = vcombine.high %v1402_v23, %v1402_v23  ;;  %v1465_v32 = vrot.slane %v1402_v23, %v2829_v26  ;;  %v1565_v45 = vrot.slane %v1564_v22, 2 }
 0x190   : > { %v1711_v20 = vrot.slane %v1655_v14, %v2829_v26  ;;  %v1742_v21 = vunpack.c.l.b16 %v1704_v1  ;;  %v1740_v33 = vunpack.c.l.b16 %v1690_v16  ;;  %v1552_v49 = vmax.f32 %v1550_v29, %v1551_v25 }
 0x191   : > { %v1741_v18 = vunpack.c.l.b16 %v1697_v17  ;;  %v1472_v60 = vrot.slane %v1458_v31, %v2829_v26  ;;  %v1473_v42 = vcombine.high %v1465_v32, %v1465_v32  ;;  %v1576_v43 = vsel %vm1491_vm6, %v1465_v32, -inf }
 0x192   : > { %v1743_v24 = vunpack.c.l.b16 %v1711_v20  ;;  %v1751_v30 = vrot.slane %v1742_v21, 6  ;;  %v1572_v50 = vrot.slane %v1571_v27, 2  ;;  %v1577_v28 = vrot.slane %v1576_v43, 4 }
 0x193   : > { %v1748_v37 = vrot.slane %v1741_v18, 7  ;;  %v1474_v51 = vcombine.high %v1472_v60, %v1472_v60  ;;  %v1583_v53 = vsel %vm1491_vm6, %v1473_v42, -inf  ;;  %v1590_v57 = vsel %vm1491_vm6, %v1472_v60, -inf }
 0x194   : > { %v1754_v38 = vrot.slane %v1743_v24, 5  ;;  %v1578_v56 = vmax.f32 %v1576_v43, %v1577_v28  ;;  %v1584_v58 = vrot.slane %v1583_v53, 4  ;;  %v1591_v40 = vrot.slane %v1590_v57, 4 }
 0x195   : > { %v1750_v47 = vsel %vm1749_vm7, %v1748_v37, %v1740_v33  ;;  %v1559_v59 = vmax.f32 %v1557_v15, %v1558_v39  ;;  %v1566_v61 = vmax.f32 %v1564_v22, %v1565_v45  ;;  %v1597_v62 = vsel %vm1491_vm6, %v1474_v51, -inf }
 0x196   : > { %v1753_v34 = vsel %vm1752_vm8, %v1751_v30, %v1750_v47  ;;  %v1579_v63 = vrot.slane %v1578_v56, 2  ;;  %v1585_v2 = vmax.f32 %v1583_v53, %v1584_v58  ;;  %v1592_v4 = vmax.f32 %v1590_v57, %v1591_v40 }
 0x197   : > { %v1756_v55 = vsel %vm1755_vm9, %v1754_v38, %v1753_v34  ;;  %v1598_v36 = vrot.slane %v1597_v62, 4  ;;  %v1553_v44 = vrot.slane %v1552_v49, 1  ;;  %v1573_v5 = vmax.f32 %v1571_v27, %v1572_v50 }
 0x198   : > { %v1763_v41 = vpack.c.b16 %v1756_v55, %v1756_v55  ;;  %v1580_v6 = vmax.f32 %v1578_v56, %v1579_v63  ;;  %v1586_v7 = vrot.slane %v1585_v2, 2  ;;  %v1593_v8 = vrot.slane %v1592_v4, 2 }
 0x199   : > { %v1599_v48 = vmax.f32 %v1597_v62, %v1598_v36  ;;  %v1560_v19 = vrot.slane %v1559_v59, 1  ;;  %v1567_v46 = vrot.slane %v1566_v61, 1  ;;  %v1554_v10 = vmax.f32 %v1552_v49, %v1553_v44 }
 0x19a   : > { %2036 = vst.sshfl [vmem:[%s2467_s29] sm:$0x3 pattern:$0x76325410] %v1763_v41  ;;  %v1581_v9 = vrot.slane %v1580_v6, 1  ;;  %v1587_v0 = vmax.f32 %v1585_v2, %v1586_v7  ;;  %v1594_v52 = vmax.f32 %v1592_v4, %v1593_v8  ;;  %v1574_v11 = vrot.slane %v1573_v5, 1 }
 0x19b   : > { %v1600_v54 = vrot.slane %v1599_v48, 2  ;;  %v1561_v14 = vmax.f32 %v1559_v59, %v1560_v19  ;;  %v1568_v1 = vmax.f32 %v1566_v61, %v1567_v46 }
 0x19c   : > { %v1582_v29 = vmax.f32 %v1580_v6, %v1581_v9  ;;  %v1588_v35 = vrot.slane %v1587_v0, 1  ;;  %v1595_v12 = vrot.slane %v1594_v52, 1  ;;  %v1575_v20 = vmax.f32 %v1573_v5, %v1574_v11 }
 0x19d   : > { %v1601_v13 = vmax.f32 %v1599_v48, %v1600_v54 }
 0x19e   : > { %v1589_v3 = vmax.f32 %v1587_v0, %v1588_v35  ;;  %v1596_v15 = vmax.f32 %v1594_v52, %v1595_v12  ;;  %v1608_v17 = vmax.f32 %v1554_v10, %v1582_v29 }
 0x19f   : > { %v1602_v16 = vrot.slane %v1601_v13, 1 }
 0x1a0   : > { %v1609_v22 = vmax.f32 %v1561_v14, %v1589_v3  ;;  %v1610_v23 = vmax.f32 %v1568_v1, %v1596_v15  ;;  %v1616_v18 = vpack.c.bf16 %v1608_v17, %v1608_v17 }
 0x1a1   : > { %v1603_v21 = vmax.f32 %v1601_v13, %v1602_v16 }
 0x1a2   : > { %v1617_v25 = vpack.c.bf16 %v1609_v22, %v1609_v22  ;;  %v1618_v27 = vpack.c.bf16 %v1610_v23, %v1610_v23  ;;  %v1662_v30 = vrot.slane %v1616_v18, %v2829_v26 }
 0x1a3   : > { %v1611_v24 = vmax.f32 %v1575_v20, %v1603_v21 }
 0x1a4   : > { %v1669_v32 = vrot.slane %v1617_v25, %v2829_v26  ;;  %v1676_v33 = vrot.slane %v1618_v27, %v2829_v26  ;;  %v1718_v38 = vrot.slane %v1662_v30, %v2829_v26 }
 0x1a5   : > { %v1619_v31 = vpack.c.bf16 %v1611_v24, %v1611_v24 }
 0x1a6   : > { %v1725_v39 = vrot.slane %v1669_v32, %v2829_v26  ;;  %v1732_v45 = vrot.slane %v1676_v33, %v2829_v26  ;;  %v1744_v47 = vunpack.c.l.b16 %v1718_v38 }
 0x1a7   : > { %v1683_v37 = vrot.slane %v1619_v31, %v2829_v26 }
 0x1a8   : > { %v1745_v42 = vunpack.c.l.b16 %v1725_v39  ;;  %v1746_v43 = vunpack.c.l.b16 %v1732_v45 }
 0x1a9   : > { %v1739_v60 = vrot.slane %v1683_v37, %v2829_v26 }
 0x1aa   : > { %v1757_v50 = vrot.slane %v1745_v42, 7  ;;  %v1759_v28 = vrot.slane %v1746_v43, 6 }
 0x1ab   : > { %v1747_v49 = vunpack.c.l.b16 %v1739_v60 }
 0x1ac   : > { %v1758_v34 = vsel %vm1749_vm7, %v1757_v50, %v1744_v47 }
 0x1ad   : > { %v1761_v51 = vrot.slane %v1747_v49, 5  ;;  %v1760_v53 = vsel %vm1752_vm8, %v1759_v28, %v1758_v34 }
 0x1af   : > { %v1762_v57 = vsel %vm1755_vm9, %v1761_v51, %v1760_v53 }
 0x1b0   : > { %v1764_v55 = vpack.c.b16 %v1762_v57, %v1762_v57 }
 0x1b2   : > { %2037 = vst.sshfl [vmem:[%s2467_s29 + $0x2] sm:$0x3 pattern:$0x76325410] %v1764_v55 }
 0x1b3 PF: > { %s13_s16 = sadd.s32 1, %s2401_s16   ;;  %s2912_s12 = smov %s2393_s14 }
 0x1b4   : > { %p10_p2 = scmp.ge.s32.totalorder %s13_s16, 6   ;;  %s2913_s13 = smov %s2397_s15 }
 0x1b5   : > { %s2914_s14 = smov %s2917_s17  ;;  %s2915_s15 = smov %s2921_s18 }
 0x1b6   :  { %12 = sbr.rel (!%p10_p2) target bundleno = 3 (0x3), region = 213 }
 0x1bb   :  { %1813 = vsyncmov [#allocation3] }
 0x1be   :  { %s1814_s29 = vpop.sfrf %1813 }
 0x1bf   :  { %p2040_p3 = scmp.ne.s32.totalorder %s1814_s29, 0 }
 0x1c1   :  { %1818 = shalt.err (%p2040_p3)  }
 0x1c2   :  { %1820 = vsyncmov [#allocation3 + $0x1] }
 0x1c5   :  { %s1821_s26 = vpop.sfrf %1820 }
 0x1c6   :  { %p2041_p4 = scmp.ne.s32.totalorder %s1821_s26, 0 }
 0x1c8   :  { %1825 = shalt.err (%p2041_p4)  }
 0x1c9   :  { %1827 = vsyncmov [#allocation3 + $0x2] }
 0x1cc   :  { %s1828_s23 = vpop.sfrf %1827 }
 0x1cd   :  { %p2042_p5 = scmp.ne.s32.totalorder %s1828_s23, 0 }
 0x1cf   :  { %1832 = shalt.err (%p2042_p5)  }

// kernel: rsu4_forward.14
= control target key start
LH: loop header
LB: loop body
LE: loop exit
PB: predicated region body
PF: predicated region fallthrough
CT: control target
= control target key end

     0   :  { %s2043_s12 = smov 0   ;;  %s2045_s13 = smov 0   ;;  %s2405_s0 = inlined_call_operand.vmem [shape: bf16[2,4,4,128], index: 0, kind: input, shape index: {}]   ;;  %s2406_s1 = inlined_call_operand.vmem [shape: bf16[1152,128], index: 1, kind: input, shape index: {}]   ;;  %s2407_s2 = inlined_call_operand.vmem [shape: f32[1,128], index: 2, kind: input, shape index: {}]   ;;  %s2408_s3 = inlined_call_operand.vmem [shape: bf16[2,4,4,128], index: 3, kind: output, shape index: {}]  }
   0x1   :  { %s2047_s14 = smov 0   ;;  %s2049_s15 = smov 0  }
   0x2   :  { %s2051_s16 = smov 0  }
   0x3 LB: > { %s22_s17 = sadd.s32 1, %s2008_s14  ;;  %s25_s18 = sadd.s32 1, %s2012_s15  ;;  %s2016_s16 = sphi %s2051_s16, %s13_s16   ;;  %s2012_s15 = sphi %s2049_s15, %s2412_s15   ;;  %s2008_s14 = sphi %s2047_s14, %s2411_s14   ;;  %s2004_s13 = sphi %s2045_s13, %s2410_s13   ;;  %s2000_s12 = sphi %s2043_s12, %s2409_s12  }
   0x4   : > { %p23_p0 = scmp.ge.s32.totalorder %s22_s17, 2  ;;  %p1582_p1 = scmp.ge.s32.totalorder %s2016_s16, 1 }
   0x5   : > { %p117_p2 = scmp.lt.s32.totalorder %s2016_s16, 5 }
   0x6   : > { %s2414_s17 = smov (%p23_p0, %s22_s17), 0  ;;  %s2416_s18 = smov (!%p23_p0, %s25_s18), %s2012_s15 }
   0x7   : > { %p118_p3 = pnand %p1582_p1, %p117_p2  ;;  %p27_p4 = scmp.ge.s32.totalorder %s2416_s18, 2 }
   0x8   : > { %s1583_s19 = sshll.u32 (!%p118_p3), %s2000_s12, 1  ;;  %p139_p5 = scmp.lt.s32.totalorder (!%p118_p3), %s2004_s13, 1 }
   0x9   : > { %s2418_s18 = smov (%p27_p4, %s2416_s18), 0  ;;  %121 = sbr.rel (%p118_p3) target bundleno = 378 (0x17a), region = 28 }
   0xa   : > { %p141_p6 = scmp.lt.s32.totalorder (!%p118_p3), %s1583_s19, 3  ;;  %s1587_s20 = sadd.s32 (!%p118_p3), 4294967294, %s1583_s19 }
   0xb   : > { %p151_p7 = scmp.gt.s32.totalorder (!%p118_p3), %s1587_s20, 0  ;;  %s1689_s25 = sadd.s32 (!%p118_p3), 2, %s1583_s19 }
   0xc   : > { %p155_p8 = scmp.gt.s32.totalorder (!%p118_p3), %s1689_s25, 0  ;;  %p1589_p9 = scmp.lt.s32.totalorder (!%p118_p3), %s1689_s25, 2 }
   0xd   : > { %s1594_s30 = sshll.u32 (!%p118_p3), %s2004_s13, 2 }
   0xe   : > { %s140_s21 = scalar_select %p139_p5, %s2004_s13, 1 }
   0xf   : > { %s142_s22 = scalar_select %p141_p6, %s1583_s19, 3 }
  0x10   : > { %s1584_s23 = sshll.u32 %s140_s21, 2  ;;  %s2420_s20 = smov (!%p151_p7, %s1587_s20), 0 }
  0x11   : > { %s144_s24 = sadd.s32 %s1584_s23, %s142_s22  ;;  %s2422_s25 = smov (!%p155_p8, %s1689_s25), 0 }
  0x12   : > { %s1585_s26 = sshll.u32 %s144_s24, 1  ;;  %s2424_s25 = smov (!%p1589_p9, %s2422_s25), 2 }
  0x13   : > { %s2083_s29 = scalar_lea.vmem %s2408_s3, %s1585_s26  ;;  %s160_s4 = sadd.s32 %s1594_s30, %s1583_s19 }
  0x14   : > { %s1595_s5 = sshll.u32 %s160_s4, 1 }
  0x15   : > { %s162_s8 = scalar_lea.vmem %s2405_s0, %s1595_s5 }
  0x16   : > { %v182_v0 = vld [vmem:[%s162_s8] sm:$0xf] }
  0x17   : > { %183 = vst [vmem:[#allocation2 + $0x4] sm:$0xf] %v182_v0 }
  0x18   : > { %209 = vsyncadd [#allocation3], 64  ;;  %p1596_p10 = scmp.le.s32.totalorder %s2000_s12, 0 }
  0x19   : > { %s214_s9 = sadd.s32 (!%p1596_p10), %s1594_s30, %s2420_s20 }
  0x1a   : > { %213 = sbr.rel (%p1596_p10) target bundleno = 34 (0x22), region = 62  ;;  %s1597_s10 = sshll.u32 (!%p1596_p10), %s214_s9, 1 }
  0x1b   : > { %s216_s22 = scalar_lea.vmem (!%p1596_p10), %s2405_s0, %s1597_s10 }
  0x1f   : > { %v236_v1 = vld [vmem:[%s216_s22] sm:$0xf] }
  0x20   : > { %237 = vst [vmem:[#allocation2] sm:$0xf] %v236_v1 }
  0x21   : > { %263 = vsyncadd [#allocation3 + $0x1], 64 }
  0x22 PF: > { %p1598_p11 = scmp.ge.s32.totalorder %s2000_s12, 1 }
  0x23   : > { %s268_s13 = sadd.s32 (!%p1598_p11), %s2424_s25, %s1594_s30 }
  0x24   : > { %267 = sbr.rel (%p1598_p11) target bundleno = 44 (0x2c), region = 96  ;;  %s1599_s19 = sshll.u32 (!%p1598_p11), %s268_s13, 1 }
  0x25   : > { %s270_s26 = scalar_lea.vmem (!%p1598_p11), %s2405_s0, %s1599_s19 }
  0x29   : > { %v291_v2 = vld [vmem:[%s270_s26] sm:$0xf] }
  0x2a   : > { %292 = vst [vmem:[#allocation2 + $0x8] sm:$0xf] %v291_v2 }
  0x2b   : > { %318 = vsyncadd [#allocation3 + $0x2], 64 }
  0x2c PF: > { %p1600_p12 = scmp.ne.s32.totalorder %s2000_s12, 0 }
  0x2e   : > { %322 = sbr.rel (%p1600_p12) target bundleno = 53 (0x35), region = 130 }
  0x33   : > { %v2018_v3 = vmov 0  }
  0x34   : > { %323 = vst [vmem:[#allocation2] sm:$0x3] %v2018_v3  ;;  %324 = vst [vmem:[#allocation2 + $0x2] sm:$0x3] %v2018_v3 }
  0x35 PF: > { %p1601_p13 = scmp.ne.s32.totalorder %s2000_s12, 1 }
  0x37   : > { %328 = sbr.rel (%p1601_p13) target bundleno = 62 (0x3e), region = 134 }
  0x3c   : > { %v2019_v4 = vmov 0  }
  0x3d   : > { %330 = vst [vmem:[#allocation2 + $0x8] sm:$0x3] %v2019_v4  ;;  %331 = vst [vmem:[#allocation2 + $0xa] sm:$0x3] %v2019_v4 }
  0x3e PF: > { %1988 = dma.done.wait [#allocation3], 64 }
  0x3f   : > { %1989 = vsyncadd [#allocation3], 4294967232  ;;  %p1849_p0 = scmp.gt.s32.totalorder %s2000_s12, 0 }
  0x41   : > { %1991 = dma.done.wait (%p1849_p0), [#allocation3 + $0x1], 64 }
  0x42   : > { %1993 = vsyncadd (%p1849_p0), [#allocation3 + $0x1], 4294967232  ;;  %p1850_p1 = scmp.lt.s32.totalorder %s2000_s12, 1 }
  0x44   : > { %1995 = dma.done.wait (%p1850_p1), [#allocation3 + $0x2], 64 }
  0x45   : > { %1997 = vsyncadd (%p1850_p1), [#allocation3 + $0x2], 4294967232  ;;  %v2020_v5 = vmov 0.0   ;;  %vm2021_vm0 = vmmov 0   ;;  %v1896_v6 = vld [vmem:[%s2406_s1 + $0x138] sm:$0xff]   ;;  %v1899_v9 = vld [vmem:[%s2406_s1 + $0x130] sm:$0xff]   ;;  %v364_v21 = vlaneseq }
  0x46   : > { %1785 = vmatprep.subr.bf16.mxu1 %v2020_v5  ;;  %1801 = vmatprep.mubr.msk.bf16.mxu1 %vm2021_vm0, %v2020_v5  ;;  %v1897_v7 = vld [vmem:[%s2406_s1 + $0x178] sm:$0xff]   ;;  %v1900_v10 = vld [vmem:[%s2406_s1 + $0x170] sm:$0xff]   ;;  %v1902_v12 = vld [vmem:[%s2406_s1 + $0x128] sm:$0xff]   ;;  %v2022_v19 = vmov 1983009808   ;;  %vm409_vm1 = vcmask 1040384  }
  0x47   : > { %1692 = vmatprep.subr.bf16.mxu0 %v1896_v6  ;;  %v1898_v8 = vld [vmem:[%s2406_s1 + $0xf8] sm:$0xff]   ;;  %1786 = vmatpush3.bf16.msra.mxu1 %v1897_v7  ;;  %v1901_v11 = vld [vmem:[%s2406_s1 + $0xf0] sm:$0xff]   ;;  %v1903_v13 = vld [vmem:[%s2406_s1 + $0x168] sm:$0xff]   ;;  %v362_v20 = vunpack.c.l.s4 %v2022_v19  ;;  %v365_v26 = vshrl.u32 %v364_v21, 7 }
  0x48   : > { %1693 = vmatpush3.bf16.msra.mxu0 %v1898_v8  ;;  %1787 = vmatprep.subr.bf16.mxu1 %v2020_v5  ;;  %v1904_v14 = vld [vmem:[%s2406_s1 + $0xe8] sm:$0xff]   ;;  %v1905_v15 = vld [vmem:[%s2406_s1 + $0x120] sm:$0xff]   ;;  %v1908_v18 = vld [vmem:[%s2406_s1 + $0x118] sm:$0xff]  }
  0x49   : > { %1694 = vmatprep.subr.bf16.mxu0 %v1899_v9  ;;  %v1906_v16 = vld [vmem:[%s2406_s1 + $0x160] sm:$0xff]   ;;  %v1909_v22 = vld [vmem:[%s2406_s1 + $0x158] sm:$0xff]   ;;  %v1911_v24 = vld [vmem:[%s2406_s1 + $0x110] sm:$0xff]   ;;  %v363_v25 = vunpack.c.0.s8 %v362_v20 }
  0x4a   : > { %v1907_v17 = vld [vmem:[%s2406_s1 + $0xe0] sm:$0xff]   ;;  %v1910_v23 = vld [vmem:[%s2406_s1 + $0xd8] sm:$0xff]   ;;  %v1912_v27 = vld [vmem:[%s2406_s1 + $0x150] sm:$0xff]  }
  0x4b   : > { %1788 = vmatpush3.bf16.msra.mxu1 %v1900_v10  ;;  %v1913_v28 = vld [vmem:[%s2406_s1 + $0xd0] sm:$0xff]   ;;  %v1914_v29 = vld [vmem:[%s2406_s1 + $0x108] sm:$0xff]   ;;  %v2166_v30 = vsub.s32 %v363_v25, %v365_v26  ;;  %v351_v33 = vld [vmem:[#allocation2 + $0x4] sm:$0x3] }
  0x4c   : > { %1695 = vmatpush3.bf16.msra.mxu0 %v1901_v11  ;;  %1789 = vmatprep.subr.bf16.mxu1 %v2020_v5  ;;  %v1915_v31 = vld [vmem:[%s2406_s1 + $0x148] sm:$0xff]   ;;  %v352_v34 = vld [vmem:[#allocation2 + $0x6] sm:$0x3]  ;;  %v1920_v48 = vld [vmem:[%s2406_s1 + $0x78] sm:$0xff]  }
  0x4d   : > { %1696 = vmatprep.subr.bf16.mxu0 %v1902_v12  ;;  %v1916_v32 = vld [vmem:[%s2406_s1 + $0xc8] sm:$0xff]   ;;  %v1917_v35 = vld [vmem:[%s2406_s1 + $0x100] sm:$0xff]   ;;  %v381_v36 = vrot.slane %v351_v33, %v2166_v30  ;;  %v388_v37 = vrot.slane %v352_v34, %v2166_v30  ;;  %v1921_v56 = vld [vmem:[%s2406_s1 + $0xb8] sm:$0xff]  }
  0x4e   : > { %v1918_v38 = vld [vmem:[%s2406_s1 + $0x140] sm:$0xff]   ;;  %v1924_v60 = vld [vmem:[%s2406_s1 + $0xb0] sm:$0xff]   ;;  %v1922_v62 = vld [vmem:[%s2406_s1 + $0x38] sm:$0xff]  }
  0x4f   : > { %1790 = vmatpush3.bf16.msra.mxu1 %v1903_v13  ;;  %v405_v39 = vrot.slane %v381_v36, 7  ;;  %v406_v40 = vrot.slane %v388_v37, 7  ;;  %v425_v41 = vrot.slane %v381_v36, 1  ;;  %v426_v42 = vrot.slane %v388_v37, 1  ;;  %v1919_v43 = vld [vmem:[%s2406_s1 + $0xc0] sm:$0xff]   ;;  %v1923_v63 = vld [vmem:[%s2406_s1 + $0x70] sm:$0xff]  }
  0x50   : > { %1697 = vmatpush3.bf16.msra.mxu0 %v1904_v14  ;;  %1791 = vmatprep.subr.bf16.mxu1 %v2020_v5  ;;  %v1927_v0 = vld [vmem:[%s2406_s1 + $0xa8] sm:$0xff]   ;;  %v1925_v1 = vld [vmem:[%s2406_s1 + $0x30] sm:$0xff]   ;;  %v1930_v3 = vld [vmem:[%s2406_s1 + $0xa0] sm:$0xff]  }
  0x51   : > { %1698 = vmatprep.subr.bf16.mxu0 %v1905_v15  ;;  %v416_v44 = vsel %vm409_vm1, 0, %v405_v39  ;;  %v418_v45 = vsel %vm409_vm1, 0, %v406_v40  ;;  %v434_v46 = vsel %vm409_vm1, %v425_v41, 0  ;;  %v436_v47 = vsel %vm409_vm1, %v426_v42, 0  ;;  %v1926_v2 = vld [vmem:[%s2406_s1 + $0x68] sm:$0xff]   ;;  %v1929_v6 = vld [vmem:[%s2406_s1 + $0x60] sm:$0xff]  }
  0x52   : > { %v529_v49 = vcombine.low %v416_v44, %v351_v33  ;;  %v545_v50 = vcombine.low %v418_v45, %v352_v34  ;;  %v543_v51 = vrot.slane %v434_v46, %v2166_v30  ;;  %v559_v52 = vrot.slane %v436_v47, %v2166_v30  ;;  %v1928_v4 = vld [vmem:[%s2406_s1 + $0x28] sm:$0xff]   ;;  %v1931_v7 = vld [vmem:[%s2406_s1 + $0x20] sm:$0xff]   ;;  %v1933_v8 = vld [vmem:[%s2406_s1 + $0x98] sm:$0xff]  }
  0x53   : > { %1792 = vmatpush3.bf16.msra.mxu1 %v1906_v16  ;;  %v349_v9 = vld [vmem:[#allocation2] sm:$0x3]  ;;  %v350_v10 = vld [vmem:[#allocation2 + $0x2] sm:$0x3]  ;;  %v1932_v12 = vld [vmem:[%s2406_s1 + $0x58] sm:$0xff]  }
  0x54   : > { %1699 = vmatpush3.bf16.msra.mxu0 %v1907_v17  ;;  %1793 = vmatprep.subr.bf16.mxu1 %v2020_v5  ;;  %v536_v53 = vrot.slane %v529_v49, %v2166_v30  ;;  %v552_v54 = vrot.slane %v545_v50, %v2166_v30  ;;  %v1605_v55 = vcombine.low %v543_v51, %v559_v52  ;;  %v1936_v14 = vld [vmem:[%s2406_s1 + $0x90] sm:$0xff]   ;;  %v1934_v19 = vld [vmem:[%s2406_s1 + $0x18] sm:$0xff]   ;;  %v1938_v34 = vld [vmem:[%s2406_s1 + $0x48] sm:$0xff]  }
  0x55   : > { %1700 = vmatprep.subr.bf16.mxu0 %v1908_v18  ;;  %v367_v11 = vrot.slane %v349_v9, %v2166_v30  ;;  %v374_v13 = vrot.slane %v350_v10, %v2166_v30  ;;  %v1935_v20 = vld [vmem:[%s2406_s1 + $0x50] sm:$0xff]   ;;  %v1942_v37 = vld [vmem:[%s2406_s1 + $0x80] sm:$0xff]   ;;  %v1944_v45 = vld [vmem:[%s2406_s1 + $0x1f8] sm:$0xff]  }
  0x56   : > { %v1604_v57 = vcombine.low %v536_v53, %v552_v54  ;;  %v624_v58 = vrot.slane %v1605_v55, %v2166_v30  ;;  %v1941_v40 = vld [vmem:[%s2406_s1 + $0x40] sm:$0xff]   ;;  %v1948_v46 = vld [vmem:[%s2406_s1 + $0x230] sm:$0xff]   ;;  %v1946_v47 = vld [vmem:[%s2406_s1 + $0x1b8] sm:$0xff]  }
  0x57   : > { %1794 = vmatpush3.bf16.msra.mxu1 %v1909_v22  ;;  %v403_v15 = vrot.slane %v367_v11, 7  ;;  %v423_v16 = vrot.slane %v367_v11, 1  ;;  %v404_v17 = vrot.slane %v374_v13, 7  ;;  %v424_v18 = vrot.slane %v374_v13, 1  ;;  %v1943_v44 = vld [vmem:[%s2406_s1] sm:$0xff]   ;;  %v1951_v49 = vld [vmem:[%s2406_s1 + $0x228] sm:$0xff]  }
  0x58   : > { %1701 = vmatpush3.bf16.msra.mxu0 %v1910_v23  ;;  %1795 = vmatprep.subr.bf16.mxu1 %v2020_v5  ;;  %v617_v59 = vrot.slane %v1604_v57, %v2166_v30  ;;  %v1949_v50 = vld [vmem:[%s2406_s1 + $0x1b0] sm:$0xff]   ;;  %v1950_v51 = vld [vmem:[%s2406_s1 + $0x1e8] sm:$0xff]  }
  0x59   : > { %1702 = vmatprep.subr.bf16.mxu0 %v1911_v24  ;;  %v412_v21 = vsel %vm409_vm1, 0, %v403_v15  ;;  %v430_v22 = vsel %vm409_vm1, %v423_v16, 0  ;;  %v414_v23 = vsel %vm409_vm1, 0, %v404_v17  ;;  %v432_v25 = vsel %vm409_vm1, %v424_v18, 0  ;;  %v353_v52 = vld [vmem:[#allocation2 + $0x8] sm:$0x3] }
  0x5a   : > { %v625_v61 = vcombine.high %v617_v59, %v617_v59  ;;  %v445_v24 = vcombine.low %v412_v21, %v349_v9  ;;  %v461_v26 = vcombine.low %v414_v23, %v350_v10  ;;  %v354_v53 = vld [vmem:[#allocation2 + $0xa] sm:$0x3]  ;;  %v395_v54 = vrot.slane %v353_v52, %v2166_v30  ;;  %v1955_v9 = vld [vmem:[%s2406_s1 + $0x1a0] sm:$0xff]   ;;  %v1956_v10 = vld [vmem:[%s2406_s1 + $0x1d8] sm:$0xff]  }
  0x5b   : > { %1796 = vmatpush3.bf16.msra.mxu1 %v1912_v27  ;;  %v459_v27 = vrot.slane %v430_v22, %v2166_v30  ;;  %v402_v55 = vrot.slane %v354_v53, %v2166_v30  ;;  %v1952_v57 = vld [vmem:[%s2406_s1 + $0x1a8] sm:$0xff]   ;;  %v1958_v17 = vld [vmem:[%s2406_s1 + $0x198] sm:$0xff]   ;;  %v1959_v18 = vld [vmem:[%s2406_s1 + $0x1d0] sm:$0xff]  }
  0x5c   : > { %1703 = vmatpush3.bf16.msra.mxu0 %v1913_v28  ;;  %1797 = vmatprep.subr.bf16.mxu1 %v2020_v5  ;;  %v475_v28 = vrot.slane %v432_v25, %v2166_v30  ;;  %v468_v33 = vrot.slane %v461_v26, %v2166_v30  ;;  %v1961_v22 = vld [vmem:[%s2406_s1 + $0x190] sm:$0xff]   ;;  %v1962_v23 = vld [vmem:[%s2406_s1 + $0x1c8] sm:$0xff]   ;;  %v1965_v25 = vld [vmem:[%s2406_s1 + $0x1c0] sm:$0xff]  }
  0x5d   : > { %1704 = vmatprep.subr.bf16.mxu0 %v1914_v29  ;;  %805 = vmatprep.mubr.bf16.mxu0 %v625_v61  ;;  %v1939_v29 = vld [vmem:[%s2406_s1 + $0x88] sm:$0xff]   ;;  %v428_v61 = vrot.slane %v402_v55, 1  ;;  %v1967_v26 = vld [vmem:[%s2406_s1 + $0x180] sm:$0xff]  }
  0x5e   : > { %v1631_v36 = vcombine.low %v459_v27, %v475_v28 }
  0x5f   : > { %1798 = vmatpush3.bf16.msra.mxu1 %v1915_v31  ;;  %v452_v31 = vrot.slane %v445_v24, %v2166_v30  ;;  %v1964_v24 = vld [vmem:[%s2406_s1 + $0x188] sm:$0xff]  }
  0x60   : > { %1705 = vmatpush3.bf16.msra.mxu0 %v1916_v32  ;;  %1799 = vmatprep.subr.bf16.mxu1 %v2020_v5  ;;  %v1937_v32 = vld [vmem:[%s2406_s1 + $0x10] sm:$0xff]   ;;  %v868_v42 = vrot.slane %v1631_v36, %v2166_v30 }
  0x61   : > { %1706 = vmatprep.subr.bf16.mxu0 %v1917_v35  ;;  %v1630_v35 = vcombine.low %v452_v31, %v468_v33 }
  0x63   : > { %1800 = vmatpush3.bf16.msra.mxu1 %v1918_v38  ;;  %v1940_v38 = vld [vmem:[%s2406_s1 + $0x8] sm:$0xff]   ;;  %v861_v39 = vrot.slane %v1630_v35, %v2166_v30 }
  0x64   : > { %1707 = vmatpush3.bf16.msra.mxu0 %v1919_v43  ;;  %1805 = vmatprep.subr.bf16.mxu1 %v2020_v5  ;;  %v1945_v43 = vld [vmem:[%s2406_s1 + $0x238] sm:$0xff]  }
  0x65   : > { %1723 = vmatprep.subr.bf16.mxu0 %v1920_v48  ;;  %v869_v41 = vcombine.high %v861_v39, %v861_v39  ;;  %v1947_v48 = vld [vmem:[%s2406_s1 + $0x1f0] sm:$0xff]  }
  0x66   : > { %1802 = vmatmul.mubr.bf16.vlgmr.msra.gmra.mxu1 %v624_v58  ;;  %v407_v58 = vrot.slane %v395_v54, 7 }
  0x67   : > { %1806 = vmatpush3.bf16.msra.mxu1 %v1921_v56  ;;  %1821 = vmatprep.mubr.msk.bf16.mxu1 %vm2021_vm0, %v2020_v5  ;;  %v1954_v56 = vld [vmem:[%s2406_s1 + $0x220] sm:$0xff]  }
  0x68   : > { %1807 = vmatprep.subr.bf16.mxu1 %v2020_v5  ;;  %806 = vmatmul.mubr.bf16.vlgmr.msra.gmra.mxu0 %v617_v59  ;;  %v408_v59 = vrot.slane %v402_v55, 7 }
  0x69   : > { %1724 = vmatpush3.bf16.msra.mxu0 %v1922_v62  ;;  %1049 = vmatprep.mubr.bf16.mxu0 %v869_v41  ;;  %v1953_v62 = vld [vmem:[%s2406_s1 + $0x1e0] sm:$0xff]  }
  0x6a   : > { %1725 = vmatprep.subr.bf16.mxu0 %v1923_v63  ;;  %v420_v63 = vsel %vm409_vm1, 0, %v407_v58 }
  0x6b   : > { %1808 = vmatpush3.bf16.msra.mxu1 %v1924_v60  ;;  %v427_v60 = vrot.slane %v395_v54, 1 }
  0x6c   : > { %1809 = vmatprep.subr.bf16.mxu1 %v2020_v5 }
  0x6d   : > { %1726 = vmatpush3.bf16.msra.mxu0 %v1925_v1  ;;  %v438_v1 = vsel %vm409_vm1, %v427_v60, 0 }
  0x6e   : > { %1727 = vmatprep.subr.bf16.mxu0 %v1926_v2  ;;  %v440_v2 = vsel %vm409_vm1, %v428_v61, 0 }
  0x6f   : > { %1810 = vmatpush3.bf16.msra.mxu1 %v1927_v0  ;;  %v422_v0 = vsel %vm409_vm1, 0, %v408_v59 }
  0x70   : > { %1811 = vmatprep.subr.bf16.mxu1 %v2020_v5 }
  0x71   : > { %1728 = vmatpush3.bf16.msra.mxu0 %v1928_v4  ;;  %v1101_v4 = vcombine.low %v420_v63, %v353_v52 }
  0x72   : > { %1729 = vmatprep.subr.bf16.mxu0 %v1929_v6  ;;  %v1117_v6 = vcombine.low %v422_v0, %v354_v53 }
  0x73   : > { %1812 = vmatpush3.bf16.msra.mxu1 %v1930_v3  ;;  %v1957_v3 = vld [vmem:[%s2406_s1 + $0x218] sm:$0xff]   ;;  %v1108_v11 = vrot.slane %v1101_v4, %v2166_v30 }
  0x74   : > { %1813 = vmatprep.subr.bf16.mxu1 %v2020_v5 }
  0x75   : > { %1730 = vmatpush3.bf16.msra.mxu0 %v1931_v7  ;;  %v1115_v7 = vrot.slane %v438_v1, %v2166_v30 }
  0x76   : > { %1731 = vmatprep.subr.bf16.mxu0 %v1932_v12  ;;  %v1124_v12 = vrot.slane %v1117_v6, %v2166_v30 }
  0x77   : > { %1814 = vmatpush3.bf16.msra.mxu1 %v1933_v8  ;;  %v1131_v8 = vrot.slane %v440_v2, %v2166_v30 }
  0x78   : > { %1815 = vmatprep.subr.bf16.mxu1 %v2020_v5  ;;  %v1656_v15 = vcombine.low %v1108_v11, %v1124_v12 }
  0x79   : > { %1732 = vmatpush3.bf16.msra.mxu0 %v1934_v19  ;;  %v1657_v13 = vcombine.low %v1115_v7, %v1131_v8 }
  0x7a   : > { %1733 = vmatprep.subr.bf16.mxu0 %v1935_v20  ;;  %v1189_v19 = vrot.slane %v1656_v15, %v2166_v30  ;;  %v1963_v20 = vld [vmem:[%s2406_s1 + $0x208] sm:$0xff]  }
  0x7b   : > { %1816 = vmatpush3.bf16.msra.mxu1 %v1936_v14  ;;  %v1960_v14 = vld [vmem:[%s2406_s1 + $0x210] sm:$0xff]   ;;  %v1196_v16 = vrot.slane %v1657_v13, %v2166_v30  ;;  %v1966_v30 = vld [vmem:[%s2406_s1 + $0x200] sm:$0xff]  }
  0x7c   : > { %1817 = vmatprep.subr.bf16.mxu1 %v2020_v5  ;;  %v1197_v21 = vcombine.high %v1189_v19, %v1189_v19 }
  0x7d   : > { %1734 = vmatpush3.bf16.msra.mxu0 %v1937_v32 }
  0x7e   : > { %1735 = vmatprep.subr.bf16.mxu0 %v1938_v34 }
  0x7f   : > { %1818 = vmatpush3.bf16.msra.mxu1 %v1939_v29 }
  0x80   : > { %1819 = vmatprep.subr.bf16.mxu1 %v2020_v5 }
  0x81   : > { %1736 = vmatpush3.bf16.msra.mxu0 %v1940_v38 }
  0x82   : > { %1737 = vmatprep.subr.bf16.mxu0 %v1941_v40 }
  0x83   : > { %1820 = vmatpush3.bf16.msra.mxu1 %v1942_v37 }
  0x84   : > { %1825 = vmatprep.subr.bf16.mxu1 %v2020_v5 }
  0x85   : > { %1738 = vmatpush3.bf16.msra.mxu0 %v1943_v44 }
  0x86   : > { %1822 = vmatmul.mubr.bf16.vlgmr.msra.gmra.mxu1 %v868_v42  ;;  %1754 = vmatprep.subr.bf16.mxu0 %v1944_v45 }
  0x87   : > { %1826 = vmatpush3.bf16.msra.mxu1 %v1945_v43  ;;  %1841 = vmatprep.mubr.msk.bf16.mxu1 %vm2021_vm0, %v2020_v5 }
  0x88   : > { %1827 = vmatprep.subr.bf16.mxu1 %v2020_v5  ;;  %1050 = vmatmul.mubr.bf16.vlgmr.msra.gmra.mxu0 %v861_v39 }
  0x89   : > { %1755 = vmatpush3.bf16.msra.mxu0 %v1946_v47  ;;  %1377 = vmatprep.mubr.bf16.mxu0 %v1197_v21 }
  0x8a   : > { %1756 = vmatprep.subr.bf16.mxu0 %v1947_v48 }
  0x8b   : > { %1828 = vmatpush3.bf16.msra.mxu1 %v1948_v46 }
  0x8c   : > { %1829 = vmatprep.subr.bf16.mxu1 %v2020_v5 }
  0x8d   : > { %1757 = vmatpush3.bf16.msra.mxu0 %v1949_v50 }
  0x8e   : > { %1758 = vmatprep.subr.bf16.mxu0 %v1950_v51 }
  0x8f   : > { %1830 = vmatpush3.bf16.msra.mxu1 %v1951_v49 }
  0x90   : > { %1831 = vmatprep.subr.bf16.mxu1 %v2020_v5 }
  0x91   : > { %1759 = vmatpush3.bf16.msra.mxu0 %v1952_v57  ;;  %v1682_v57 = vld [vmem:[%s2407_s2] ss:$0 sm:$0xff] }
  0x92   : > { %1760 = vmatprep.subr.bf16.mxu0 %v1953_v62 }
  0x93   : > { %1832 = vmatpush3.bf16.msra.mxu1 %v1954_v56 }
  0x94   : > { %1833 = vmatprep.subr.bf16.mxu1 %v2020_v5 }
  0x95   : > { %1761 = vmatpush3.bf16.msra.mxu0 %v1955_v9 }
  0x96   : > { %1762 = vmatprep.subr.bf16.mxu0 %v1956_v10 }
  0x97   : > { %1834 = vmatpush3.bf16.msra.mxu1 %v1957_v3 }
  0x98   : > { %1835 = vmatprep.subr.bf16.mxu1 %v2020_v5 }
  0x99   : > { %1763 = vmatpush3.bf16.msra.mxu0 %v1958_v17 }
  0x9a   : > { %1764 = vmatprep.subr.bf16.mxu0 %v1959_v18 }
  0x9b   : > { %1836 = vmatpush3.bf16.msra.mxu1 %v1960_v14 }
  0x9c   : > { %1837 = vmatprep.subr.bf16.mxu1 %v2020_v5 }
  0x9d   : > { %1765 = vmatpush3.bf16.msra.mxu0 %v1961_v22 }
  0x9e   : > { %1766 = vmatprep.subr.bf16.mxu0 %v1962_v23 }
  0x9f   : > { %1838 = vmatpush3.bf16.msra.mxu1 %v1963_v20 }
  0xa0   : > { %1839 = vmatprep.subr.bf16.mxu1 %v2020_v5 }
  0xa1   : > { %1767 = vmatpush3.bf16.msra.mxu0 %v1964_v24 }
  0xa2   : > { %1768 = vmatprep.subr.bf16.mxu0 %v1965_v25 }
  0xa3   : > { %1840 = vmatpush3.bf16.msra.mxu1 %v1966_v30 }
  0xa5   : > { %1769 = vmatpush3.bf16.msra.mxu0 %v1967_v26 }
  0xa6   : > { %1842 = vmatmul.mubr.bf16.vlgmr.msra.gmra.mxu1 %v1196_v16 }
  0xa8   : > { %1378 = vmatmul.mubr.bf16.vlgmr.msra.gmra.mxu0 %v1189_v19 }
 0x126   : > { %v847_v27 = vpop.f32.mrf.mxu1 }
 0x128   : > { %v1803_v28 = vpop.f32.mrf.mxu1  ;;  %v1708_v31 = vpop.f32.mrf.mxu0 }
 0x12a   : > { %v850_v29 = vpop.f32.mrf.mxu1  ;;  %v1709_v32 = vpop.f32.mrf.mxu0 }
 0x12b   : > { %v1710_v43 = vadd.f32 %v1709_v32, %v1708_v31 }
 0x12c   : > { %v1804_v5 = vpop.f32.mrf.mxu1  ;;  %v1711_v33 = vpop.f32.mrf.mxu0 }
 0x12d   : > { %v848_v47 = vadd.f32 %v1710_v43, %v847_v27 }
 0x12e   : > { %v1712_v34 = vpop.f32.mrf.mxu0 }
 0x146   : > { %v1091_v35 = vpop.f32.mrf.mxu1 }
 0x148   : > { %v1823_v36 = vpop.f32.mrf.mxu1  ;;  %v1739_v38 = vpop.f32.mrf.mxu0 }
 0x14a   : > { %v1094_v37 = vpop.f32.mrf.mxu1  ;;  %v1740_v40 = vpop.f32.mrf.mxu0 }
 0x14b   : > { %v1741_v45 = vadd.f32 %v1740_v40, %v1739_v38 }
 0x14c   : > { %v1824_v39 = vpop.f32.mrf.mxu1  ;;  %v1742_v41 = vpop.f32.mrf.mxu0 }
 0x14d   : > { %v1052_v50 = vadd.f32 %v1741_v45, %v848_v47 }
 0x14e   : > { %v1743_v42 = vpop.f32.mrf.mxu0 }
 0x14f   : > { %v1092_v55 = vadd.f32 %v1091_v35, %v1052_v50 }
 0x166   : > { %v1419_v44 = vpop.f32.mrf.mxu1 }
 0x168   : > { %v1843_v46 = vpop.f32.mrf.mxu1  ;;  %v1770_v49 = vpop.f32.mrf.mxu0 }
 0x16a   : > { %v1422_v48 = vpop.f32.mrf.mxu1  ;;  %v1771_v52 = vpop.f32.mrf.mxu0 }
 0x16b   : > { %v1772_v53 = vadd.f32 %v1771_v52, %v1770_v49 }
 0x16c   : > { %v1844_v51 = vpop.f32.mrf.mxu1  ;;  %v1773_v54 = vpop.f32.mrf.mxu0 }
 0x16d   : > { %v1420_v56 = vadd.f32 %v1772_v53, %v1419_v44 }
 0x16e   : > { %v1774_v58 = vpop.f32.mrf.mxu0 }
 0x16f   : > { %v1425_v59 = vadd.f32 %v1420_v56, %v1092_v55 }
 0x171   : > { %v1433_v60 = vadd.f32 %v1682_v57, %v1425_v59 }
 0x173   : > { %v1434_v61 = vmax.f32 %v1433_v60, 0.0 }
 0x175   : > { %v1436_v62 = vcombine.high %v1434_v61, %v1434_v61  ;;  %v1438_v63 = vpack.c.bf16 %v1434_v61, %v1434_v61 }
 0x177   : > { %v1439_v0 = vpack.c.bf16 %v1436_v62, %v1436_v62  ;;  %1440 = vst [vmem:[%s2083_s29] sm:$0x3] %v1438_v63 }
 0x179   : > { %1441 = vst [vmem:[%s2083_s29 + $0x2] sm:$0x3] %v1439_v0 }
 0x17a PF: > { %s13_s16 = sadd.s32 1, %s2016_s16   ;;  %s2409_s12 = smov %s2008_s14 }
 0x17b   : > { %p10_p2 = scmp.ge.s32.totalorder %s13_s16, 6   ;;  %s2410_s13 = smov %s2012_s15 }
 0x17c   : > { %s2411_s14 = smov %s2414_s17  ;;  %s2412_s15 = smov %s2418_s18 }
 0x17d   :  { %12 = sbr.rel (!%p10_p2) target bundleno = 3 (0x3), region = 211 }
 0x182   :  { %1472 = vsyncmov [#allocation3] }
 0x185   :  { %s1473_s29 = vpop.sfrf %1472 }
 0x186   :  { %p1685_p3 = scmp.ne.s32.totalorder %s1473_s29, 0 }
 0x188   :  { %1477 = shalt.err (%p1685_p3)  }
 0x189   :  { %1479 = vsyncmov [#allocation3 + $0x1] }
 0x18c   :  { %s1480_s26 = vpop.sfrf %1479 }
 0x18d   :  { %p1686_p4 = scmp.ne.s32.totalorder %s1480_s26, 0 }
 0x18f   :  { %1484 = shalt.err (%p1686_p4)  }
 0x190   :  { %1486 = vsyncmov [#allocation3 + $0x2] }
 0x193   :  { %s1487_s20 = vpop.sfrf %1486 }
 0x194   :  { %p1687_p5 = scmp.ne.s32.totalorder %s1487_s20, 0 }
 0x196   :  { %1491 = shalt.err (%p1687_p5)  }

// kernel: rsu4_forward.18
= control target key start
LH: loop header
LB: loop body
LE: loop exit
PB: predicated region body
PF: predicated region fallthrough
CT: control target
= control target key end

     0   :  { %s1293_s9 = smov 0   ;;  %s1295_s10 = smov 0   ;;  %s1390_s0 = inlined_call_operand.vmem [shape: f32[16,4], index: 0, kind: input, shape index: {}]   ;;  %s1391_s1 = inlined_call_operand.vmem [shape: f32[2,16,4,128], index: 1, kind: input, shape index: {}]   ;;  %s1392_s2 = inlined_call_operand.vmem [shape: bf16[2,16,16,128], index: 2, kind: output, shape index: {}]  }
   0x1   :  { %s1297_s11 = smov 0   ;;  %s1299_s12 = smov 0  }
   0x2   :  { %s1301_s13 = smov 0  }
   0x3 LB: > { %s21_s14 = sadd.s32 1, %s1268_s11  ;;  %s24_s15 = sadd.s32 1, %s1272_s12  ;;  %s1276_s13 = sphi %s1301_s13, %s12_s13   ;;  %s1272_s12 = sphi %s1299_s12, %s1396_s12   ;;  %s1268_s11 = sphi %s1297_s11, %s1395_s11   ;;  %s1264_s10 = sphi %s1295_s10, %s1394_s10   ;;  %s1260_s9 = sphi %s1293_s9, %s1393_s9  }
   0x4   : > { %p22_p0 = scmp.ge.s32.totalorder %s21_s14, 2  ;;  %p1014_p1 = scmp.ge.s32.totalorder %s1276_s13, 1 }
   0x5   : > { %p133_p2 = scmp.lt.s32.totalorder %s1276_s13, 5 }
   0x6   : > { %s1398_s14 = smov (%p22_p0, %s21_s14), 0  ;;  %s1400_s15 = smov (!%p22_p0, %s24_s15), %s1272_s12 }
   0x7   : > { %p134_p3 = pnand %p1014_p1, %p133_p2  ;;  %p26_p4 = scmp.ge.s32.totalorder %s1400_s15, 2 }
   0x8   : > { %s1015_s16 = sshll.u32 (!%p134_p3), %s1260_s9, 3  ;;  %p165_p5 = scmp.lt.s32.totalorder (!%p134_p3), %s1264_s10, 1 }
   0x9   : > { %s1402_s15 = smov (%p26_p4, %s1400_s15), 0  ;;  %137 = sbr.rel (%p134_p3) target bundleno = 232 (0xe8), region = 28 }
   0xa   : > { %p167_p6 = scmp.lt.s32.totalorder (!%p134_p3), %s1015_s16, 15 }
   0xe   : > { %v185_v0 = vld [vmem:[%s1390_s0] sm:$0xff]  ;;  %vm188_vm0 = vcmask 31744   ;;  %s1404_s10 = smov (!%p165_p5, %s1264_s10), 1  ;;  %s1406_s16 = smov (!%p167_p6, %s1015_s16), 15  ;;  %vm195_vm1 = vcmask 1043456   ;;  %v186_v3 = vld [vmem:[%s1390_s0 + $0x8] sm:$0xff] }
   0xf   : > { %1160 = vmatprep.mubr.msk.f32.mxu0 %vm188_vm0, %v185_v0  ;;  %1165 = vmatprep.mubr.msk.f32.mxu1 %vm188_vm0, %v185_v0  ;;  %s1016_s19 = sshll.u32 %s1404_s10, 4  ;;  %s1019_s27 = sshll.u32 %s1406_s16, 1 }
  0x10   : > { %s170_s20 = sadd.s32 %s1016_s19, %s1406_s16  ;;  %s1020_s28 = sshll.u32 %s1404_s10, 5 }
  0x11   : > { %s1017_s21 = sshll.u32 %s170_s20, 2  ;;  %s181_s29 = sadd.s32 %s1020_s28, %s1019_s27 }
  0x12   : > { %s172_s24 = scalar_lea.vmem %s1391_s1, %s1017_s21  ;;  %s1021_s30 = sshll.u32 %s181_s29, 2 }
  0x13   : > { %v187_v1 = vld [vmem:[%s172_s24] sm:$0xf]  ;;  %v1025_v2 = vld [vmem:[%s172_s24 + $0x4] sm:$0xf]  ;;  %v1029_v4 = vld [vmem:[%s172_s24 + $0x8] sm:$0xf]  ;;  %s183_s5 = scalar_lea.vmem %s1392_s2, %s1021_s30 }
  0x14   : > { %1158 = vmatprep.subr.msk.mxu0 %vm195_vm1, %v187_v1  ;;  %1163 = vmatprep.subr.msk.mxu1 %vm195_vm1, %v1025_v2  ;;  %v1033_v5 = vld [vmem:[%s172_s24 + $0xc] sm:$0xf]  ;;  %v1037_v6 = vld [vmem:[%s172_s24 + $0x10] sm:$0xf]  ;;  %v1041_v7 = vld [vmem:[%s172_s24 + $0x14] sm:$0xf] }
  0x15   : > { %1159 = vmatpush3.msk.msra.mxu0 %vm195_vm1, %v187_v1  ;;  %1164 = vmatpush3.msk.msra.mxu1 %vm195_vm1, %v1025_v2  ;;  %v1045_v8 = vld [vmem:[%s172_s24 + $0x18] sm:$0xf]  ;;  %v1049_v9 = vld [vmem:[%s172_s24 + $0x1c] sm:$0xf] }
  0x16   : > { %1161 = vmatmul.mubr.msk.f32.vlgmr.msra.gmra.mxu0 %vm188_vm0, %v186_v3  ;;  %1166 = vmatmul.mubr.msk.f32.vlgmr.msra.gmra.mxu1 %vm188_vm0, %v186_v3 }
  0x17   : > { %1168 = vmatprep.subr.msk.mxu0 %vm195_vm1, %v1029_v4  ;;  %1173 = vmatprep.subr.msk.mxu1 %vm195_vm1, %v1033_v5 }
  0x18   : > { %1169 = vmatpush3.msk.msra.mxu0 %vm195_vm1, %v1029_v4  ;;  %1174 = vmatpush3.msk.msra.mxu1 %vm195_vm1, %v1033_v5 }
  0x19   : > { %1170 = vmatprep.mubr.msk.f32.mxu0 %vm188_vm0, %v185_v0  ;;  %1175 = vmatprep.mubr.msk.f32.mxu1 %vm188_vm0, %v185_v0 }
  0x1a   : > { %1171 = vmatmul.mubr.msk.f32.vlgmr.msra.gmra.mxu0 %vm188_vm0, %v186_v3  ;;  %1176 = vmatmul.mubr.msk.f32.vlgmr.msra.gmra.mxu1 %vm188_vm0, %v186_v3 }
  0x1b   : > { %1178 = vmatprep.subr.msk.mxu0 %vm195_vm1, %v1037_v6  ;;  %1183 = vmatprep.subr.msk.mxu1 %vm195_vm1, %v1041_v7 }
  0x1c   : > { %1179 = vmatpush3.msk.msra.mxu0 %vm195_vm1, %v1037_v6  ;;  %1184 = vmatpush3.msk.msra.mxu1 %vm195_vm1, %v1041_v7 }
  0x1d   : > { %1180 = vmatprep.mubr.msk.f32.mxu0 %vm188_vm0, %v185_v0  ;;  %1185 = vmatprep.mubr.msk.f32.mxu1 %vm188_vm0, %v185_v0 }
  0x1e   : > { %1181 = vmatmul.mubr.msk.f32.vlgmr.msra.gmra.mxu0 %vm188_vm0, %v186_v3  ;;  %1186 = vmatmul.mubr.msk.f32.vlgmr.msra.gmra.mxu1 %vm188_vm0, %v186_v3 }
  0x1f   : > { %1188 = vmatprep.subr.msk.mxu0 %vm195_vm1, %v1045_v8  ;;  %1193 = vmatprep.subr.msk.mxu1 %vm195_vm1, %v1049_v9 }
  0x20   : > { %1189 = vmatpush3.msk.msra.mxu0 %vm195_vm1, %v1045_v8  ;;  %1194 = vmatpush3.msk.msra.mxu1 %vm195_vm1, %v1049_v9 }
  0x21   : > { %1190 = vmatprep.mubr.msk.f32.mxu0 %vm188_vm0, %v185_v0  ;;  %1195 = vmatprep.mubr.msk.f32.mxu1 %vm188_vm0, %v185_v0 }
  0x22   : > { %1191 = vmatmul.mubr.msk.f32.vlgmr.msra.gmra.mxu0 %vm188_vm0, %v186_v3  ;;  %1196 = vmatmul.mubr.msk.f32.vlgmr.msra.gmra.mxu1 %vm188_vm0, %v186_v3 }
  0xd6   : > { %v1162_v10 = vpop.f32.mrf.mxu0  ;;  %v1167_v11 = vpop.f32.mrf.mxu1 }
  0xd8   : > { %v265_v12 = vpop.f32.mrf.mxu0  ;;  %v345_v13 = vpop.f32.mrf.mxu1 }
  0xd9   : > { %v1090_v14 = vpack.c.bf16 %v1162_v10, %v265_v12  ;;  %v1095_v15 = vpack.c.bf16 %v1167_v11, %v345_v13 }
  0xda   : > { %v1172_v16 = vpop.f32.mrf.mxu0  ;;  %v1177_v17 = vpop.f32.mrf.mxu1 }
  0xdb   : > { %1091 = vst [vmem:[%s183_s5] sm:$0xff] %v1090_v14   ;;  %1127 = vst [vmem:[%s183_s5 + $0x8] sm:$0xff] %v1095_v15  }
  0xdc   : > { %v425_v18 = vpop.f32.mrf.mxu0  ;;  %v505_v19 = vpop.f32.mrf.mxu1 }
  0xdd   : > { %v1100_v20 = vpack.c.bf16 %v1172_v16, %v425_v18  ;;  %v1105_v21 = vpack.c.bf16 %v1177_v17, %v505_v19 }
  0xde   : > { %v1182_v22 = vpop.f32.mrf.mxu0  ;;  %v1187_v23 = vpop.f32.mrf.mxu1 }
  0xdf   : > { %1128 = vst [vmem:[%s183_s5 + $0x10] sm:$0xff] %v1100_v20   ;;  %1129 = vst [vmem:[%s183_s5 + $0x18] sm:$0xff] %v1105_v21  }
  0xe0   : > { %v585_v24 = vpop.f32.mrf.mxu0  ;;  %v665_v25 = vpop.f32.mrf.mxu1 }
  0xe1   : > { %v1110_v26 = vpack.c.bf16 %v1182_v22, %v585_v24  ;;  %v1115_v27 = vpack.c.bf16 %v1187_v23, %v665_v25 }
  0xe2   : > { %v1192_v28 = vpop.f32.mrf.mxu0  ;;  %v1197_v29 = vpop.f32.mrf.mxu1 }
  0xe3   : > { %1130 = vst [vmem:[%s183_s5 + $0x20] sm:$0xff] %v1110_v26   ;;  %1131 = vst [vmem:[%s183_s5 + $0x28] sm:$0xff] %v1115_v27  }
  0xe4   : > { %v745_v30 = vpop.f32.mrf.mxu0  ;;  %v825_v31 = vpop.f32.mrf.mxu1 }
  0xe5   : > { %v1120_v32 = vpack.c.bf16 %v1192_v28, %v745_v30  ;;  %v1125_v33 = vpack.c.bf16 %v1197_v29, %v825_v31 }
  0xe7   : > { %1132 = vst [vmem:[%s183_s5 + $0x30] sm:$0xff] %v1120_v32   ;;  %1133 = vst [vmem:[%s183_s5 + $0x38] sm:$0xff] %v1125_v33  }
  0xe8 PF: > { %s12_s13 = sadd.s32 1, %s1276_s13   ;;  %s1393_s9 = smov %s1268_s11 }
  0xe9   : > { %p9_p7 = scmp.ge.s32.totalorder %s12_s13, 6   ;;  %s1394_s10 = smov %s1272_s12 }
  0xea   : > { %s1395_s11 = smov %s1398_s14  ;;  %s1396_s12 = smov %s1402_s15 }
  0xeb   :  { %11 = sbr.rel (!%p9_p7) target bundleno = 3 (0x3), region = 65 }

// kernel: rsu4_forward.17
= control target key start
LH: loop header
LB: loop body
LE: loop exit
PB: predicated region body
PF: predicated region fallthrough
CT: control target
= control target key end

     0   :  { %s1413_s9 = smov 0   ;;  %s1727_s0 = inlined_call_operand.vmem [shape: f32[16,4], index: 0, kind: input, shape index: {}]   ;;  %s1728_s1 = inlined_call_operand.vmem [shape: bf16[2,4,4,128], index: 1, kind: input, shape index: {}]   ;;  %s1729_s2 = inlined_call_operand.vmem [shape: f32[2,16,4,128], index: 2, kind: output, shape index: {}]  }
   0x1 LB: > { %s1307_s10 = sadd.s32 4294967295, %s1395_s9   ;;  %p1311_p0 = scmp.ge.s32.totalorder %s1395_s9, 1  ;;  %s1395_s9 = sphi %s1413_s9, %s12_s9  }
   0x2   : > { %p112_p1 = scmp.lt.s32.totalorder %s1395_s9, 3 }
   0x4   : > { %p113_p2 = pnand %p1311_p0, %p112_p1 }
   0x5   : > { %p134_p3 = scmp.lt.s32.totalorder (!%p113_p2), %s1307_s10, 1 }
   0x6   : > { %116 = sbr.rel (%p113_p2) target bundleno = 277 (0x115), region = 28 }
   0xb   : > { %v1424_v0 = vld [vmem:[%s1727_s0] sm:$0xff]  ;;  %vm197_vm0 = vcmask 31744   ;;  %s1731_s10 = smov (!%p134_p3, %s1307_s10), 1  ;;  %vm188_vm1 = vcmask 1041409   ;;  %vm191_vm2 = vcmask 1042434   ;;  %vm194_vm3 = vcmask 1043459  }
   0xc   : > { %1358 = vmatprep.mubr.msk.f32.mxu0 %vm197_vm0, %v1424_v0  ;;  %1363 = vmatprep.mubr.msk.f32.mxu1 %vm197_vm0, %v1424_v0  ;;  %s1342_s13 = sshll.u32 %s1731_s10, 3  ;;  %vm204_vm4 = vcmask 1041408   ;;  %v146_v42 = vld [vmem:[%s1727_s0 + $0x8] sm:$0xff]  ;;  %v1397_v50 = vmov 1966171168   ;;  %v536_v52 = vlaneseq  ;;  %vm1186_vm5 = vcmask 1040384  }
   0xd   : > { %s138_s16 = scalar_lea.vmem %s1728_s1, %s1342_s13  ;;  %v534_v51 = vunpack.c.l.s4 %v1397_v50  ;;  %vm1219_vm6 = vcmask 1042432   ;;  %s1343_s19 = sshll.u32 %s1731_s10, 6 }
   0xe   : > { %v1316_v1 = vld.sshfl [vmem:[%s138_s16] sm:$0x1 pattern:$0x76325410]  ;;  %v537_v54 = vshrl.u32 %v536_v52, 7  ;;  %s1621_s22 = scalar_lea.vmem %s1729_s2, %s1343_s19 }
   0xf   : > { %v1317_v2 = vld.sshfl [vmem:[%s138_s16 + $0x2] sm:$0x1 pattern:$0x76325410]  ;;  %v183_v3 = vunpack.c.l.b16 %v1316_v1  ;;  %v535_v53 = vunpack.c.0.s8 %v534_v51 }
  0x10   : > { %v1318_v4 = vld.sshfl [vmem:[%s138_s16 + $0x4] sm:$0x1 pattern:$0x76325410]  ;;  %v184_v5 = vunpack.c.l.b16 %v1317_v2  ;;  %v1473_v1 = vsub.s32 0, %v537_v54 }
  0x11   : > { %v1319_v6 = vld.sshfl [vmem:[%s138_s16 + $0x6] sm:$0x1 pattern:$0x76325410]  ;;  %v185_v7 = vunpack.c.l.b16 %v1318_v4  ;;  %v291_v8 = vrot.slane %v183_v3, 1  ;;  %v1467_v55 = vsub.s32 %v535_v53, %v537_v54 }
  0x12   : > { %v186_v9 = vunpack.c.l.b16 %v1319_v6  ;;  %v187_v10 = vrot.slane %v184_v5, 7  ;;  %v1328_v11 = vld.sshfl [vmem:[%s138_s16] sm:$0x2 pattern:$0x76325410] }
  0x13   : > { %v190_v12 = vrot.slane %v185_v7, 6  ;;  %v292_v13 = vsel %vm188_vm1, %v184_v5, %v291_v8  ;;  %v293_v14 = vrot.slane %v185_v7, 7  ;;  %v1329_v15 = vld.sshfl [vmem:[%s138_s16 + $0x2] sm:$0x2 pattern:$0x76325410]  ;;  %v380_v16 = vunpack.c.l.b16 %v1328_v11 }
  0x14   : > { %v189_v17 = vsel %vm188_vm1, %v187_v10, %v183_v3  ;;  %v193_v18 = vrot.slane %v186_v9, 5  ;;  %v295_v19 = vrot.slane %v186_v9, 6  ;;  %v1330_v20 = vld.sshfl [vmem:[%s138_s16 + $0x4] sm:$0x2 pattern:$0x76325410]  ;;  %v381_v21 = vunpack.c.l.b16 %v1329_v15 }
  0x15   : > { %v192_v22 = vsel %vm191_vm2, %v190_v12, %v189_v17  ;;  %v294_v23 = vsel %vm191_vm2, %v293_v14, %v292_v13  ;;  %v1331_v24 = vld.sshfl [vmem:[%s138_s16 + $0x6] sm:$0x2 pattern:$0x76325410]  ;;  %v382_v25 = vunpack.c.l.b16 %v1330_v20  ;;  %v384_v26 = vrot.slane %v380_v16, 2 }
  0x16   : > { %v195_v27 = vsel %vm194_vm3, %v193_v18, %v192_v22  ;;  %v296_v28 = vsel %vm194_vm3, %v295_v19, %v294_v23  ;;  %v383_v29 = vunpack.c.l.b16 %v1331_v24  ;;  %v385_v30 = vrot.slane %v381_v21, 1 }
  0x17   : > { %v196_v31 = vpack.c.b16 %v195_v27, %v195_v27  ;;  %v297_v32 = vpack.c.b16 %v296_v28, %v296_v28  ;;  %v477_v33 = vrot.slane %v380_v16, 3  ;;  %v478_v34 = vrot.slane %v381_v21, 2 }
  0x18   : > { %v386_v35 = vsel %vm188_vm1, %v385_v30, %v384_v26  ;;  %v388_v36 = vrot.slane %v383_v29, 7  ;;  %v480_v37 = vrot.slane %v382_v25, 1 }
  0x19   : > { %1376 = vmatprep.subr.msk.bf16.mxu0 %vm204_vm4, %v196_v31  ;;  %1377 = vmatprep.subr.msk.bf16.mxu1 %vm204_vm4, %v297_v32  ;;  %v206_v38 = vsel %vm204_vm4, %v196_v31, 0  ;;  %v299_v39 = vsel %vm204_vm4, %v297_v32, 0  ;;  %v387_v40 = vsel %vm191_vm2, %v382_v25, %v386_v35  ;;  %v479_v41 = vsel %vm188_vm1, %v478_v34, %v477_v33 }
  0x1a   : > { %1357 = vmatpush3.bf16.msra.mxu0 %v206_v38  ;;  %1362 = vmatpush3.bf16.msra.mxu1 %v299_v39  ;;  %v389_v43 = vsel %vm194_vm3, %v388_v36, %v387_v40  ;;  %v481_v44 = vsel %vm191_vm2, %v480_v37, %v479_v41 }
  0x1b   : > { %v390_v45 = vpack.c.b16 %v389_v43, %v389_v43  ;;  %v482_v46 = vsel %vm194_vm3, %v383_v29, %v481_v44 }
  0x1c   : > { %v483_v47 = vpack.c.b16 %v482_v46, %v482_v46 }
  0x1d   : > { %1359 = vmatmul.mubr.msk.f32.vlgmr.msra.gmra.mxu0 %vm197_vm0, %v146_v42  ;;  %1364 = vmatmul.mubr.msk.f32.vlgmr.msra.gmra.mxu1 %vm197_vm0, %v146_v42  ;;  %v392_v48 = vsel %vm204_vm4, %v390_v45, 0 }
  0x1e   : > { %1378 = vmatprep.subr.msk.bf16.mxu0 %vm204_vm4, %v390_v45  ;;  %1379 = vmatprep.subr.msk.bf16.mxu1 %vm204_vm4, %v483_v47  ;;  %v485_v49 = vsel %vm204_vm4, %v483_v47, 0 }
  0x1f   : > { %1367 = vmatpush3.bf16.msra.mxu0 %v392_v48  ;;  %1372 = vmatpush3.bf16.msra.mxu1 %v485_v49 }
  0x20   : > { %1368 = vmatprep.mubr.msk.f32.mxu0 %vm197_vm0, %v1424_v0  ;;  %1373 = vmatprep.mubr.msk.f32.mxu1 %vm197_vm0, %v1424_v0 }
  0x22   : > { %1369 = vmatmul.mubr.msk.f32.vlgmr.msra.gmra.mxu0 %vm197_vm0, %v146_v42  ;;  %1374 = vmatmul.mubr.msk.f32.vlgmr.msra.gmra.mxu1 %vm197_vm0, %v146_v42 }
  0xdd   : > { %v1360_v56 = vpop.f32.mrf.mxu0  ;;  %v1365_v57 = vpop.f32.mrf.mxu1 }
  0xde   : > { %v581_v58 = vcombine.high %v1360_v56, %v1360_v56  ;;  %v588_v59 = vrot.slane %v1360_v56, %v1467_v55  ;;  %v697_v60 = vcombine.high %v1365_v57, %v1365_v57  ;;  %v704_v61 = vrot.slane %v1365_v57, %v1467_v55 }
  0xdf   : > { %v242_v4 = vpop.f32.mrf.mxu0  ;;  %v335_v32 = vpop.f32.mrf.mxu1 }
  0xe0   : > { %v595_v62 = vrot.slane %v581_v58, %v1467_v55  ;;  %v596_v63 = vcombine.high %v588_v59, %v588_v59  ;;  %v711_v0 = vrot.slane %v697_v60, %v1467_v55  ;;  %v712_v2 = vcombine.high %v704_v61, %v704_v61 }
  0xe1   : > { %v720_v3 = vrot.slane %v704_v61, %v1467_v55  ;;  %v604_v6 = vrot.slane %v588_v59, %v1467_v55  ;;  %v532_v15 = vcombine.high %v242_v4, %v242_v4  ;;  %v539_v23 = vrot.slane %v242_v4, %v1467_v55 }
  0xe2   : > { %v597_v5 = vcombine.high %v595_v62, %v595_v62  ;;  %v611_v7 = vrot.slane %v595_v62, %v1467_v55  ;;  %v618_v8 = vrot.slane %v596_v63, %v1467_v55  ;;  %v713_v9 = vcombine.high %v711_v0, %v711_v0  ;;  %v1370_v33 = vpop.f32.mrf.mxu0  ;;  %v1375_v4 = vpop.f32.mrf.mxu1 }
  0xe3   : > { %v727_v10 = vrot.slane %v711_v0, %v1467_v55  ;;  %v734_v11 = vrot.slane %v712_v2, %v1467_v55  ;;  %v742_v12 = vcombine.high %v720_v3, %v720_v3  ;;  %v981_v14 = vrot.slane %v720_v3, %v1473_v1 }
  0xe4   : > { %v625_v13 = vrot.slane %v597_v5, %v1467_v55  ;;  %v741_v16 = vrot.slane %v713_v9, %v1467_v55  ;;  %v626_v20 = vcombine.high %v604_v6, %v604_v6  ;;  %v627_v24 = vcombine.high %v611_v7, %v611_v7 }
  0xe5   : > { %v743_v17 = vcombine.high %v727_v10, %v727_v10  ;;  %v744_v18 = vcombine.high %v734_v11, %v734_v11  ;;  %v985_v19 = vrot.slane %v734_v11, %v1473_v1  ;;  %v989_v21 = vrot.slane %v742_v12, %v1473_v1 }
  0xe6   : > { %v997_v22 = vrot.slane %v727_v10, %v1473_v1  ;;  %v628_v25 = vcombine.high %v618_v8, %v618_v8  ;;  %v745_v26 = vcombine.high %v741_v16, %v741_v16  ;;  %v629_v28 = vcombine.high %v625_v13, %v625_v13 }
  0xe7   : > { %v993_v27 = vrot.slane %v744_v18, %v1473_v1  ;;  %v1001_v29 = vrot.slane %v741_v16, %v1473_v1  ;;  %v1005_v30 = vrot.slane %v743_v17, %v1473_v1  ;;  %v546_v31 = vrot.slane %v532_v15, %v1467_v55 }
  0xe8   : > { %v1009_v34 = vrot.slane %v745_v26, %v1473_v1  ;;  %v1494_v35 = vsel %vm1186_vm5, %v604_v6, %v981_v14  ;;  %v1497_v36 = vsel %vm1186_vm5, %v618_v8, %v985_v19  ;;  %v1500_v37 = vsel %vm1186_vm5, %v626_v20, %v989_v21 }
  0xe9   : > { %v1503_v38 = vsel %vm1186_vm5, %v611_v7, %v997_v22  ;;  %v547_v39 = vcombine.high %v539_v23, %v539_v23  ;;  %v548_v40 = vcombine.high %v546_v31, %v546_v31  ;;  %v555_v41 = vrot.slane %v539_v23, %v1467_v55 }
  0xea   : > { %v1507_v42 = vsel %vm1186_vm5, %v628_v25, %v993_v27  ;;  %v648_v43 = vcombine.high %v335_v32, %v335_v32  ;;  %v655_v44 = vrot.slane %v335_v32, %v1467_v55  ;;  %v797_v45 = vcombine.high %v1370_v33, %v1370_v33 }
  0xeb   : > { %v1511_v46 = vsel %vm1186_vm5, %v625_v13, %v1001_v29  ;;  %v1514_v47 = vsel %vm1186_vm5, %v627_v24, %v1005_v30  ;;  %v1517_v48 = vsel %vm1186_vm5, %v629_v28, %v1009_v34  ;;  %v1520_v49 = vrot.slane %v546_v31, %v1467_v55 }
  0xec   : > { %v662_v50 = vrot.slane %v648_v43, %v1467_v55  ;;  %v663_v51 = vcombine.high %v655_v44, %v655_v44  ;;  %v671_v52 = vrot.slane %v655_v44, %v1467_v55  ;;  %v804_v53 = vrot.slane %v1370_v33, %v1467_v55 }
  0xed   : > { %v1526_v54 = vrot.slane %v547_v39, %v1467_v55  ;;  %v1529_v56 = vrot.slane %v548_v40, %v1467_v55  ;;  %v577_v57 = vcombine.high %v555_v41, %v555_v41  ;;  %v811_v58 = vrot.slane %v797_v45, %v1467_v55 }
  0xee   : > { %v664_v59 = vcombine.high %v662_v50, %v662_v50  ;;  %v678_v60 = vrot.slane %v662_v50, %v1467_v55  ;;  %v685_v61 = vrot.slane %v663_v51, %v1467_v55  ;;  %v693_v62 = vcombine.high %v671_v52, %v671_v52  ;;  %v521_v51 = vpop.f32.mrf.mxu1 }
  0xef   : > { %v578_v63 = vcombine.high %v1520_v49, %v1520_v49  ;;  %v949_v0 = vrot.slane %v671_v52, %v1473_v1  ;;  %v812_v2 = vcombine.high %v804_v53, %v804_v53  ;;  %v813_v3 = vcombine.high %v811_v58, %v811_v58 }
  0xf0   : > { %v1538_v5 = vrot.slane %v664_v59, %v1467_v55  ;;  %v694_v6 = vcombine.high %v678_v60, %v678_v60  ;;  %v695_v7 = vcombine.high %v685_v61, %v685_v61  ;;  %v953_v8 = vrot.slane %v685_v61, %v1473_v1 }
  0xf1   : > { %v957_v9 = vrot.slane %v693_v62, %v1473_v1  ;;  %v965_v10 = vrot.slane %v678_v60, %v1473_v1  ;;  %v820_v11 = vrot.slane %v804_v53, %v1467_v55  ;;  %v827_v12 = vrot.slane %v811_v58, %v1467_v55 }
  0xf2   : > { %v579_v13 = vcombine.high %v1526_v54, %v1526_v54  ;;  %v580_v14 = vcombine.high %v1529_v56, %v1529_v56  ;;  %v696_v15 = vcombine.high %v1538_v5, %v1538_v5  ;;  %v897_v16 = vcombine.high %v1375_v4, %v1375_v4 }
  0xf3   : > { %v1552_v17 = vrot.slane %v695_v7, %v1473_v1  ;;  %v969_v18 = vrot.slane %v1538_v5, %v1473_v1  ;;  %v1557_v19 = vsel %vm1186_vm5, %v555_v41, %v949_v0  ;;  %v834_v20 = vrot.slane %v812_v2, %v1467_v55  ;;  %v428_v41 = vpop.f32.mrf.mxu0 }
  0xf4   : > { %v1561_v21 = vrot.slane %v694_v6, %v1473_v1  ;;  %v1565_v22 = vsel %vm1186_vm5, %v1526_v54, %v953_v8  ;;  %v1568_v23 = vsel %vm1186_vm5, %v577_v57, %v957_v9  ;;  %v1572_v24 = vsel %vm1186_vm5, %v1520_v49, %v965_v10 }
  0xf5   : > { %v841_v25 = vrot.slane %v813_v3, %v1467_v55  ;;  %v842_v26 = vcombine.high %v820_v11, %v820_v11  ;;  %v843_v27 = vcombine.high %v827_v12, %v827_v12  ;;  %v844_v28 = vcombine.high %v834_v20, %v834_v20 }
  0xf6   : > { %v1576_v29 = vrot.slane %v696_v15, %v1473_v1  ;;  %v1061_v30 = vrot.slane %v820_v11, %v1473_v1  ;;  %v1065_v31 = vrot.slane %v834_v20, %v1473_v1  ;;  %v1077_v32 = vrot.slane %v827_v12, %v1473_v1 }
  0xf7   : > { %v845_v33 = vcombine.high %v841_v25, %v841_v25  ;;  %v1069_v34 = vrot.slane %v842_v26, %v1473_v1  ;;  %v1073_v39 = vrot.slane %v844_v28, %v1473_v1  ;;  %v1081_v40 = vrot.slane %v841_v25, %v1473_v1 }
  0xf8   : > { %v1085_v43 = vrot.slane %v843_v27, %v1473_v1  ;;  %v1211_v44 = vsel %vm204_vm4, %v1494_v35, %v1061_v30  ;;  %v1212_v45 = vsel %vm204_vm4, %v1497_v36, %v1065_v31  ;;  %v1215_v50 = vsel %vm204_vm4, %v1503_v38, %v1077_v32 }
  0xf9   : > { %v1089_v52 = vrot.slane %v845_v33, %v1473_v1  ;;  %v1213_v53 = vsel %vm204_vm4, %v1500_v37, %v1069_v34  ;;  %v1214_v57 = vsel %vm204_vm4, %v1507_v42, %v1073_v39  ;;  %v1216_v58 = vsel %vm204_vm4, %v1511_v46, %v1081_v40 }
  0xfa   : > { %v1217_v35 = vsel %vm204_vm4, %v1514_v47, %v1085_v43  ;;  %v904_v36 = vrot.slane %v1375_v4, %v1467_v55  ;;  %v911_v59 = vrot.slane %v897_v16, %v1467_v55  ;;  %v748_v38 = vcombine.high %v428_v41, %v428_v41 }
  0xfb   : > { %v1218_v60 = vsel %vm204_vm4, %v1517_v48, %v1089_v52  ;;  %v755_v61 = vrot.slane %v428_v41, %v1467_v55  ;;  %v848_v37 = vcombine.high %v521_v51, %v521_v51  ;;  %v1606_v62 = vrot.slane %v521_v51, %v1467_v55 }
  0xfc   : > { %v912_v42 = vcombine.high %v904_v36, %v904_v36  ;;  %v913_v46 = vcombine.high %v911_v59, %v911_v59  ;;  %v920_v0 = vrot.slane %v904_v36, %v1467_v55  ;;  %v927_v47 = vrot.slane %v911_v59, %v1467_v55 }
  0xfd   : > { %v762_v2 = vrot.slane %v748_v38, %v1467_v55  ;;  %v763_v3 = vcombine.high %v755_v61, %v755_v61  ;;  %v771_v4 = vrot.slane %v755_v61, %v1467_v55  ;;  %v1614_v48 = vrot.slane %v848_v37, %v1467_v55 }
  0xfe   : > { %v934_v6 = vrot.slane %v912_v42, %v1467_v55  ;;  %v941_v7 = vrot.slane %v913_v46, %v1467_v55  ;;  %v942_v8 = vcombine.high %v920_v0, %v920_v0  ;;  %v943_v9 = vcombine.high %v927_v47, %v927_v47 }
  0xff   : > { %v1141_v10 = vrot.slane %v920_v0, %v1473_v1  ;;  %v1157_v11 = vrot.slane %v927_v47, %v1473_v1  ;;  %v764_v12 = vcombine.high %v762_v2, %v762_v2  ;;  %v778_v15 = vrot.slane %v762_v2, %v1467_v55 }
 0x100   : > { %v944_v16 = vcombine.high %v934_v6, %v934_v6  ;;  %v945_v20 = vcombine.high %v941_v7, %v941_v7  ;;  %v1145_v25 = vrot.slane %v934_v6, %v1473_v1  ;;  %v1149_v26 = vrot.slane %v942_v8, %v1473_v1 }
 0x101   : > { %v1161_v27 = vrot.slane %v941_v7, %v1473_v1  ;;  %v1165_v28 = vrot.slane %v943_v9, %v1473_v1  ;;  %v1228_v30 = vsel %vm1219_vm6, %v1211_v44, %v1141_v10  ;;  %v1232_v31 = vsel %vm1219_vm6, %v1215_v50, %v1157_v11 }
 0x102   : > { %v1153_v32 = vrot.slane %v944_v16, %v1473_v1  ;;  %v1169_v33 = vrot.slane %v945_v20, %v1473_v1  ;;  %v1229_v34 = vsel %vm1219_vm6, %v1212_v45, %v1145_v25  ;;  %v1230_v39 = vsel %vm1219_vm6, %v1213_v53, %v1149_v26  ;;  %1244 = vst [vmem:[%s1621_s22 + $0x20] sm:$0xf] %v1228_v30 }
 0x103   : > { %1248 = vst [vmem:[%s1621_s22 + $0x30] sm:$0xf] %v1232_v31  ;;  %v1233_v40 = vsel %vm1219_vm6, %v1216_v58, %v1161_v27  ;;  %v1234_v41 = vsel %vm1219_vm6, %v1217_v35, %v1165_v28  ;;  %1245 = vst [vmem:[%s1621_s22 + $0x24] sm:$0xf] %v1229_v34  ;;  %v785_v43 = vrot.slane %v763_v3, %v1467_v55 }
 0x104   : > { %1246 = vst [vmem:[%s1621_s22 + $0x28] sm:$0xf] %v1230_v39  ;;  %v792_v44 = vrot.slane %v764_v12, %v1467_v55  ;;  %v1231_v50 = vsel %vm1219_vm6, %v1214_v57, %v1153_v32  ;;  %v1235_v45 = vsel %vm1219_vm6, %v1218_v60, %v1169_v33  ;;  %1249 = vst [vmem:[%s1621_s22 + $0x34] sm:$0xf] %v1233_v40 }
 0x105   : > { %1250 = vst [vmem:[%s1621_s22 + $0x38] sm:$0xf] %v1234_v41  ;;  %v793_v51 = vcombine.high %v771_v4, %v771_v4  ;;  %v794_v52 = vcombine.high %v778_v15, %v778_v15  ;;  %1247 = vst [vmem:[%s1621_s22 + $0x2c] sm:$0xf] %v1231_v50  ;;  %v795_v53 = vcombine.high %v785_v43, %v785_v43 }
 0x106   : > { %1251 = vst [vmem:[%s1621_s22 + $0x3c] sm:$0xf] %v1235_v45  ;;  %v796_v58 = vcombine.high %v792_v44, %v792_v44  ;;  %v1029_v35 = vrot.slane %v771_v4, %v1473_v1  ;;  %v1033_v36 = vrot.slane %v785_v43, %v1473_v1  ;;  %v1045_v38 = vrot.slane %v778_v15, %v1473_v1 }
 0x107   : > { %v1037_v59 = vrot.slane %v793_v51, %v1473_v1  ;;  %v1049_v57 = vrot.slane %v792_v44, %v1473_v1  ;;  %v1053_v60 = vrot.slane %v794_v52, %v1473_v1  ;;  %v1190_v61 = vsel %vm1186_vm5, %v579_v13, %v1552_v17 }
 0x108   : > { %v1192_v37 = vsel %vm1186_vm5, %v1529_v56, %v969_v18  ;;  %v1041_v42 = vrot.slane %v795_v53, %v1473_v1  ;;  %v1057_v46 = vrot.slane %v796_v58, %v1473_v1  ;;  %v1193_v0 = vsel %vm1186_vm5, %v578_v63, %v1561_v21 }
 0x109   : > { %v1194_v54 = vsel %vm1186_vm5, %v580_v14, %v1576_v29  ;;  %v1203_v5 = vsel %vm204_vm4, %v1557_v19, %v1029_v35  ;;  %v1204_v13 = vsel %vm204_vm4, %v1565_v22, %v1033_v36  ;;  %v1205_v17 = vsel %vm204_vm4, %v1568_v23, %v1037_v59 }
 0x10a   : > { %v1207_v49 = vsel %vm204_vm4, %v1572_v24, %v1045_v38  ;;  %v863_v63 = vcombine.high %v1606_v62, %v1606_v62  ;;  %v864_v56 = vcombine.high %v1614_v48, %v1614_v48  ;;  %v1208_v14 = vsel %vm204_vm4, %v1192_v37, %v1049_v57 }
 0x10b   : > { %v1209_v18 = vsel %vm204_vm4, %v1193_v0, %v1053_v60  ;;  %v871_v19 = vrot.slane %v1606_v62, %v1467_v55  ;;  %v878_v21 = vrot.slane %v1614_v48, %v1467_v55  ;;  %v1206_v22 = vsel %vm204_vm4, %v1190_v61, %v1041_v42 }
 0x10c   : > { %v1210_v23 = vsel %vm204_vm4, %v1194_v54, %v1057_v46  ;;  %v885_v24 = vrot.slane %v863_v63, %v1467_v55  ;;  %v892_v29 = vrot.slane %v864_v56, %v1467_v55 }
 0x10d   : > { %v893_v47 = vcombine.high %v871_v19, %v871_v19  ;;  %v894_v2 = vcombine.high %v878_v21, %v878_v21  ;;  %v1109_v3 = vrot.slane %v871_v19, %v1473_v1  ;;  %v1125_v4 = vrot.slane %v878_v21, %v1473_v1 }
 0x10e   : > { %v895_v62 = vcombine.high %v885_v24, %v885_v24  ;;  %v896_v6 = vcombine.high %v892_v29, %v892_v29  ;;  %v1113_v48 = vrot.slane %v885_v24, %v1473_v1  ;;  %v1129_v7 = vrot.slane %v892_v29, %v1473_v1 }
 0x10f   : > { %v1117_v8 = vrot.slane %v893_v47, %v1473_v1  ;;  %v1133_v55 = vrot.slane %v894_v2, %v1473_v1  ;;  %v1220_v9 = vsel %vm1219_vm6, %v1203_v5, %v1109_v3  ;;  %v1224_v10 = vsel %vm1219_vm6, %v1207_v49, %v1125_v4 }
 0x110   : > { %v1121_v11 = vrot.slane %v895_v62, %v1473_v1  ;;  %v1137_v12 = vrot.slane %v896_v6, %v1473_v1  ;;  %v1221_v15 = vsel %vm1219_vm6, %v1204_v13, %v1113_v48  ;;  %v1225_v16 = vsel %vm1219_vm6, %v1208_v14, %v1129_v7  ;;  %1236 = vst [vmem:[%s1621_s22] sm:$0xf] %v1220_v9 }
 0x111   : > { %1240 = vst [vmem:[%s1621_s22 + $0x10] sm:$0xf] %v1224_v10  ;;  %v1222_v20 = vsel %vm1219_vm6, %v1205_v17, %v1117_v8  ;;  %v1226_v25 = vsel %vm1219_vm6, %v1209_v18, %v1133_v55  ;;  %1237 = vst [vmem:[%s1621_s22 + $0x4] sm:$0xf] %v1221_v15 }
 0x112   : > { %1241 = vst [vmem:[%s1621_s22 + $0x14] sm:$0xf] %v1225_v16  ;;  %v1223_v26 = vsel %vm1219_vm6, %v1206_v22, %v1121_v11  ;;  %v1227_v27 = vsel %vm1219_vm6, %v1210_v23, %v1137_v12  ;;  %1238 = vst [vmem:[%s1621_s22 + $0x8] sm:$0xf] %v1222_v20 }
 0x113   : > { %1242 = vst [vmem:[%s1621_s22 + $0x18] sm:$0xf] %v1226_v25  ;;  %1239 = vst [vmem:[%s1621_s22 + $0xc] sm:$0xf] %v1223_v26 }
 0x114   : > { %1243 = vst [vmem:[%s1621_s22 + $0x1c] sm:$0xf] %v1227_v27 }
 0x115 PF: > { %s12_s9 = sadd.s32 1, %s1395_s9  }
 0x116   : > { %p9_p4 = scmp.ge.s32.totalorder %s12_s9, 4  }
 0x118   :  { %11 = sbr.rel (!%p9_p4) target bundleno = 1 (0x1), region = 58 }

// kernel: rsu4_forward.19
= control target key start
LH: loop header
LB: loop body
LE: loop exit
PB: predicated region body
PF: predicated region fallthrough
CT: control target
= control target key end

     0   :  { %s2791_s15 = smov 0   ;;  %s2793_s16 = smov 0   ;;  %s3536_s0 = inlined_call_operand.vmem [shape: bf16[2,16,16,128], index: 0, kind: input, shape index: {}]   ;;  %s3537_s1 = inlined_call_operand.vmem [shape: bf16[1152,128], index: 1, kind: input, shape index: {}]   ;;  %s3538_s2 = inlined_call_operand.vmem [shape: f32[1,128], index: 2, kind: input, shape index: {}]   ;;  %s3539_s3 = inlined_call_operand.vmem [shape: bf16[2,16,16,128], index: 3, kind: input, shape index: {}]   ;;  %s3540_s4 = inlined_call_operand.vmem [shape: f32[2,16,16,128], index: 4, kind: output, shape index: {}]  }
   0x1   :  { %s2795_s17 = smov 0   ;;  %s2797_s18 = smov 0  }
   0x2   :  { %s2799_s19 = smov 0  }
   0x3 LB: > { %s23_s20 = sadd.s32 1, %s2754_s17  ;;  %s26_s21 = sadd.s32 1, %s2758_s18  ;;  %s2762_s19 = sphi %s2799_s19, %s14_s19   ;;  %s2758_s18 = sphi %s2797_s18, %s3572_s18   ;;  %s2754_s17 = sphi %s2795_s17, %s3571_s17   ;;  %s2750_s16 = sphi %s2793_s16, %s3570_s16   ;;  %s2746_s15 = sphi %s2791_s15, %s3569_s15  }
   0x4   : > { %p24_p0 = scmp.ge.s32.totalorder %s23_s20, 2  ;;  %p2086_p1 = scmp.ge.s32.totalorder %s2762_s19, 1 }
   0x5   : > { %p160_p2 = scmp.lt.s32.totalorder %s2762_s19, 5 }
   0x6   : > { %s3574_s20 = smov (%p24_p0, %s23_s20), 0  ;;  %s3576_s21 = smov (!%p24_p0, %s26_s21), %s2758_s18 }
   0x7   : > { %p161_p3 = pnand %p2086_p1, %p160_p2  ;;  %p28_p4 = scmp.ge.s32.totalorder %s3576_s21, 2 }
   0x9   : > { %s3578_s21 = smov (%p28_p4, %s3576_s21), 0  ;;  %164 = sbr.rel (%p161_p3) target bundleno = 477 (0x1dd), region = 32 }
   0xe   : > { %s2087_s22 = sshll.u32 %s2746_s15, 3  ;;  %p195_p5 = scmp.lt.s32.totalorder %s2750_s16, 1 }
   0xf   : > { %p197_p6 = scmp.lt.s32.totalorder %s2087_s22, 15  ;;  %s2096_s23 = sadd.s32 4294967295, %s2087_s22 }
  0x10   : > { %s196_s24 = scalar_select %p195_p5, %s2750_s16, 1 }
  0x11   : > { %s198_s25 = scalar_select %p197_p6, %s2087_s22, 15 }
  0x12   : > { %s2089_s26 = sshll.u32 %s196_s24, 5  ;;  %p219_p7 = scmp.gt.s32.totalorder %s2096_s23, 0 }
  0x13   : > { %s2088_s27 = sshll.u32 %s198_s25, 1  ;;  %s2205_s28 = sadd.s32 8, %s2087_s22 }
  0x14   : > { %s201_s29 = sadd.s32 %s2089_s26, %s2088_s27  ;;  %p223_p8 = scmp.gt.s32.totalorder %s2205_s28, 0 }
  0x15   : > { %s2090_s30 = sshll.u32 %s201_s29, 2  ;;  %s2094_s5 = sshll.u32 %s201_s29, 3 }
  0x16   : > { %s2831_s8 = scalar_lea.vmem %s3539_s3, %s2090_s30  ;;  %s2836_s11 = scalar_lea.vmem %s3540_s4, %s2094_s5 }
  0x17   : > { %s3580_s23 = smov (!%p219_p7, %s2096_s23), 0  ;;  %p2098_p9 = scmp.lt.s32.totalorder %s2205_s28, 15 }
  0x18   : > { %s224_s12 = scalar_select %p223_p8, %s2205_s28, 0 }
  0x19   : > { %s2208_s13 = sshll.u32 %s2746_s15, 4  ;;  %s2842_s14 = sshll.u32 %s2750_s16, 5 }
  0x1a   : > { %s3582_s12 = smov (!%p2098_p9, %s224_s12), 15  ;;  %s229_s22 = sadd.s32 %s2208_s13, %s2842_s14 }
  0x1b   : > { %s2105_s24 = sshll.u32 %s229_s22, 2 }
  0x1c   : > { %s231_s27 = scalar_lea.vmem %s3536_s0, %s2105_s24 }
  0x1d   : > { %v266_v0 = vld [vmem:[%s231_s27] sm:$0xff]  ;;  %v268_v1 = vld [vmem:[%s231_s27 + $0x8] sm:$0xff]  ;;  %v270_v2 = vld [vmem:[%s231_s27 + $0x10] sm:$0xff] }
  0x1e   : > { %267 = vst [vmem:[#allocation2 + $0x8] sm:$0xff] %v266_v0  ;;  %269 = vst [vmem:[#allocation2 + $0x10] sm:$0xff] %v268_v1  ;;  %v272_v3 = vld [vmem:[%s231_s27 + $0x18] sm:$0xff]  ;;  %v274_v4 = vld [vmem:[%s231_s27 + $0x20] sm:$0xff] }
  0x1f   : > { %271 = vst [vmem:[#allocation2 + $0x18] sm:$0xff] %v270_v2  ;;  %v276_v5 = vld [vmem:[%s231_s27 + $0x28] sm:$0xff]  ;;  %273 = vst [vmem:[#allocation2 + $0x20] sm:$0xff] %v272_v3  ;;  %v278_v6 = vld [vmem:[%s231_s27 + $0x30] sm:$0xff] }
  0x20   : > { %275 = vst [vmem:[#allocation2 + $0x28] sm:$0xff] %v274_v4  ;;  %277 = vst [vmem:[#allocation2 + $0x30] sm:$0xff] %v276_v5  ;;  %v280_v7 = vld [vmem:[%s231_s27 + $0x38] sm:$0xff] }
  0x21   : > { %279 = vst [vmem:[#allocation2 + $0x38] sm:$0xff] %v278_v6  ;;  %281 = vst [vmem:[#allocation2 + $0x40] sm:$0xff] %v280_v7 }
  0x22   : > { %289 = vsyncadd [#allocation3], 1024  ;;  %p2106_p10 = scmp.le.s32.totalorder %s2746_s15, 0 }
  0x23   : > { %s2107_s16 = sshll.u32 (!%p2106_p10), %s3580_s23, 1 }
  0x24   : > { %293 = sbr.rel (%p2106_p10) target bundleno = 44 (0x2c), region = 70  ;;  %s295_s28 = sadd.s32 (!%p2106_p10), %s2107_s16, %s2842_s14 }
  0x25   : > { %s2108_s29 = sshll.u32 (!%p2106_p10), %s295_s28, 2 }
  0x26   : > { %s297_s6 = scalar_lea.vmem (!%p2106_p10), %s3536_s0, %s2108_s29 }
  0x29   : > { %v332_v8 = vld [vmem:[%s297_s6] sm:$0xff] }
  0x2a   : > { %333 = vst [vmem:[#allocation2] sm:$0xff] %v332_v8 }
  0x2b   : > { %341 = vsyncadd [#allocation3 + $0x1], 128 }
  0x2c PF: > { %p2109_p11 = scmp.ge.s32.totalorder %s2746_s15, 1 }
  0x2d   : > { %s2110_s7 = sshll.u32 (!%p2109_p11), %s3582_s12, 1 }
  0x2e   : > { %345 = sbr.rel (%p2109_p11) target bundleno = 54 (0x36), region = 108  ;;  %s347_s9 = sadd.s32 (!%p2109_p11), %s2110_s7, %s2842_s14 }
  0x2f   : > { %s2111_s10 = sshll.u32 (!%p2109_p11), %s347_s9, 2 }
  0x30   : > { %s349_s22 = scalar_lea.vmem (!%p2109_p11), %s3536_s0, %s2111_s10 }
  0x33   : > { %v385_v9 = vld [vmem:[%s349_s22] sm:$0xff] }
  0x34   : > { %386 = vst [vmem:[#allocation2 + $0x48] sm:$0xff] %v385_v9 }
  0x35   : > { %394 = vsyncadd [#allocation3 + $0x2], 128 }
  0x36 PF: > { %p2112_p12 = scmp.ne.s32.totalorder %s2746_s15, 0 }
  0x38   : > { %398 = sbr.rel (%p2112_p12) target bundleno = 63 (0x3f), region = 146 }
  0x3d   : > { %v2764_v10 = vmov 0  }
  0x3e   : > { %399 = vst [vmem:[#allocation2] sm:$0xf] %v2764_v10  ;;  %400 = vst [vmem:[#allocation2 + $0x4] sm:$0xf] %v2764_v10 }
  0x3f PF: > { %p2113_p13 = scmp.ne.s32.totalorder %s2746_s15, 1 }
  0x41   : > { %404 = sbr.rel (%p2113_p13) target bundleno = 72 (0x48), region = 150 }
  0x46   : > { %v2765_v11 = vmov 0  }
  0x47   : > { %406 = vst [vmem:[#allocation2 + $0x48] sm:$0xf] %v2765_v11  ;;  %407 = vst [vmem:[#allocation2 + $0x4c] sm:$0xf] %v2765_v11 }
  0x48 PF: > { %2734 = dma.done.wait [#allocation3], 1024 }
  0x49   : > { %2735 = vsyncadd [#allocation3], 4294966272  ;;  %p2588_p0 = scmp.gt.s32.totalorder %s2746_s15, 0 }
  0x4b   : > { %2737 = dma.done.wait (%p2588_p0), [#allocation3 + $0x1], 128 }
  0x4c   : > { %2739 = vsyncadd (%p2588_p0), [#allocation3 + $0x1], 4294967168  ;;  %p2589_p1 = scmp.lt.s32.totalorder %s2746_s15, 1 }
  0x4e   : > { %2741 = dma.done.wait (%p2589_p1), [#allocation3 + $0x2], 128 }
  0x4f   : > { %2743 = vsyncadd (%p2589_p1), [#allocation3 + $0x2], 4294967168  ;;  %v2632_v12 = vld [vmem:[%s3537_s1 + $0x138] sm:$0xff]   ;;  %v2635_v15 = vld [vmem:[%s3537_s1 + $0x130] sm:$0xff]   ;;  %vm625_vm0 = vsmask.f32 7424 }
  0x50   : > { %v2633_v13 = vld [vmem:[%s3537_s1 + $0x178] sm:$0xff]   ;;  %2248 = vmatprep.subr.bf16.mxu0 %v2632_v12  ;;  %v2636_v16 = vld [vmem:[%s3537_s1 + $0x170] sm:$0xff]   ;;  %v2638_v18 = vld [vmem:[%s3537_s1 + $0x128] sm:$0xff]   ;;  %vm582_vm1 = vsmask.f32 256  ;;  %vm624_vm2 = vcmask 1047552  }
  0x51   : > { %v2634_v14 = vld [vmem:[%s3537_s1 + $0xf8] sm:$0xff]   ;;  %2488 = vmatprep.subr.bf16.mxu1 %v2633_v13  ;;  %v2637_v17 = vld [vmem:[%s3537_s1 + $0xf0] sm:$0xff]   ;;  %v2639_v19 = vld [vmem:[%s3537_s1 + $0x168] sm:$0xff]   ;;  %vm581_vm3 = vcmask 1040384  }
  0x52   : > { %2249 = vmatpush3.bf16.msra.mxu0 %v2634_v14  ;;  %2489 = vmatpush3.bf16.msra.mxu1 %v2633_v13  ;;  %v2640_v20 = vld [vmem:[%s3537_s1 + $0xe8] sm:$0xff]   ;;  %v2641_v21 = vld [vmem:[%s3537_s1 + $0x120] sm:$0xff]   ;;  %v2644_v24 = vld [vmem:[%s3537_s1 + $0x118] sm:$0xff]  }
  0x53   : > { %2250 = vmatprep.subr.bf16.mxu0 %v2635_v15  ;;  %2490 = vmatprep.subr.bf16.mxu1 %v2636_v16  ;;  %v2642_v22 = vld [vmem:[%s3537_s1 + $0x160] sm:$0xff]   ;;  %v2645_v25 = vld [vmem:[%s3537_s1 + $0x158] sm:$0xff]   ;;  %v2647_v27 = vld [vmem:[%s3537_s1 + $0x110] sm:$0xff]  }
  0x54   : > { %v2643_v23 = vld [vmem:[%s3537_s1 + $0xe0] sm:$0xff]   ;;  %v2646_v26 = vld [vmem:[%s3537_s1 + $0xd8] sm:$0xff]   ;;  %v2648_v28 = vld [vmem:[%s3537_s1 + $0x150] sm:$0xff]  }
  0x55   : > { %v2649_v29 = vld [vmem:[%s3537_s1 + $0xd0] sm:$0xff]   ;;  %v2650_v30 = vld [vmem:[%s3537_s1 + $0x108] sm:$0xff]   ;;  %v2653_v33 = vld [vmem:[%s3537_s1 + $0x100] sm:$0xff]  }
  0x56   : > { %2251 = vmatpush3.bf16.msra.mxu0 %v2637_v17  ;;  %2491 = vmatpush3.bf16.msra.mxu1 %v2636_v16  ;;  %v2651_v31 = vld [vmem:[%s3537_s1 + $0x148] sm:$0xff]   ;;  %v2654_v34 = vld [vmem:[%s3537_s1 + $0x140] sm:$0xff]   ;;  %v2937_v36 = vld [vmem:[#allocation2 + $0x10] sm:$0xff]  }
  0x57   : > { %2252 = vmatprep.subr.bf16.mxu0 %v2638_v18  ;;  %2492 = vmatprep.subr.bf16.mxu1 %v2639_v19  ;;  %v2652_v32 = vld [vmem:[%s3537_s1 + $0xc8] sm:$0xff]   ;;  %v2655_v39 = vld [vmem:[%s3537_s1 + $0xc0] sm:$0xff]   ;;  %vm2946_vm4 = vmand %vm624_vm2, %vm625_vm0  ;;  %v516_v41 = vshrl.u32 %v2937_v36, 16  ;;  %v519_v42 = vshll.u32 %v2937_v36, 16 }
  0x58   : > { %v2935_v35 = vld [vmem:[#allocation2 + $0x8] sm:$0xff]   ;;  %vm2953_vm5 = vmand %vm581_vm3, %vm582_vm1  ;;  %v2658_v47 = vld [vmem:[%s3537_s1 + $0x78] sm:$0xff]  }
  0x59   : > { %918 = vmatprep.mubr.bf16.mxu0 %v2935_v35  ;;  %v509_v37 = vshrl.u32 %v2935_v35, 16  ;;  %v512_v38 = vshll.u32 %v2935_v35, 16  ;;  %v598_v46 = vrot.slane %v519_v42, 1  ;;  %v2659_v50 = vld [vmem:[%s3537_s1 + $0xb8] sm:$0xff]   ;;  %v518_v51 = vrot.slane %v516_v41, 7  ;;  %v2976_v57 = vld [vmem:[#allocation2 + $0x20] sm:$0xff]  }
  0x5a   : > { %2253 = vmatpush3.bf16.msra.mxu0 %v2640_v20  ;;  %2493 = vmatpush3.bf16.msra.mxu1 %v2639_v19  ;;  %v2660_v53 = vld [vmem:[%s3537_s1 + $0x38] sm:$0xff]   ;;  %v2661_v59 = vld [vmem:[%s3537_s1 + $0x70] sm:$0xff]   ;;  %v530_v0 = vshrl.u32 %v2976_v57, 16  ;;  %v533_v1 = vshll.u32 %v2976_v57, 16  ;;  %v2665_v4 = vld [vmem:[%s3537_s1 + $0x68] sm:$0xff]  }
  0x5b   : > { %2254 = vmatprep.subr.bf16.mxu0 %v2641_v21  ;;  %2494 = vmatprep.subr.bf16.mxu1 %v2642_v22  ;;  %v596_v43 = vrot.slane %v512_v38, 1  ;;  %v511_v44 = vrot.slane %v509_v37, 7  ;;  %v599_v52 = vor.u32 %v598_v46, %v516_v41  ;;  %v2974_v56 = vld [vmem:[#allocation2 + $0x18] sm:$0xff]   ;;  %v521_v60 = vor.u32 %v519_v42, %v518_v51  ;;  %v2662_v61 = vld [vmem:[%s3537_s1 + $0x30] sm:$0xff]   ;;  %v2667_v8 = vld [vmem:[%s3537_s1 + $0x28] sm:$0xff]  }
  0x5c   : > { %v523_v62 = vshrl.u32 %v2974_v56, 16  ;;  %v526_v63 = vshll.u32 %v2974_v56, 16  ;;  %v2666_v2 = vld [vmem:[%s3537_s1 + $0xb0] sm:$0xff]   ;;  %v602_v6 = vrot.slane %v533_v1, 1  ;;  %v2668_v10 = vld [vmem:[%s3537_s1 + $0x60] sm:$0xff]   ;;  %v3016_v13 = vld [vmem:[#allocation2 + $0x28] sm:$0xff]  }
  0x5d   : > { %v597_v48 = vor.u32 %v596_v43, %v509_v37  ;;  %v514_v49 = vor.u32 %v512_v38, %v511_v44  ;;  %v2981_v58 = vsel %vm2946_vm4, %v599_v52, 0  ;;  %v3004_v5 = vsel %vm2953_vm5, 0, %v521_v60  ;;  %v3023_v16 = vld [vmem:[#allocation2 + $0x30] sm:$0xff]   ;;  %v2673_v19 = vld [vmem:[%s3537_s1 + $0xa8] sm:$0xff]   ;;  %v2669_v20 = vld [vmem:[%s3537_s1 + $0x20] sm:$0xff]  }
  0x5e   : > { %2255 = vmatpush3.bf16.msra.mxu0 %v2643_v23  ;;  %2495 = vmatpush3.bf16.msra.mxu1 %v2642_v22  ;;  %v600_v3 = vrot.slane %v526_v63, 1  ;;  %v603_v9 = vor.u32 %v602_v6, %v530_v0  ;;  %v525_v11 = vrot.slane %v523_v62, 7  ;;  %v537_v17 = vshrl.u32 %v3016_v13, 16  ;;  %v2675_v37 = vld [vmem:[%s3537_s1 + $0x50] sm:$0xff]   ;;  %v2683_v6 = vld [vmem:[%s3537_s1] sm:$0xff]  }
  0x5f   : > { %2256 = vmatprep.subr.bf16.mxu0 %v2644_v24  ;;  %2496 = vmatprep.subr.bf16.mxu1 %v2645_v25  ;;  %v2968_v54 = vsel %vm2946_vm4, %v597_v48, 0  ;;  %v2972_v55 = vsel %vm2953_vm5, 0, %v514_v49  ;;  %v540_v18 = vshll.u32 %v3016_v13, 16  ;;  %v544_v21 = vshrl.u32 %v3023_v16, 16  ;;  %v2672_v24 = vld [vmem:[%s3537_s1 + $0x58] sm:$0xff]   ;;  %v2676_v44 = vld [vmem:[%s3537_s1 + $0x10] sm:$0xff]  }
  0x60   : > { %2504 = vmatprep.mubr.bf16.mxu1 %v2968_v54  ;;  %v601_v7 = vor.u32 %v600_v3, %v523_v62  ;;  %v3021_v14 = vsel %vm2946_vm4, %v603_v9, 0  ;;  %v528_v15 = vor.u32 %v526_v63, %v525_v11  ;;  %v547_v22 = vshll.u32 %v3023_v16, 16  ;;  %v2679_v49 = vld [vmem:[%s3537_s1 + $0x48] sm:$0xff]   ;;  %v2685_v63 = vld [vmem:[%s3537_s1 + $0x98] sm:$0xff]  }
  0x61   : > { %v604_v23 = vrot.slane %v540_v18, 1  ;;  %v539_v62 = vrot.slane %v537_v17, 7  ;;  %v546_v9 = vrot.slane %v544_v21, 7 }
  0x62   : > { %2257 = vmatpush3.bf16.msra.mxu0 %v2646_v26  ;;  %2497 = vmatpush3.bf16.msra.mxu1 %v2645_v25  ;;  %v3014_v12 = vsel %vm2946_vm4, %v601_v7, 0  ;;  %v3045_v25 = vsel %vm2953_vm5, 0, %v528_v15  ;;  %v606_v26 = vrot.slane %v547_v22, 1 }
  0x63   : > { %2258 = vmatprep.subr.bf16.mxu0 %v2647_v27  ;;  %2498 = vmatprep.subr.bf16.mxu1 %v2648_v28  ;;  %v605_v27 = vor.u32 %v604_v23, %v537_v17  ;;  %v542_v7 = vor.u32 %v540_v18, %v539_v62  ;;  %v2687_v17 = vld [vmem:[%s3537_s1 + $0x88] sm:$0xff]   ;;  %v2694_v18 = vld [vmem:[%s3537_s1 + $0x230] sm:$0xff]  }
  0x64   : > { %v2705_v62 = vld [vmem:[%s3537_s1 + $0x190] sm:$0xff]  }
  0x65   : > { %v3141_v11 = vsel %vm2953_vm5, 0, %v542_v7 }
  0x66   : > { %2259 = vmatpush3.bf16.msra.mxu0 %v2649_v29  ;;  %2499 = vmatpush3.bf16.msra.mxu1 %v2648_v28  ;;  %v2674_v28 = vld [vmem:[%s3537_s1 + $0x18] sm:$0xff]   ;;  %v607_v29 = vor.u32 %v606_v26, %v544_v21  ;;  %v2697_v21 = vld [vmem:[%s3537_s1 + $0x228] sm:$0xff]  }
  0x67   : > { %2260 = vmatprep.subr.bf16.mxu0 %v2650_v30  ;;  %2500 = vmatprep.subr.bf16.mxu1 %v2651_v31  ;;  %v3054_v30 = vld [vmem:[#allocation2 + $0x38] sm:$0xff]  }
  0x68   : > { %v551_v38 = vshrl.u32 %v3054_v30, 16 }
  0x6a   : > { %2261 = vmatpush3.bf16.msra.mxu0 %v2652_v32  ;;  %2501 = vmatpush3.bf16.msra.mxu1 %v2651_v31  ;;  %v532_v31 = vrot.slane %v530_v0, 7  ;;  %v3058_v32 = vsel %vm2946_vm4, %v605_v27, 0  ;;  %v2682_v0 = vld [vmem:[%s3537_s1 + $0x40] sm:$0xff]   ;;  %v2703_v27 = vld [vmem:[%s3537_s1 + $0x218] sm:$0xff]  }
  0x6b   : > { %2262 = vmatprep.subr.bf16.mxu0 %v2653_v33  ;;  %2502 = vmatprep.subr.bf16.mxu1 %v2654_v34  ;;  %v3060_v33 = vld [vmem:[#allocation2 + $0x40] sm:$0xff]  }
  0x6c   : > { %v535_v41 = vor.u32 %v533_v1, %v532_v31  ;;  %v558_v42 = vshrl.u32 %v3060_v33, 16  ;;  %v561_v43 = vshll.u32 %v3060_v33, 16  ;;  %v2706_v31 = vld [vmem:[%s3537_s1 + $0x210] sm:$0xff]  }
  0x6e   : > { %2263 = vmatpush3.bf16.msra.mxu0 %v2655_v39  ;;  %2503 = vmatpush3.bf16.msra.mxu1 %v2654_v34  ;;  %v3065_v34 = vsel %vm2946_vm4, %v607_v29, 0  ;;  %v554_v39 = vshll.u32 %v3054_v30, 16  ;;  %v610_v48 = vrot.slane %v561_v43, 1  ;;  %v3094_v51 = vsel %vm2953_vm5, 0, %v535_v41 }
  0x6f   : > { %2328 = vmatprep.subr.bf16.mxu1 %v2658_v47  ;;  %2520 = vmatprep.subr.bf16.mxu0 %v2659_v50  ;;  %v2680_v47 = vld [vmem:[%s3537_s1 + $0xa0] sm:$0xff]  }
  0x70   : > { %v608_v46 = vrot.slane %v554_v39, 1  ;;  %v611_v52 = vor.u32 %v610_v48, %v558_v42  ;;  %v2695_v48 = vld [vmem:[%s3537_s1 + $0x1e8] sm:$0xff]  }
  0x71   : > { %919 = vmatmul.mubr.bf16.vlgmr.msra.gmra.mxu0 %v2972_v55  ;;  %2505 = vmatmul.mubr.bf16.vlgmr.msra.gmra.mxu1 %v2981_v58 }
  0x72   : > { %2329 = vmatpush3.bf16.msra.mxu1 %v2660_v53  ;;  %2521 = vmatpush3.bf16.msra.mxu0 %v2659_v50  ;;  %v609_v50 = vor.u32 %v608_v46, %v551_v38  ;;  %v3107_v60 = vsel %vm2946_vm4, %v611_v52, 0  ;;  %v2692_v46 = vld [vmem:[%s3537_s1 + $0x1f0] sm:$0xff]   ;;  %v2701_v52 = vld [vmem:[%s3537_s1 + $0x1d8] sm:$0xff]  }
  0x73   : > { %2330 = vmatprep.subr.bf16.mxu1 %v2661_v59  ;;  %926 = vmatprep.mubr.bf16.mxu0 %v2937_v36  ;;  %v3102_v59 = vld [vmem:[#allocation2] sm:$0xff]  }
  0x74   : > { %2522 = vmatprep.subr.bf16.mxu0 %v2666_v2  ;;  %2508 = vmatprep.mubr.bf16.mxu1 %v3014_v12  ;;  %v3100_v53 = vsel %vm2946_vm4, %v609_v50, 0  ;;  %v502_v1 = vshrl.u32 %v3102_v59, 16  ;;  %v2699_v50 = vld [vmem:[%s3537_s1 + $0x1a0] sm:$0xff]  }
  0x76   : > { %2331 = vmatpush3.bf16.msra.mxu1 %v2662_v61  ;;  %2523 = vmatpush3.bf16.msra.mxu0 %v2666_v2  ;;  %v2681_v61 = vld [vmem:[%s3537_s1 + $0x8] sm:$0xff]   ;;  %v505_v2 = vshll.u32 %v3102_v59, 16  ;;  %v504_v3 = vrot.slane %v502_v1, 7 }
  0x77   : > { %2332 = vmatprep.subr.bf16.mxu1 %v2665_v4  ;;  %2524 = vmatprep.subr.bf16.mxu0 %v2673_v19  ;;  %v2686_v4 = vld [vmem:[%s3537_s1 + $0x90] sm:$0xff]  }
  0x78   : > { %v594_v29 = vrot.slane %v505_v2, 1 }
  0x79   : > { %927 = vmatmul.mubr.bf16.gmra.mxu0 %v3004_v5  ;;  %2509 = vmatmul.mubr.bf16.gmra.mxu1 %v3021_v14 }
  0x7a   : > { %2333 = vmatpush3.bf16.msra.mxu1 %v2667_v8  ;;  %934 = vmatprep.mubr.bf16.mxu0 %v2974_v56  ;;  %v507_v8 = vor.u32 %v505_v2, %v504_v3  ;;  %v2711_v2 = vld [vmem:[%s3537_s1 + $0x180] sm:$0xff]   ;;  %v2713_v3 = vld [vmem:[#allocation2 + $0x48] sm:$0xff]  }
  0x7b   : > { %2334 = vmatprep.subr.bf16.mxu1 %v2668_v10  ;;  %2525 = vmatpush3.bf16.msra.mxu0 %v2673_v19  ;;  %v2691_v10 = vld [vmem:[%s3537_s1 + $0x238] sm:$0xff]   ;;  %v2688_v19 = vld [vmem:[%s3537_s1 + $0x80] sm:$0xff]  }
  0x7c   : > { %2512 = vmatprep.mubr.bf16.mxu1 %v3058_v32  ;;  %2526 = vmatprep.subr.bf16.mxu0 %v2680_v47  ;;  %v584_v15 = vsel %vm2953_vm5, 0, %v507_v8 }
  0x7e   : > { %2335 = vmatpush3.bf16.msra.mxu1 %v2669_v20  ;;  %v549_v20 = vor.u32 %v547_v22, %v546_v9  ;;  %v2700_v22 = vld [vmem:[%s3537_s1 + $0x220] sm:$0xff]  }
  0x7f   : > { %2336 = vmatprep.subr.bf16.mxu1 %v2672_v24  ;;  %2527 = vmatpush3.bf16.msra.mxu0 %v2680_v47  ;;  %v553_v24 = vrot.slane %v551_v38, 7  ;;  %v595_v38 = vor.u32 %v594_v29, %v502_v1  ;;  %v2693_v47 = vld [vmem:[%s3537_s1 + $0x1b0] sm:$0xff]   ;;  %v2710_v1 = vld [vmem:[%s3537_s1 + $0x1c0] sm:$0xff]  }
  0x80   : > { %2528 = vmatprep.subr.bf16.mxu0 %v2685_v63  ;;  %v3164_v23 = vsel %vm2953_vm5, 0, %v549_v20 }
  0x81   : > { %935 = vmatmul.mubr.bf16.gmra.mxu0 %v3045_v25  ;;  %2513 = vmatmul.mubr.bf16.gmra.mxu1 %v3065_v34  ;;  %v556_v26 = vor.u32 %v554_v39, %v553_v24  ;;  %v2709_v39 = vld [vmem:[%s3537_s1 + $0x208] sm:$0xff]  }
  0x82   : > { %2337 = vmatpush3.bf16.msra.mxu1 %v2674_v28  ;;  %942 = vmatprep.mubr.bf16.mxu0 %v2976_v57 }
  0x83   : > { %2338 = vmatprep.subr.bf16.mxu1 %v2675_v37  ;;  %2516 = vmatprep.mubr.bf16.mxu1 %v3100_v53  ;;  %v3185_v28 = vsel %vm2953_vm5, 0, %v556_v26 }
  0x84   : > { %2529 = vmatpush3.bf16.msra.mxu0 %v2685_v63  ;;  %v2707_v63 = vld [vmem:[%s3537_s1 + $0x1c8] sm:$0xff]  }
  0x85   : > { %2530 = vmatprep.subr.bf16.mxu0 %v2686_v4 }
  0x86   : > { %2339 = vmatpush3.bf16.msra.mxu1 %v2676_v44  ;;  %v2690_v44 = vld [vmem:[%s3537_s1 + $0x1b8] sm:$0xff]  }
  0x87   : > { %2340 = vmatprep.subr.bf16.mxu1 %v2679_v49  ;;  %v2696_v49 = vld [vmem:[%s3537_s1 + $0x1a8] sm:$0xff]  }
  0x88   : > { %2531 = vmatpush3.bf16.msra.mxu0 %v2686_v4 }
  0x89   : > { %943 = vmatmul.mubr.bf16.gmra.mxu0 %v3094_v51  ;;  %2517 = vmatmul.mubr.bf16.gmra.mxu1 %v3107_v60 }
  0x8a   : > { %2341 = vmatpush3.bf16.msra.mxu1 %v2681_v61  ;;  %950 = vmatprep.mubr.bf16.mxu0 %v3016_v13  ;;  %v2704_v61 = vld [vmem:[%s3537_s1 + $0x1d0] sm:$0xff]  }
  0x8b   : > { %2342 = vmatprep.subr.bf16.mxu1 %v2682_v0  ;;  %1256 = vmatprep.mubr.bf16.mxu1 %v3102_v59  ;;  %v2702_v59 = vld [vmem:[%s3537_s1 + $0x198] sm:$0xff]   ;;  %v2708_v0 = vld [vmem:[%s3537_s1 + $0x188] sm:$0xff]  }
  0x8c   : > { %2532 = vmatprep.subr.bf16.mxu0 %v2687_v17 }
  0x8d   : > { %2533 = vmatpush3.bf16.msra.mxu0 %v2687_v17 }
  0x8e   : > { %2343 = vmatpush3.bf16.msra.mxu1 %v2683_v6  ;;  %2534 = vmatprep.subr.bf16.mxu0 %v2688_v19 }
  0x8f   : > { %2552 = vmatprep.subr.bf16.mxu1 %v2691_v10 }
  0x91   : > { %951 = vmatmul.mubr.bf16.gmra.mxu0 %v3141_v11  ;;  %1257 = vmatmul.mubr.bf16.vlgmr.msra.gmra.mxu1 %v584_v15 }
  0x92   : > { %958 = vmatprep.mubr.bf16.mxu0 %v3023_v16  ;;  %1264 = vmatprep.mubr.bf16.mxu1 %v2935_v35  ;;  %v2689_v35 = vld [vmem:[%s3537_s1 + $0x1f8] sm:$0xff]  }
  0x93   : > { %2553 = vmatpush3.bf16.msra.mxu1 %v2691_v10  ;;  %2535 = vmatpush3.bf16.msra.mxu0 %v2688_v19 }
  0x94   : > { %2554 = vmatprep.subr.bf16.mxu1 %v2694_v18  ;;  %2408 = vmatprep.subr.bf16.mxu0 %v2689_v35 }
  0x97   : > { %2555 = vmatpush3.bf16.msra.mxu1 %v2694_v18 }
  0x98   : > { %2556 = vmatprep.subr.bf16.mxu1 %v2697_v21 }
  0x99   : > { %959 = vmatmul.mubr.bf16.gmra.mxu0 %v3164_v23  ;;  %1265 = vmatmul.mubr.bf16.gmra.mxu1 %v2972_v55  ;;  %v560_v55 = vrot.slane %v558_v42, 7  ;;  %v627_v42 = vsel %vm2946_vm4, %v595_v38, 0 }
  0x9a   : > { %966 = vmatprep.mubr.bf16.mxu0 %v3054_v30  ;;  %1272 = vmatprep.mubr.bf16.mxu1 %v2937_v36 }
  0x9b   : > { %2557 = vmatpush3.bf16.msra.mxu1 %v2697_v21  ;;  %v563_v37 = vor.u32 %v561_v43, %v560_v55  ;;  %v2712_v43 = vld [vmem:[%s3537_s1 + $0x200] sm:$0xff]  }
  0x9c   : > { %2558 = vmatprep.subr.bf16.mxu1 %v2700_v22 }
  0x9d   : > { %v3205_v41 = vsel %vm2953_vm5, 0, %v563_v37 }
  0x9f   : > { %2559 = vmatpush3.bf16.msra.mxu1 %v2700_v22 }
  0xa0   : > { %2560 = vmatprep.subr.bf16.mxu1 %v2703_v27 }
  0xa1   : > { %967 = vmatmul.mubr.bf16.gmra.mxu0 %v3185_v28  ;;  %1273 = vmatmul.mubr.bf16.gmra.mxu1 %v3004_v5 }
  0xa2   : > { %974 = vmatprep.mubr.bf16.mxu0 %v3060_v33  ;;  %1280 = vmatprep.mubr.bf16.mxu1 %v2974_v56 }
  0xa3   : > { %2561 = vmatpush3.bf16.msra.mxu1 %v2703_v27 }
  0xa4   : > { %2562 = vmatprep.subr.bf16.mxu1 %v2706_v31 }
  0xa7   : > { %2563 = vmatpush3.bf16.msra.mxu1 %v2706_v31 }
  0xa8   : > { %2564 = vmatprep.subr.bf16.mxu1 %v2709_v39 }
  0xa9   : > { %975 = vmatmul.mubr.bf16.gmra.mxu0 %v3205_v41  ;;  %1281 = vmatmul.mubr.bf16.gmra.mxu1 %v3045_v25 }
  0xaa   : > { %1288 = vmatprep.mubr.bf16.mxu1 %v2976_v57  ;;  %2536 = vmatprep.mubr.bf16.mxu0 %v627_v42 }
  0xab   : > { %2565 = vmatpush3.bf16.msra.mxu1 %v2709_v39 }
  0xac   : > { %2566 = vmatprep.subr.bf16.mxu1 %v2712_v43 }
  0xaf   : > { %2567 = vmatpush3.bf16.msra.mxu1 %v2712_v43 }
  0xb1   : > { %1289 = vmatmul.mubr.bf16.gmra.mxu1 %v3094_v51  ;;  %2537 = vmatmul.mubr.bf16.vlgmr.msra.gmra.mxu0 %v2968_v54  ;;  %v2698_v54 = vld [vmem:[%s3537_s1 + $0x1e0] sm:$0xff]  }
  0xb2   : > { %2409 = vmatpush3.bf16.msra.mxu0 %v2690_v44  ;;  %1296 = vmatprep.mubr.bf16.mxu1 %v3016_v13 }
  0xb3   : > { %2410 = vmatprep.subr.bf16.mxu0 %v2692_v46  ;;  %2540 = vmatprep.mubr.bf16.mxu0 %v2981_v58 }
  0xb6   : > { %2411 = vmatpush3.bf16.msra.mxu0 %v2693_v47 }
  0xb7   : > { %2412 = vmatprep.subr.bf16.mxu0 %v2695_v48 }
  0xb9   : > { %1297 = vmatmul.mubr.bf16.gmra.mxu1 %v3141_v11  ;;  %2541 = vmatmul.mubr.bf16.gmra.mxu0 %v3014_v12 }
  0xba   : > { %2413 = vmatpush3.bf16.msra.mxu0 %v2696_v49  ;;  %1304 = vmatprep.mubr.bf16.mxu1 %v3023_v16 }
  0xbb   : > { %2414 = vmatprep.subr.bf16.mxu0 %v2698_v54  ;;  %2544 = vmatprep.mubr.bf16.mxu0 %v3021_v14 }
  0xbe   : > { %2415 = vmatpush3.bf16.msra.mxu0 %v2699_v50 }
  0xbf   : > { %2416 = vmatprep.subr.bf16.mxu0 %v2701_v52 }
  0xc1   : > { %1305 = vmatmul.mubr.bf16.gmra.mxu1 %v3164_v23  ;;  %2545 = vmatmul.mubr.bf16.gmra.mxu0 %v3058_v32 }
  0xc2   : > { %2417 = vmatpush3.bf16.msra.mxu0 %v2702_v59  ;;  %1312 = vmatprep.mubr.bf16.mxu1 %v3054_v30 }
  0xc3   : > { %2418 = vmatprep.subr.bf16.mxu0 %v2704_v61  ;;  %2548 = vmatprep.mubr.bf16.mxu0 %v3065_v34 }
  0xc6   : > { %2419 = vmatpush3.bf16.msra.mxu0 %v2705_v62 }
  0xc7   : > { %2420 = vmatprep.subr.bf16.mxu0 %v2707_v63 }
  0xc9   : > { %1313 = vmatmul.mubr.bf16.gmra.mxu1 %v3185_v28  ;;  %2549 = vmatmul.mubr.bf16.gmra.mxu0 %v3100_v53 }
  0xca   : > { %2421 = vmatpush3.bf16.msra.mxu0 %v2708_v0  ;;  %1643 = vmatprep.mubr.bf16.mxu0 %v2937_v36  ;;  %v568_v36 = vshll.u32 %v2713_v3, 16 }
  0xcb   : > { %2422 = vmatprep.subr.bf16.mxu0 %v2710_v1  ;;  %2568 = vmatprep.mubr.bf16.mxu1 %v2981_v58  ;;  %v565_v58 = vshrl.u32 %v2713_v3, 16 }
  0xcc   : > { %v612_v4 = vrot.slane %v568_v36, 1 }
  0xce   : > { %2423 = vmatpush3.bf16.msra.mxu0 %v2711_v2 }
  0xd1   : > { %1644 = vmatmul.mubr.bf16.vlgmr.msra.gmra.mxu0 %v3004_v5  ;;  %2569 = vmatmul.mubr.bf16.vlgmr.msra.gmra.mxu1 %v3014_v12 }
  0xd2   : > { %1651 = vmatprep.mubr.bf16.mxu0 %v2974_v56  ;;  %2572 = vmatprep.mubr.bf16.mxu1 %v3021_v14  ;;  %v613_v56 = vor.u32 %v612_v4, %v565_v58 }
  0xd4   : > { %v636_v5 = vsel %vm2946_vm4, %v613_v56, 0 }
  0xd9   : > { %1652 = vmatmul.mubr.bf16.gmra.mxu0 %v3045_v25  ;;  %2573 = vmatmul.mubr.bf16.gmra.mxu1 %v3058_v32 }
  0xda   : > { %1659 = vmatprep.mubr.bf16.mxu0 %v2976_v57  ;;  %2576 = vmatprep.mubr.bf16.mxu1 %v3065_v34  ;;  %v567_v57 = vrot.slane %v565_v58, 7 }
  0xdc   : > { %v570_v12 = vor.u32 %v568_v36, %v567_v57 }
  0xde   : > { %v593_v40 = vsel %vm2953_vm5, 0, %v570_v12 }
  0xe1   : > { %1660 = vmatmul.mubr.bf16.gmra.mxu0 %v3094_v51  ;;  %2577 = vmatmul.mubr.bf16.gmra.mxu1 %v3100_v53 }
  0xe2   : > { %1667 = vmatprep.mubr.bf16.mxu0 %v3016_v13  ;;  %2580 = vmatprep.mubr.bf16.mxu1 %v3107_v60 }
  0xe9   : > { %1668 = vmatmul.mubr.bf16.gmra.mxu0 %v3141_v11  ;;  %2581 = vmatmul.mubr.bf16.gmra.mxu1 %v636_v5 }
  0xea   : > { %1675 = vmatprep.mubr.bf16.mxu0 %v3023_v16 }
  0xf1   : > { %1676 = vmatmul.mubr.bf16.gmra.mxu0 %v3164_v23 }
  0xf2   : > { %1683 = vmatprep.mubr.bf16.mxu0 %v3054_v30 }
  0xf9   : > { %1684 = vmatmul.mubr.bf16.gmra.mxu0 %v3185_v28 }
  0xfa   : > { %1691 = vmatprep.mubr.bf16.mxu0 %v3060_v33 }
 0x101   : > { %1692 = vmatmul.mubr.bf16.gmra.mxu0 %v3205_v41 }
 0x102   : > { %1699 = vmatprep.mubr.bf16.mxu0 %v2713_v3 }
 0x109   : > { %1700 = vmatmul.mubr.bf16.gmra.mxu0 %v593_v40 }
 0x131   : > { %v2264_v13 = vpop.f32.mrf.mxu0  ;;  %v2506_v14 = vpop.f32.mrf.mxu1 }
 0x133   : > { %v2265_v16 = vpop.f32.mrf.mxu0  ;;  %v1017_v25 = vpop.f32.mrf.mxu1 }
 0x134   : > { %v2266_v32 = vadd.f32 %v2265_v16, %v2264_v13 }
 0x135   : > { %v2267_v34 = vpop.f32.mrf.mxu0  ;;  %v2507_v30 = vpop.f32.mrf.mxu1 }
 0x136   : > { %v3299_v51 = vadd.f32 %v2266_v32, %v1017_v25 }
 0x137   : > { %v2268_v53 = vpop.f32.mrf.mxu0  ;;  %v1020_v33 = vpop.f32.mrf.mxu1 }
 0x138   : > { %v2269_v60 = vadd.f32 %v2268_v53, %v2267_v34 }
 0x139   : > { %v2270_v6 = vpop.f32.mrf.mxu0  ;;  %v2510_v7 = vpop.f32.mrf.mxu1 }
 0x13a   : > { %v3301_v8 = vadd.f32 %v2269_v60, %v1020_v33 }
 0x13b   : > { %v2271_v9 = vpop.f32.mrf.mxu0  ;;  %v1033_v45 = vpop.f32.mrf.mxu1 }
 0x13c   : > { %v2272_v10 = vadd.f32 %v2271_v9, %v2270_v6 }
 0x13d   : > { %v2273_v11 = vpop.f32.mrf.mxu0  ;;  %v2511_v15 = vpop.f32.mrf.mxu1 }
 0x13e   : > { %v3303_v17 = vadd.f32 %v2506_v14, %v2272_v10 }
 0x13f   : > { %v2274_v18 = vpop.f32.mrf.mxu0  ;;  %v1036_v19 = vpop.f32.mrf.mxu1 }
 0x140   : > { %v2275_v20 = vadd.f32 %v2274_v18, %v2273_v11 }
 0x141   : > { %v2276_v21 = vpop.f32.mrf.mxu0  ;;  %v2514_v23 = vpop.f32.mrf.mxu1 }
 0x142   : > { %v3305_v24 = vadd.f32 %v2507_v30, %v2275_v20 }
 0x143   : > { %v2277_v35 = vpop.f32.mrf.mxu0  ;;  %v1049_v22 = vpop.f32.mrf.mxu1 }
 0x144   : > { %v2278_v26 = vadd.f32 %v2277_v35, %v2276_v21 }
 0x145   : > { %v2279_v27 = vpop.f32.mrf.mxu0  ;;  %v2515_v28 = vpop.f32.mrf.mxu1 }
 0x146   : > { %v3307_v55 = vadd.f32 %v2278_v26, %v1033_v45 }
 0x147   : > { %v2280_v29 = vpop.f32.mrf.mxu0  ;;  %v1052_v31 = vpop.f32.mrf.mxu1 }
 0x148   : > { %v2281_v37 = vadd.f32 %v2280_v29, %v2279_v27 }
 0x149   : > { %v2282_v38 = vpop.f32.mrf.mxu0  ;;  %v2518_v39 = vpop.f32.mrf.mxu1 }
 0x14a   : > { %v3309_v41 = vadd.f32 %v2281_v37, %v1036_v19 }
 0x14b   : > { %v2283_v42 = vpop.f32.mrf.mxu0  ;;  %v1065_v43 = vpop.f32.mrf.mxu1 }
 0x14c   : > { %v2284_v44 = vadd.f32 %v2283_v42, %v2282_v38 }
 0x14d   : > { %v2285_v46 = vpop.f32.mrf.mxu0  ;;  %v2519_v47 = vpop.f32.mrf.mxu1 }
 0x14e   : > { %v3311_v48 = vadd.f32 %v2510_v7, %v2284_v44 }
 0x14f   : > { %v2286_v49 = vpop.f32.mrf.mxu0  ;;  %v1068_v54 = vpop.f32.mrf.mxu1 }
 0x150   : > { %v2287_v50 = vadd.f32 %v2286_v49, %v2285_v46 }
 0x151   : > { %v2288_v52 = vpop.f32.mrf.mxu0  ;;  %v3313_v59 = vpop.f32.mrf.mxu1 }
 0x152   : > { %v3315_v61 = vadd.f32 %v2511_v15, %v2287_v50 }
 0x153   : > { %v2289_v62 = vpop.f32.mrf.mxu0  ;;  %v3317_v63 = vpop.f32.mrf.mxu1 }
 0x154   : > { %v2290_v0 = vadd.f32 %v2289_v62, %v2288_v52 }
 0x155   : > { %v2291_v1 = vpop.f32.mrf.mxu0  ;;  %v3319_v2 = vpop.f32.mrf.mxu1 }
 0x156   : > { %v3321_v3 = vadd.f32 %v2290_v0, %v1049_v22 }
 0x157   : > { %v2292_v36 = vpop.f32.mrf.mxu0  ;;  %v3323_v58 = vpop.f32.mrf.mxu1 }
 0x158   : > { %v2293_v4 = vadd.f32 %v2292_v36, %v2291_v1 }
 0x159   : > { %v2294_v56 = vpop.f32.mrf.mxu0  ;;  %v3325_v5 = vpop.f32.mrf.mxu1 }
 0x15a   : > { %v3327_v57 = vadd.f32 %v2293_v4, %v1052_v31 }
 0x15b   : > { %v2295_v12 = vpop.f32.mrf.mxu0  ;;  %v3329_v40 = vpop.f32.mrf.mxu1 }
 0x15c   : > { %v2296_v13 = vadd.f32 %v2295_v12, %v2294_v56 }
 0x15d   : > { %v2297_v14 = vpop.f32.mrf.mxu0  ;;  %v3331_v16 = vpop.f32.mrf.mxu1 }
 0x15e   : > { %v3333_v25 = vadd.f32 %v2514_v23, %v2296_v13 }
 0x15f   : > { %v2298_v32 = vpop.f32.mrf.mxu0  ;;  %v3335_v34 = vpop.f32.mrf.mxu1 }
 0x160   : > { %v2299_v30 = vadd.f32 %v2298_v32, %v2297_v14 }
 0x161   : > { %v2300_v53 = vpop.f32.mrf.mxu0  ;;  %v3337_v33 = vpop.f32.mrf.mxu1 }
 0x162   : > { %v3339_v60 = vadd.f32 %v2515_v28, %v2299_v30 }
 0x163   : > { %v2301_v6 = vpop.f32.mrf.mxu0  ;;  %v3341_v7 = vpop.f32.mrf.mxu1 }
 0x164   : > { %3545 = vst [vmem:[#allocation10_spill] sm:$0xff] %v3339_v60  ;;  %v2302_v9 = vadd.f32 %v2301_v6, %v2300_v53 }
 0x165   : > { %v2303_v45 = vpop.f32.mrf.mxu0  ;;  %v3343_v10 = vpop.f32.mrf.mxu1 }
 0x166   : > { %v3345_v11 = vadd.f32 %v2302_v9, %v1065_v43 }
 0x167   : > { %v2304_v15 = vpop.f32.mrf.mxu0  ;;  %v3347_v18 = vpop.f32.mrf.mxu1 }
 0x168   : > { %3546 = vst [vmem:[#allocation11_spill] sm:$0xff] %v3345_v11  ;;  %v2305_v19 = vadd.f32 %v2304_v15, %v2303_v45 }
 0x169   : > { %v2306_v20 = vpop.f32.mrf.mxu0  ;;  %v3349_v21 = vpop.f32.mrf.mxu1 }
 0x16a   : > { %v3351_v23 = vadd.f32 %v2305_v19, %v1068_v54 }
 0x16b   : > { %v2307_v35 = vpop.f32.mrf.mxu0  ;;  %v3353_v22 = vpop.f32.mrf.mxu1 }
 0x16c   : > { %3547 = vst [vmem:[#allocation12_spill] sm:$0xff] %v3351_v23  ;;  %v2308_v26 = vadd.f32 %v2307_v35, %v2306_v20 }
 0x16d   : > { %v2309_v27 = vpop.f32.mrf.mxu0  ;;  %v3355_v28 = vpop.f32.mrf.mxu1 }
 0x16e   : > { %v1074_v29 = vadd.f32 %v2518_v39, %v2308_v26 }
 0x16f   : > { %v2310_v31 = vpop.f32.mrf.mxu0  ;;  %v3357_v37 = vpop.f32.mrf.mxu1 }
 0x170   : > { %v2311_v38 = vadd.f32 %v2310_v31, %v2309_v27 }
 0x171   : > { %v3359_v42 = vpop.f32.mrf.mxu1  ;;  %v3361_v43 = vpop.f32.mrf.mxu0 }
 0x172   : > { %v1077_v44 = vadd.f32 %v2519_v47, %v2311_v38 }
 0x173   : > { %v3363_v46 = vpop.f32.mrf.mxu1  ;;  %v1355_v49 = vpop.f32.mrf.mxu0 }
 0x175   : > { %v3365_v54 = vpop.f32.mrf.mxu1  ;;  %v3367_v50 = vpop.f32.mrf.mxu0 }
 0x177   : > { %v3369_v52 = vpop.f32.mrf.mxu1  ;;  %v1358_v62 = vpop.f32.mrf.mxu0 }
 0x179   : > { %v3371_v39 = vpop.f32.mrf.mxu1  ;;  %v3373_v0 = vpop.f32.mrf.mxu0 }
 0x17b   : > { %v3375_v1 = vpop.f32.mrf.mxu1  ;;  %v3377_v36 = vpop.f32.mrf.mxu0 }
 0x17d   : > { %v3379_v4 = vpop.f32.mrf.mxu1  ;;  %v3381_v47 = vpop.f32.mrf.mxu0 }
 0x17f   : > { %v3383_v56 = vpop.f32.mrf.mxu1  ;;  %v3385_v12 = vpop.f32.mrf.mxu0 }
 0x180   : > { %3548 = vst [vmem:[#allocation13_spill] sm:$0xff] %v3383_v56 }
 0x181   : > { %v3387_v13 = vpop.f32.mrf.mxu1  ;;  %v3389_v14 = vpop.f32.mrf.mxu0 }
 0x182   : > { %3549 = vst [vmem:[#allocation14_spill] sm:$0xff] %v3387_v13  ;;  %3550 = vst [vmem:[#allocation15_spill] sm:$0xff] %v3389_v14 }
 0x183   : > { %v3391_v32 = vpop.f32.mrf.mxu1  ;;  %v3393_v30 = vpop.f32.mrf.mxu0 }
 0x184   : > { %3551 = vst [vmem:[#allocation16_spill] sm:$0xff] %v3391_v32 }
 0x185   : > { %v3395_v53 = vpop.f32.mrf.mxu1  ;;  %v3397_v6 = vpop.f32.mrf.mxu0 }
 0x186   : > { %3552 = vst [vmem:[#allocation17_spill] sm:$0xff] %v3395_v53  ;;  %3553 = vst [vmem:[#allocation18_spill] sm:$0xff] %v3397_v6  ;;  %v2346_v53 = vadd.f32 %v3317_v63, %v3313_v59 }
 0x187   : > { %v3399_v9 = vpop.f32.mrf.mxu1  ;;  %v3401_v45 = vpop.f32.mrf.mxu0 }
 0x188   : > { %3554 = vst [vmem:[#allocation19_spill] sm:$0xff] %v3399_v9 }
 0x189   : > { %v2386_v15 = vpop.f32.mrf.mxu1  ;;  %v2550_v19 = vpop.f32.mrf.mxu0 }
 0x18b   : > { %v2387_v20 = vpop.f32.mrf.mxu1  ;;  %v3403_v35 = vpop.f32.mrf.mxu0 }
 0x18c   : > { %3555 = vst [vmem:[#allocation20_spill] sm:$0xff] %v3403_v35  ;;  %v2388_v26 = vadd.f32 %v2387_v20, %v2386_v15  ;;  %v2349_v15 = vadd.f32 %v3323_v58, %v3319_v2 }
 0x18d   : > { %v2389_v27 = vpop.f32.mrf.mxu1  ;;  %v2551_v31 = vpop.f32.mrf.mxu0 }
 0x18e   : > { %v1315_v38 = vadd.f32 %v2388_v26, %v1074_v29  ;;  %v1259_v29 = vadd.f32 %v2346_v53, %v3299_v51  ;;  %v1262_v51 = vadd.f32 %v2349_v15, %v3301_v8 }
 0x18f   : > { %v2390_v23 = vpop.f32.mrf.mxu1  ;;  %v3405_v11 = vpop.f32.mrf.mxu0 }
 0x190   : > { %3556 = vst [vmem:[#allocation21_spill] sm:$0xff] %v3405_v11  ;;  %v3409_v6 = vadd.f32 %v2550_v19, %v1315_v38  ;;  %v2391_v9 = vadd.f32 %v2390_v23, %v2389_v27  ;;  %v1356_v59 = vadd.f32 %v1355_v49, %v1259_v29  ;;  %v2352_v23 = vadd.f32 %v3329_v40, %v3325_v5 }
 0x191   : > { %v2424_v60 = vpop.f32.mrf.mxu0  ;;  %v2570_v32 = vpop.f32.mrf.mxu1 }
 0x192   : > { %v1318_v13 = vadd.f32 %v2391_v9, %v1077_v44  ;;  %v3421_v44 = vld [vmem:[%s3538_s2] ss:$0 sm:$0xff]  ;;  %v1267_v5 = vadd.f32 %v2352_v23, %v3303_v17  ;;  %v2358_v17 = vadd.f32 %v3341_v7, %v3337_v33 }
 0x193   : > { %v2425_v14 = vpop.f32.mrf.mxu0  ;;  %v1742_v56 = vpop.f32.mrf.mxu1  ;;  %v2210_v9 = vld [vmem:[%s2831_s8] sm:$0xff]  }
 0x194   : > { %v3414_v20 = vadd.f32 %v2551_v31, %v1318_v13  ;;  %v2426_v26 = vadd.f32 %v2425_v14, %v2424_v60  ;;  %v1359_v14 = vadd.f32 %v1358_v62, %v1262_v51  ;;  %v2355_v31 = vadd.f32 %v3335_v34, %v3331_v16 }
 0x195   : > { %v2427_v11 = vpop.f32.mrf.mxu0  ;;  %v2571_v35 = vpop.f32.mrf.mxu1  ;;  %v1364_v62 = vadd.f32 %v3361_v43, %v1267_v5  ;;  %v1275_v33 = vadd.f32 %v2358_v17, %v3307_v55  ;;  %v2364_v55 = vadd.f32 %v3353_v22, %v3349_v21 }
 0x196   : > { %v1743_v63 = vadd.f32 %v2426_v26, %v1742_v56  ;;  %v2211_v56 = vunpack.c.l.bf16 %v2210_v9  ;;  %v1270_v16 = vadd.f32 %v2355_v31, %v3305_v24  ;;  %v2361_v24 = vadd.f32 %v3347_v18, %v3343_v10 }
 0x197   : > { %v2428_v19 = vpop.f32.mrf.mxu0  ;;  %v1745_v2 = vpop.f32.mrf.mxu1  ;;  %v1283_v21 = vadd.f32 %v2364_v55, %v3311_v48 }
 0x198   : > { %v1805_v58 = vadd.f32 %v1743_v63, %v1356_v59  ;;  %v2429_v13 = vadd.f32 %v2428_v19, %v2427_v11  ;;  %v2212_v11 = vunpack.c.h.bf16 %v2210_v9  ;;  %v2241_v19 = vld [vmem:[%s2831_s8 + $0x8] sm:$0xff]   ;;  %v1367_v43 = vadd.f32 %v3367_v50, %v1270_v16 }
 0x199   : > { %v2430_v60 = vpop.f32.mrf.mxu0  ;;  %v3427_v27 = vpop.f32.mrf.mxu1  ;;  %v1372_v50 = vadd.f32 %v3377_v36, %v1275_v33  ;;  %v1278_v10 = vadd.f32 %v2361_v24, %v3309_v41  ;;  %v2367_v41 = vadd.f32 %v3357_v37, %v3355_v28 }
 0x19a   : > { %v1828_v49 = vadd.f32 %v3421_v44, %v1805_v58  ;;  %v1746_v53 = vadd.f32 %v2429_v13, %v1745_v2  ;;  %v2215_v58 = vunpack.c.l.bf16 %v2241_v19 }
 0x19b   : > { %v2431_v40 = vpop.f32.mrf.mxu0  ;;  %v1758_v2 = vpop.f32.mrf.mxu1  ;;  %v1375_v36 = vadd.f32 %v3385_v12, %v1278_v10  ;;  %v1286_v37 = vadd.f32 %v2367_v41, %v3315_v61  ;;  %v2373_v61 = vadd.f32 %v3369_v52, %v3365_v54 }
 0x19c   : > { %v1844_v38 = vmax.f32 %v1828_v49, 0.0  ;;  %v1806_v8 = vadd.f32 %v1746_v53, %v1359_v14  ;;  %v2432_v15 = vadd.f32 %v2431_v40, %v2430_v60  ;;  %v2216_v40 = vunpack.c.h.bf16 %v2241_v19 }
 0x19d   : > { %v2433_v29 = vpop.f32.mrf.mxu0  ;;  %v2575_v49 = vpop.f32.mrf.mxu1  ;;  %v1294_v54 = vadd.f32 %v2373_v61, %v3327_v57  ;;  %v3557_v57 = vld [vmem:[#allocation13_spill] sm:$0xff] }
 0x19e   : > { %v1892_v26 = vadd.f32 %v2211_v56, %v1844_v38  ;;  %v1829_v59 = vadd.f32 %v3421_v44, %v1806_v8  ;;  %v1751_v63 = vadd.f32 %v2570_v32, %v2432_v15  ;;  %v2242_v15 = vld [vmem:[%s2831_s8 + $0x10] sm:$0xff]  }
 0x19f   : > { %v2434_v23 = vpop.f32.mrf.mxu0 }
 0x1a0   : > { %1908 = vst [vmem:[%s2836_s11] sm:$0xff] %v1892_v26  ;;  %v1845_v34 = vmax.f32 %v1829_v59, 0.0  ;;  %v1807_v51 = vadd.f32 %v1751_v63, %v1364_v62  ;;  %v2435_v9 = vadd.f32 %v2434_v23, %v2433_v29  ;;  %v1761_v29 = vpop.f32.mrf.mxu1  ;;  %v2219_v59 = vunpack.c.l.bf16 %v2242_v15 }
 0x1a1   : > { %v2436_v13 = vpop.f32.mrf.mxu0 }
 0x1a2   : > { %v1893_v60 = vadd.f32 %v2212_v11, %v1845_v34  ;;  %v1830_v32 = vadd.f32 %v3421_v44, %v1807_v51  ;;  %v1754_v14 = vadd.f32 %v2571_v35, %v2435_v9  ;;  %v2220_v9 = vunpack.c.h.bf16 %v2242_v15 }
 0x1a3   : > { %v2437_v7 = vpop.f32.mrf.mxu0 }
 0x1a4   : > { %1909 = vst [vmem:[%s2836_s11 + $0x8] sm:$0xff] %v1893_v60  ;;  %v1846_v56 = vmax.f32 %v1830_v32, 0.0  ;;  %v1808_v53 = vadd.f32 %v1754_v14, %v1367_v43  ;;  %v2438_v5 = vadd.f32 %v2437_v7, %v2436_v13  ;;  %v2243_v60 = vld [vmem:[%s2831_s8 + $0x18] sm:$0xff]   ;;  %v2370_v32 = vadd.f32 %v3363_v46, %v3359_v42 }
 0x1a5   : > { %v2439_v31 = vpop.f32.mrf.mxu0 }
 0x1a6   : > { %v1894_v38 = vadd.f32 %v2215_v58, %v1846_v56  ;;  %v1831_v8 = vadd.f32 %v3421_v44, %v1808_v53  ;;  %v1759_v35 = vadd.f32 %v2438_v5, %v1758_v2  ;;  %v3454_v2 = vpop.f32.mrf.mxu1  ;;  %v1380_v58 = vadd.f32 %v3373_v0, %v1283_v21 }
 0x1a7   : > { %v2440_v11 = vpop.f32.mrf.mxu0  ;;  %v2223_v56 = vunpack.c.l.bf16 %v2243_v60  ;;  %v1383_v53 = vadd.f32 %v3381_v47, %v1286_v37  ;;  %v1291_v42 = vadd.f32 %v2370_v32, %v3321_v3  ;;  %v2376_v3 = vadd.f32 %v3375_v1, %v3371_v39 }
 0x1a8   : > { %1910 = vst [vmem:[%s2836_s11 + $0x10] sm:$0xff] %v1894_v38  ;;  %v1847_v18 = vmax.f32 %v1831_v8, 0.0  ;;  %v1809_v62 = vadd.f32 %v1759_v35, %v1372_v50  ;;  %v2441_v26 = vadd.f32 %v2440_v11, %v2439_v31  ;;  %v1774_v28 = vpop.f32.mrf.mxu1  ;;  %v2224_v35 = vunpack.c.h.bf16 %v2243_v60 }
 0x1a9   : > { %v2442_v63 = vpop.f32.mrf.mxu0  ;;  %v1388_v47 = vadd.f32 %v3393_v30, %v1291_v42  ;;  %v1391_v30 = vadd.f32 %v3401_v45, %v1294_v54  ;;  %v1299_v39 = vadd.f32 %v2376_v3, %v3333_v25  ;;  %v2379_v21 = vadd.f32 %v3557_v57, %v3379_v4 }
 0x1aa   : > { %v1895_v19 = vadd.f32 %v2216_v40, %v1847_v18  ;;  %v1832_v17 = vadd.f32 %v3421_v44, %v1809_v62  ;;  %v1762_v23 = vadd.f32 %v2441_v26, %v1761_v29  ;;  %v2579_v31 = vpop.f32.mrf.mxu1  ;;  %v2244_v29 = vld [vmem:[%s2831_s8 + $0x20] sm:$0xff]  }
 0x1ab   : > { %v2443_v22 = vpop.f32.mrf.mxu0 }
 0x1ac   : > { %1911 = vst [vmem:[%s2836_s11 + $0x18] sm:$0xff] %v1895_v19  ;;  %v1848_v16 = vmax.f32 %v1832_v17, 0.0  ;;  %v1810_v34 = vadd.f32 %v1762_v23, %v1375_v36  ;;  %v2444_v51 = vadd.f32 %v2443_v22, %v2442_v63  ;;  %v1777_v18 = vpop.f32.mrf.mxu1 }
 0x1ad   : > { %v2445_v12 = vpop.f32.mrf.mxu0 }
 0x1ae   : > { %v1896_v13 = vadd.f32 %v2219_v59, %v1848_v16  ;;  %v1833_v43 = vadd.f32 %v3421_v44, %v1810_v34  ;;  %v1767_v48 = vadd.f32 %v3427_v27, %v2444_v51  ;;  %v2227_v59 = vunpack.c.l.bf16 %v2244_v29  ;;  %v3483_v23 = vpop.f32.mrf.mxu1  ;;  %v3558_v51 = vld [vmem:[#allocation15_spill] sm:$0xff] }
 0x1af   : > { %v2446_v14 = vpop.f32.mrf.mxu0  ;;  %v2228_v34 = vunpack.c.h.bf16 %v2244_v29 }
 0x1b0   : > { %1912 = vst [vmem:[%s2836_s11 + $0x20] sm:$0xff] %v1896_v13  ;;  %v1849_v33 = vmax.f32 %v1833_v43, 0.0  ;;  %v1811_v7 = vadd.f32 %v1767_v48, %v1380_v58  ;;  %v2447_v24 = vadd.f32 %v2446_v14, %v2445_v12  ;;  %v2245_v13 = vld [vmem:[%s2831_s8 + $0x28] sm:$0xff]   ;;  %v3559_v43 = vld [vmem:[#allocation14_spill] sm:$0xff]  ;;  %v3560_v48 = vld [vmem:[#allocation16_spill] sm:$0xff]  ;;  %v1790_v4 = vpop.f32.mrf.mxu1 }
 0x1b1   : > { %v2448_v0 = vpop.f32.mrf.mxu0  ;;  %v2382_v60 = vadd.f32 %v3560_v48, %v3559_v43  ;;  %v3561_v14 = vld [vmem:[#allocation10_spill] sm:$0xff] }
 0x1b2   : > { %v1897_v5 = vadd.f32 %v2220_v9, %v1849_v33  ;;  %v1834_v27 = vadd.f32 %v3421_v44, %v1811_v7  ;;  %v1770_v40 = vadd.f32 %v2575_v49, %v2447_v24  ;;  %v1396_v9 = vadd.f32 %v3558_v51, %v1299_v39  ;;  %v2583_v61 = vpop.f32.mrf.mxu1 }
 0x1b3   : > { %v2449_v46 = vpop.f32.mrf.mxu0  ;;  %v2231_v24 = vunpack.c.l.bf16 %v2245_v13 }
 0x1b4   : > { %1913 = vst [vmem:[%s2836_s11 + $0x28] sm:$0xff] %v1897_v5  ;;  %v1850_v50 = vmax.f32 %v1834_v27, 0.0  ;;  %v1812_v38 = vadd.f32 %v1770_v40, %v1383_v53  ;;  %v2450_v8 = vadd.f32 %v2449_v46, %v2448_v0  ;;  %v3562_v0 = vld [vmem:[#allocation18_spill] sm:$0xff]  ;;  %v3563_v40 = vld [vmem:[#allocation11_spill] sm:$0xff] }
 0x1b5   : > { %v2451_v15 = vpop.f32.mrf.mxu0  ;;  %v1307_v42 = vadd.f32 %v2382_v60, %v3563_v40 }
 0x1b6   : > { %v1898_v55 = vadd.f32 %v2223_v56, %v1850_v50  ;;  %v1835_v11 = vadd.f32 %v3421_v44, %v1812_v38  ;;  %v1775_v49 = vadd.f32 %v2450_v8, %v1774_v28  ;;  %v1302_v28 = vadd.f32 %v2379_v21, %v3561_v14  ;;  %v3564_v50 = vld [vmem:[#allocation17_spill] sm:$0xff]  ;;  %v3565_v38 = vld [vmem:[#allocation19_spill] sm:$0xff] }
 0x1b7   : > { %v2452_v10 = vpop.f32.mrf.mxu0  ;;  %v2385_v8 = vadd.f32 %v3565_v38, %v3564_v50 }
 0x1b8   : > { %1914 = vst [vmem:[%s2836_s11 + $0x30] sm:$0xff] %v1898_v55  ;;  %v1851_v52 = vmax.f32 %v1835_v11, 0.0  ;;  %v1813_v62 = vadd.f32 %v1775_v49, %v1388_v47  ;;  %v2453_v26 = vadd.f32 %v2452_v10, %v2451_v15  ;;  %v1399_v53 = vadd.f32 %v3562_v0, %v1302_v28  ;;  %v3566_v49 = vld [vmem:[#allocation20_spill] sm:$0xff] }
 0x1b9   : > { %v2454_v63 = vpop.f32.mrf.mxu0  ;;  %v2232_v55 = vunpack.c.h.bf16 %v2245_v13  ;;  %v1404_v29 = vadd.f32 %v3566_v49, %v1307_v42 }
 0x1ba   : > { %v1899_v36 = vadd.f32 %v2224_v35, %v1851_v52  ;;  %v1836_v19 = vadd.f32 %v3421_v44, %v1813_v62  ;;  %v1778_v17 = vadd.f32 %v2453_v26, %v1777_v18  ;;  %v2246_v18 = vld [vmem:[%s2831_s8 + $0x30] sm:$0xff]   ;;  %v1793_v52 = vpop.f32.mrf.mxu1  ;;  %v3567_v62 = vld [vmem:[#allocation12_spill] sm:$0xff] }
 0x1bb   : > { %v2455_v1 = vpop.f32.mrf.mxu0  ;;  %v1310_v26 = vadd.f32 %v2385_v8, %v3567_v62 }
 0x1bc   : > { %1915 = vst [vmem:[%s2836_s11 + $0x38] sm:$0xff] %v1899_v36  ;;  %v1852_v22 = vmax.f32 %v1836_v19, 0.0  ;;  %v1814_v41 = vadd.f32 %v1778_v17, %v1391_v30  ;;  %v2456_v16 = vadd.f32 %v2455_v1, %v2454_v63  ;;  %v2235_v36 = vunpack.c.l.bf16 %v2246_v18  ;;  %v3568_v17 = vld [vmem:[#allocation21_spill] sm:$0xff] }
 0x1bd   : > { %v2457_v45 = vpop.f32.mrf.mxu0  ;;  %v1407_v39 = vadd.f32 %v3568_v17, %v1310_v26 }
 0x1be   : > { %v1900_v12 = vadd.f32 %v2227_v59, %v1852_v22  ;;  %v1837_v58 = vadd.f32 %v3421_v44, %v1814_v41  ;;  %v1783_v25 = vadd.f32 %v3454_v2, %v2456_v16 }
 0x1bf   : > { %v2458_v32 = vpop.f32.mrf.mxu0 }
 0x1c0   : > { %1916 = vst [vmem:[%s2836_s11 + $0x40] sm:$0xff] %v1900_v12  ;;  %v1853_v37 = vmax.f32 %v1837_v58, 0.0  ;;  %v1815_v33 = vadd.f32 %v1783_v25, %v1396_v9  ;;  %v2459_v7 = vadd.f32 %v2458_v32, %v2457_v45  ;;  %v2236_v12 = vunpack.c.h.bf16 %v2246_v18  ;;  %v2247_v25 = vld [vmem:[%s2831_s8 + $0x38] sm:$0xff]  }
 0x1c1   : > { %v2460_v56 = vpop.f32.mrf.mxu0  ;;  %v2239_v14 = vunpack.c.l.bf16 %v2247_v25 }
 0x1c2   : > { %v1901_v5 = vadd.f32 %v2228_v34, %v1853_v37  ;;  %v1838_v2 = vadd.f32 %v3421_v44, %v1815_v33  ;;  %v1786_v27 = vadd.f32 %v2579_v31, %v2459_v7 }
 0x1c3   : > { %v2461_v46 = vpop.f32.mrf.mxu0 }
 0x1c4   : > { %1917 = vst [vmem:[%s2836_s11 + $0x48] sm:$0xff] %v1901_v5  ;;  %v1854_v35 = vmax.f32 %v1838_v2, 0.0  ;;  %v1816_v15 = vadd.f32 %v1786_v27, %v1399_v53  ;;  %v2462_v47 = vadd.f32 %v2461_v46, %v2460_v56 }
 0x1c5   : > { %v2463_v11 = vpop.f32.mrf.mxu0 }
 0x1c6   : > { %v1902_v3 = vadd.f32 %v2231_v24, %v1854_v35  ;;  %v1839_v10 = vadd.f32 %v3421_v44, %v1816_v15  ;;  %v1791_v31 = vadd.f32 %v2462_v47, %v1790_v4  ;;  %v2240_v24 = vunpack.c.h.bf16 %v2247_v25 }
 0x1c7   : > { %v2464_v54 = vpop.f32.mrf.mxu0 }
 0x1c8   : > { %1918 = vst [vmem:[%s2836_s11 + $0x50] sm:$0xff] %v1902_v3  ;;  %v1855_v59 = vmax.f32 %v1839_v10, 0.0  ;;  %v1817_v63 = vadd.f32 %v1791_v31, %v1404_v29  ;;  %v2465_v30 = vadd.f32 %v2464_v54, %v2463_v11 }
 0x1c9   : > { %v2466_v19 = vpop.f32.mrf.mxu0 }
 0x1ca   : > { %v1903_v1 = vadd.f32 %v2232_v55, %v1855_v59  ;;  %v1840_v57 = vadd.f32 %v3421_v44, %v1817_v63  ;;  %v1794_v21 = vadd.f32 %v2465_v30, %v1793_v52 }
 0x1cb   : > { %v2467_v22 = vpop.f32.mrf.mxu0 }
 0x1cc   : > { %1919 = vst [vmem:[%s2836_s11 + $0x58] sm:$0xff] %v1903_v1  ;;  %v1856_v41 = vmax.f32 %v1840_v57, 0.0  ;;  %v1818_v16 = vadd.f32 %v1794_v21, %v1407_v39  ;;  %v2468_v34 = vadd.f32 %v2467_v22, %v2466_v19 }
 0x1cd   : > { %v2469_v45 = vpop.f32.mrf.mxu0 }
 0x1ce   : > { %v1904_v51 = vadd.f32 %v2235_v36, %v1856_v41  ;;  %v1841_v9 = vadd.f32 %v3421_v44, %v1818_v16  ;;  %v1799_v58 = vadd.f32 %v3483_v23, %v2468_v34 }
 0x1cf   : > { %v2470_v13 = vpop.f32.mrf.mxu0 }
 0x1d0   : > { %1920 = vst [vmem:[%s2836_s11 + $0x60] sm:$0xff] %v1904_v51  ;;  %v1857_v43 = vmax.f32 %v1841_v9, 0.0  ;;  %v1819_v48 = vadd.f32 %v1799_v58, %v3409_v6  ;;  %v2471_v60 = vadd.f32 %v2470_v13, %v2469_v45 }
 0x1d2   : > { %v1905_v32 = vadd.f32 %v2236_v12, %v1857_v43  ;;  %v1842_v4 = vadd.f32 %v3421_v44, %v1819_v48  ;;  %v1802_v28 = vadd.f32 %v2583_v61, %v2471_v60 }
 0x1d4   : > { %1921 = vst [vmem:[%s2836_s11 + $0x68] sm:$0xff] %v1905_v32  ;;  %v1858_v37 = vmax.f32 %v1842_v4, 0.0  ;;  %v1820_v33 = vadd.f32 %v1802_v28, %v3414_v20 }
 0x1d6   : > { %v1906_v7 = vadd.f32 %v2239_v14, %v1858_v37  ;;  %v1843_v23 = vadd.f32 %v3421_v44, %v1820_v33 }
 0x1d8   : > { %1922 = vst [vmem:[%s2836_s11 + $0x70] sm:$0xff] %v1906_v7  ;;  %v1859_v56 = vmax.f32 %v1843_v23, 0.0 }
 0x1da   : > { %v1907_v0 = vadd.f32 %v2240_v24, %v1859_v56 }
 0x1dc   : > { %1923 = vst [vmem:[%s2836_s11 + $0x78] sm:$0xff] %v1907_v0 }
 0x1dd PF: > { %s14_s19 = sadd.s32 1, %s2762_s19   ;;  %s3569_s15 = smov %s2754_s17 }
 0x1de   : > { %p11_p2 = scmp.ge.s32.totalorder %s14_s19, 6   ;;  %s3570_s16 = smov %s2758_s18 }
 0x1df   : > { %s3571_s17 = smov %s3574_s20  ;;  %s3572_s18 = smov %s3578_s21 }
 0x1e0   :  { %13 = sbr.rel (!%p11_p2) target bundleno = 3 (0x3), region = 224 }
 0x1e5   :  { %1956 = vsyncmov [#allocation3] }
 0x1e8   :  { %s1957_s8 = vpop.sfrf %1956 }
 0x1e9   :  { %p2201_p3 = scmp.ne.s32.totalorder %s1957_s8, 0 }
 0x1eb   :  { %1961 = shalt.err (%p2201_p3)  }
 0x1ec   :  { %1963 = vsyncmov [#allocation3 + $0x1] }
 0x1ef   :  { %s1964_s11 = vpop.sfrf %1963 }
 0x1f0   :  { %p2202_p4 = scmp.ne.s32.totalorder %s1964_s11, 0 }
 0x1f2   :  { %1968 = shalt.err (%p2202_p4)  }
 0x1f3   :  { %1970 = vsyncmov [#allocation3 + $0x2] }
 0x1f6   :  { %s1971_s7 = vpop.sfrf %1970 }
 0x1f7   :  { %p2203_p5 = scmp.ne.s32.totalorder %s1971_s7, 0 }
 0x1f9   :  { %1975 = shalt.err (%p2203_p5)  }

</bundles_post_ra>
